<compile_context>
chip_gen: v6e
topology: v6e:2x2x1
jax: 0.10.0
libtpu: 0.0.40
codegen_flags: <defaults>
</compile_context>

<pallas_src>
import functools

import jax
import jax.numpy as jnp
from jax.experimental import pallas as pl
from jax.experimental.pallas import tpu as pltpu


def _round_up(x, m):
    return ((x + m - 1) // m) * m


def _pick_chunk(qr):
    """Largest conv chunk (<=128 rows, multiple of 8) dividing qr; else pad qr."""
    for c in range(128, 7, -8):
        if qr % c == 0:
            return c, qr
    c = 96
    return c, _round_up(qr, c)


# --------------------------------------------------------------------------------------
# Fused conditional conv-net kernels
#   net(x, t, label) = conv3x3(SiLU(conv3x3(x) + b1 + cond(t, label))) + b2  (zero pad)
# Row layout: padded width Wp = W + 2, conv output row q = r*Wp + c (c in [0, W) valid).
# --------------------------------------------------------------------------------------


def _forward_kernel(x9_ref, cond_ref, cmask_ref, w1_ref, w2_ref, b2_ref,
                    o_ref, hbuf, *, Bt, QRp, Wp, CH, s0, Lh):
    NH = w1_ref.shape[-1]
    stage0 = s0 + Wp + 1                      # 16-aligned start of the staged interior
    nck = QRp // CH

    # Zero only the hidden-slab halo rows; the interior is fully re-staged per image.
    hbuf[0:stage0, :] = jnp.zeros((stage0, NH), hbuf.dtype)
    if Lh > stage0 + QRp:
        hbuf[stage0 + QRp:Lh, :] = jnp.zeros((Lh - stage0 - QRp, NH), hbuf.dtype)

    w1 = w1_ref[...]                          # [K, NH] bf16, tiny -> kept in vregs
    b2 = b2_ref[...]                          # [1, CO] f32
    for b in range(Bt):                       # static unrolled image loop
        cond = cond_ref[b, 0:1, :]            # [1, NH] f32 (conv1 bias folded in)

        # ---- conv1: one folded K=9*C dot per chunk, + cond, SiLU, stage bf16 -------
        for k in range(nck):
            q0 = k * CH
            pre = jnp.dot(x9_ref[b, q0:q0 + CH, :], w1,
                          preferred_element_type=jnp.float32) + cond
            h = pre * jax.nn.sigmoid(pre)                       # SiLU (f32 / EUP)
            h = h * cmask_ref[q0:q0 + CH, :]                    # zero pad-column rows
            hbuf[stage0 + q0:stage0 + q0 + CH, :] = h.astype(hbuf.dtype)

        # ---- conv2: 9 row-shifted slab taps, f32 accumulation, bf16 store ----------
        for k in range(nck):
            q0 = k * CH
            acc = None
            for t in range(9):
                off = (t // 3) * Wp + (t % 3)
                d = jnp.dot(hbuf[s0 + q0 + off:s0 + q0 + off + CH, :], w2_ref[t],
                            preferred_element_type=jnp.float32)
                acc = d if acc is None else acc + d
            o_ref[b, q0:q0 + CH, :] = (acc + b2).astype(o_ref.dtype)


def _cfg_kernel(g_ref, x9_ref, cond_ref, cmask_ref, w1_ref, w2_ref, b2_ref,
                o_ref, hbuf_c, hbuf_u, *, Bt, QRp, Wp, CH, s0, Lh):
    """Cond + uncond pass per image (conv1 shared), CFG combine in the epilogue."""
    NH = w1_ref.shape[-1]
    stage0 = s0 + Wp + 1
    nck = QRp // CH
    g = g_ref[0]                              # SMEM scalar guidance strength

    for hb in (hbuf_c, hbuf_u):
        hb[0:stage0, :] = jnp.zeros((stage0, NH), hb.dtype)
        if Lh > stage0 + QRp:
            hb[stage0 + QRp:Lh, :] = jnp.zeros((Lh - stage0 - QRp, NH), hb.dtype)

    w1 = w1_ref[...]
    b2 = b2_ref[...]
    for b in range(Bt):
        cond_c = cond_ref[b, 0:1, :]
        cond_u = cond_ref[b, 1:2, :]

        # ---- conv1 once per image; pre-activation shared by both branches ----------
        for k in range(nck):
            q0 = k * CH
            pre = jnp.dot(x9_ref[b, q0:q0 + CH, :], w1,
                          preferred_element_type=jnp.float32)
            m = cmask_ref[q0:q0 + CH, :]
            hc = pre + cond_c
            hc = hc * jax.nn.sigmoid(hc) * m
            hbuf_c[stage0 + q0:stage0 + q0 + CH, :] = hc.astype(hbuf_c.dtype)
            hu = pre + cond_u
            hu = hu * jax.nn.sigmoid(hu) * m
            hbuf_u[stage0 + q0:stage0 + q0 + CH, :] = hu.astype(hbuf_u.dtype)

        # ---- conv2 (cond / uncond share each tap's weight load) + CFG combine ------
        for k in range(nck):
            q0 = k * CH
            acc_c = None
            acc_u = None
            for t in range(9):
                off = (t // 3) * Wp + (t % 3)
                w2t = w2_ref[t]
                dc = jnp.dot(hbuf_c[s0 + q0 + off:s0 + q0 + off + CH, :], w2t,
                             preferred_element_type=jnp.float32)
                du = jnp.dot(hbuf_u[s0 + q0 + off:s0 + q0 + off + CH, :], w2t,
                             preferred_element_type=jnp.float32)
                acc_c = dc if acc_c is None else acc_c + dc
                acc_u = du if acc_u is None else acc_u + du
            out = (1.0 + g) * acc_c - g * acc_u + b2
            o_ref[b, q0:q0 + CH, :] = out.astype(o_ref.dtype)


def _run_fused_net(x9, cond, cmask, w1, w2, b2, *, Bt, Wp, CH, s0, Lh, guidance=None):
    Bpad, QRp, K = x9.shape
    NH = w1.shape[-1]
    CO = w2.shape[-1]
    n_steps = Bpad // Bt

    kw = dict(Bt=Bt, QRp=QRp, Wp=Wp, CH=CH, s0=s0, Lh=Lh)
    in_specs = [
        pl.BlockSpec((Bt, QRp, K), lambda b: (b, 0, 0)),         # im2col'd image taps
        None,                                                    # conditioning (below)
        pl.BlockSpec((QRp, 1), lambda b: (0, 0)),                # pad-column mask
        pl.BlockSpec((K, NH), lambda b: (0, 0)),                 # folded conv1 weight
        pl.BlockSpec((9, NH, CO), lambda b: (0, 0, 0)),          # conv2 tap weights
        pl.BlockSpec((1, CO), lambda b: (0, 0)),                 # conv2 bias
    ]
    out_specs = pl.BlockSpec((Bt, QRp, CO), lambda b: (b, 0, 0))
    out_shape = jax.ShapeDtypeStruct((Bpad, QRp, CO), jnp.bfloat16)
    compiler_params = pltpu.CompilerParams(
        dimension_semantics=("parallel",),      # megacore / v7x dual-TC batch split
        vmem_limit_bytes=32 * 1024 * 1024)

    if guidance is None:
        in_specs[1] = pl.BlockSpec((Bt, 1, NH), lambda b: (b, 0, 0))
        return pl.pallas_call(
            functools.partial(_forward_kernel, **kw),
            out_shape=out_shape, grid=(n_steps,),
            in_specs=in_specs, out_specs=out_specs,
            scratch_shapes=[pltpu.VMEM((Lh, NH), jnp.bfloat16)],
            compiler_params=compiler_params,
        )(x9, cond, cmask, w1, w2, b2)

    in_specs[1] = pl.BlockSpec((Bt, 2, NH), lambda b: (b, 0, 0))
    in_specs = [pl.BlockSpec(memory_space=pltpu.MemorySpace.SMEM)] + in_specs
    return pl.pallas_call(
        functools.partial(_cfg_kernel, **kw),
        out_shape=out_shape, grid=(n_steps,),
        in_specs=in_specs, out_specs=out_specs,
        scratch_shapes=[pltpu.VMEM((Lh, NH), jnp.bfloat16),
                        pltpu.VMEM((Lh, NH), jnp.bfloat16)],
        compiler_params=compiler_params,
    )(guidance, x9, cond, cmask, w1, w2, b2)


# --------------------------------------------------------------------------------------
# JAX glue + module wrapper
# --------------------------------------------------------------------------------------


def sinusoidal_embedding(t, dim):
    half = dim // 2
    freqs = jnp.exp(-jnp.log(10000.0) * jnp.arange(half, dtype=jnp.float32) / half)
    args = t.astype(jnp.float32)[:, None] * freqs[None, :]
    return jnp.concatenate([jnp.sin(args), jnp.cos(args)], axis=-1)     # [B, dim]


class CFGDiffusionPallas:
    def __init__(self, img_size, min_lamb=-20.0, max_lamb=20.0, interpol_coeff=0.3,
                 uncond_prob=0.1, guidance_str=0.1, image_channels=3,
                 n_diffusion_steps=256, hidden=128, emb_dim=32, num_classes=10,
                 images_per_step=8, seed=42):
        self.img_size = img_size
        self.min_lambda = min_lamb
        self.max_lambda = max_lamb
        self.interpol_coeff = interpol_coeff
        self.uncond_prob = uncond_prob
        self.guidance_str = guidance_str
        self.image_channels = image_channels
        self.n_diffusion_steps = n_diffusion_steps
        self.hidden = hidden
        self.emb_dim = emb_dim
        self.num_classes = num_classes
        self.images_per_step = images_per_step

        # Buffers mirroring the reference module.
        self.diffusion_step = jnp.linspace(min_lamb, max_lamb, n_diffusion_steps)
        self.b_buf = jnp.arctan(jnp.exp(jnp.asarray(-max_lamb / 2.0, jnp.float32)))
        self.a_buf = jnp.arctan(jnp.exp(jnp.asarray(-min_lamb / 2.0, jnp.float32))) - self.b_buf

        # Kernel geometry.
        W = img_size
        C = image_channels
        self.Wp = W + 2                              # padded row width (zero cols L/R)
        qr = W * self.Wp                             # conv-output rows/image (incl pad cols)
        self.QR = qr
        self.CH, self.QRp = _pick_chunk(qr)          # chunk rows / padded row count
        self.K = _round_up(9 * C, 8)                 # folded conv1 contraction depth
        self.cout_pad = _round_up(C, 128)            # lane-dense output width
        # Hidden slab: padded hidden image starts at row s0 so the staged interior
        # store begins on a 16-row (bf16 sublane) boundary.
        self.s0 = _round_up(self.Wp + 1, 16) - (self.Wp + 1)
        stage0 = self.s0 + self.Wp + 1
        self.Lh = _round_up(max(stage0 + self.QRp,
                                self.s0 + self.QRp + 2 * self.Wp + 2), 16)

        # Validity mask over output rows: 0 for pad columns / tail-pad rows.
        q = jnp.arange(self.QRp)
        col = q % self.Wp
        self.cmask = ((col < W) & (q < qr)).astype(jnp.float32).reshape(self.QRp, 1)

        # Deterministic synthetic parameters for the conditional conv-net.
        # Weights bf16 (MXU inputs), biases / conditioning f32 (VPU/EUP epilogue).
        k = jax.random.split(jax.random.PRNGKey(seed), 4)
        w1 = 0.1 * jax.random.normal(k[0], (9, C, hidden), jnp.float32)
        w1 = w1.reshape(9 * C, hidden)                       # tap-major, matches im2col
        self.w1 = jnp.pad(w1, ((0, self.K - 9 * C), (0, 0))).astype(jnp.bfloat16)
        self.b1 = jnp.zeros((1, hidden), jnp.float32)        # folded into conditioning
        w2 = 0.1 * jax.random.normal(k[1], (9, hidden, C), jnp.float32)
        self.w2 = jnp.pad(w2, ((0, 0), (0, 0), (0, self.cout_pad - C))).astype(jnp.bfloat16)
        self.b2 = jnp.zeros((1, self.cout_pad), jnp.float32)
        self.w_t = 0.1 * jax.random.normal(k[2], (emb_dim, hidden), jnp.float32)
        self.b_t = jnp.zeros((hidden,), jnp.float32)
        # Row `num_classes` is the null / unconditional embedding.
        self.label_emb = 0.1 * jax.random.normal(
            k[3], (num_classes + 1, hidden), jnp.float32)

    # ------------------------------ plain-JAX glue ---------------------------------
    def _conditioning(self, diffusion_step, label, batch_size):
        t_emb = sinusoidal_embedding(diffusion_step, self.emb_dim)      # [B, E]
        cond = t_emb @ self.w_t + self.b_t                              # [B, hidden]
        if label is None:
            idx = jnp.full((batch_size,), self.num_classes, jnp.int32)
        else:
            idx = label.astype(jnp.int32)
        return cond + self.label_emb[idx] + self.b1                     # conv1 bias folded

    def _build_tap_input(self, noisy_image):
        """Tap-concatenated bf16 im2col slab [B, QRp, K] (layout plumbing only)."""
        B, C, H, W = noisy_image.shape
        x = jnp.transpose(noisy_image, (0, 2, 3, 1)).astype(jnp.float32)   # NHWC
        xp = jnp.pad(x, ((0, 0), (1, 1), (1, 3), (0, 0)))                  # zero halo
        taps = [xp[:, di:di + H, dj:dj + self.Wp, :]
                for di in range(3) for dj in range(3)]
        x9 = jnp.concatenate(taps, axis=-1).reshape(B, H * self.Wp, 9 * C)
        x9 = jnp.pad(x9, ((0, 0), (0, self.QRp - H * self.Wp), (0, self.K - 9 * C)))
        return x9.astype(jnp.bfloat16)

    def _batch_tile(self, B):
        # TODO(synk): for v7x prefer an even number of grid steps so both TCs stay busy.
        Bt = min(self.images_per_step, B)
        return Bt, _round_up(B, Bt)

    @staticmethod
    def _pad_batch(arr, Bpad):
        B = arr.shape[0]
        if Bpad == B:
            return arr
        return jnp.pad(arr, ((0, Bpad - B),) + ((0, 0),) * (arr.ndim - 1))

    def _unpack_output(self, out_pad, B, C, H, W):
        out = out_pad[:B, :H * self.Wp, :C].astype(jnp.float32)
        out = out.reshape(B, H, self.Wp, C)[:, :, :W, :]
        return jnp.transpose(out, (0, 3, 1, 2))                            # NCHW

    # ------------------------------ forward = net(...) ------------------------------
    def forward(self, noisy_image, diffusion_step, label):
        B, C, H, W = noisy_image.shape
        assert C == self.image_channels and H == self.img_size and W == self.img_size
        Bt, Bpad = self._batch_tile(B)
        x9 = self._pad_batch(self._build_tap_input(noisy_image), Bpad)
        cond = self._conditioning(diffusion_step, label, B).reshape(B, 1, self.hidden)
        cond = self._pad_batch(cond, Bpad)
        out = _run_fused_net(x9, cond, self.cmask, self.w1, self.w2, self.b2,
                             Bt=Bt, Wp=self.Wp, CH=self.CH, s0=self.s0, Lh=self.Lh)
        return self._unpack_output(out, B, C, H, W)

    __call__ = forward

    # ---- classifier-free guidance: cond + uncond + combine fused in one pallas_call ----
    def predict_noise(self, noisy_image, diffusion_step_idx, label):
        B, C, H, W = noisy_image.shape
        Bt, Bpad = self._batch_tile(B)
        step = jnp.full((B,), diffusion_step_idx, dtype=jnp.int32)
        cond_c = self._conditioning(step, label, B)
        cond_u = self._conditioning(step, None, B)
        cond2 = self._pad_batch(jnp.stack([cond_c, cond_u], axis=1), Bpad)  # [Bp,2,NH]
        x9 = self._pad_batch(self._build_tap_input(noisy_image), Bpad)
        g = jnp.asarray([self.guidance_str], jnp.float32)    # runtime SMEM scalar
        out = _run_fused_net(x9, cond2, self.cmask, self.w1, self.w2, self.b2,
                             Bt=Bt, Wp=self.Wp, CH=self.CH, s0=self.s0, Lh=self.Lh,
                             guidance=g)
        return self._unpack_output(out, B, C, H, W)

    # TODO(synk): sample_noise / sample_lambda / get_loss / the denoising loop are
    # host-side stochastic control flow and are not kernelized here.


if __name__ == "__main__":
    key = jax.random.PRNGKey(0)
    B, C, H = 2, 3, 16

    k_img, k_lab = jax.random.split(key)
    noisy_image = jax.random.normal(k_img, (B, C, H, H), jnp.float32)
    label = jax.random.randint(k_lab, (B,), 0, 10, dtype=jnp.int32)
    diffusion_step = jnp.full((B,), 10, dtype=jnp.int32)

    model = CFGDiffusionPallas(img_size=H, image_channels=C)

    # forward pass: one fused Pallas kernel per batch tile (conv1 + cond + SiLU + conv2)
    out = jax.block_until_ready(model.forward(noisy_image, diffusion_step, label))
    assert out.shape == (B, C, H, H) and out.dtype == jnp.float32

    # classifier-free guidance: cond + uncond + CFG combine fused in one Pallas call
    pred = jax.block_until_ready(
        model.predict_noise(noisy_image, diffusion_step_idx=10, label=label))
    assert pred.shape == (B, C, H, H)

    # cross-check the fused CFG path against two separate forward passes
    pred_cond = model.forward(noisy_image, diffusion_step, label)
    pred_uncond = model.forward(noisy_image, diffusion_step, None)
    ref = (1.0 + model.guidance_str) * pred_cond - model.guidance_str * pred_uncond
    err = float(jnp.max(jnp.abs(pred - ref)))
    # bf16 kernel output: rounding happens before vs after the CFG combine in the two
    # paths, so allow a few bf16 ulps of slack.
    assert jnp.allclose(pred, ref, atol=2e-2, rtol=2e-2), err

    print("KERNEL_OK")
</pallas_src>

<mosaic_0001>
module attributes {stable_mosaic.version = 11 : i64} {
  func.func @_forward_kernel(%arg0: i32, %arg1: memref<2x288x32xbf16, #tpu.memory_space<vmem>>, %arg2: memref<2x1x128xf32, #tpu.memory_space<vmem>>, %arg3: memref<288x1xf32, #tpu.memory_space<vmem>>, %arg4: memref<32x128xbf16, #tpu.memory_space<vmem>>, %arg5: memref<9x128x128xbf16, #tpu.memory_space<vmem>>, %arg6: memref<1x128xf32, #tpu.memory_space<vmem>>, %arg7: memref<2x288x128xbf16, #tpu.memory_space<vmem>>, %arg8: memref<352x128xbf16, #tpu.memory_space<vmem>>) attributes {dimension_semantics = [#tpu.dimension_semantics<parallel>], iteration_bounds = array<i64: 1>, scalar_prefetch = 0 : i64, scratch_operands = 1 : i64, tpu.core_type = #tpu.core_type<tc>, window_params = [{transform_indices = @transform_0, window_bounds = array<i64: 2, 288, 32>}, {transform_indices = @transform_1, window_bounds = array<i64: 2, 1, 128>}, {pipeline_mode = #tpu.pipeline_mode<synchronous>, transform_indices = @transform_2, window_bounds = array<i64: 288, 1>}, {pipeline_mode = #tpu.pipeline_mode<synchronous>, transform_indices = @transform_3, window_bounds = array<i64: 32, 128>}, {pipeline_mode = #tpu.pipeline_mode<synchronous>, transform_indices = @transform_4, window_bounds = array<i64: 9, 128, 128>}, {pipeline_mode = #tpu.pipeline_mode<synchronous>, transform_indices = @transform_5, window_bounds = array<i64: 1, 128>}, {transform_indices = @transform_6, window_bounds = array<i64: 2, 288, 128>}]} {
    %cst = arith.constant 0.000000e+00 : bf16
    %0 = vector.broadcast %cst : bf16 to vector<32x128xbf16>
    %c0 = arith.constant 0 : index
    %c0_0 = arith.constant 0 : index
    %1 = vector.load %arg8[%c0, %c0_0] : memref<352x128xbf16, #tpu.memory_space<vmem>>, vector<32x128xbf16>
    tpu.vector_store %arg8[%c0, %c0_0], %0 {strides = array<i32>} : memref<352x128xbf16, #tpu.memory_space<vmem>>, vector<32x128xbf16>,
    %cst_1 = arith.constant 0.000000e+00 : bf16
    %2 = vector.broadcast %cst_1 : bf16 to vector<32x128xbf16>
    %c320 = arith.constant 320 : index
    %c0_2 = arith.constant 0 : index
    %3 = vector.load %arg8[%c320, %c0_2] : memref<352x128xbf16, #tpu.memory_space<vmem>>, vector<32x128xbf16>
    tpu.vector_store %arg8[%c320, %c0_2], %2 {strides = array<i32>} : memref<352x128xbf16, #tpu.memory_space<vmem>>, vector<32x128xbf16>,
    %c0_3 = arith.constant 0 : index
    %c0_4 = arith.constant 0 : index
    %4 = vector.load %arg4[%c0_3, %c0_4] : memref<32x128xbf16, #tpu.memory_space<vmem>>, vector<32x128xbf16>
    %c0_5 = arith.constant 0 : index
    %c0_6 = arith.constant 0 : index
    %5 = vector.load %arg6[%c0_5, %c0_6] : memref<1x128xf32, #tpu.memory_space<vmem>>, vector<1x128xf32>
    %c0_7 = arith.constant 0 : index
    %c0_8 = arith.constant 0 : index
    %c0_9 = arith.constant 0 : index
    %6 = vector.load %arg2[%c0_7, %c0_8, %c0_9] : memref<2x1x128xf32, #tpu.memory_space<vmem>>, vector<1x1x128xf32>
    %7 = vector.shape_cast %6 : vector<1x1x128xf32> to vector<1x128xf32>
    %c0_10 = arith.constant 0 : index
    %c0_11 = arith.constant 0 : index
    %c0_12 = arith.constant 0 : index
    %8 = vector.load %arg1[%c0_10, %c0_11, %c0_12] : memref<2x288x32xbf16, #tpu.memory_space<vmem>>, vector<1x96x32xbf16>
    %9 = vector.shape_cast %8 : vector<1x96x32xbf16> to vector<96x32xbf16>
    %cst_13 = arith.constant dense<0.000000e+00> : vector<96x128xf32>
    %10 = tpu.matmul %9, %4, %cst_13 {dimension_numbers = #tpu.dot_dimension_numbers<[1], [0], [0], [1], [0, 0, 1, 1], [], []>} : vector<96x32xbf16>, vector<32x128xbf16>, vector<96x128xf32> -> vector<96x128xf32>
    %11 = vector.broadcast %7 : vector<1x128xf32> to vector<96x128xf32>
    %12 = arith.addf %10, %11 : vector<96x128xf32>
    %13 = arith.negf %12 : vector<96x128xf32>
    %14 = math.exp %13 : vector<96x128xf32>
    %cst_14 = arith.constant 1.000000e+00 : f32
    %15 = vector.broadcast %cst_14 : f32 to vector<96x128xf32>
    %16 = arith.addf %15, %14 : vector<96x128xf32>
    %17 = arith.divf %15, %16 : vector<96x128xf32>
    %18 = arith.mulf %12, %17 : vector<96x128xf32>
    %c0_15 = arith.constant 0 : index
    %c0_16 = arith.constant 0 : index
    %19 = vector.load %arg3[%c0_15, %c0_16] : memref<288x1xf32, #tpu.memory_space<vmem>>, vector<96x1xf32>
    %20 = vector.broadcast %19 : vector<96x1xf32> to vector<96x128xf32>
    %21 = arith.mulf %18, %20 : vector<96x128xf32>
    %22 = arith.truncf %21 : vector<96x128xf32> to vector<96x128xbf16>
    %c32 = arith.constant 32 : index
    %c0_17 = arith.constant 0 : index
    %23 = vector.load %arg8[%c32, %c0_17] : memref<352x128xbf16, #tpu.memory_space<vmem>>, vector<96x128xbf16>
    tpu.vector_store %arg8[%c32, %c0_17], %22 {strides = array<i32>} : memref<352x128xbf16, #tpu.memory_space<vmem>>, vector<96x128xbf16>,
    %c0_18 = arith.constant 0 : index
    %c96 = arith.constant 96 : index
    %c0_19 = arith.constant 0 : index
    %24 = vector.load %arg1[%c0_18, %c96, %c0_19] : memref<2x288x32xbf16, #tpu.memory_space<vmem>>, vector<1x96x32xbf16>
    %25 = vector.shape_cast %24 : vector<1x96x32xbf16> to vector<96x32xbf16>
    %cst_20 = arith.constant dense<0.000000e+00> : vector<96x128xf32>
    %26 = tpu.matmul %25, %4, %cst_20 {dimension_numbers = #tpu.dot_dimension_numbers<[1], [0], [0], [1], [0, 0, 1, 1], [], []>} : vector<96x32xbf16>, vector<32x128xbf16>, vector<96x128xf32> -> vector<96x128xf32>
    %27 = vector.broadcast %7 : vector<1x128xf32> to vector<96x128xf32>
    %28 = arith.addf %26, %27 : vector<96x128xf32>
    %29 = arith.negf %28 : vector<96x128xf32>
    %30 = math.exp %29 : vector<96x128xf32>
    %cst_21 = arith.constant 1.000000e+00 : f32
    %31 = vector.broadcast %cst_21 : f32 to vector<96x128xf32>
    %32 = arith.addf %31, %30 : vector<96x128xf32>
    %33 = arith.divf %31, %32 : vector<96x128xf32>
    %34 = arith.mulf %28, %33 : vector<96x128xf32>
    %c96_22 = arith.constant 96 : index
    %c0_23 = arith.constant 0 : index
    %35 = vector.load %arg3[%c96_22, %c0_23] : memref<288x1xf32, #tpu.memory_space<vmem>>, vector<96x1xf32>
    %36 = vector.broadcast %35 : vector<96x1xf32> to vector<96x128xf32>
    %37 = arith.mulf %34, %36 : vector<96x128xf32>
    %38 = arith.truncf %37 : vector<96x128xf32> to vector<96x128xbf16>
    %c128 = arith.constant 128 : index
    %c0_24 = arith.constant 0 : index
    %39 = vector.load %arg8[%c128, %c0_24] : memref<352x128xbf16, #tpu.memory_space<vmem>>, vector<96x128xbf16>
    tpu.vector_store %arg8[%c128, %c0_24], %38 {strides = array<i32>} : memref<352x128xbf16, #tpu.memory_space<vmem>>, vector<96x128xbf16>,
    %c0_25 = arith.constant 0 : index
    %c192 = arith.constant 192 : index
    %c0_26 = arith.constant 0 : index
    %40 = vector.load %arg1[%c0_25, %c192, %c0_26] : memref<2x288x32xbf16, #tpu.memory_space<vmem>>, vector<1x96x32xbf16>
    %41 = vector.shape_cast %40 : vector<1x96x32xbf16> to vector<96x32xbf16>
    %cst_27 = arith.constant dense<0.000000e+00> : vector<96x128xf32>
    %42 = tpu.matmul %41, %4, %cst_27 {dimension_numbers = #tpu.dot_dimension_numbers<[1], [0], [0], [1], [0, 0, 1, 1], [], []>} : vector<96x32xbf16>, vector<32x128xbf16>, vector<96x128xf32> -> vector<96x128xf32>
    %43 = vector.broadcast %7 : vector<1x128xf32> to vector<96x128xf32>
    %44 = arith.addf %42, %43 : vector<96x128xf32>
    %45 = arith.negf %44 : vector<96x128xf32>
    %46 = math.exp %45 : vector<96x128xf32>
    %cst_28 = arith.constant 1.000000e+00 : f32
    %47 = vector.broadcast %cst_28 : f32 to vector<96x128xf32>
    %48 = arith.addf %47, %46 : vector<96x128xf32>
    %49 = arith.divf %47, %48 : vector<96x128xf32>
    %50 = arith.mulf %44, %49 : vector<96x128xf32>
    %c192_29 = arith.constant 192 : index
    %c0_30 = arith.constant 0 : index
    %51 = vector.load %arg3[%c192_29, %c0_30] : memref<288x1xf32, #tpu.memory_space<vmem>>, vector<96x1xf32>
    %52 = vector.broadcast %51 : vector<96x1xf32> to vector<96x128xf32>
    %53 = arith.mulf %50, %52 : vector<96x128xf32>
    %54 = arith.truncf %53 : vector<96x128xf32> to vector<96x128xbf16>
    %c224 = arith.constant 224 : index
    %c0_31 = arith.constant 0 : index
    %55 = vector.load %arg8[%c224, %c0_31] : memref<352x128xbf16, #tpu.memory_space<vmem>>, vector<96x128xbf16>
    tpu.vector_store %arg8[%c224, %c0_31], %54 {strides = array<i32>} : memref<352x128xbf16, #tpu.memory_space<vmem>>, vector<96x128xbf16>,
    %c13 = arith.constant 13 : index
    %c0_32 = arith.constant 0 : index
    %56 = vector.load %arg8[%c13, %c0_32] : memref<352x128xbf16, #tpu.memory_space<vmem>>, vector<96x128xbf16>
    %c0_33 = arith.constant 0 : index
    %c0_34 = arith.constant 0 : index
    %c0_35 = arith.constant 0 : index
    %57 = vector.load %arg5[%c0_33, %c0_34, %c0_35] : memref<9x128x128xbf16, #tpu.memory_space<vmem>>, vector<1x128x128xbf16>
    %58 = vector.shape_cast %57 : vector<1x128x128xbf16> to vector<128x128xbf16>
    %cst_36 = arith.constant dense<0.000000e+00> : vector<96x128xf32>
    %59 = tpu.matmul %56, %58, %cst_36 {dimension_numbers = #tpu.dot_dimension_numbers<[1], [0], [0], [1], [0, 0, 1, 1], [], []>} : vector<96x128xbf16>, vector<128x128xbf16>, vector<96x128xf32> -> vector<96x128xf32>
    %c14 = arith.constant 14 : index
    %c0_37 = arith.constant 0 : index
    %60 = vector.load %arg8[%c14, %c0_37] : memref<352x128xbf16, #tpu.memory_space<vmem>>, vector<96x128xbf16>
    %c1 = arith.constant 1 : index
    %c0_38 = arith.constant 0 : index
    %c0_39 = arith.constant 0 : index
    %61 = vector.load %arg5[%c1, %c0_38, %c0_39] : memref<9x128x128xbf16, #tpu.memory_space<vmem>>, vector<1x128x128xbf16>
    %62 = vector.shape_cast %61 : vector<1x128x128xbf16> to vector<128x128xbf16>
    %cst_40 = arith.constant dense<0.000000e+00> : vector<96x128xf32>
    %63 = tpu.matmul %60, %62, %cst_40 {dimension_numbers = #tpu.dot_dimension_numbers<[1], [0], [0], [1], [0, 0, 1, 1], [], []>} : vector<96x128xbf16>, vector<128x128xbf16>, vector<96x128xf32> -> vector<96x128xf32>
    %64 = arith.addf %59, %63 : vector<96x128xf32>
    %c15 = arith.constant 15 : index
    %c0_41 = arith.constant 0 : index
    %65 = vector.load %arg8[%c15, %c0_41] : memref<352x128xbf16, #tpu.memory_space<vmem>>, vector<96x128xbf16>
    %c2 = arith.constant 2 : index
    %c0_42 = arith.constant 0 : index
    %c0_43 = arith.constant 0 : index
    %66 = vector.load %arg5[%c2, %c0_42, %c0_43] : memref<9x128x128xbf16, #tpu.memory_space<vmem>>, vector<1x128x128xbf16>
    %67 = vector.shape_cast %66 : vector<1x128x128xbf16> to vector<128x128xbf16>
    %cst_44 = arith.constant dense<0.000000e+00> : vector<96x128xf32>
    %68 = tpu.matmul %65, %67, %cst_44 {dimension_numbers = #tpu.dot_dimension_numbers<[1], [0], [0], [1], [0, 0, 1, 1], [], []>} : vector<96x128xbf16>, vector<128x128xbf16>, vector<96x128xf32> -> vector<96x128xf32>
    %69 = arith.addf %64, %68 : vector<96x128xf32>
    %c31 = arith.constant 31 : index
    %c0_45 = arith.constant 0 : index
    %70 = vector.load %arg8[%c31, %c0_45] : memref<352x128xbf16, #tpu.memory_space<vmem>>, vector<96x128xbf16>
    %c3 = arith.constant 3 : index
    %c0_46 = arith.constant 0 : index
    %c0_47 = arith.constant 0 : index
    %71 = vector.load %arg5[%c3, %c0_46, %c0_47] : memref<9x128x128xbf16, #tpu.memory_space<vmem>>, vector<1x128x128xbf16>
    %72 = vector.shape_cast %71 : vector<1x128x128xbf16> to vector<128x128xbf16>
    %cst_48 = arith.constant dense<0.000000e+00> : vector<96x128xf32>
    %73 = tpu.matmul %70, %72, %cst_48 {dimension_numbers = #tpu.dot_dimension_numbers<[1], [0], [0], [1], [0, 0, 1, 1], [], []>} : vector<96x128xbf16>, vector<128x128xbf16>, vector<96x128xf32> -> vector<96x128xf32>
    %74 = arith.addf %69, %73 : vector<96x128xf32>
    %c32_49 = arith.constant 32 : index
    %c0_50 = arith.constant 0 : index
    %75 = vector.load %arg8[%c32_49, %c0_50] : memref<352x128xbf16, #tpu.memory_space<vmem>>, vector<96x128xbf16>
    %c4 = arith.constant 4 : index
    %c0_51 = arith.constant 0 : index
    %c0_52 = arith.constant 0 : index
    %76 = vector.load %arg5[%c4, %c0_51, %c0_52] : memref<9x128x128xbf16, #tpu.memory_space<vmem>>, vector<1x128x128xbf16>
    %77 = vector.shape_cast %76 : vector<1x128x128xbf16> to vector<128x128xbf16>
    %cst_53 = arith.constant dense<0.000000e+00> : vector<96x128xf32>
    %78 = tpu.matmul %75, %77, %cst_53 {dimension_numbers = #tpu.dot_dimension_numbers<[1], [0], [0], [1], [0, 0, 1, 1], [], []>} : vector<96x128xbf16>, vector<128x128xbf16>, vector<96x128xf32> -> vector<96x128xf32>
    %79 = arith.addf %74, %78 : vector<96x128xf32>
    %c33 = arith.constant 33 : index
    %c0_54 = arith.constant 0 : index
    %80 = vector.load %arg8[%c33, %c0_54] : memref<352x128xbf16, #tpu.memory_space<vmem>>, vector<96x128xbf16>
    %c5 = arith.constant 5 : index
    %c0_55 = arith.constant 0 : index
    %c0_56 = arith.constant 0 : index
    %81 = vector.load %arg5[%c5, %c0_55, %c0_56] : memref<9x128x128xbf16, #tpu.memory_space<vmem>>, vector<1x128x128xbf16>
    %82 = vector.shape_cast %81 : vector<1x128x128xbf16> to vector<128x128xbf16>
    %cst_57 = arith.constant dense<0.000000e+00> : vector<96x128xf32>
    %83 = tpu.matmul %80, %82, %cst_57 {dimension_numbers = #tpu.dot_dimension_numbers<[1], [0], [0], [1], [0, 0, 1, 1], [], []>} : vector<96x128xbf16>, vector<128x128xbf16>, vector<96x128xf32> -> vector<96x128xf32>
    %84 = arith.addf %79, %83 : vector<96x128xf32>
    %c49 = arith.constant 49 : index
    %c0_58 = arith.constant 0 : index
    %85 = vector.load %arg8[%c49, %c0_58] : memref<352x128xbf16, #tpu.memory_space<vmem>>, vector<96x128xbf16>
    %c6 = arith.constant 6 : index
    %c0_59 = arith.constant 0 : index
    %c0_60 = arith.constant 0 : index
    %86 = vector.load %arg5[%c6, %c0_59, %c0_60] : memref<9x128x128xbf16, #tpu.memory_space<vmem>>, vector<1x128x128xbf16>
    %87 = vector.shape_cast %86 : vector<1x128x128xbf16> to vector<128x128xbf16>
    %cst_61 = arith.constant dense<0.000000e+00> : vector<96x128xf32>
    %88 = tpu.matmul %85, %87, %cst_61 {dimension_numbers = #tpu.dot_dimension_numbers<[1], [0], [0], [1], [0, 0, 1, 1], [], []>} : vector<96x128xbf16>, vector<128x128xbf16>, vector<96x128xf32> -> vector<96x128xf32>
    %89 = arith.addf %84, %88 : vector<96x128xf32>
    %c50 = arith.constant 50 : index
    %c0_62 = arith.constant 0 : index
    %90 = vector.load %arg8[%c50, %c0_62] : memref<352x128xbf16, #tpu.memory_space<vmem>>, vector<96x128xbf16>
    %c7 = arith.constant 7 : index
    %c0_63 = arith.constant 0 : index
    %c0_64 = arith.constant 0 : index
    %91 = vector.load %arg5[%c7, %c0_63, %c0_64] : memref<9x128x128xbf16, #tpu.memory_space<vmem>>, vector<1x128x128xbf16>
    %92 = vector.shape_cast %91 : vector<1x128x128xbf16> to vector<128x128xbf16>
    %cst_65 = arith.constant dense<0.000000e+00> : vector<96x128xf32>
    %93 = tpu.matmul %90, %92, %cst_65 {dimension_numbers = #tpu.dot_dimension_numbers<[1], [0], [0], [1], [0, 0, 1, 1], [], []>} : vector<96x128xbf16>, vector<128x128xbf16>, vector<96x128xf32> -> vector<96x128xf32>
    %94 = arith.addf %89, %93 : vector<96x128xf32>
    %c51 = arith.constant 51 : index
    %c0_66 = arith.constant 0 : index
    %95 = vector.load %arg8[%c51, %c0_66] : memref<352x128xbf16, #tpu.memory_space<vmem>>, vector<96x128xbf16>
    %c8 = arith.constant 8 : index
    %c0_67 = arith.constant 0 : index
    %c0_68 = arith.constant 0 : index
    %96 = vector.load %arg5[%c8, %c0_67, %c0_68] : memref<9x128x128xbf16, #tpu.memory_space<vmem>>, vector<1x128x128xbf16>
    %97 = vector.shape_cast %96 : vector<1x128x128xbf16> to vector<128x128xbf16>
    %cst_69 = arith.constant dense<0.000000e+00> : vector<96x128xf32>
    %98 = tpu.matmul %95, %97, %cst_69 {dimension_numbers = #tpu.dot_dimension_numbers<[1], [0], [0], [1], [0, 0, 1, 1], [], []>} : vector<96x128xbf16>, vector<128x128xbf16>, vector<96x128xf32> -> vector<96x128xf32>
    %99 = arith.addf %94, %98 : vector<96x128xf32>
    %100 = vector.broadcast %5 : vector<1x128xf32> to vector<96x128xf32>
    %101 = arith.addf %99, %100 : vector<96x128xf32>
    %102 = arith.truncf %101 : vector<96x128xf32> to vector<96x128xbf16>
    %c0_70 = arith.constant 0 : index
    %c0_71 = arith.constant 0 : index
    %c0_72 = arith.constant 0 : index
    %103 = vector.load %arg7[%c0_70, %c0_71, %c0_72] : memref<2x288x128xbf16, #tpu.memory_space<vmem>>, vector<1x96x128xbf16>
    %104 = vector.shape_cast %103 : vector<1x96x128xbf16> to vector<96x128xbf16>
    %105 = vector.shape_cast %102 : vector<96x128xbf16> to vector<1x96x128xbf16>
    tpu.vector_store %arg7[%c0_70, %c0_71, %c0_72], %105 {strides = array<i32>} : memref<2x288x128xbf16, #tpu.memory_space<vmem>>, vector<1x96x128xbf16>,
    %c109 = arith.constant 109 : index
    %c0_73 = arith.constant 0 : index
    %106 = vector.load %arg8[%c109, %c0_73] : memref<352x128xbf16, #tpu.memory_space<vmem>>, vector<96x128xbf16>
    %c0_74 = arith.constant 0 : index
    %c0_75 = arith.constant 0 : index
    %c0_76 = arith.constant 0 : index
    %107 = vector.load %arg5[%c0_74, %c0_75, %c0_76] : memref<9x128x128xbf16, #tpu.memory_space<vmem>>, vector<1x128x128xbf16>
    %108 = vector.shape_cast %107 : vector<1x128x128xbf16> to vector<128x128xbf16>
    %cst_77 = arith.constant dense<0.000000e+00> : vector<96x128xf32>
    %109 = tpu.matmul %106, %108, %cst_77 {dimension_numbers = #tpu.dot_dimension_numbers<[1], [0], [0], [1], [0, 0, 1, 1], [], []>} : vector<96x128xbf16>, vector<128x128xbf16>, vector<96x128xf32> -> vector<96x128xf32>
    %c110 = arith.constant 110 : index
    %c0_78 = arith.constant 0 : index
    %110 = vector.load %arg8[%c110, %c0_78] : memref<352x128xbf16, #tpu.memory_space<vmem>>, vector<96x128xbf16>
    %c1_79 = arith.constant 1 : index
    %c0_80 = arith.constant 0 : index
    %c0_81 = arith.constant 0 : index
    %111 = vector.load %arg5[%c1_79, %c0_80, %c0_81] : memref<9x128x128xbf16, #tpu.memory_space<vmem>>, vector<1x128x128xbf16>
    %112 = vector.shape_cast %111 : vector<1x128x128xbf16> to vector<128x128xbf16>
    %cst_82 = arith.constant dense<0.000000e+00> : vector<96x128xf32>
    %113 = tpu.matmul %110, %112, %cst_82 {dimension_numbers = #tpu.dot_dimension_numbers<[1], [0], [0], [1], [0, 0, 1, 1], [], []>} : vector<96x128xbf16>, vector<128x128xbf16>, vector<96x128xf32> -> vector<96x128xf32>
    %114 = arith.addf %109, %113 : vector<96x128xf32>
    %c111 = arith.constant 111 : index
    %c0_83 = arith.constant 0 : index
    %115 = vector.load %arg8[%c111, %c0_83] : memref<352x128xbf16, #tpu.memory_space<vmem>>, vector<96x128xbf16>
    %c2_84 = arith.constant 2 : index
    %c0_85 = arith.constant 0 : index
    %c0_86 = arith.constant 0 : index
    %116 = vector.load %arg5[%c2_84, %c0_85, %c0_86] : memref<9x128x128xbf16, #tpu.memory_space<vmem>>, vector<1x128x128xbf16>
    %117 = vector.shape_cast %116 : vector<1x128x128xbf16> to vector<128x128xbf16>
    %cst_87 = arith.constant dense<0.000000e+00> : vector<96x128xf32>
    %118 = tpu.matmul %115, %117, %cst_87 {dimension_numbers = #tpu.dot_dimension_numbers<[1], [0], [0], [1], [0, 0, 1, 1], [], []>} : vector<96x128xbf16>, vector<128x128xbf16>, vector<96x128xf32> -> vector<96x128xf32>
    %119 = arith.addf %114, %118 : vector<96x128xf32>
    %c127 = arith.constant 127 : index
    %c0_88 = arith.constant 0 : index
    %120 = vector.load %arg8[%c127, %c0_88] : memref<352x128xbf16, #tpu.memory_space<vmem>>, vector<96x128xbf16>
    %c3_89 = arith.constant 3 : index
    %c0_90 = arith.constant 0 : index
    %c0_91 = arith.constant 0 : index
    %121 = vector.load %arg5[%c3_89, %c0_90, %c0_91] : memref<9x128x128xbf16, #tpu.memory_space<vmem>>, vector<1x128x128xbf16>
    %122 = vector.shape_cast %121 : vector<1x128x128xbf16> to vector<128x128xbf16>
    %cst_92 = arith.constant dense<0.000000e+00> : vector<96x128xf32>
    %123 = tpu.matmul %120, %122, %cst_92 {dimension_numbers = #tpu.dot_dimension_numbers<[1], [0], [0], [1], [0, 0, 1, 1], [], []>} : vector<96x128xbf16>, vector<128x128xbf16>, vector<96x128xf32> -> vector<96x128xf32>
    %124 = arith.addf %119, %123 : vector<96x128xf32>
    %c128_93 = arith.constant 128 : index
    %c0_94 = arith.constant 0 : index
    %125 = vector.load %arg8[%c128_93, %c0_94] : memref<352x128xbf16, #tpu.memory_space<vmem>>, vector<96x128xbf16>
    %c4_95 = arith.constant 4 : index
    %c0_96 = arith.constant 0 : index
    %c0_97 = arith.constant 0 : index
    %126 = vector.load %arg5[%c4_95, %c0_96, %c0_97] : memref<9x128x128xbf16, #tpu.memory_space<vmem>>, vector<1x128x128xbf16>
    %127 = vector.shape_cast %126 : vector<1x128x128xbf16> to vector<128x128xbf16>
    %cst_98 = arith.constant dense<0.000000e+00> : vector<96x128xf32>
    %128 = tpu.matmul %125, %127, %cst_98 {dimension_numbers = #tpu.dot_dimension_numbers<[1], [0], [0], [1], [0, 0, 1, 1], [], []>} : vector<96x128xbf16>, vector<128x128xbf16>, vector<96x128xf32> -> vector<96x128xf32>
    %129 = arith.addf %124, %128 : vector<96x128xf32>
    %c129 = arith.constant 129 : index
    %c0_99 = arith.constant 0 : index
    %130 = vector.load %arg8[%c129, %c0_99] : memref<352x128xbf16, #tpu.memory_space<vmem>>, vector<96x128xbf16>
    %c5_100 = arith.constant 5 : index
    %c0_101 = arith.constant 0 : index
    %c0_102 = arith.constant 0 : index
    %131 = vector.load %arg5[%c5_100, %c0_101, %c0_102] : memref<9x128x128xbf16, #tpu.memory_space<vmem>>, vector<1x128x128xbf16>
    %132 = vector.shape_cast %131 : vector<1x128x128xbf16> to vector<128x128xbf16>
    %cst_103 = arith.constant dense<0.000000e+00> : vector<96x128xf32>
    %133 = tpu.matmul %130, %132, %cst_103 {dimension_numbers = #tpu.dot_dimension_numbers<[1], [0], [0], [1], [0, 0, 1, 1], [], []>} : vector<96x128xbf16>, vector<128x128xbf16>, vector<96x128xf32> -> vector<96x128xf32>
    %134 = arith.addf %129, %133 : vector<96x128xf32>
    %c145 = arith.constant 145 : index
    %c0_104 = arith.constant 0 : index
    %135 = vector.load %arg8[%c145, %c0_104] : memref<352x128xbf16, #tpu.memory_space<vmem>>, vector<96x128xbf16>
    %c6_105 = arith.constant 6 : index
    %c0_106 = arith.constant 0 : index
    %c0_107 = arith.constant 0 : index
    %136 = vector.load %arg5[%c6_105, %c0_106, %c0_107] : memref<9x128x128xbf16, #tpu.memory_space<vmem>>, vector<1x128x128xbf16>
    %137 = vector.shape_cast %136 : vector<1x128x128xbf16> to vector<128x128xbf16>
    %cst_108 = arith.constant dense<0.000000e+00> : vector<96x128xf32>
    %138 = tpu.matmul %135, %137, %cst_108 {dimension_numbers = #tpu.dot_dimension_numbers<[1], [0], [0], [1], [0, 0, 1, 1], [], []>} : vector<96x128xbf16>, vector<128x128xbf16>, vector<96x128xf32> -> vector<96x128xf32>
    %139 = arith.addf %134, %138 : vector<96x128xf32>
    %c146 = arith.constant 146 : index
    %c0_109 = arith.constant 0 : index
    %140 = vector.load %arg8[%c146, %c0_109] : memref<352x128xbf16, #tpu.memory_space<vmem>>, vector<96x128xbf16>
    %c7_110 = arith.constant 7 : index
    %c0_111 = arith.constant 0 : index
    %c0_112 = arith.constant 0 : index
    %141 = vector.load %arg5[%c7_110, %c0_111, %c0_112] : memref<9x128x128xbf16, #tpu.memory_space<vmem>>, vector<1x128x128xbf16>
    %142 = vector.shape_cast %141 : vector<1x128x128xbf16> to vector<128x128xbf16>
    %cst_113 = arith.constant dense<0.000000e+00> : vector<96x128xf32>
    %143 = tpu.matmul %140, %142, %cst_113 {dimension_numbers = #tpu.dot_dimension_numbers<[1], [0], [0], [1], [0, 0, 1, 1], [], []>} : vector<96x128xbf16>, vector<128x128xbf16>, vector<96x128xf32> -> vector<96x128xf32>
    %144 = arith.addf %139, %143 : vector<96x128xf32>
    %c147 = arith.constant 147 : index
    %c0_114 = arith.constant 0 : index
    %145 = vector.load %arg8[%c147, %c0_114] : memref<352x128xbf16, #tpu.memory_space<vmem>>, vector<96x128xbf16>
    %c8_115 = arith.constant 8 : index
    %c0_116 = arith.constant 0 : index
    %c0_117 = arith.constant 0 : index
    %146 = vector.load %arg5[%c8_115, %c0_116, %c0_117] : memref<9x128x128xbf16, #tpu.memory_space<vmem>>, vector<1x128x128xbf16>
    %147 = vector.shape_cast %146 : vector<1x128x128xbf16> to vector<128x128xbf16>
    %cst_118 = arith.constant dense<0.000000e+00> : vector<96x128xf32>
    %148 = tpu.matmul %145, %147, %cst_118 {dimension_numbers = #tpu.dot_dimension_numbers<[1], [0], [0], [1], [0, 0, 1, 1], [], []>} : vector<96x128xbf16>, vector<128x128xbf16>, vector<96x128xf32> -> vector<96x128xf32>
    %149 = arith.addf %144, %148 : vector<96x128xf32>
    %150 = vector.broadcast %5 : vector<1x128xf32> to vector<96x128xf32>
    %151 = arith.addf %149, %150 : vector<96x128xf32>
    %152 = arith.truncf %151 : vector<96x128xf32> to vector<96x128xbf16>
    %c0_119 = arith.constant 0 : index
    %c96_120 = arith.constant 96 : index
    %c0_121 = arith.constant 0 : index
    %153 = vector.load %arg7[%c0_119, %c96_120, %c0_121] : memref<2x288x128xbf16, #tpu.memory_space<vmem>>, vector<1x96x128xbf16>
    %154 = vector.shape_cast %153 : vector<1x96x128xbf16> to vector<96x128xbf16>
    %155 = vector.shape_cast %152 : vector<96x128xbf16> to vector<1x96x128xbf16>
    tpu.vector_store %arg7[%c0_119, %c96_120, %c0_121], %155 {strides = array<i32>} : memref<2x288x128xbf16, #tpu.memory_space<vmem>>, vector<1x96x128xbf16>,
    %c205 = arith.constant 205 : index
    %c0_122 = arith.constant 0 : index
    %156 = vector.load %arg8[%c205, %c0_122] : memref<352x128xbf16, #tpu.memory_space<vmem>>, vector<96x128xbf16>
    %c0_123 = arith.constant 0 : index
    %c0_124 = arith.constant 0 : index
    %c0_125 = arith.constant 0 : index
    %157 = vector.load %arg5[%c0_123, %c0_124, %c0_125] : memref<9x128x128xbf16, #tpu.memory_space<vmem>>, vector<1x128x128xbf16>
    %158 = vector.shape_cast %157 : vector<1x128x128xbf16> to vector<128x128xbf16>
    %cst_126 = arith.constant dense<0.000000e+00> : vector<96x128xf32>
    %159 = tpu.matmul %156, %158, %cst_126 {dimension_numbers = #tpu.dot_dimension_numbers<[1], [0], [0], [1], [0, 0, 1, 1], [], []>} : vector<96x128xbf16>, vector<128x128xbf16>, vector<96x128xf32> -> vector<96x128xf32>
    %c206 = arith.constant 206 : index
    %c0_127 = arith.constant 0 : index
    %160 = vector.load %arg8[%c206, %c0_127] : memref<352x128xbf16, #tpu.memory_space<vmem>>, vector<96x128xbf16>
    %c1_128 = arith.constant 1 : index
    %c0_129 = arith.constant 0 : index
    %c0_130 = arith.constant 0 : index
    %161 = vector.load %arg5[%c1_128, %c0_129, %c0_130] : memref<9x128x128xbf16, #tpu.memory_space<vmem>>, vector<1x128x128xbf16>
    %162 = vector.shape_cast %161 : vector<1x128x128xbf16> to vector<128x128xbf16>
    %cst_131 = arith.constant dense<0.000000e+00> : vector<96x128xf32>
    %163 = tpu.matmul %160, %162, %cst_131 {dimension_numbers = #tpu.dot_dimension_numbers<[1], [0], [0], [1], [0, 0, 1, 1], [], []>} : vector<96x128xbf16>, vector<128x128xbf16>, vector<96x128xf32> -> vector<96x128xf32>
    %164 = arith.addf %159, %163 : vector<96x128xf32>
    %c207 = arith.constant 207 : index
    %c0_132 = arith.constant 0 : index
    %165 = vector.load %arg8[%c207, %c0_132] : memref<352x128xbf16, #tpu.memory_space<vmem>>, vector<96x128xbf16>
    %c2_133 = arith.constant 2 : index
    %c0_134 = arith.constant 0 : index
    %c0_135 = arith.constant 0 : index
    %166 = vector.load %arg5[%c2_133, %c0_134, %c0_135] : memref<9x128x128xbf16, #tpu.memory_space<vmem>>, vector<1x128x128xbf16>
    %167 = vector.shape_cast %166 : vector<1x128x128xbf16> to vector<128x128xbf16>
    %cst_136 = arith.constant dense<0.000000e+00> : vector<96x128xf32>
    %168 = tpu.matmul %165, %167, %cst_136 {dimension_numbers = #tpu.dot_dimension_numbers<[1], [0], [0], [1], [0, 0, 1, 1], [], []>} : vector<96x128xbf16>, vector<128x128xbf16>, vector<96x128xf32> -> vector<96x128xf32>
    %169 = arith.addf %164, %168 : vector<96x128xf32>
    %c223 = arith.constant 223 : index
    %c0_137 = arith.constant 0 : index
    %170 = vector.load %arg8[%c223, %c0_137] : memref<352x128xbf16, #tpu.memory_space<vmem>>, vector<96x128xbf16>
    %c3_138 = arith.constant 3 : index
    %c0_139 = arith.constant 0 : index
    %c0_140 = arith.constant 0 : index
    %171 = vector.load %arg5[%c3_138, %c0_139, %c0_140] : memref<9x128x128xbf16, #tpu.memory_space<vmem>>, vector<1x128x128xbf16>
    %172 = vector.shape_cast %171 : vector<1x128x128xbf16> to vector<128x128xbf16>
    %cst_141 = arith.constant dense<0.000000e+00> : vector<96x128xf32>
    %173 = tpu.matmul %170, %172, %cst_141 {dimension_numbers = #tpu.dot_dimension_numbers<[1], [0], [0], [1], [0, 0, 1, 1], [], []>} : vector<96x128xbf16>, vector<128x128xbf16>, vector<96x128xf32> -> vector<96x128xf32>
    %174 = arith.addf %169, %173 : vector<96x128xf32>
    %c224_142 = arith.constant 224 : index
    %c0_143 = arith.constant 0 : index
    %175 = vector.load %arg8[%c224_142, %c0_143] : memref<352x128xbf16, #tpu.memory_space<vmem>>, vector<96x128xbf16>
    %c4_144 = arith.constant 4 : index
    %c0_145 = arith.constant 0 : index
    %c0_146 = arith.constant 0 : index
    %176 = vector.load %arg5[%c4_144, %c0_145, %c0_146] : memref<9x128x128xbf16, #tpu.memory_space<vmem>>, vector<1x128x128xbf16>
    %177 = vector.shape_cast %176 : vector<1x128x128xbf16> to vector<128x128xbf16>
    %cst_147 = arith.constant dense<0.000000e+00> : vector<96x128xf32>
    %178 = tpu.matmul %175, %177, %cst_147 {dimension_numbers = #tpu.dot_dimension_numbers<[1], [0], [0], [1], [0, 0, 1, 1], [], []>} : vector<96x128xbf16>, vector<128x128xbf16>, vector<96x128xf32> -> vector<96x128xf32>
    %179 = arith.addf %174, %178 : vector<96x128xf32>
    %c225 = arith.constant 225 : index
    %c0_148 = arith.constant 0 : index
    %180 = vector.load %arg8[%c225, %c0_148] : memref<352x128xbf16, #tpu.memory_space<vmem>>, vector<96x128xbf16>
    %c5_149 = arith.constant 5 : index
    %c0_150 = arith.constant 0 : index
    %c0_151 = arith.constant 0 : index
    %181 = vector.load %arg5[%c5_149, %c0_150, %c0_151] : memref<9x128x128xbf16, #tpu.memory_space<vmem>>, vector<1x128x128xbf16>
    %182 = vector.shape_cast %181 : vector<1x128x128xbf16> to vector<128x128xbf16>
    %cst_152 = arith.constant dense<0.000000e+00> : vector<96x128xf32>
    %183 = tpu.matmul %180, %182, %cst_152 {dimension_numbers = #tpu.dot_dimension_numbers<[1], [0], [0], [1], [0, 0, 1, 1], [], []>} : vector<96x128xbf16>, vector<128x128xbf16>, vector<96x128xf32> -> vector<96x128xf32>
    %184 = arith.addf %179, %183 : vector<96x128xf32>
    %c241 = arith.constant 241 : index
    %c0_153 = arith.constant 0 : index
    %185 = vector.load %arg8[%c241, %c0_153] : memref<352x128xbf16, #tpu.memory_space<vmem>>, vector<96x128xbf16>
    %c6_154 = arith.constant 6 : index
    %c0_155 = arith.constant 0 : index
    %c0_156 = arith.constant 0 : index
    %186 = vector.load %arg5[%c6_154, %c0_155, %c0_156] : memref<9x128x128xbf16, #tpu.memory_space<vmem>>, vector<1x128x128xbf16>
    %187 = vector.shape_cast %186 : vector<1x128x128xbf16> to vector<128x128xbf16>
    %cst_157 = arith.constant dense<0.000000e+00> : vector<96x128xf32>
    %188 = tpu.matmul %185, %187, %cst_157 {dimension_numbers = #tpu.dot_dimension_numbers<[1], [0], [0], [1], [0, 0, 1, 1], [], []>} : vector<96x128xbf16>, vector<128x128xbf16>, vector<96x128xf32> -> vector<96x128xf32>
    %189 = arith.addf %184, %188 : vector<96x128xf32>
    %c242 = arith.constant 242 : index
    %c0_158 = arith.constant 0 : index
    %190 = vector.load %arg8[%c242, %c0_158] : memref<352x128xbf16, #tpu.memory_space<vmem>>, vector<96x128xbf16>
    %c7_159 = arith.constant 7 : index
    %c0_160 = arith.constant 0 : index
    %c0_161 = arith.constant 0 : index
    %191 = vector.load %arg5[%c7_159, %c0_160, %c0_161] : memref<9x128x128xbf16, #tpu.memory_space<vmem>>, vector<1x128x128xbf16>
    %192 = vector.shape_cast %191 : vector<1x128x128xbf16> to vector<128x128xbf16>
    %cst_162 = arith.constant dense<0.000000e+00> : vector<96x128xf32>
    %193 = tpu.matmul %190, %192, %cst_162 {dimension_numbers = #tpu.dot_dimension_numbers<[1], [0], [0], [1], [0, 0, 1, 1], [], []>} : vector<96x128xbf16>, vector<128x128xbf16>, vector<96x128xf32> -> vector<96x128xf32>
    %194 = arith.addf %189, %193 : vector<96x128xf32>
    %c243 = arith.constant 243 : index
    %c0_163 = arith.constant 0 : index
    %195 = vector.load %arg8[%c243, %c0_163] : memref<352x128xbf16, #tpu.memory_space<vmem>>, vector<96x128xbf16>
    %c8_164 = arith.constant 8 : index
    %c0_165 = arith.constant 0 : index
    %c0_166 = arith.constant 0 : index
    %196 = vector.load %arg5[%c8_164, %c0_165, %c0_166] : memref<9x128x128xbf16, #tpu.memory_space<vmem>>, vector<1x128x128xbf16>
    %197 = vector.shape_cast %196 : vector<1x128x128xbf16> to vector<128x128xbf16>
    %cst_167 = arith.constant dense<0.000000e+00> : vector<96x128xf32>
    %198 = tpu.matmul %195, %197, %cst_167 {dimension_numbers = #tpu.dot_dimension_numbers<[1], [0], [0], [1], [0, 0, 1, 1], [], []>} : vector<96x128xbf16>, vector<128x128xbf16>, vector<96x128xf32> -> vector<96x128xf32>
    %199 = arith.addf %194, %198 : vector<96x128xf32>
    %200 = vector.broadcast %5 : vector<1x128xf32> to vector<96x128xf32>
    %201 = arith.addf %199, %200 : vector<96x128xf32>
    %202 = arith.truncf %201 : vector<96x128xf32> to vector<96x128xbf16>
    %c0_168 = arith.constant 0 : index
    %c192_169 = arith.constant 192 : index
    %c0_170 = arith.constant 0 : index
    %203 = vector.load %arg7[%c0_168, %c192_169, %c0_170] : memref<2x288x128xbf16, #tpu.memory_space<vmem>>, vector<1x96x128xbf16>
    %204 = vector.shape_cast %203 : vector<1x96x128xbf16> to vector<96x128xbf16>
    %205 = vector.shape_cast %202 : vector<96x128xbf16> to vector<1x96x128xbf16>
    tpu.vector_store %arg7[%c0_168, %c192_169, %c0_170], %205 {strides = array<i32>} : memref<2x288x128xbf16, #tpu.memory_space<vmem>>, vector<1x96x128xbf16>,
    %c1_171 = arith.constant 1 : index
    %c0_172 = arith.constant 0 : index
    %c0_173 = arith.constant 0 : index
    %206 = vector.load %arg2[%c1_171, %c0_172, %c0_173] : memref<2x1x128xf32, #tpu.memory_space<vmem>>, vector<1x1x128xf32>
    %207 = vector.shape_cast %206 : vector<1x1x128xf32> to vector<1x128xf32>
    %c1_174 = arith.constant 1 : index
    %c0_175 = arith.constant 0 : index
    %c0_176 = arith.constant 0 : index
    %208 = vector.load %arg1[%c1_174, %c0_175, %c0_176] : memref<2x288x32xbf16, #tpu.memory_space<vmem>>, vector<1x96x32xbf16>
    %209 = vector.shape_cast %208 : vector<1x96x32xbf16> to vector<96x32xbf16>
    %cst_177 = arith.constant dense<0.000000e+00> : vector<96x128xf32>
    %210 = tpu.matmul %209, %4, %cst_177 {dimension_numbers = #tpu.dot_dimension_numbers<[1], [0], [0], [1], [0, 0, 1, 1], [], []>} : vector<96x32xbf16>, vector<32x128xbf16>, vector<96x128xf32> -> vector<96x128xf32>
    %211 = vector.broadcast %207 : vector<1x128xf32> to vector<96x128xf32>
    %212 = arith.addf %210, %211 : vector<96x128xf32>
    %213 = arith.negf %212 : vector<96x128xf32>
    %214 = math.exp %213 : vector<96x128xf32>
    %cst_178 = arith.constant 1.000000e+00 : f32
    %215 = vector.broadcast %cst_178 : f32 to vector<96x128xf32>
    %216 = arith.addf %215, %214 : vector<96x128xf32>
    %217 = arith.divf %215, %216 : vector<96x128xf32>
    %218 = arith.mulf %212, %217 : vector<96x128xf32>
    %c0_179 = arith.constant 0 : index
    %c0_180 = arith.constant 0 : index
    %219 = vector.load %arg3[%c0_179, %c0_180] : memref<288x1xf32, #tpu.memory_space<vmem>>, vector<96x1xf32>
    %220 = vector.broadcast %219 : vector<96x1xf32> to vector<96x128xf32>
    %221 = arith.mulf %218, %220 : vector<96x128xf32>
    %222 = arith.truncf %221 : vector<96x128xf32> to vector<96x128xbf16>
    %c32_181 = arith.constant 32 : index
    %c0_182 = arith.constant 0 : index
    %223 = vector.load %arg8[%c32_181, %c0_182] : memref<352x128xbf16, #tpu.memory_space<vmem>>, vector<96x128xbf16>
    tpu.vector_store %arg8[%c32_181, %c0_182], %222 {strides = array<i32>} : memref<352x128xbf16, #tpu.memory_space<vmem>>, vector<96x128xbf16>,
    %c1_183 = arith.constant 1 : index
    %c96_184 = arith.constant 96 : index
    %c0_185 = arith.constant 0 : index
    %224 = vector.load %arg1[%c1_183, %c96_184, %c0_185] : memref<2x288x32xbf16, #tpu.memory_space<vmem>>, vector<1x96x32xbf16>
    %225 = vector.shape_cast %224 : vector<1x96x32xbf16> to vector<96x32xbf16>
    %cst_186 = arith.constant dense<0.000000e+00> : vector<96x128xf32>
    %226 = tpu.matmul %225, %4, %cst_186 {dimension_numbers = #tpu.dot_dimension_numbers<[1], [0], [0], [1], [0, 0, 1, 1], [], []>} : vector<96x32xbf16>, vector<32x128xbf16>, vector<96x128xf32> -> vector<96x128xf32>
    %227 = vector.broadcast %207 : vector<1x128xf32> to vector<96x128xf32>
    %228 = arith.addf %226, %227 : vector<96x128xf32>
    %229 = arith.negf %228 : vector<96x128xf32>
    %230 = math.exp %229 : vector<96x128xf32>
    %cst_187 = arith.constant 1.000000e+00 : f32
    %231 = vector.broadcast %cst_187 : f32 to vector<96x128xf32>
    %232 = arith.addf %231, %230 : vector<96x128xf32>
    %233 = arith.divf %231, %232 : vector<96x128xf32>
    %234 = arith.mulf %228, %233 : vector<96x128xf32>
    %c96_188 = arith.constant 96 : index
    %c0_189 = arith.constant 0 : index
    %235 = vector.load %arg3[%c96_188, %c0_189] : memref<288x1xf32, #tpu.memory_space<vmem>>, vector<96x1xf32>
    %236 = vector.broadcast %235 : vector<96x1xf32> to vector<96x128xf32>
    %237 = arith.mulf %234, %236 : vector<96x128xf32>
    %238 = arith.truncf %237 : vector<96x128xf32> to vector<96x128xbf16>
    %c128_190 = arith.constant 128 : index
    %c0_191 = arith.constant 0 : index
    %239 = vector.load %arg8[%c128_190, %c0_191] : memref<352x128xbf16, #tpu.memory_space<vmem>>, vector<96x128xbf16>
    tpu.vector_store %arg8[%c128_190, %c0_191], %238 {strides = array<i32>} : memref<352x128xbf16, #tpu.memory_space<vmem>>, vector<96x128xbf16>,
    %c1_192 = arith.constant 1 : index
    %c192_193 = arith.constant 192 : index
    %c0_194 = arith.constant 0 : index
    %240 = vector.load %arg1[%c1_192, %c192_193, %c0_194] : memref<2x288x32xbf16, #tpu.memory_space<vmem>>, vector<1x96x32xbf16>
    %241 = vector.shape_cast %240 : vector<1x96x32xbf16> to vector<96x32xbf16>
    %cst_195 = arith.constant dense<0.000000e+00> : vector<96x128xf32>
    %242 = tpu.matmul %241, %4, %cst_195 {dimension_numbers = #tpu.dot_dimension_numbers<[1], [0], [0], [1], [0, 0, 1, 1], [], []>} : vector<96x32xbf16>, vector<32x128xbf16>, vector<96x128xf32> -> vector<96x128xf32>
    %243 = vector.broadcast %207 : vector<1x128xf32> to vector<96x128xf32>
    %244 = arith.addf %242, %243 : vector<96x128xf32>
    %245 = arith.negf %244 : vector<96x128xf32>
    %246 = math.exp %245 : vector<96x128xf32>
    %cst_196 = arith.constant 1.000000e+00 : f32
    %247 = vector.broadcast %cst_196 : f32 to vector<96x128xf32>
    %248 = arith.addf %247, %246 : vector<96x128xf32>
    %249 = arith.divf %247, %248 : vector<96x128xf32>
    %250 = arith.mulf %244, %249 : vector<96x128xf32>
    %c192_197 = arith.constant 192 : index
    %c0_198 = arith.constant 0 : index
    %251 = vector.load %arg3[%c192_197, %c0_198] : memref<288x1xf32, #tpu.memory_space<vmem>>, vector<96x1xf32>
    %252 = vector.broadcast %251 : vector<96x1xf32> to vector<96x128xf32>
    %253 = arith.mulf %250, %252 : vector<96x128xf32>
    %254 = arith.truncf %253 : vector<96x128xf32> to vector<96x128xbf16>
    %c224_199 = arith.constant 224 : index
    %c0_200 = arith.constant 0 : index
    %255 = vector.load %arg8[%c224_199, %c0_200] : memref<352x128xbf16, #tpu.memory_space<vmem>>, vector<96x128xbf16>
    tpu.vector_store %arg8[%c224_199, %c0_200], %254 {strides = array<i32>} : memref<352x128xbf16, #tpu.memory_space<vmem>>, vector<96x128xbf16>,
    %c13_201 = arith.constant 13 : index
    %c0_202 = arith.constant 0 : index
    %256 = vector.load %arg8[%c13_201, %c0_202] : memref<352x128xbf16, #tpu.memory_space<vmem>>, vector<96x128xbf16>
    %c0_203 = arith.constant 0 : index
    %c0_204 = arith.constant 0 : index
    %c0_205 = arith.constant 0 : index
    %257 = vector.load %arg5[%c0_203, %c0_204, %c0_205] : memref<9x128x128xbf16, #tpu.memory_space<vmem>>, vector<1x128x128xbf16>
    %258 = vector.shape_cast %257 : vector<1x128x128xbf16> to vector<128x128xbf16>
    %cst_206 = arith.constant dense<0.000000e+00> : vector<96x128xf32>
    %259 = tpu.matmul %256, %258, %cst_206 {dimension_numbers = #tpu.dot_dimension_numbers<[1], [0], [0], [1], [0, 0, 1, 1], [], []>} : vector<96x128xbf16>, vector<128x128xbf16>, vector<96x128xf32> -> vector<96x128xf32>
    %c14_207 = arith.constant 14 : index
    %c0_208 = arith.constant 0 : index
    %260 = vector.load %arg8[%c14_207, %c0_208] : memref<352x128xbf16, #tpu.memory_space<vmem>>, vector<96x128xbf16>
    %c1_209 = arith.constant 1 : index
    %c0_210 = arith.constant 0 : index
    %c0_211 = arith.constant 0 : index
    %261 = vector.load %arg5[%c1_209, %c0_210, %c0_211] : memref<9x128x128xbf16, #tpu.memory_space<vmem>>, vector<1x128x128xbf16>
    %262 = vector.shape_cast %261 : vector<1x128x128xbf16> to vector<128x128xbf16>
    %cst_212 = arith.constant dense<0.000000e+00> : vector<96x128xf32>
    %263 = tpu.matmul %260, %262, %cst_212 {dimension_numbers = #tpu.dot_dimension_numbers<[1], [0], [0], [1], [0, 0, 1, 1], [], []>} : vector<96x128xbf16>, vector<128x128xbf16>, vector<96x128xf32> -> vector<96x128xf32>
    %264 = arith.addf %259, %263 : vector<96x128xf32>
    %c15_213 = arith.constant 15 : index
    %c0_214 = arith.constant 0 : index
    %265 = vector.load %arg8[%c15_213, %c0_214] : memref<352x128xbf16, #tpu.memory_space<vmem>>, vector<96x128xbf16>
    %c2_215 = arith.constant 2 : index
    %c0_216 = arith.constant 0 : index
    %c0_217 = arith.constant 0 : index
    %266 = vector.load %arg5[%c2_215, %c0_216, %c0_217] : memref<9x128x128xbf16, #tpu.memory_space<vmem>>, vector<1x128x128xbf16>
    %267 = vector.shape_cast %266 : vector<1x128x128xbf16> to vector<128x128xbf16>
    %cst_218 = arith.constant dense<0.000000e+00> : vector<96x128xf32>
    %268 = tpu.matmul %265, %267, %cst_218 {dimension_numbers = #tpu.dot_dimension_numbers<[1], [0], [0], [1], [0, 0, 1, 1], [], []>} : vector<96x128xbf16>, vector<128x128xbf16>, vector<96x128xf32> -> vector<96x128xf32>
    %269 = arith.addf %264, %268 : vector<96x128xf32>
    %c31_219 = arith.constant 31 : index
    %c0_220 = arith.constant 0 : index
    %270 = vector.load %arg8[%c31_219, %c0_220] : memref<352x128xbf16, #tpu.memory_space<vmem>>, vector<96x128xbf16>
    %c3_221 = arith.constant 3 : index
    %c0_222 = arith.constant 0 : index
    %c0_223 = arith.constant 0 : index
    %271 = vector.load %arg5[%c3_221, %c0_222, %c0_223] : memref<9x128x128xbf16, #tpu.memory_space<vmem>>, vector<1x128x128xbf16>
    %272 = vector.shape_cast %271 : vector<1x128x128xbf16> to vector<128x128xbf16>
    %cst_224 = arith.constant dense<0.000000e+00> : vector<96x128xf32>
    %273 = tpu.matmul %270, %272, %cst_224 {dimension_numbers = #tpu.dot_dimension_numbers<[1], [0], [0], [1], [0, 0, 1, 1], [], []>} : vector<96x128xbf16>, vector<128x128xbf16>, vector<96x128xf32> -> vector<96x128xf32>
    %274 = arith.addf %269, %273 : vector<96x128xf32>
    %c32_225 = arith.constant 32 : index
    %c0_226 = arith.constant 0 : index
    %275 = vector.load %arg8[%c32_225, %c0_226] : memref<352x128xbf16, #tpu.memory_space<vmem>>, vector<96x128xbf16>
    %c4_227 = arith.constant 4 : index
    %c0_228 = arith.constant 0 : index
    %c0_229 = arith.constant 0 : index
    %276 = vector.load %arg5[%c4_227, %c0_228, %c0_229] : memref<9x128x128xbf16, #tpu.memory_space<vmem>>, vector<1x128x128xbf16>
    %277 = vector.shape_cast %276 : vector<1x128x128xbf16> to vector<128x128xbf16>
    %cst_230 = arith.constant dense<0.000000e+00> : vector<96x128xf32>
    %278 = tpu.matmul %275, %277, %cst_230 {dimension_numbers = #tpu.dot_dimension_numbers<[1], [0], [0], [1], [0, 0, 1, 1], [], []>} : vector<96x128xbf16>, vector<128x128xbf16>, vector<96x128xf32> -> vector<96x128xf32>
    %279 = arith.addf %274, %278 : vector<96x128xf32>
    %c33_231 = arith.constant 33 : index
    %c0_232 = arith.constant 0 : index
    %280 = vector.load %arg8[%c33_231, %c0_232] : memref<352x128xbf16, #tpu.memory_space<vmem>>, vector<96x128xbf16>
    %c5_233 = arith.constant 5 : index
    %c0_234 = arith.constant 0 : index
    %c0_235 = arith.constant 0 : index
    %281 = vector.load %arg5[%c5_233, %c0_234, %c0_235] : memref<9x128x128xbf16, #tpu.memory_space<vmem>>, vector<1x128x128xbf16>
    %282 = vector.shape_cast %281 : vector<1x128x128xbf16> to vector<128x128xbf16>
    %cst_236 = arith.constant dense<0.000000e+00> : vector<96x128xf32>
    %283 = tpu.matmul %280, %282, %cst_236 {dimension_numbers = #tpu.dot_dimension_numbers<[1], [0], [0], [1], [0, 0, 1, 1], [], []>} : vector<96x128xbf16>, vector<128x128xbf16>, vector<96x128xf32> -> vector<96x128xf32>
    %284 = arith.addf %279, %283 : vector<96x128xf32>
    %c49_237 = arith.constant 49 : index
    %c0_238 = arith.constant 0 : index
    %285 = vector.load %arg8[%c49_237, %c0_238] : memref<352x128xbf16, #tpu.memory_space<vmem>>, vector<96x128xbf16>
    %c6_239 = arith.constant 6 : index
    %c0_240 = arith.constant 0 : index
    %c0_241 = arith.constant 0 : index
    %286 = vector.load %arg5[%c6_239, %c0_240, %c0_241] : memref<9x128x128xbf16, #tpu.memory_space<vmem>>, vector<1x128x128xbf16>
    %287 = vector.shape_cast %286 : vector<1x128x128xbf16> to vector<128x128xbf16>
    %cst_242 = arith.constant dense<0.000000e+00> : vector<96x128xf32>
    %288 = tpu.matmul %285, %287, %cst_242 {dimension_numbers = #tpu.dot_dimension_numbers<[1], [0], [0], [1], [0, 0, 1, 1], [], []>} : vector<96x128xbf16>, vector<128x128xbf16>, vector<96x128xf32> -> vector<96x128xf32>
    %289 = arith.addf %284, %288 : vector<96x128xf32>
    %c50_243 = arith.constant 50 : index
    %c0_244 = arith.constant 0 : index
    %290 = vector.load %arg8[%c50_243, %c0_244] : memref<352x128xbf16, #tpu.memory_space<vmem>>, vector<96x128xbf16>
    %c7_245 = arith.constant 7 : index
    %c0_246 = arith.constant 0 : index
    %c0_247 = arith.constant 0 : index
    %291 = vector.load %arg5[%c7_245, %c0_246, %c0_247] : memref<9x128x128xbf16, #tpu.memory_space<vmem>>, vector<1x128x128xbf16>
    %292 = vector.shape_cast %291 : vector<1x128x128xbf16> to vector<128x128xbf16>
    %cst_248 = arith.constant dense<0.000000e+00> : vector<96x128xf32>
    %293 = tpu.matmul %290, %292, %cst_248 {dimension_numbers = #tpu.dot_dimension_numbers<[1], [0], [0], [1], [0, 0, 1, 1], [], []>} : vector<96x128xbf16>, vector<128x128xbf16>, vector<96x128xf32> -> vector<96x128xf32>
    %294 = arith.addf %289, %293 : vector<96x128xf32>
    %c51_249 = arith.constant 51 : index
    %c0_250 = arith.constant 0 : index
    %295 = vector.load %arg8[%c51_249, %c0_250] : memref<352x128xbf16, #tpu.memory_space<vmem>>, vector<96x128xbf16>
    %c8_251 = arith.constant 8 : index
    %c0_252 = arith.constant 0 : index
    %c0_253 = arith.constant 0 : index
    %296 = vector.load %arg5[%c8_251, %c0_252, %c0_253] : memref<9x128x128xbf16, #tpu.memory_space<vmem>>, vector<1x128x128xbf16>
    %297 = vector.shape_cast %296 : vector<1x128x128xbf16> to vector<128x128xbf16>
    %cst_254 = arith.constant dense<0.000000e+00> : vector<96x128xf32>
    %298 = tpu.matmul %295, %297, %cst_254 {dimension_numbers = #tpu.dot_dimension_numbers<[1], [0], [0], [1], [0, 0, 1, 1], [], []>} : vector<96x128xbf16>, vector<128x128xbf16>, vector<96x128xf32> -> vector<96x128xf32>
    %299 = arith.addf %294, %298 : vector<96x128xf32>
    %300 = vector.broadcast %5 : vector<1x128xf32> to vector<96x128xf32>
    %301 = arith.addf %299, %300 : vector<96x128xf32>
    %302 = arith.truncf %301 : vector<96x128xf32> to vector<96x128xbf16>
    %c1_255 = arith.constant 1 : index
    %c0_256 = arith.constant 0 : index
    %c0_257 = arith.constant 0 : index
    %303 = vector.load %arg7[%c1_255, %c0_256, %c0_257] : memref<2x288x128xbf16, #tpu.memory_space<vmem>>, vector<1x96x128xbf16>
    %304 = vector.shape_cast %303 : vector<1x96x128xbf16> to vector<96x128xbf16>
    %305 = vector.shape_cast %302 : vector<96x128xbf16> to vector<1x96x128xbf16>
    tpu.vector_store %arg7[%c1_255, %c0_256, %c0_257], %305 {strides = array<i32>} : memref<2x288x128xbf16, #tpu.memory_space<vmem>>, vector<1x96x128xbf16>,
    %c109_258 = arith.constant 109 : index
    %c0_259 = arith.constant 0 : index
    %306 = vector.load %arg8[%c109_258, %c0_259] : memref<352x128xbf16, #tpu.memory_space<vmem>>, vector<96x128xbf16>
    %c0_260 = arith.constant 0 : index
    %c0_261 = arith.constant 0 : index
    %c0_262 = arith.constant 0 : index
    %307 = vector.load %arg5[%c0_260, %c0_261, %c0_262] : memref<9x128x128xbf16, #tpu.memory_space<vmem>>, vector<1x128x128xbf16>
    %308 = vector.shape_cast %307 : vector<1x128x128xbf16> to vector<128x128xbf16>
    %cst_263 = arith.constant dense<0.000000e+00> : vector<96x128xf32>
    %309 = tpu.matmul %306, %308, %cst_263 {dimension_numbers = #tpu.dot_dimension_numbers<[1], [0], [0], [1], [0, 0, 1, 1], [], []>} : vector<96x128xbf16>, vector<128x128xbf16>, vector<96x128xf32> -> vector<96x128xf32>
    %c110_264 = arith.constant 110 : index
    %c0_265 = arith.constant 0 : index
    %310 = vector.load %arg8[%c110_264, %c0_265] : memref<352x128xbf16, #tpu.memory_space<vmem>>, vector<96x128xbf16>
    %c1_266 = arith.constant 1 : index
    %c0_267 = arith.constant 0 : index
    %c0_268 = arith.constant 0 : index
    %311 = vector.load %arg5[%c1_266, %c0_267, %c0_268] : memref<9x128x128xbf16, #tpu.memory_space<vmem>>, vector<1x128x128xbf16>
    %312 = vector.shape_cast %311 : vector<1x128x128xbf16> to vector<128x128xbf16>
    %cst_269 = arith.constant dense<0.000000e+00> : vector<96x128xf32>
    %313 = tpu.matmul %310, %312, %cst_269 {dimension_numbers = #tpu.dot_dimension_numbers<[1], [0], [0], [1], [0, 0, 1, 1], [], []>} : vector<96x128xbf16>, vector<128x128xbf16>, vector<96x128xf32> -> vector<96x128xf32>
    %314 = arith.addf %309, %313 : vector<96x128xf32>
    %c111_270 = arith.constant 111 : index
    %c0_271 = arith.constant 0 : index
    %315 = vector.load %arg8[%c111_270, %c0_271] : memref<352x128xbf16, #tpu.memory_space<vmem>>, vector<96x128xbf16>
    %c2_272 = arith.constant 2 : index
    %c0_273 = arith.constant 0 : index
    %c0_274 = arith.constant 0 : index
    %316 = vector.load %arg5[%c2_272, %c0_273, %c0_274] : memref<9x128x128xbf16, #tpu.memory_space<vmem>>, vector<1x128x128xbf16>
    %317 = vector.shape_cast %316 : vector<1x128x128xbf16> to vector<128x128xbf16>
    %cst_275 = arith.constant dense<0.000000e+00> : vector<96x128xf32>
    %318 = tpu.matmul %315, %317, %cst_275 {dimension_numbers = #tpu.dot_dimension_numbers<[1], [0], [0], [1], [0, 0, 1, 1], [], []>} : vector<96x128xbf16>, vector<128x128xbf16>, vector<96x128xf32> -> vector<96x128xf32>
    %319 = arith.addf %314, %318 : vector<96x128xf32>
    %c127_276 = arith.constant 127 : index
    %c0_277 = arith.constant 0 : index
    %320 = vector.load %arg8[%c127_276, %c0_277] : memref<352x128xbf16, #tpu.memory_space<vmem>>, vector<96x128xbf16>
    %c3_278 = arith.constant 3 : index
    %c0_279 = arith.constant 0 : index
    %c0_280 = arith.constant 0 : index
    %321 = vector.load %arg5[%c3_278, %c0_279, %c0_280] : memref<9x128x128xbf16, #tpu.memory_space<vmem>>, vector<1x128x128xbf16>
    %322 = vector.shape_cast %321 : vector<1x128x128xbf16> to vector<128x128xbf16>
    %cst_281 = arith.constant dense<0.000000e+00> : vector<96x128xf32>
    %323 = tpu.matmul %320, %322, %cst_281 {dimension_numbers = #tpu.dot_dimension_numbers<[1], [0], [0], [1], [0, 0, 1, 1], [], []>} : vector<96x128xbf16>, vector<128x128xbf16>, vector<96x128xf32> -> vector<96x128xf32>
    %324 = arith.addf %319, %323 : vector<96x128xf32>
    %c128_282 = arith.constant 128 : index
    %c0_283 = arith.constant 0 : index
    %325 = vector.load %arg8[%c128_282, %c0_283] : memref<352x128xbf16, #tpu.memory_space<vmem>>, vector<96x128xbf16>
    %c4_284 = arith.constant 4 : index
    %c0_285 = arith.constant 0 : index
    %c0_286 = arith.constant 0 : index
    %326 = vector.load %arg5[%c4_284, %c0_285, %c0_286] : memref<9x128x128xbf16, #tpu.memory_space<vmem>>, vector<1x128x128xbf16>
    %327 = vector.shape_cast %326 : vector<1x128x128xbf16> to vector<128x128xbf16>
    %cst_287 = arith.constant dense<0.000000e+00> : vector<96x128xf32>
    %328 = tpu.matmul %325, %327, %cst_287 {dimension_numbers = #tpu.dot_dimension_numbers<[1], [0], [0], [1], [0, 0, 1, 1], [], []>} : vector<96x128xbf16>, vector<128x128xbf16>, vector<96x128xf32> -> vector<96x128xf32>
    %329 = arith.addf %324, %328 : vector<96x128xf32>
    %c129_288 = arith.constant 129 : index
    %c0_289 = arith.constant 0 : index
    %330 = vector.load %arg8[%c129_288, %c0_289] : memref<352x128xbf16, #tpu.memory_space<vmem>>, vector<96x128xbf16>
    %c5_290 = arith.constant 5 : index
    %c0_291 = arith.constant 0 : index
    %c0_292 = arith.constant 0 : index
    %331 = vector.load %arg5[%c5_290, %c0_291, %c0_292] : memref<9x128x128xbf16, #tpu.memory_space<vmem>>, vector<1x128x128xbf16>
    %332 = vector.shape_cast %331 : vector<1x128x128xbf16> to vector<128x128xbf16>
    %cst_293 = arith.constant dense<0.000000e+00> : vector<96x128xf32>
    %333 = tpu.matmul %330, %332, %cst_293 {dimension_numbers = #tpu.dot_dimension_numbers<[1], [0], [0], [1], [0, 0, 1, 1], [], []>} : vector<96x128xbf16>, vector<128x128xbf16>, vector<96x128xf32> -> vector<96x128xf32>
    %334 = arith.addf %329, %333 : vector<96x128xf32>
    %c145_294 = arith.constant 145 : index
    %c0_295 = arith.constant 0 : index
    %335 = vector.load %arg8[%c145_294, %c0_295] : memref<352x128xbf16, #tpu.memory_space<vmem>>, vector<96x128xbf16>
    %c6_296 = arith.constant 6 : index
    %c0_297 = arith.constant 0 : index
    %c0_298 = arith.constant 0 : index
    %336 = vector.load %arg5[%c6_296, %c0_297, %c0_298] : memref<9x128x128xbf16, #tpu.memory_space<vmem>>, vector<1x128x128xbf16>
    %337 = vector.shape_cast %336 : vector<1x128x128xbf16> to vector<128x128xbf16>
    %cst_299 = arith.constant dense<0.000000e+00> : vector<96x128xf32>
    %338 = tpu.matmul %335, %337, %cst_299 {dimension_numbers = #tpu.dot_dimension_numbers<[1], [0], [0], [1], [0, 0, 1, 1], [], []>} : vector<96x128xbf16>, vector<128x128xbf16>, vector<96x128xf32> -> vector<96x128xf32>
    %339 = arith.addf %334, %338 : vector<96x128xf32>
    %c146_300 = arith.constant 146 : index
    %c0_301 = arith.constant 0 : index
    %340 = vector.load %arg8[%c146_300, %c0_301] : memref<352x128xbf16, #tpu.memory_space<vmem>>, vector<96x128xbf16>
    %c7_302 = arith.constant 7 : index
    %c0_303 = arith.constant 0 : index
    %c0_304 = arith.constant 0 : index
    %341 = vector.load %arg5[%c7_302, %c0_303, %c0_304] : memref<9x128x128xbf16, #tpu.memory_space<vmem>>, vector<1x128x128xbf16>
    %342 = vector.shape_cast %341 : vector<1x128x128xbf16> to vector<128x128xbf16>
    %cst_305 = arith.constant dense<0.000000e+00> : vector<96x128xf32>
    %343 = tpu.matmul %340, %342, %cst_305 {dimension_numbers = #tpu.dot_dimension_numbers<[1], [0], [0], [1], [0, 0, 1, 1], [], []>} : vector<96x128xbf16>, vector<128x128xbf16>, vector<96x128xf32> -> vector<96x128xf32>
    %344 = arith.addf %339, %343 : vector<96x128xf32>
    %c147_306 = arith.constant 147 : index
    %c0_307 = arith.constant 0 : index
    %345 = vector.load %arg8[%c147_306, %c0_307] : memref<352x128xbf16, #tpu.memory_space<vmem>>, vector<96x128xbf16>
    %c8_308 = arith.constant 8 : index
    %c0_309 = arith.constant 0 : index
    %c0_310 = arith.constant 0 : index
    %346 = vector.load %arg5[%c8_308, %c0_309, %c0_310] : memref<9x128x128xbf16, #tpu.memory_space<vmem>>, vector<1x128x128xbf16>
    %347 = vector.shape_cast %346 : vector<1x128x128xbf16> to vector<128x128xbf16>
    %cst_311 = arith.constant dense<0.000000e+00> : vector<96x128xf32>
    %348 = tpu.matmul %345, %347, %cst_311 {dimension_numbers = #tpu.dot_dimension_numbers<[1], [0], [0], [1], [0, 0, 1, 1], [], []>} : vector<96x128xbf16>, vector<128x128xbf16>, vector<96x128xf32> -> vector<96x128xf32>
    %349 = arith.addf %344, %348 : vector<96x128xf32>
    %350 = vector.broadcast %5 : vector<1x128xf32> to vector<96x128xf32>
    %351 = arith.addf %349, %350 : vector<96x128xf32>
    %352 = arith.truncf %351 : vector<96x128xf32> to vector<96x128xbf16>
    %c1_312 = arith.constant 1 : index
    %c96_313 = arith.constant 96 : index
    %c0_314 = arith.constant 0 : index
    %353 = vector.load %arg7[%c1_312, %c96_313, %c0_314] : memref<2x288x128xbf16, #tpu.memory_space<vmem>>, vector<1x96x128xbf16>
    %354 = vector.shape_cast %353 : vector<1x96x128xbf16> to vector<96x128xbf16>
    %355 = vector.shape_cast %352 : vector<96x128xbf16> to vector<1x96x128xbf16>
    tpu.vector_store %arg7[%c1_312, %c96_313, %c0_314], %355 {strides = array<i32>} : memref<2x288x128xbf16, #tpu.memory_space<vmem>>, vector<1x96x128xbf16>,
    %c205_315 = arith.constant 205 : index
    %c0_316 = arith.constant 0 : index
    %356 = vector.load %arg8[%c205_315, %c0_316] : memref<352x128xbf16, #tpu.memory_space<vmem>>, vector<96x128xbf16>
    %c0_317 = arith.constant 0 : index
    %c0_318 = arith.constant 0 : index
    %c0_319 = arith.constant 0 : index
    %357 = vector.load %arg5[%c0_317, %c0_318, %c0_319] : memref<9x128x128xbf16, #tpu.memory_space<vmem>>, vector<1x128x128xbf16>
    %358 = vector.shape_cast %357 : vector<1x128x128xbf16> to vector<128x128xbf16>
    %cst_320 = arith.constant dense<0.000000e+00> : vector<96x128xf32>
    %359 = tpu.matmul %356, %358, %cst_320 {dimension_numbers = #tpu.dot_dimension_numbers<[1], [0], [0], [1], [0, 0, 1, 1], [], []>} : vector<96x128xbf16>, vector<128x128xbf16>, vector<96x128xf32> -> vector<96x128xf32>
    %c206_321 = arith.constant 206 : index
    %c0_322 = arith.constant 0 : index
    %360 = vector.load %arg8[%c206_321, %c0_322] : memref<352x128xbf16, #tpu.memory_space<vmem>>, vector<96x128xbf16>
    %c1_323 = arith.constant 1 : index
    %c0_324 = arith.constant 0 : index
    %c0_325 = arith.constant 0 : index
    %361 = vector.load %arg5[%c1_323, %c0_324, %c0_325] : memref<9x128x128xbf16, #tpu.memory_space<vmem>>, vector<1x128x128xbf16>
    %362 = vector.shape_cast %361 : vector<1x128x128xbf16> to vector<128x128xbf16>
    %cst_326 = arith.constant dense<0.000000e+00> : vector<96x128xf32>
    %363 = tpu.matmul %360, %362, %cst_326 {dimension_numbers = #tpu.dot_dimension_numbers<[1], [0], [0], [1], [0, 0, 1, 1], [], []>} : vector<96x128xbf16>, vector<128x128xbf16>, vector<96x128xf32> -> vector<96x128xf32>
    %364 = arith.addf %359, %363 : vector<96x128xf32>
    %c207_327 = arith.constant 207 : index
    %c0_328 = arith.constant 0 : index
    %365 = vector.load %arg8[%c207_327, %c0_328] : memref<352x128xbf16, #tpu.memory_space<vmem>>, vector<96x128xbf16>
    %c2_329 = arith.constant 2 : index
    %c0_330 = arith.constant 0 : index
    %c0_331 = arith.constant 0 : index
    %366 = vector.load %arg5[%c2_329, %c0_330, %c0_331] : memref<9x128x128xbf16, #tpu.memory_space<vmem>>, vector<1x128x128xbf16>
    %367 = vector.shape_cast %366 : vector<1x128x128xbf16> to vector<128x128xbf16>
    %cst_332 = arith.constant dense<0.000000e+00> : vector<96x128xf32>
    %368 = tpu.matmul %365, %367, %cst_332 {dimension_numbers = #tpu.dot_dimension_numbers<[1], [0], [0], [1], [0, 0, 1, 1], [], []>} : vector<96x128xbf16>, vector<128x128xbf16>, vector<96x128xf32> -> vector<96x128xf32>
    %369 = arith.addf %364, %368 : vector<96x128xf32>
    %c223_333 = arith.constant 223 : index
    %c0_334 = arith.constant 0 : index
    %370 = vector.load %arg8[%c223_333, %c0_334] : memref<352x128xbf16, #tpu.memory_space<vmem>>, vector<96x128xbf16>
    %c3_335 = arith.constant 3 : index
    %c0_336 = arith.constant 0 : index
    %c0_337 = arith.constant 0 : index
    %371 = vector.load %arg5[%c3_335, %c0_336, %c0_337] : memref<9x128x128xbf16, #tpu.memory_space<vmem>>, vector<1x128x128xbf16>
    %372 = vector.shape_cast %371 : vector<1x128x128xbf16> to vector<128x128xbf16>
    %cst_338 = arith.constant dense<0.000000e+00> : vector<96x128xf32>
    %373 = tpu.matmul %370, %372, %cst_338 {dimension_numbers = #tpu.dot_dimension_numbers<[1], [0], [0], [1], [0, 0, 1, 1], [], []>} : vector<96x128xbf16>, vector<128x128xbf16>, vector<96x128xf32> -> vector<96x128xf32>
    %374 = arith.addf %369, %373 : vector<96x128xf32>
    %c224_339 = arith.constant 224 : index
    %c0_340 = arith.constant 0 : index
    %375 = vector.load %arg8[%c224_339, %c0_340] : memref<352x128xbf16, #tpu.memory_space<vmem>>, vector<96x128xbf16>
    %c4_341 = arith.constant 4 : index
    %c0_342 = arith.constant 0 : index
    %c0_343 = arith.constant 0 : index
    %376 = vector.load %arg5[%c4_341, %c0_342, %c0_343] : memref<9x128x128xbf16, #tpu.memory_space<vmem>>, vector<1x128x128xbf16>
    %377 = vector.shape_cast %376 : vector<1x128x128xbf16> to vector<128x128xbf16>
    %cst_344 = arith.constant dense<0.000000e+00> : vector<96x128xf32>
    %378 = tpu.matmul %375, %377, %cst_344 {dimension_numbers = #tpu.dot_dimension_numbers<[1], [0], [0], [1], [0, 0, 1, 1], [], []>} : vector<96x128xbf16>, vector<128x128xbf16>, vector<96x128xf32> -> vector<96x128xf32>
    %379 = arith.addf %374, %378 : vector<96x128xf32>
    %c225_345 = arith.constant 225 : index
    %c0_346 = arith.constant 0 : index
    %380 = vector.load %arg8[%c225_345, %c0_346] : memref<352x128xbf16, #tpu.memory_space<vmem>>, vector<96x128xbf16>
    %c5_347 = arith.constant 5 : index
    %c0_348 = arith.constant 0 : index
    %c0_349 = arith.constant 0 : index
    %381 = vector.load %arg5[%c5_347, %c0_348, %c0_349] : memref<9x128x128xbf16, #tpu.memory_space<vmem>>, vector<1x128x128xbf16>
    %382 = vector.shape_cast %381 : vector<1x128x128xbf16> to vector<128x128xbf16>
    %cst_350 = arith.constant dense<0.000000e+00> : vector<96x128xf32>
    %383 = tpu.matmul %380, %382, %cst_350 {dimension_numbers = #tpu.dot_dimension_numbers<[1], [0], [0], [1], [0, 0, 1, 1], [], []>} : vector<96x128xbf16>, vector<128x128xbf16>, vector<96x128xf32> -> vector<96x128xf32>
    %384 = arith.addf %379, %383 : vector<96x128xf32>
    %c241_351 = arith.constant 241 : index
    %c0_352 = arith.constant 0 : index
    %385 = vector.load %arg8[%c241_351, %c0_352] : memref<352x128xbf16, #tpu.memory_space<vmem>>, vector<96x128xbf16>
    %c6_353 = arith.constant 6 : index
    %c0_354 = arith.constant 0 : index
    %c0_355 = arith.constant 0 : index
    %386 = vector.load %arg5[%c6_353, %c0_354, %c0_355] : memref<9x128x128xbf16, #tpu.memory_space<vmem>>, vector<1x128x128xbf16>
    %387 = vector.shape_cast %386 : vector<1x128x128xbf16> to vector<128x128xbf16>
    %cst_356 = arith.constant dense<0.000000e+00> : vector<96x128xf32>
    %388 = tpu.matmul %385, %387, %cst_356 {dimension_numbers = #tpu.dot_dimension_numbers<[1], [0], [0], [1], [0, 0, 1, 1], [], []>} : vector<96x128xbf16>, vector<128x128xbf16>, vector<96x128xf32> -> vector<96x128xf32>
    %389 = arith.addf %384, %388 : vector<96x128xf32>
    %c242_357 = arith.constant 242 : index
    %c0_358 = arith.constant 0 : index
    %390 = vector.load %arg8[%c242_357, %c0_358] : memref<352x128xbf16, #tpu.memory_space<vmem>>, vector<96x128xbf16>
    %c7_359 = arith.constant 7 : index
    %c0_360 = arith.constant 0 : index
    %c0_361 = arith.constant 0 : index
    %391 = vector.load %arg5[%c7_359, %c0_360, %c0_361] : memref<9x128x128xbf16, #tpu.memory_space<vmem>>, vector<1x128x128xbf16>
    %392 = vector.shape_cast %391 : vector<1x128x128xbf16> to vector<128x128xbf16>
    %cst_362 = arith.constant dense<0.000000e+00> : vector<96x128xf32>
    %393 = tpu.matmul %390, %392, %cst_362 {dimension_numbers = #tpu.dot_dimension_numbers<[1], [0], [0], [1], [0, 0, 1, 1], [], []>} : vector<96x128xbf16>, vector<128x128xbf16>, vector<96x128xf32> -> vector<96x128xf32>
    %394 = arith.addf %389, %393 : vector<96x128xf32>
    %c243_363 = arith.constant 243 : index
    %c0_364 = arith.constant 0 : index
    %395 = vector.load %arg8[%c243_363, %c0_364] : memref<352x128xbf16, #tpu.memory_space<vmem>>, vector<96x128xbf16>
    %c8_365 = arith.constant 8 : index
    %c0_366 = arith.constant 0 : index
    %c0_367 = arith.constant 0 : index
    %396 = vector.load %arg5[%c8_365, %c0_366, %c0_367] : memref<9x128x128xbf16, #tpu.memory_space<vmem>>, vector<1x128x128xbf16>
    %397 = vector.shape_cast %396 : vector<1x128x128xbf16> to vector<128x128xbf16>
    %cst_368 = arith.constant dense<0.000000e+00> : vector<96x128xf32>
    %398 = tpu.matmul %395, %397, %cst_368 {dimension_numbers = #tpu.dot_dimension_numbers<[1], [0], [0], [1], [0, 0, 1, 1], [], []>} : vector<96x128xbf16>, vector<128x128xbf16>, vector<96x128xf32> -> vector<96x128xf32>
    %399 = arith.addf %394, %398 : vector<96x128xf32>
    %400 = vector.broadcast %5 : vector<1x128xf32> to vector<96x128xf32>
    %401 = arith.addf %399, %400 : vector<96x128xf32>
    %402 = arith.truncf %401 : vector<96x128xf32> to vector<96x128xbf16>
    %c1_369 = arith.constant 1 : index
    %c192_370 = arith.constant 192 : index
    %c0_371 = arith.constant 0 : index
    %403 = vector.load %arg7[%c1_369, %c192_370, %c0_371] : memref<2x288x128xbf16, #tpu.memory_space<vmem>>, vector<1x96x128xbf16>
    %404 = vector.shape_cast %403 : vector<1x96x128xbf16> to vector<96x128xbf16>
    %405 = vector.shape_cast %402 : vector<96x128xbf16> to vector<1x96x128xbf16>
    tpu.vector_store %arg7[%c1_369, %c192_370, %c0_371], %405 {strides = array<i32>} : memref<2x288x128xbf16, #tpu.memory_space<vmem>>, vector<1x96x128xbf16>,
    return
  }
  func.func @transform_0(%arg0: i32) -> (i32, i32, i32) {
    %c0_i32 = arith.constant 0 : i32
    %c0_i32_0 = arith.constant 0 : i32
    %c0_i32_1 = arith.constant 0 : i32
    return %arg0, %c0_i32, %c0_i32_0 : i32, i32, i32
  }
  func.func @transform_1(%arg0: i32) -> (i32, i32, i32) {
    %c0_i32 = arith.constant 0 : i32
    %c0_i32_0 = arith.constant 0 : i32
    %c0_i32_1 = arith.constant 0 : i32
    return %arg0, %c0_i32, %c0_i32_0 : i32, i32, i32
  }
  func.func @transform_2(%arg0: i32) -> (i32, i32) {
    %c0_i32 = arith.constant 0 : i32
    %c0_i32_0 = arith.constant 0 : i32
    %c0_i32_1 = arith.constant 0 : i32
    return %c0_i32, %c0_i32_0 : i32, i32
  }
  func.func @transform_3(%arg0: i32) -> (i32, i32) {
    %c0_i32 = arith.constant 0 : i32
    %c0_i32_0 = arith.constant 0 : i32
    %c0_i32_1 = arith.constant 0 : i32
    return %c0_i32, %c0_i32_0 : i32, i32
  }
  func.func @transform_4(%arg0: i32) -> (i32, i32, i32) {
    %c0_i32 = arith.constant 0 : i32
    %c0_i32_0 = arith.constant 0 : i32
    %c0_i32_1 = arith.constant 0 : i32
    %c0_i32_2 = arith.constant 0 : i32
    return %c0_i32, %c0_i32_0, %c0_i32_1 : i32, i32, i32
  }
  func.func @transform_5(%arg0: i32) -> (i32, i32) {
    %c0_i32 = arith.constant 0 : i32
    %c0_i32_0 = arith.constant 0 : i32
    %c0_i32_1 = arith.constant 0 : i32
    return %c0_i32, %c0_i32_0 : i32, i32
  }
  func.func @transform_6(%arg0: i32) -> (i32, i32, i32) {
    %c0_i32 = arith.constant 0 : i32
    %c0_i32_0 = arith.constant 0 : i32
    %c0_i32_1 = arith.constant 0 : i32
    return %arg0, %c0_i32, %c0_i32_0 : i32, i32, i32
  }
}

</mosaic_0001>

<bundles_post_ra>
// kernel: tpu_custom_call.1
= control target key start
LH: loop header
LB: loop body
LE: loop exit
PB: predicated region body
PF: predicated region fallthrough
CT: control target
= control target key end

     0   :  { %v20378_v2 = vmov 0   ;;  %vm99_vm0 = vcmask 261120   ;;  %vm1245_vm1 = vcmask 1044480   ;;  %vm1397_vm2 = vsmask.f32 5376  ;;  %s26332_s0 = inlined_call_operand.vmem [shape: bf16[2,288,32], index: 0, kind: input, shape index: {}]   ;;  %s26333_s1 = inlined_call_operand.vmem [shape: f32[2,1,128], index: 1, kind: input, shape index: {}]   ;;  %s26334_s2 = inlined_call_operand.vmem [shape: f32[288,1], index: 2, kind: input, shape index: {}]   ;;  %s26335_s3 = inlined_call_operand.vmem [shape: bf16[32,128], index: 3, kind: input, shape index: {}]   ;;  %s26336_s4 = inlined_call_operand.vmem [shape: bf16[9,128,128], index: 4, kind: input, shape index: {}]   ;;  %s26337_s5 = inlined_call_operand.vmem [shape: f32[1,128], index: 5, kind: input, shape index: {}]   ;;  %s26338_s6 = inlined_call_operand.hbm [shape: bf16[2,288,128], index: 6, kind: output, shape index: {}]  }
   0x1   :  { %v20420_v0 = vld [vmem:[%s26334_s2 + $0x10] sm:$0xff]  ;;  %v20425_v1 = vld [vmem:[%s26334_s2] sm:$0xff]  ;;  %19361 = vset.pattern.permute.xlu1 %v20378_v2  ;;  %26 = vst [vmem:[#allocation2 + $0x4] sm:$0xf] %v20378_v2  ;;  %27 = vst [vmem:[#allocation2 + $0x8] sm:$0xf] %v20378_v2  ;;  %19360 = vset.pattern.permute.xlu0 %v20378_v2 }
   0x2   :  { %28 = vst [vmem:[#allocation2 + $0xc] sm:$0xf] %v20378_v2  ;;  %29 = vst [vmem:[#allocation2 + $0xa0] sm:$0xf] %v20378_v2  ;;  %v19362_v3 = vld [vmem:[%s26335_s3 + $0x8] sm:$0xff]   ;;  %v20433_v4 = vld [vmem:[%s26334_s2 + $0x18] sm:$0xff]  ;;  %307 = vperm.xlu1 %19361, %v20420_v0   ;;  %297 = vperm.xlu0 %19360, %v20425_v1  }
   0x3   :  { %30 = vst [vmem:[#allocation2 + $0xa4] sm:$0xf] %v20378_v2  ;;  %31 = vst [vmem:[#allocation2 + $0xa8] sm:$0xf] %v20378_v2  ;;  %v20440_v5 = vld [vmem:[%s26334_s2 + $0x8] sm:$0xff]  ;;  %17748 = vmatprep.subr.bf16.mxu0 %v19362_v3  ;;  %17764 = vmatprep.subr.bf16.mxu1 %v19362_v3  ;;  %v19363_v6 = vld [vmem:[%s26335_s3] sm:$0xff]  }
   0x4   :  { %17749 = vmatpush3.bf16.msra.mxu0 %v19362_v3  ;;  %17765 = vmatpush3.bf16.msra.mxu1 %v19362_v3  ;;  %v19364_v7 = vld [vmem:[%s26332_s0] sm:$0xff]   ;;  %v19365_v8 = vld [vmem:[%s26332_s0 + $0x30] sm:$0xff]   ;;  %v20454_v9 = vld [vmem:[%s26334_s2 + $0x28] sm:$0xff]  ;;  %vm1616_vm3 = vsmask.f32 4352  ;;  %vm2789_vm5 = vcmask 1046528  }
   0x5   :  { %17750 = vmatprep.subr.bf16.mxu0 %v19363_v6  ;;  %17766 = vmatprep.subr.bf16.mxu1 %v19363_v6  ;;  %v20459_v10 = vld [vmem:[%s26334_s2 + $0x20] sm:$0xff]  ;;  %v19366_v11 = vld [vmem:[%s26332_s0 + $0x8] sm:$0xff]   ;;  %v19367_v12 = vld [vmem:[%s26332_s0 + $0x38] sm:$0xff]   ;;  %vm2306_vm4 = vsmask.f32 7424 }
   0x6   :  { %312 = vperm.xlu1 %19361, %v20433_v4   ;;  %302 = vperm.xlu0 %19360, %v20440_v5   ;;  %v19368_v13 = vld [vmem:[%s26332_s0 + $0x10] sm:$0xff]   ;;  %v20479_v14 = vld [vmem:[%s26334_s2 + $0x38] sm:$0xff]  ;;  %v19369_v15 = vld [vmem:[%s26332_s0 + $0x40] sm:$0xff]   ;;  %vm2971_vm6 = vsmask.f32 6400 }
   0x7   :  { %17752 = vmatprep.mubr.msk.bf16.mxu0 %vm99_vm0, %v19364_v7  ;;  %17768 = vmatprep.mubr.msk.bf16.mxu1 %vm99_vm0, %v19365_v8  ;;  %v20489_v16 = vld [vmem:[%s26334_s2 + $0x30] sm:$0xff]  ;;  %v20496_v17 = vld [vmem:[%s26334_s2 + $0x48] sm:$0xff]  ;;  %v20501_v18 = vld [vmem:[%s26334_s2 + $0x40] sm:$0xff] }
   0x8   :  { %17751 = vmatpush3.bf16.msra.mxu0 %v19363_v6  ;;  %17767 = vmatpush3.bf16.msra.mxu1 %v19363_v6  ;;  %v19370_v19 = vld [vmem:[%s26332_s0 + $0x18] sm:$0xff]   ;;  %v19371_v20 = vld [vmem:[%s26332_s0 + $0x48] sm:$0xff]   ;;  %v19372_v21 = vld [vmem:[%s26332_s0 + $0x20] sm:$0xff]  }
   0x9   :  { %17780 = vmatprep.subr.bf16.mxu0 %v19362_v3  ;;  %v19373_v22 = vld [vmem:[%s26332_s0 + $0x50] sm:$0xff]   ;;  %v20522_v23 = vld [vmem:[%s26334_s2 + $0x58] sm:$0xff]  ;;  %v20538_v25 = vld [vmem:[%s26334_s2 + $0x68] sm:$0xff] }
   0xa   :  { %322 = vperm.xlu1 %19361, %v20454_v9   ;;  %317 = vperm.xlu0 %19360, %v20459_v10   ;;  %v20529_v24 = vld [vmem:[%s26334_s2 + $0x50] sm:$0xff]  ;;  %v20543_v26 = vld [vmem:[%s26334_s2 + $0x60] sm:$0xff]  ;;  %v19374_v27 = vld [vmem:[%s26332_s0 + $0x28] sm:$0xff]  }
   0xb   :  { %17753 = vmatmul.mubr.msk.bf16.vlgmr.msra.gmra.mxu0 %vm99_vm0, %v19366_v11  ;;  %17769 = vmatmul.mubr.msk.bf16.vlgmr.msra.gmra.mxu1 %vm99_vm0, %v19367_v12  ;;  %v19375_v28 = vld [vmem:[%s26332_s0 + $0x58] sm:$0xff]   ;;  %v19376_v29 = vld [vmem:[%s26332_s0 + $0x60] sm:$0xff]   ;;  %v20566_v31 = vld [vmem:[%s26334_s2 + $0x70] sm:$0xff] }
   0xc   :  { %17756 = vmatprep.mubr.msk.bf16.mxu0 %vm99_vm0, %v19368_v13  ;;  %17772 = vmatprep.mubr.msk.bf16.mxu1 %vm99_vm0, %v19369_v15  ;;  %v20561_v30 = vld [vmem:[%s26334_s2 + $0x78] sm:$0xff]  ;;  %v20574_v32 = vld [vmem:[%s26334_s2 + $0x88] sm:$0xff]  ;;  %v20579_v33 = vld [vmem:[%s26334_s2 + $0x80] sm:$0xff] }
   0xd   :  { %17781 = vmatpush3.bf16.msra.mxu0 %v19362_v3  ;;  %v19377_v34 = vld [vmem:[%s26332_s0 + $0x68] sm:$0xff]   ;;  %v19378_v35 = vld [vmem:[%s26332_s0 + $0x70] sm:$0xff]   ;;  %v20590_v36 = vld [vmem:[%s26334_s2 + $0x98] sm:$0xff] }
   0xe   :  { %332 = vperm.xlu1 %19361, %v20479_v14   ;;  %327 = vperm.xlu0 %19360, %v20489_v16   ;;  %v20595_v37 = vld [vmem:[%s26334_s2 + $0x90] sm:$0xff]  ;;  %v661_v38 = vld [vmem:[%s26334_s2 + $0xa8] sm:$0xff]  ;;  %v660_v39 = vld [vmem:[%s26334_s2 + $0xa0] sm:$0xff] }
   0xf   :  { %17782 = vmatprep.subr.bf16.mxu0 %v19363_v6  ;;  %v19379_v40 = vld [vmem:[%s26332_s0 + $0x78] sm:$0xff]   ;;  %v19380_v41 = vld [vmem:[%s26332_s0 + $0x80] sm:$0xff]   ;;  %v662_v43 = vld [vmem:[%s26334_s2 + $0xb0] sm:$0xff] }
  0x10   :  { %v663_v42 = vld [vmem:[%s26334_s2 + $0xb8] sm:$0xff]  ;;  %v1022_v44 = vld [vmem:[%s26334_s2 + $0xc8] sm:$0xff]  ;;  %v1021_v45 = vld [vmem:[%s26334_s2 + $0xc0] sm:$0xff] }
  0x11   :  { %17783 = vmatpush3.bf16.msra.mxu0 %v19363_v6  ;;  %v19381_v46 = vld [vmem:[%s26332_s0 + $0x88] sm:$0xff]   ;;  %v1024_v47 = vld [vmem:[%s26334_s2 + $0xd8] sm:$0xff]  ;;  %v1023_v48 = vld [vmem:[%s26334_s2 + $0xd0] sm:$0xff] }
  0x12   :  { %342 = vperm.xlu1 %19361, %v20496_v17   ;;  %337 = vperm.xlu0 %19360, %v20501_v18   ;;  %v1026_v49 = vld [vmem:[%s26334_s2 + $0xe8] sm:$0xff]  ;;  %v1025_v50 = vld [vmem:[%s26334_s2 + $0xe0] sm:$0xff]  ;;  %v1028_v51 = vld [vmem:[%s26334_s2 + $0xf8] sm:$0xff] }
  0x13   :  { %17757 = vmatmul.mubr.msk.bf16.gmra.mxu0 %vm99_vm0, %v19370_v19  ;;  %17773 = vmatmul.mubr.msk.bf16.gmra.mxu1 %vm99_vm0, %v19371_v20  ;;  %v1027_v52 = vld [vmem:[%s26334_s2 + $0xf0] sm:$0xff]  ;;  %v1030_v53 = vld [vmem:[%s26334_s2 + $0x108] sm:$0xff]  ;;  %v1029_v54 = vld [vmem:[%s26334_s2 + $0x100] sm:$0xff] }
  0x14   :  { %17760 = vmatprep.mubr.msk.bf16.mxu0 %vm99_vm0, %v19372_v21  ;;  %17776 = vmatprep.mubr.msk.bf16.mxu1 %vm99_vm0, %v19373_v22  ;;  %v1032_v55 = vld [vmem:[%s26334_s2 + $0x118] sm:$0xff]  ;;  %v1031_v56 = vld [vmem:[%s26334_s2 + $0x110] sm:$0xff]  ;;  %v19385_v60 = vld [vmem:[%s26336_s4 + $0x68] sm:$0xff]  }
  0x15   :  { %v19382_v57 = vld [vmem:[%s26336_s4 + $0x78] sm:$0xff]   ;;  %v19383_v58 = vld [vmem:[%s26336_s4 + $0x70] sm:$0xff]   ;;  %v19387_v62 = vld [vmem:[%s26336_s4 + $0x60] sm:$0xff]  }
  0x16   :  { %352 = vperm.xlu1 %19361, %v20522_v23   ;;  %347 = vperm.xlu0 %19360, %v20529_v24   ;;  %v19384_v59 = vld [vmem:[%s26336_s4 + $0x38] sm:$0xff]   ;;  %v19386_v61 = vld [vmem:[%s26336_s4 + $0x30] sm:$0xff]   ;;  %v19388_v63 = vld [vmem:[%s26336_s4 + $0x28] sm:$0xff]  }
  0x17   :  { %17796 = vmatprep.subr.bf16.mxu1 %v19382_v57  ;;  %17824 = vmatprep.subr.bf16.mxu0 %v19384_v59  ;;  %v19391_v2 = vld [vmem:[%s26336_s4 + $0x50] sm:$0xff]   ;;  %v19392_v3 = vld [vmem:[%s26336_s4 + $0x18] sm:$0xff]   ;;  %v19395_v6 = vld [vmem:[%s26336_s4 + $0x40] sm:$0xff]  }
  0x18   :  { %17797 = vmatpush3.bf16.msra.mxu1 %v19382_v57  ;;  %v19396_v7 = vld [vmem:[%s26336_s4 + $0x8] sm:$0xff]   ;;  %v19399_v8 = vld [vmem:[%s26336_s4] sm:$0xff]  }
  0x19   :  { %17798 = vmatprep.subr.bf16.mxu1 %v19383_v58  ;;  %v20748_v15 = vld [vmem:[%s26333_s1] ss:$0 sm:$0xff] }
  0x1a   :  { %671 = vperm.xlu1 %19361, %v20538_v25   ;;  %666 = vperm.xlu0 %19360, %v20543_v26  }
  0x1b   :  { %17761 = vmatmul.mubr.msk.bf16.gmra.mxu0 %vm99_vm0, %v19374_v27  ;;  %17777 = vmatmul.mubr.msk.bf16.gmra.mxu1 %vm99_vm0, %v19375_v28 }
  0x1c   :  { %17784 = vmatprep.mubr.msk.bf16.mxu0 %vm99_vm0, %v19376_v29  ;;  %17799 = vmatpush3.bf16.msra.mxu1 %v19383_v58 }
  0x1d   :  { %17800 = vmatprep.subr.bf16.mxu1 %v19385_v60 }
  0x1e   :  { %681 = vperm.xlu1 %19361, %v20561_v30   ;;  %676 = vperm.xlu0 %19360, %v20566_v31  }
  0x20   :  { %17801 = vmatpush3.bf16.msra.mxu1 %v19385_v60 }
  0x21   :  { %17802 = vmatprep.subr.bf16.mxu1 %v19387_v62 }
  0x22   :  { %691 = vperm.xlu1 %19361, %v20574_v32   ;;  %686 = vperm.xlu0 %19360, %v20579_v33  }
  0x23   :  { %17785 = vmatmul.mubr.msk.bf16.vlgmr.msra.gmra.mxu0 %vm99_vm0, %v19377_v34 }
  0x24   :  { %17788 = vmatprep.mubr.msk.bf16.mxu0 %vm99_vm0, %v19378_v35  ;;  %17825 = vmatpush3.bf16.msra.mxu0 %v19384_v59 }
  0x25   :  { %17826 = vmatprep.subr.bf16.mxu0 %v19386_v61  ;;  %17803 = vmatpush3.bf16.msra.mxu1 %v19387_v62 }
  0x26   :  { %701 = vperm.xlu1 %19361, %v20590_v36   ;;  %696 = vperm.xlu0 %19360, %v20595_v37  }
  0x28   :  { %17827 = vmatpush3.bf16.msra.mxu0 %v19386_v61 }
  0x29   :  { %17828 = vmatprep.subr.bf16.mxu0 %v19388_v63 }
  0x2a   :  { %711 = vperm.xlu1 %19361, %v661_v38   ;;  %706 = vperm.xlu0 %19360, %v660_v39  }
  0x2b   :  { %17789 = vmatmul.mubr.msk.bf16.gmra.mxu0 %vm99_vm0, %v19379_v40  ;;  %v1166_v40 = vld [vmem:[#allocation2 + $0x8] sm:$0xf] }
  0x2c   :  { %17792 = vmatprep.mubr.msk.bf16.mxu0 %vm99_vm0, %v19380_v41  ;;  %17829 = vmatpush3.bf16.msra.mxu0 %v19388_v63  ;;  %v1194_v41 = vld [vmem:[#allocation2 + $0x4] sm:$0x8] }
  0x2d   :  { %v20804_v59 = vcombine.low %v1194_v41, %v1166_v40 }
  0x2e   :  { %721 = vperm.xlu1 %19361, %v663_v42   ;;  %716 = vperm.xlu0 %19360, %v662_v43  }
  0x32   :  { %1040 = vperm.xlu1 %19361, %v1022_v44   ;;  %1035 = vperm.xlu0 %19360, %v1021_v45  }
  0x33   :  { %17793 = vmatmul.mubr.msk.bf16.gmra.mxu0 %vm99_vm0, %v19381_v46 }
  0x36   :  { %1050 = vperm.xlu1 %19361, %v1024_v47   ;;  %1045 = vperm.xlu0 %19360, %v1023_v48  }
  0x3a   :  { %1060 = vperm.xlu1 %19361, %v1026_v49   ;;  %1055 = vperm.xlu0 %19360, %v1025_v50  }
  0x3e   :  { %1070 = vperm.xlu1 %19361, %v1028_v51   ;;  %1065 = vperm.xlu0 %19360, %v1027_v52  }
  0x42   :  { %1080 = vperm.xlu1 %19361, %v1030_v53   ;;  %1075 = vperm.xlu0 %19360, %v1029_v54  }
  0x46   :  { %1090 = vperm.xlu1 %19361, %v1032_v55   ;;  %1085 = vperm.xlu0 %19360, %v1031_v56  }
  0x4a   :  { %7585 = vperm.xlu1 %19361, %v20440_v5   ;;  %7580 = vperm.xlu0 %19360, %v20425_v1   ;;  %v19390_v1 = vld [vmem:[%s26336_s4 + $0x20] sm:$0xff]   ;;  %v19394_v5 = vld [vmem:[%s26336_s4 + $0x10] sm:$0xff]  }
  0x4b   :  { %17830 = vmatprep.subr.bf16.mxu0 %v19390_v1 }
  0x4c   :  { %17831 = vmatpush3.bf16.msra.mxu0 %v19390_v1 }
  0x4d   :  { %17832 = vmatprep.subr.bf16.mxu0 %v19392_v3 }
  0x4e   :  { %7595 = vperm.xlu1 %19361, %v20433_v4   ;;  %7590 = vperm.xlu0 %19360, %v20420_v0   ;;  %v19389_v0 = vld [vmem:[%s26336_s4 + $0x58] sm:$0xff]   ;;  %v19393_v4 = vld [vmem:[%s26336_s4 + $0x48] sm:$0xff]  }
  0x4f   :  { %17804 = vmatprep.subr.bf16.mxu1 %v19389_v0 }
  0x50   :  { %17805 = vmatpush3.bf16.msra.mxu1 %v19389_v0  ;;  %17833 = vmatpush3.bf16.msra.mxu0 %v19392_v3 }
  0x51   :  { %17806 = vmatprep.subr.bf16.mxu1 %v19391_v2  ;;  %17834 = vmatprep.subr.bf16.mxu0 %v19394_v5 }
  0x52   :  { %7605 = vperm.xlu1 %19361, %v20454_v9   ;;  %7600 = vperm.xlu0 %19360, %v20459_v10   ;;  %v19400_v9 = vld [vmem:[%s26336_s4 + $0xb8] sm:$0xff]  }
  0x53   :  { %v19404_v10 = vld [vmem:[%s26336_s4 + $0xf8] sm:$0xff]  }
  0x54   :  { %17807 = vmatpush3.bf16.msra.mxu1 %v19391_v2  ;;  %17835 = vmatpush3.bf16.msra.mxu0 %v19394_v5 }
  0x55   :  { %17808 = vmatprep.subr.bf16.mxu1 %v19393_v4  ;;  %17836 = vmatprep.subr.bf16.mxu0 %v19396_v7 }
  0x56   :  { %7615 = vperm.xlu1 %19361, %v20479_v14   ;;  %7610 = vperm.xlu0 %19360, %v20489_v16  }
  0x58   :  { %17809 = vmatpush3.bf16.msra.mxu1 %v19393_v4  ;;  %17837 = vmatpush3.bf16.msra.mxu0 %v19396_v7 }
  0x59   :  { %17810 = vmatprep.subr.bf16.mxu1 %v19395_v6  ;;  %17838 = vmatprep.subr.bf16.mxu0 %v19399_v8 }
  0x5a   :  { %7625 = vperm.xlu1 %19361, %v20496_v17   ;;  %7620 = vperm.xlu0 %19360, %v20501_v18  }
  0x5c   :  { %17811 = vmatpush3.bf16.msra.mxu1 %v19395_v6  ;;  %17839 = vmatpush3.bf16.msra.mxu0 %v19399_v8 }
  0x5d   :  { %17852 = vmatprep.subr.bf16.mxu1 %v19400_v9  ;;  %17880 = vmatprep.subr.bf16.mxu0 %v19404_v10 }
  0x5e   :  { %7635 = vperm.xlu1 %19361, %v20522_v23   ;;  %7630 = vperm.xlu0 %19360, %v20529_v24  }
  0x62   :  { %7954 = vperm.xlu1 %19361, %v20538_v25   ;;  %7949 = vperm.xlu0 %19360, %v20543_v26  }
  0x66   :  { %7964 = vperm.xlu1 %19361, %v20561_v30   ;;  %7959 = vperm.xlu0 %19360, %v20566_v31  }
  0x6a   :  { %7974 = vperm.xlu1 %19361, %v20574_v32   ;;  %7969 = vperm.xlu0 %19360, %v20579_v33  }
  0x6e   :  { %7984 = vperm.xlu1 %19361, %v20590_v36   ;;  %7979 = vperm.xlu0 %19360, %v20595_v37  }
  0x72   :  { %7994 = vperm.xlu1 %19361, %v661_v38   ;;  %7989 = vperm.xlu0 %19360, %v660_v39  }
  0x76   :  { %8004 = vperm.xlu1 %19361, %v663_v42   ;;  %7999 = vperm.xlu0 %19360, %v662_v43  }
  0x7a   :  { %8323 = vperm.xlu1 %19361, %v1022_v44   ;;  %8318 = vperm.xlu0 %19360, %v1021_v45  }
  0x7d   :  { %v20737_v11 = vpop.permute.xlu0 %297  ;;  %v20739_v12 = vpop.permute.xlu1 %307 }
  0x7e   :  { %8333 = vperm.xlu1 %19361, %v1024_v47   ;;  %8328 = vperm.xlu0 %19360, %v1023_v48  }
  0x81   :  { %v20741_v13 = vpop.permute.xlu0 %302  ;;  %v20743_v14 = vpop.permute.xlu1 %312 }
  0x82   :  { %8343 = vperm.xlu1 %19361, %v1026_v49   ;;  %8338 = vperm.xlu0 %19360, %v1025_v50   ;;  %v1165_v49 = vld [vmem:[#allocation2 + $0x4] sm:$0xc] }
  0x83   :  { %v20816_v3 = vcombine.low %v1165_v49, %v1166_v40 }
  0x85   :  { %v20750_v18 = vpop.permute.xlu0 %317  ;;  %v20758_v23 = vpop.permute.xlu1 %322 }
  0x86   :  { %8353 = vperm.xlu1 %19361, %v1028_v51   ;;  %8348 = vperm.xlu0 %19360, %v1027_v52  }
  0x89   :  { %v20776_v36 = vpop.permute.xlu0 %327  ;;  %v20786_v45 = vpop.permute.xlu1 %332 }
  0x8a   :  { %8363 = vperm.xlu1 %19361, %v1030_v53   ;;  %8358 = vperm.xlu0 %19360, %v1029_v54  }
  0x8d   :  { %v20806_v60 = vpop.permute.xlu0 %337  ;;  %v20818_v4 = vpop.permute.xlu1 %342 }
  0x8e   :  { %8373 = vperm.xlu1 %19361, %v1032_v55   ;;  %8368 = vperm.xlu0 %19360, %v1031_v56   ;;  %26399 = vst [vmem:[#allocation6_spill] sm:$0xff] %v20806_v60  ;;  %26400 = vst [vmem:[#allocation7_spill] sm:$0xff] %v20818_v4 }
  0xcb   :  { %v17754_v16 = vpop.f32.mrf.mxu0  ;;  %v17770_v17 = vpop.f32.mrf.mxu1 }
  0xcc   :  { %v20753_v19 = vadd.f32 %v17754_v16, %v20748_v15  ;;  %v20756_v20 = vadd.f32 %v17770_v17, %v20748_v15 }
  0xcd   :  { %v152_v21 = vpop.f32.mrf.mxu0  ;;  %v521_v22 = vpop.f32.mrf.mxu1 }
  0xce   :  { %v14629_v24 = vmul.f32 -1.442695, %v20753_v19  ;;  %v14665_v25 = vmul.f32 -1.442695, %v20756_v20  ;;  %v20763_v26 = vadd.f32 %v20748_v15, %v152_v21  ;;  %v20766_v27 = vadd.f32 %v20748_v15, %v521_v22 }
  0xcf   :  { %v17755_v28 = vpop.f32.mrf.mxu0  ;;  %v17771_v29 = vpop.f32.mrf.mxu1 }
  0xd0   :  { %20060 = vpow2.f32 %v14629_v24  ;;  %v14627_v30 = vmul.f32 -1.442695, %v20763_v26  ;;  %v14663_v31 = vmul.f32 -1.442695, %v20766_v27  ;;  %v20771_v32 = vadd.f32 %v17755_v28, %v20748_v15 }
  0xd1   :  { %20062 = vpow2.f32 %v14665_v25  ;;  %v20774_v33 = vadd.f32 %v17771_v29, %v20748_v15  ;;  %v155_v34 = vpop.f32.mrf.mxu0  ;;  %v524_v35 = vpop.f32.mrf.mxu1 }
  0xd2   :  { %20064 = vpow2.f32 %v14627_v30  ;;  %v14630_v37 = vmul.f32 -1.442695, %v20771_v32  ;;  %v20780_v38 = vadd.f32 %v20748_v15, %v155_v34  ;;  %v20783_v39 = vadd.f32 %v20748_v15, %v524_v35  ;;  %v20834_v30 = vpop.permute.xlu0 %347 }
  0xd3   :  { %20066 = vpow2.f32 %v14663_v31  ;;  %v14666_v42 = vmul.f32 -1.442695, %v20774_v33  ;;  %v17758_v43 = vpop.f32.mrf.mxu0  ;;  %v17774_v44 = vpop.f32.mrf.mxu1  ;;  %26401 = vst [vmem:[#allocation8_spill] sm:$0xff] %v20834_v30  ;;  %v1399_v35 = vshrl.u32 %v20816_v3, 16 }
  0xd4   :  { %20068 = vpow2.f32 %v14630_v37  ;;  %v14628_v46 = vmul.f32 -1.442695, %v20780_v38  ;;  %v14664_v47 = vmul.f32 -1.442695, %v20783_v39  ;;  %v20791_v48 = vadd.f32 %v17758_v43, %v20748_v15 }
  0xd5   :  { %20070 = vpow2.f32 %v14666_v42  ;;  %v20794_v50 = vadd.f32 %v17774_v44, %v20748_v15  ;;  %v168_v51 = vpop.f32.mrf.mxu0  ;;  %v537_v52 = vpop.f32.mrf.mxu1  ;;  %v1402_v44 = vshll.u32 %v20816_v3, 16 }
  0xd6   :  { %20072 = vpow2.f32 %v14628_v46  ;;  %v14633_v53 = vmul.f32 -1.442695, %v20791_v48  ;;  %v20798_v54 = vadd.f32 %v20748_v15, %v168_v51  ;;  %v20801_v55 = vadd.f32 %v20748_v15, %v537_v52 }
  0xd7   :  { %20074 = vpow2.f32 %v14664_v47  ;;  %v14669_v56 = vmul.f32 -1.442695, %v20794_v50  ;;  %v17759_v57 = vpop.f32.mrf.mxu0  ;;  %v17775_v58 = vpop.f32.mrf.mxu1 }
  0xd8   :  { %20076 = vpow2.f32 %v14633_v53  ;;  %v14631_v61 = vmul.f32 -1.442695, %v20798_v54  ;;  %v14667_v62 = vmul.f32 -1.442695, %v20801_v55  ;;  %v20811_v63 = vadd.f32 %v17759_v57, %v20748_v15  ;;  %v20848_v53 = vpop.permute.xlu1 %352 }
  0xd9   :  { %20078 = vpow2.f32 %v14669_v56  ;;  %v20814_v0 = vadd.f32 %v17775_v58, %v20748_v15  ;;  %v171_v1 = vpop.f32.mrf.mxu0  ;;  %v540_v2 = vpop.f32.mrf.mxu1  ;;  %26403 = vst [vmem:[#allocation10_spill] sm:$0xff] %v20848_v53 }
  0xda   :  { %20080 = vpow2.f32 %v14631_v61  ;;  %v14634_v5 = vmul.f32 -1.442695, %v20811_v63  ;;  %v20822_v6 = vadd.f32 %v20748_v15, %v171_v1  ;;  %v20825_v7 = vadd.f32 %v20748_v15, %v540_v2 }
  0xdb   :  { %20082 = vpow2.f32 %v14667_v62  ;;  %v14670_v8 = vmul.f32 -1.442695, %v20814_v0  ;;  %v17762_v9 = vpop.f32.mrf.mxu0  ;;  %v17778_v10 = vpop.f32.mrf.mxu1 }
  0xdc   :  { %20084 = vpow2.f32 %v14634_v5  ;;  %v14632_v16 = vmul.f32 -1.442695, %v20822_v6  ;;  %v14668_v17 = vmul.f32 -1.442695, %v20825_v7  ;;  %v20832_v24 = vadd.f32 %v17762_v9, %v20748_v15 }
  0xdd   :  { %v20061_v22 = vpop.eup %20060  ;;  %20086 = vpow2.f32 %v14670_v8  ;;  %v184_v25 = vpop.f32.mrf.mxu0  ;;  %v20837_v34 = vadd.f32 %v17778_v10, %v20748_v15 }
  0xde   :  { %v553_v28 = vpop.f32.mrf.mxu1  ;;  %v20063_v29 = vpop.eup %20062  ;;  %v237_v31 = vadd.f32 1.0, %v20061_v22  ;;  %20088 = vpow2.f32 %v14632_v16  ;;  %v20841_v41 = vadd.f32 %v20748_v15, %v184_v25  ;;  %v20851_v57 = vmul.f32 -1.442695, %v20832_v24 }
  0xdf   :  { %v20065_v37 = vpop.eup %20064  ;;  %v606_v40 = vadd.f32 1.0, %v20063_v29  ;;  %20090 = vpow2.f32 %v14668_v17  ;;  %v17763_v42 = vpop.f32.mrf.mxu0  ;;  %v20845_v49 = vadd.f32 %v20748_v15, %v553_v28  ;;  %v20857_v2 = vmul.f32 -1.442695, %v20837_v34 }
  0xe0   :  { %v17779_v43 = vpop.f32.mrf.mxu1  ;;  %v20067_v46 = vpop.eup %20066  ;;  %20092 = vrcp.f32 %v237_v31  ;;  %v235_v47 = vadd.f32 1.0, %v20065_v37  ;;  %v20854_v58 = vadd.f32 %v17763_v42, %v20748_v15  ;;  %v20863_v10 = vmul.f32 -1.442695, %v20841_v41 }
  0xe1   :  { %26402 = vst [vmem:[#allocation9_spill] sm:$0xff] %v20845_v49  ;;  %v20069_v52 = vpop.eup %20068  ;;  %20094 = vrcp.f32 %v606_v40  ;;  %v604_v56 = vadd.f32 1.0, %v20067_v46  ;;  %v187_v61 = vpop.f32.mrf.mxu0  ;;  %v20860_v3 = vadd.f32 %v17779_v43, %v20748_v15  ;;  %v1621_v17 = vshll.u32 %v20804_v59, 16 }
  0xe2   :  { %26404 = vst [vmem:[#allocation11_spill] sm:$0xff] %v20854_v58  ;;  %v20071_v62 = vpop.eup %20070  ;;  %20096 = vrcp.f32 %v235_v47  ;;  %v238_v1 = vadd.f32 1.0, %v20069_v52  ;;  %v556_v5 = vpop.f32.mrf.mxu1  ;;  %v20867_v28 = vmul.f32 -1.442695, %v20845_v49  ;;  %v20870_v29 = vadd.f32 %v20748_v15, %v187_v61 }
  0xe3   :  { %26405 = vst [vmem:[#allocation12_spill] sm:$0xff] %v20860_v3  ;;  %v20073_v8 = vpop.eup %20072  ;;  %20098 = vrcp.f32 %v604_v56  ;;  %v607_v9 = vadd.f32 1.0, %v20071_v62  ;;  %v17786_v16 = vpop.f32.mrf.mxu0  ;;  %v20875_v42 = vmul.f32 -1.442695, %v20854_v58  ;;  %v20878_v43 = vadd.f32 %v20748_v15, %v556_v5 }
  0xe4   :  { %v20075_v22 = vpop.eup %20074  ;;  %20100 = vrcp.f32 %v238_v1  ;;  %v236_v25 = vadd.f32 1.0, %v20073_v8  ;;  %26406 = vst [vmem:[#allocation13_spill] sm:$0xff] %v20870_v29  ;;  %v20872_v37 = vpop.permute.xlu0 %666  ;;  %v20881_v56 = vmul.f32 -1.442695, %v20860_v3  ;;  %v20884_v61 = vadd.f32 %v17786_v16, %v20748_v15 }
  0xe5   :  { %v20077_v31 = vpop.eup %20076  ;;  %20102 = vrcp.f32 %v607_v9  ;;  %v605_v40 = vadd.f32 1.0, %v20075_v22  ;;  %26407 = vst [vmem:[#allocation14_spill] sm:$0xff] %v20878_v43  ;;  %v890_v46 = vpop.f32.mrf.mxu0  ;;  %v20888_v22 = vrot.slane %v1399_v35, 2  ;;  %v20897_v4 = vmul.f32 -1.442695, %v20878_v43 }
  0xe6   :  { %v20079_v47 = vpop.eup %20078  ;;  %20104 = vrcp.f32 %v236_v25  ;;  %v241_v52 = vadd.f32 1.0, %v20077_v31  ;;  %26408 = vst [vmem:[#allocation15_spill] sm:$0xff] %v20884_v61  ;;  %v20886_v1 = vpop.permute.xlu1 %671  ;;  %v20891_v25 = vmul.f32 -1.442695, %v20870_v29  ;;  %v20894_v31 = vadd.f32 %v20748_v15, %v890_v46 }
  0xe7   :  { %v20081_v62 = vpop.eup %20080  ;;  %20106 = vrcp.f32 %v605_v40  ;;  %v610_v8 = vadd.f32 1.0, %v20079_v47  ;;  %v17787_v9 = vpop.f32.mrf.mxu0  ;;  %v20899_v47 = vrot.slane %v1402_v44, 3  ;;  %v26412_v44 = vshrl.u32 %v20804_v59, 16 }
  0xe8   :  { %v20083_v5 = vpop.eup %20082  ;;  %20108 = vrcp.f32 %v241_v52  ;;  %v239_v21 = vadd.f32 1.0, %v20081_v62  ;;  %26409 = vst [vmem:[#allocation16_spill] sm:$0xff] %v20894_v31  ;;  %v20902_v52 = vmul.f32 -1.442695, %v20884_v61  ;;  %v20905_v62 = vadd.f32 %v17787_v9, %v20748_v15  ;;  %v677_v29 = vpop.permute.xlu0 %676 }
  0xe9   :  { %v20085_v51 = vpop.eup %20084  ;;  %20110 = vrcp.f32 %v610_v8  ;;  %v608_v16 = vadd.f32 1.0, %v20083_v5  ;;  %v893_v40 = vpop.f32.mrf.mxu0  ;;  %v20912_v3 = vrot.slane %v26412_v44, 3  ;;  %v20915_v61 = vmul.f32 -1.442695, %v20894_v31 }
  0xea   :  { %v20087_v35 = vpop.eup %20086  ;;  %20112 = vrcp.f32 %v239_v21  ;;  %v242_v53 = vadd.f32 1.0, %v20085_v51  ;;  %26410 = vst [vmem:[#allocation17_spill] sm:$0xff] %v20905_v62  ;;  %v20908_v5 = vadd.f32 %v20748_v15, %v893_v40  ;;  %v20920_v58 = vrot.slane %v1621_v17, 4 }
  0xeb   :  { %v20089_v46 = vpop.eup %20088  ;;  %20114 = vrcp.f32 %v608_v16  ;;  %v611_v8 = vadd.f32 1.0, %v20087_v35  ;;  %v17790_v43 = vpop.f32.mrf.mxu0 }
  0xec   :  { %26411 = vst [vmem:[#allocation18_spill] sm:$0xff] %v20908_v5  ;;  %v20091_v21 = vpop.eup %20090  ;;  %20116 = vrcp.f32 %v242_v53  ;;  %v240_v51 = vadd.f32 1.0, %v20089_v46  ;;  %v20918_v9 = vadd.f32 %v17790_v43, %v20748_v15  ;;  %v682_v16 = vpop.permute.xlu1 %681  ;;  %v20924_v53 = vmul.f32 -1.442695, %v20905_v62 }
  0xed   :  { %v20093_v60 = vpop.eup %20092  ;;  %20118 = vrcp.f32 %v611_v8  ;;  %v609_v35 = vadd.f32 1.0, %v20091_v21  ;;  %v906_v40 = vpop.f32.mrf.mxu0  ;;  %v20931_v8 = vmul.f32 -1.442695, %v20908_v5 }
  0xee   :  { %26413 = vst [vmem:[#allocation19_spill] sm:$0xff] %v20918_v9  ;;  %v20095_v49 = vpop.eup %20094  ;;  %v273_v44 = vmul.f32 %v20093_v60, %v20753_v19  ;;  %20120 = vrcp.f32 %v240_v51  ;;  %v20927_v46 = vadd.f32 %v20748_v15, %v906_v40  ;;  %v20934_v17 = vmul.f32 -1.442695, %v20918_v9  ;;  %v20941_v40 = vpop.permute.xlu0 %686 }
  0xef   :  { %v20097_v31 = vpop.eup %20096  ;;  %v642_v43 = vmul.f32 %v20095_v49, %v20756_v20  ;;  %20122 = vrcp.f32 %v609_v35  ;;  %v17791_v21 = vpop.f32.mrf.mxu0 }
  0xf0   :  { %26414 = vst [vmem:[#allocation20_spill] sm:$0xff] %v20927_v46  ;;  %v20099_v30 = vpop.eup %20098  ;;  %v271_v19 = vmul.f32 %v20097_v31, %v20763_v26  ;;  %20124 = vpow2.f32 %v20851_v57  ;;  %v20939_v60 = vmul.f32 -1.442695, %v20927_v46  ;;  %v357_v20 = vmul.f32 %v20739_v12, %v273_v44  ;;  %v20954_v62 = vpop.permute.xlu1 %691 }
  0xf1   :  { %v20101_v51 = vpop.eup %20100  ;;  %v640_v49 = vmul.f32 %v20099_v30, %v20766_v27  ;;  %20126 = vpow2.f32 %v20857_v2  ;;  %v20947_v35 = vadd.f32 %v17791_v21, %v20748_v15  ;;  %v909_v9 = vpop.f32.mrf.mxu0  ;;  %v726_v26 = vmul.f32 %v677_v29, %v642_v43 }
  0xf2   :  { %v20103_v5 = vpop.eup %20102  ;;  %v274_v57 = vmul.f32 %v20101_v51, %v20771_v32  ;;  %20128 = vpow2.f32 %v20863_v10  ;;  %v20952_v31 = vadd.f32 %v20748_v15, %v909_v9  ;;  %v355_v12 = vmul.f32 %v20737_v11, %v271_v19 }
  0xf3   :  { %v20105_v46 = vpop.eup %20104  ;;  %v643_v27 = vmul.f32 %v20103_v5, %v20774_v33  ;;  %20130 = vpow2.f32 %v20867_v28  ;;  %v20960_v30 = vmul.f32 -1.442695, %v20947_v35  ;;  %v17794_v9 = vpop.f32.mrf.mxu0  ;;  %v724_v11 = vmul.f32 %v20872_v37, %v640_v49 }
  0xf4   :  { %v20107_v2 = vpop.eup %20106  ;;  %v358_v32 = vmul.f32 %v20743_v14, %v274_v57  ;;  %v272_v10 = vmul.f32 %v20105_v46, %v20780_v38  ;;  %20132 = vpow2.f32 %v20875_v42  ;;  %v20966_v29 = vmul.f32 -1.442695, %v20952_v31  ;;  %v697_v46 = vpop.permute.xlu0 %696 }
  0xf5   :  { %v20109_v44 = vpop.eup %20108  ;;  %v727_v33 = vmul.f32 %v682_v16, %v643_v27  ;;  %v641_v28 = vmul.f32 %v20107_v2, %v20783_v39  ;;  %20134 = vpow2.f32 %v20881_v56  ;;  %v702_v51 = vpop.permute.xlu1 %701 }
  0xf6   :  { %v20111_v5 = vpop.eup %20110  ;;  %v16522_v43 = vpack.c.bf16 %v358_v32, %v357_v20  ;;  %v356_v14 = vmul.f32 %v20741_v13, %v272_v10  ;;  %v277_v38 = vmul.f32 %v20109_v44, %v20791_v48  ;;  %20136 = vpow2.f32 %v20891_v25  ;;  %v922_v13 = vpop.f32.mrf.mxu0 }
  0xf7   :  { %v20113_v42 = vpop.eup %20112  ;;  %v16552_v21 = vpack.c.bf16 %v727_v33, %v726_v26  ;;  %v725_v19 = vmul.f32 %v20886_v1, %v641_v28  ;;  %v646_v37 = vmul.f32 %v20111_v5, %v20794_v50  ;;  %20138 = vpow2.f32 %v20897_v4 }
  0xf8   :  { %v20115_v39 = vpop.eup %20114  ;;  %16875 = vst [vmem:[#allocation2 + $0x18] sm:$0xff] %v16522_v43   ;;  %v16517_v56 = vpack.c.bf16 %v356_v14, %v355_v12  ;;  %v275_v16 = vmul.f32 %v20113_v42, %v20798_v54  ;;  %20140 = vpow2.f32 %v20902_v52  ;;  %v361_v50 = vmul.f32 %v20776_v36, %v277_v38  ;;  %v17795_v57 = vpop.f32.mrf.mxu0 }
  0xf9   :  { %v20117_v48 = vpop.eup %20116  ;;  %16881 = vst [vmem:[#allocation2 + $0x48] sm:$0xff] %v16552_v21   ;;  %v16547_v25 = vpack.c.bf16 %v725_v19, %v724_v11  ;;  %v644_v20 = vmul.f32 %v20115_v39, %v20801_v55  ;;  %20142 = vpow2.f32 %v20915_v61  ;;  %v20985_v54 = vadd.f32 %v17794_v9, %v20748_v15  ;;  %v20994_v27 = vpop.permute.xlu0 %706 }
  0xfa   :  { %v20119_v1 = vpop.eup %20118  ;;  %16874 = vst [vmem:[#allocation2 + $0x10] sm:$0xff] %v16517_v56   ;;  %v278_v4 = vmul.f32 %v20117_v48, %v20811_v63  ;;  %20144 = vpow2.f32 %v20924_v53  ;;  %v730_v49 = vmul.f32 %v697_v46, %v646_v37  ;;  %v359_v26 = vmul.f32 %v20750_v18, %v275_v16 }
  0xfb   :  { %v20121_v52 = vpop.eup %20120  ;;  %16880 = vst [vmem:[#allocation2 + $0x40] sm:$0xff] %v16547_v25   ;;  %v647_v55 = vmul.f32 %v20119_v1, %v20814_v0  ;;  %20146 = vpow2.f32 %v20931_v8  ;;  %v728_v36 = vmul.f32 %v20941_v40, %v644_v20  ;;  %v20999_v0 = vadd.f32 %v20748_v15, %v922_v13  ;;  %v19403_v25 = vld [vmem:[%s26336_s4 + $0xb0] sm:$0xff]  }
  0xfc   :  { %v20123_v61 = vpop.eup %20122  ;;  %v362_v63 = vmul.f32 %v20786_v45, %v278_v4  ;;  %v276_v53 = vmul.f32 %v20121_v52, %v20822_v6  ;;  %20148 = vpow2.f32 %v20934_v17  ;;  %v21003_v17 = vpop.permute.xlu1 %711  ;;  %v21008_v33 = vmul.f32 -1.442695, %v20985_v54 }
  0xfd   :  { %v20125_v12 = vpop.eup %20124  ;;  %v731_v2 = vmul.f32 %v702_v51, %v647_v55  ;;  %v645_v18 = vmul.f32 %v20123_v61, %v20825_v7  ;;  %20150 = vpow2.f32 %v20939_v60  ;;  %v21015_v38 = vmul.f32 -1.442695, %v20999_v0  ;;  %v21022_v19 = vpop.permute.xlu0 %716 }
  0xfe   :  { %v20127_v8 = vpop.eup %20126  ;;  %v16532_v40 = vpack.c.bf16 %v362_v63, %v361_v50  ;;  %v360_v45 = vmul.f32 %v20758_v23, %v276_v53  ;;  %v245_v32 = vadd.f32 1.0, %v20125_v12  ;;  %20152 = vpow2.f32 %v20960_v30  ;;  %v925_v23 = vpop.f32.mrf.mxu0 }
  0xff   :  { %v20129_v6 = vpop.eup %20128  ;;  %v16562_v10 = vpack.c.bf16 %v731_v2, %v730_v49  ;;  %v729_v9 = vmul.f32 %v20954_v62, %v645_v18  ;;  %v614_v44 = vadd.f32 1.0, %v20127_v8  ;;  %20154 = vpow2.f32 %v20966_v29  ;;  %v20348_v8 = vld [vmem:[%s26336_s4 + $0xb8] sm:$0xff]  }
 0x100   :  { %v20131_v7 = vpop.eup %20130  ;;  %16877 = vst [vmem:[#allocation2 + $0x28] sm:$0xff] %v16532_v40   ;;  %v16527_v60 = vpack.c.bf16 %v360_v45, %v359_v26  ;;  %20156 = vrcp.f32 %v245_v32  ;;  %v243_v11 = vadd.f32 1.0, %v20129_v6  ;;  %v1405_v62 = vor.u32 %v20899_v47, %v20888_v22  ;;  %v21033_v1 = vpop.permute.xlu1 %721  ;;  %v19409_v22 = vld [vmem:[%s26336_s4 + $0xa0] sm:$0xff]  }
 0x101   :  { %v20133_v30 = vpop.eup %20132  ;;  %16883 = vst [vmem:[#allocation2 + $0x58] sm:$0xff] %v16562_v10   ;;  %v16557_v28 = vpack.c.bf16 %v729_v9, %v728_v36  ;;  %20158 = vrcp.f32 %v614_v44  ;;  %v612_v5 = vadd.f32 1.0, %v20131_v7  ;;  %v21010_v43 = vld [vmem:[#allocation2 + $0xc] sm:$0xff]   ;;  %v21018_v42 = vadd.f32 %v17795_v57, %v20748_v15  ;;  %v21020_v46 = vld [vmem:[#allocation2 + $0x14] sm:$0xff]   ;;  %v21055_v32 = vpop.permute.xlu0 %1035 }
 0x102   :  { %v20135_v29 = vpop.eup %20134  ;;  %16876 = vst [vmem:[#allocation2 + $0x20] sm:$0xff] %v16527_v60   ;;  %20160 = vrcp.f32 %v243_v11  ;;  %v246_v14 = vadd.f32 1.0, %v20133_v30  ;;  %v21025_v39 = vadd.f32 %v20748_v15, %v925_v23  ;;  %v1247_v56 = vrot.slane %v21010_v43, 3  ;;  %v19406_v57 = vld [vmem:[%s26336_s4 + $0xa8] sm:$0xff]  }
 0x103   :  { %v20137_v21 = vpop.eup %20136  ;;  %16882 = vst [vmem:[#allocation2 + $0x50] sm:$0xff] %v16557_v28   ;;  %20162 = vrcp.f32 %v612_v5  ;;  %v615_v37 = vadd.f32 1.0, %v20135_v29  ;;  %v1249_v48 = vrot.slane %v21020_v46, 3  ;;  %v1407_v51 = vshrl.u32 %v21010_v43, 16 }
 0x104   :  { %v20139_v16 = vpop.eup %20138  ;;  %20164 = vrcp.f32 %v246_v14  ;;  %v244_v13 = vadd.f32 1.0, %v20137_v21  ;;  %v26415_v15 = vrot.slane %v20804_v59, 3  ;;  %v1410_v52 = vshll.u32 %v21010_v43, 16  ;;  %v21068_v5 = vpop.permute.xlu1 %1040 }
 0x105   :  { %v20141_v20 = vpop.eup %20140  ;;  %20166 = vrcp.f32 %v615_v37  ;;  %v613_v50 = vadd.f32 1.0, %v20139_v16  ;;  %v1250_v55 = vsel %vm1245_vm1, %v1247_v56, %v1249_v48  ;;  %v1409_v61 = vrot.slane %v1407_v51, 2 }
 0x106   :  { %v1248_v4 = vsel %vm1245_vm1, %v26415_v15, %v1247_v56  ;;  %v20143_v49 = vpop.eup %20142  ;;  %20168 = vrcp.f32 %v244_v13  ;;  %v975_v26 = vadd.f32 1.0, %v20141_v20  ;;  %v1412_v59 = vrot.slane %v1410_v52, 3  ;;  %v19407_v13 = vld [vmem:[%s26336_s4 + $0xf0] sm:$0xff]  }
 0x107   :  { %17812 = vmatprep.mubr.bf16.mxu1 %v1248_v4  ;;  %v20145_v36 = vpop.eup %20144  ;;  %20170 = vrcp.f32 %v613_v50  ;;  %v973_v63 = vadd.f32 1.0, %v20143_v49  ;;  %v1416_v53 = vshrl.u32 %v21020_v46, 16  ;;  %v21049_v18 = vmul.f32 -1.442695, %v21018_v42 }
 0x108   :  { %17813 = vmatmul.mubr.bf16.vlgmr.msra.gmra.mxu1 %v1250_v55  ;;  %v20147_v12 = vpop.eup %20146  ;;  %20172 = vrcp.f32 %v975_v26  ;;  %v976_v2 = vadd.f32 1.0, %v20145_v36  ;;  %v1419_v40 = vshll.u32 %v21020_v46, 16  ;;  %v1413_v10 = vor.u32 %v1412_v59, %v1409_v61  ;;  %v21092_v61 = vpop.permute.xlu0 %1045 }
 0x109   :  { %17853 = vmatpush3.bf16.msra.mxu1 %v20348_v8  ;;  %v20149_v45 = vpop.eup %20148  ;;  %20174 = vrcp.f32 %v973_v63  ;;  %v974_v6 = vadd.f32 1.0, %v20147_v12  ;;  %v1418_v9 = vrot.slane %v1416_v53, 2  ;;  %v21059_v44 = vld [vmem:[#allocation2 + $0x1c] sm:$0xff]   ;;  %v21061_v7 = vld [vmem:[#allocation2 + $0x24] sm:$0xff]   ;;  %v21064_v23 = vmul.f32 -1.442695, %v21025_v39 }
 0x10a   :  { %17854 = vmatprep.subr.bf16.mxu1 %v19403_v25  ;;  %v20151_v60 = vpop.eup %20150  ;;  %20176 = vrcp.f32 %v976_v2  ;;  %v979_v11 = vadd.f32 1.0, %v20149_v45  ;;  %v1421_v30 = vrot.slane %v1419_v40, 3  ;;  %v1414_v14 = vsel %vm1397_vm2, %v1405_v62, %v1413_v10  ;;  %v20349_v12 = vld [vmem:[%s26336_s4 + $0xf8] sm:$0xff]   ;;  %v21106_v45 = vpop.permute.xlu1 %1050 }
 0x10b   :  { %v20153_v28 = vpop.eup %20152  ;;  %20178 = vrcp.f32 %v974_v6  ;;  %v977_v29 = vadd.f32 1.0, %v20151_v60  ;;  %v1251_v21 = vrot.slane %v21059_v44, 3  ;;  %17840 = vmatprep.mubr.bf16.mxu0 %v1414_v14  ;;  %v1253_v20 = vrot.slane %v21061_v7, 3  ;;  %v26416_v6 = vld [vmem:[#allocation8_spill] sm:$0xff] }
 0x10c   :  { %v20155_v37 = vpop.eup %20154  ;;  %20180 = vrcp.f32 %v979_v11  ;;  %v980_v56 = vadd.f32 1.0, %v20153_v28  ;;  %v21075_v16 = vor.u32 %v1421_v30, %v1418_v9  ;;  %v1425_v15 = vshrl.u32 %v21059_v44, 16  ;;  %v26417_v11 = vld [vmem:[#allocation9_spill] sm:$0xff]  ;;  %v26418_v28 = vld [vmem:[#allocation11_spill] sm:$0xff] }
 0x10d   :  { %17855 = vmatpush3.bf16.msra.mxu1 %v19403_v25  ;;  %v20157_v47 = vpop.eup %20156  ;;  %20182 = vrcp.f32 %v977_v29  ;;  %v978_v62 = vadd.f32 1.0, %v20155_v37  ;;  %v1252_v50 = vsel %vm1245_vm1, %v1249_v48, %v1251_v21  ;;  %v1254_v26 = vsel %vm1245_vm1, %v1251_v21, %v1253_v20  ;;  %v26419_v21 = vld [vmem:[#allocation6_spill] sm:$0xff] }
 0x10e   :  { %17856 = vmatprep.subr.bf16.mxu1 %v19406_v57  ;;  %v20159_v4 = vpop.eup %20158  ;;  %v281_v25 = vmul.f32 %v20157_v47, %v20832_v24  ;;  %20184 = vrcp.f32 %v980_v56  ;;  %v1423_v49 = vsel %vm1397_vm2, %v1413_v10, %v21075_v16  ;;  %17816 = vmatprep.mubr.bf16.mxu1 %v1252_v50  ;;  %v1427_v24 = vrot.slane %v1425_v15, 2  ;;  %v26420_v56 = vld [vmem:[#allocation12_spill] sm:$0xff] }
 0x10f   :  { %v20161_v55 = vpop.eup %20160  ;;  %v650_v48 = vmul.f32 %v20159_v4, %v20837_v34  ;;  %20186 = vrcp.f32 %v978_v62  ;;  %17841 = vmatmul.mubr.bf16.vlgmr.msra.gmra.mxu0 %v1423_v49  ;;  %v1428_v36 = vshll.u32 %v21059_v44, 16  ;;  %v1434_v34 = vshrl.u32 %v21061_v7, 16 }
 0x110   :  { %17817 = vmatmul.mubr.bf16.gmra.mxu1 %v1254_v26  ;;  %v20163_v63 = vpop.eup %20162  ;;  %v279_v59 = vmul.f32 %v20161_v55, %v20841_v41  ;;  %20188 = vpow2.f32 %v21008_v33  ;;  %17881 = vmatpush3.bf16.msra.mxu0 %v20349_v12  ;;  %v1624_v2 = vor.u32 %v20920_v58, %v20912_v3  ;;  %v365_v10 = vmul.f32 %v26416_v6, %v281_v25  ;;  %v19410_v33 = vld [vmem:[%s26336_s4 + $0xe8] sm:$0xff]   ;;  %v21134_v55 = vpop.permute.xlu0 %1055  ;;  %v21264_v58 = vld [vmem:[%s26336_s4 + $0x178] sm:$0xff]  }
 0x111   :  { %17857 = vmatpush3.bf16.msra.mxu1 %v19406_v57  ;;  %v20165_v8 = vpop.eup %20164  ;;  %20190 = vpow2.f32 %v21015_v38  ;;  %17882 = vmatprep.subr.bf16.mxu0 %v19407_v13  ;;  %v1430_v41 = vrot.slane %v1428_v36, 3  ;;  %v19412_v57 = vld [vmem:[%s26336_s4 + $0x98] sm:$0xff]   ;;  %v21120_v9 = vrot.slane %v1407_v51, 3  ;;  %v734_v38 = vmul.f32 %v21022_v19, %v650_v48  ;;  %v26421_v51 = vld [vmem:[#allocation10_spill] sm:$0xff]  ;;  %v26422_v25 = vld [vmem:[#allocation13_spill] sm:$0xff] }
 0x112   :  { %17858 = vmatprep.subr.bf16.mxu1 %v19409_v22  ;;  %v20167_v60 = vpop.eup %20166  ;;  %v648_v30 = vmul.f32 %v20163_v63, %v26417_v11  ;;  %v282_v29 = vmul.f32 %v20165_v8, %v26418_v28  ;;  %20192 = vpow2.f32 %v21049_v18  ;;  %v363_v37 = vmul.f32 %v26419_v21, %v279_v59  ;;  %v26423_v63 = vld [vmem:[#allocation14_spill] sm:$0xff]  ;;  %v26424_v8 = vld [vmem:[#allocation7_spill] sm:$0xff]  ;;  %v1801_v11 = vld [vmem:[#allocation2 + $0xc] sm:$0x8] }
 0x113   :  { %v20169_v14 = vpop.eup %20168  ;;  %v651_v47 = vmul.f32 %v20167_v60, %v26420_v56  ;;  %20194 = vpow2.f32 %v21064_v23  ;;  %v1431_v62 = vor.u32 %v1430_v41, %v1427_v24  ;;  %v1436_v19 = vrot.slane %v1434_v34, 2  ;;  %v19415_v60 = vld [vmem:[%s26336_s4 + $0x90] sm:$0xff]  }
 0x114   :  { %v20171_v50 = vpop.eup %20170  ;;  %v366_v4 = vmul.f32 %v26421_v51, %v282_v29  ;;  %v280_v49 = vmul.f32 %v20169_v14, %v26422_v25  ;;  %17883 = vmatpush3.bf16.msra.mxu0 %v19407_v13  ;;  %v1437_v26 = vshll.u32 %v21061_v7, 16  ;;  %v19413_v13 = vld [vmem:[%s26336_s4 + $0xe0] sm:$0xff]   ;;  %v21145_v59 = vrot.slane %v1410_v52, 4  ;;  %v21154_v29 = vpop.permute.xlu1 %1060  ;;  %v21159_v56 = vld [vmem:[#allocation2 + $0x10] sm:$0xf] }
 0x115   :  { %17859 = vmatpush3.bf16.msra.mxu1 %v19409_v22  ;;  %v20173_v18 = vpop.eup %20172  ;;  %v735_v48 = vmul.f32 %v21033_v1, %v651_v47  ;;  %v649_v23 = vmul.f32 %v20171_v50, %v26423_v63  ;;  %v1432_v24 = vsel %vm1397_vm2, %v21075_v16, %v1431_v62  ;;  %17884 = vmatprep.subr.bf16.mxu0 %v19410_v33  ;;  %v26425_v1 = vld [vmem:[#allocation15_spill] sm:$0xff]  ;;  %v26426_v14 = vld [vmem:[#allocation16_spill] sm:$0xff]  ;;  %v1637_v3 = vrot.slane %v1434_v34, 3 }
 0x116   :  { %17860 = vmatprep.subr.bf16.mxu1 %v19412_v57  ;;  %v20175_v22 = vpop.eup %20174  ;;  %v16542_v12 = vpack.c.bf16 %v366_v4, %v365_v10  ;;  %v364_v6 = vmul.f32 %v26424_v8, %v280_v49  ;;  %v1011_v41 = vmul.f32 %v20173_v18, %v26425_v1  ;;  %17844 = vmatprep.mubr.bf16.mxu0 %v1432_v24  ;;  %v1439_v16 = vrot.slane %v1437_v26, 3  ;;  %v26427_v4 = vld [vmem:[#allocation17_spill] sm:$0xff]  ;;  %v21165_v18 = vld [vmem:[#allocation2 + $0x14] sm:$0xf]  ;;  %v26429_v63 = vld [vmem:[#allocation19_spill] sm:$0xff] }
 0x117   :  { %v20177_v28 = vpop.eup %20176  ;;  %v732_v43 = vmul.f32 %v20994_v27, %v648_v30  ;;  %v16572_v52 = vpack.c.bf16 %v735_v48, %v734_v38  ;;  %v733_v10 = vmul.f32 %v21003_v17, %v649_v23  ;;  %v1009_v21 = vmul.f32 %v20175_v22, %v26426_v14  ;;  %v26428_v30 = vld [vmem:[#allocation18_spill] sm:$0xff]  ;;  %v21180_v24 = vld [vmem:[#allocation2 + $0x18] sm:$0xf]  ;;  %v19419_v22 = vld [vmem:[%s26336_s4 + $0x88] sm:$0xff]  }
 0x118   :  { %v20179_v47 = vpop.eup %20178  ;;  %16879 = vst [vmem:[#allocation2 + $0x38] sm:$0xff] %v16542_v12   ;;  %v16537_v50 = vpack.c.bf16 %v364_v6, %v363_v37  ;;  %v1095_v51 = vmul.f32 %v21092_v61, %v1011_v41  ;;  %v1012_v25 = vmul.f32 %v20177_v28, %v26427_v4  ;;  %v21163_v49 = vor.u32 %v1439_v16, %v1436_v19  ;;  %v19416_v61 = vld [vmem:[%s26336_s4 + $0xd8] sm:$0xff]   ;;  %v1066_v12 = vpop.permute.xlu0 %1065 }
 0x119   :  { %17885 = vmatpush3.bf16.msra.mxu0 %v19410_v33  ;;  %v20181_v27 = vpop.eup %20180  ;;  %16885 = vst [vmem:[#allocation2 + $0x68] sm:$0xff] %v16572_v52   ;;  %v16567_v38 = vpack.c.bf16 %v733_v10, %v732_v43  ;;  %v1093_v17 = vmul.f32 %v21055_v32, %v1009_v21  ;;  %v1010_v48 = vmul.f32 %v20179_v47, %v26428_v30  ;;  %v21174_v37 = vrot.slane %v1416_v53, 3 }
 0x11a   :  { %17886 = vmatprep.subr.bf16.mxu0 %v19413_v13  ;;  %17861 = vmatpush3.bf16.msra.mxu1 %v19412_v57  ;;  %v20183_v33 = vpop.eup %20182  ;;  %16878 = vst [vmem:[#allocation2 + $0x30] sm:$0xff] %v16537_v50   ;;  %v1096_v19 = vmul.f32 %v21106_v45, %v1012_v25  ;;  %v1015_v23 = vmul.f32 %v20181_v27, %v26429_v63  ;;  %v26430_v45 = vld [vmem:[#allocation20_spill] sm:$0xff]  ;;  %v21192_v1 = vrot.slane %v1419_v40, 4  ;;  %v19420_v40 = vld [vmem:[%s26336_s4 + $0xd0] sm:$0xff]   ;;  %v1638_v34 = vrot.slane %v1437_v26, 4 }
 0x11b   :  { %v1441_v32 = vsel %vm1397_vm2, %v1431_v62, %v21163_v49  ;;  %17862 = vmatprep.subr.bf16.mxu1 %v19415_v60  ;;  %v14804_v57 = vcombine.low %v1801_v11, %v21159_v56  ;;  %v20185_v53 = vpop.eup %20184  ;;  %16884 = vst [vmem:[#allocation2 + $0x60] sm:$0xff] %v16567_v38   ;;  %v1094_v8 = vmul.f32 %v21068_v5, %v1010_v48  ;;  %v1071_v5 = vpop.permute.xlu1 %1070 }
 0x11c   :  { %v1013_v6 = vmul.f32 %v20183_v33, %v26430_v45  ;;  %17845 = vmatmul.mubr.bf16.gmra.mxu0 %v1441_v32  ;;  %v14805_v62 = vcombine.low %v21165_v18, %v21180_v24  ;;  %v20187_v41 = vpop.eup %20186  ;;  %v16582_v16 = vpack.c.bf16 %v1096_v19, %v1095_v51  ;;  %v1099_v11 = vmul.f32 %v1066_v12, %v1015_v23  ;;  %v19422_v33 = vld [vmem:[%s26336_s4 + $0xc8] sm:$0xff]   ;;  %v21228_v45 = vld [vmem:[#allocation2 + $0x24] sm:$0xf] }
 0x11d   :  { %v1016_v28 = vmul.f32 %v20185_v53, %v20947_v35  ;;  %17887 = vmatpush3.bf16.msra.mxu0 %v19413_v13  ;;  %v1865_v43 = vshrl.u32 %v14804_v57, 16  ;;  %v20189_v52 = vpop.eup %20188  ;;  %v16577_v10 = vpack.c.bf16 %v1094_v8, %v1093_v17  ;;  %v1014_v21 = vmul.f32 %v20187_v41, %v20952_v31  ;;  %v21219_v53 = vld [vmem:[%s26336_s4 + $0x138] sm:$0xff]   ;;  %v21223_v8 = vld [vmem:[#allocation2 + $0x20] sm:$0xf] }
 0x11e   :  { %v1097_v14 = vmul.f32 %v21134_v55, %v1013_v6  ;;  %17888 = vmatprep.subr.bf16.mxu0 %v19416_v61  ;;  %17863 = vmatpush3.bf16.msra.mxu1 %v19415_v60  ;;  %v1868_v46 = vshll.u32 %v14804_v57, 16  ;;  %v20191_v47 = vpop.eup %20190  ;;  %16887 = vst [vmem:[#allocation2 + $0x78] sm:$0xff] %v16582_v16   ;;  %v983_v13 = vadd.f32 1.0, %v20189_v52  ;;  %v1873_v51 = vshrl.u32 %v14805_v62, 16  ;;  %v19421_v55 = vld [vmem:[%s26336_s4 + $0x80] sm:$0xff]  }
 0x11f   :  { %v1100_v35 = vmul.f32 %v1071_v5, %v1016_v28  ;;  %v21200_v50 = vrot.slane %v1865_v43, 3  ;;  %17864 = vmatprep.subr.bf16.mxu1 %v19419_v22  ;;  %v20193_v31 = vpop.eup %20192  ;;  %16886 = vst [vmem:[#allocation2 + $0x70] sm:$0xff] %v16577_v10   ;;  %v1098_v60 = vmul.f32 %v21154_v29, %v1014_v21  ;;  %v981_v4 = vadd.f32 1.0, %v20191_v47  ;;  %v19423_v5 = vld [vmem:[%s26336_s4 + $0xc0] sm:$0xff]  }
 0x120   :  { %v1870_v25 = vrot.slane %v1868_v46, 4  ;;  %v1876_v27 = vshll.u32 %v14805_v62, 16  ;;  %v20195_v38 = vpop.eup %20194  ;;  %20196 = vrcp.f32 %v983_v13  ;;  %v984_v30 = vadd.f32 1.0, %v20193_v31 }
 0x121   :  { %v16592_v17 = vpack.c.bf16 %v1100_v35, %v1099_v11  ;;  %17889 = vmatpush3.bf16.msra.mxu0 %v19416_v61  ;;  %v1875_v48 = vrot.slane %v1873_v51, 3  ;;  %v16587_v19 = vpack.c.bf16 %v1098_v60, %v1097_v14  ;;  %20198 = vrcp.f32 %v981_v4  ;;  %v21209_v23 = vld [vmem:[#allocation2 + $0x2c] sm:$0xff]   ;;  %v19414_v32 = vld [vmem:[#allocation2 + $0x34] ss:$0 sps:$4 sm:$0x77]  }
 0x122   :  { %v982_v63 = vadd.f32 1.0, %v20195_v38  ;;  %v21213_v29 = vor.u32 %v21145_v59, %v21120_v9  ;;  %17890 = vmatprep.subr.bf16.mxu0 %v19420_v40  ;;  %17865 = vmatpush3.bf16.msra.mxu1 %v19419_v22  ;;  %20200 = vrcp.f32 %v984_v30  ;;  %v1871_v61 = vor.u32 %v1870_v25, %v21200_v50  ;;  %v21232_v11 = vld [vmem:[#allocation2 + $0x1c] sm:$0xf]  ;;  %v21270_v51 = vld [vmem:[#allocation2 + $0x34] sm:$0xf]  ;;  %v1081_v38 = vpop.permute.xlu1 %1080 }
 0x123   :  { %16889 = vst [vmem:[#allocation2 + $0x88] sm:$0xff] %v16592_v17   ;;  %v1878_v57 = vrot.slane %v1876_v27, 4  ;;  %17866 = vmatprep.subr.bf16.mxu1 %v19421_v55  ;;  %v1633_v12 = vrot.slane %v1425_v15, 3  ;;  %16888 = vst [vmem:[#allocation2 + $0x80] sm:$0xff] %v16587_v19   ;;  %v1255_v9 = vrot.slane %v21209_v23, 3  ;;  %v1443_v59 = vshrl.u32 %v21209_v23, 16 }
 0x124   :  { %20202 = vrcp.f32 %v982_v63  ;;  %v1446_v22 = vshll.u32 %v21209_v23, 16  ;;  %v1257_v6 = vrot.slane %v19414_v32, 3  ;;  %v1452_v62 = vshrl.u32 %v19414_v32, 16  ;;  %v21234_v15 = vld [vmem:[#allocation2 + $0x28] sm:$0xf] }
 0x125   :  { %v1455_v41 = vshll.u32 %v19414_v32, 16  ;;  %v21230_v16 = vor.u32 %v1878_v57, %v1875_v48  ;;  %17891 = vmatpush3.bf16.msra.mxu0 %v19420_v40  ;;  %v1256_v28 = vsel %vm1245_vm1, %v1253_v20, %v1255_v9  ;;  %v1445_v43 = vrot.slane %v1443_v59, 2  ;;  %v21246_v40 = vld [vmem:[#allocation2 + $0x30] sm:$0xf] }
 0x126   :  { %v1448_v52 = vrot.slane %v1446_v22, 3  ;;  %17892 = vmatprep.subr.bf16.mxu0 %v19422_v33  ;;  %17867 = vmatpush3.bf16.msra.mxu1 %v19421_v55  ;;  %v1634_v10 = vrot.slane %v1428_v36, 4  ;;  %v1258_v14 = vsel %vm1245_vm1, %v1255_v9, %v1257_v6  ;;  %v1454_v21 = vrot.slane %v1452_v62, 2  ;;  %v19426_v57 = vld [vmem:[%s26336_s4 + $0x130] sm:$0xff]  }
 0x127   :  { %17820 = vmatprep.mubr.bf16.mxu1 %v1256_v28  ;;  %v1457_v46 = vrot.slane %v1455_v41, 3  ;;  %17908 = vmatprep.subr.bf16.mxu1 %v21219_v53  ;;  %v1628_v20 = vsel %vm1616_vm3, %v1624_v2, %v21213_v29  ;;  %v14806_v44 = vcombine.low %v21232_v11, %v21223_v8  ;;  %v14807_v36 = vcombine.low %v21228_v45, %v21234_v15  ;;  %v21268_v2 = vld [vmem:[#allocation2 + $0x2c] sm:$0xf]  ;;  %v19435_v41 = vld [vmem:[#allocation2 + $0x34] ss:$0 sps:$4 sm:$0xff]  }
 0x128   :  { %17821 = vmatmul.mubr.bf16.gmra.mxu1 %v1258_v14  ;;  %v1449_v47 = vor.u32 %v1448_v52, %v1445_v43  ;;  %v1880_v13 = vsel %vm1616_vm3, %v1871_v61, %v21230_v16  ;;  %v1631_v50 = vor.u32 %v21192_v1, %v21174_v37  ;;  %v21274_v31 = vor.u32 %v1634_v10, %v1633_v12  ;;  %v1076_v1 = vpop.permute.xlu0 %1075 }
 0x129   :  { %17868 = vmatprep.mubr.bf16.mxu1 %v1628_v20  ;;  %v1458_v35 = vor.u32 %v1457_v46, %v1454_v21  ;;  %17893 = vmatpush3.bf16.msra.mxu0 %v19422_v33  ;;  %v1882_v60 = vshrl.u32 %v14806_v44, 16  ;;  %v1885_v37 = vshll.u32 %v14806_v44, 16  ;;  %v1891_v25 = vshrl.u32 %v14807_v36, 16  ;;  %v21281_v33 = vld [vmem:[#allocation2 + $0x38] sm:$0xf]  ;;  %v1091_v20 = vpop.permute.xlu1 %1090 }
 0x12a   :  { %v1450_v55 = vsel %vm1397_vm2, %v21163_v49, %v1449_v47  ;;  %17894 = vmatprep.subr.bf16.mxu0 %v19423_v5  ;;  %v1894_v27 = vshll.u32 %v14807_v36, 16  ;;  %v1641_v48 = vrot.slane %v1443_v59, 3  ;;  %v14808_v49 = vcombine.low %v21268_v2, %v21246_v40 }
 0x12b   :  { %17848 = vmatprep.mubr.bf16.mxu0 %v1450_v55  ;;  %v1459_v4 = vsel %vm1397_vm2, %v1449_v47, %v1458_v35  ;;  %v1884_v17 = vrot.slane %v1882_v60, 3  ;;  %v1887_v30 = vrot.slane %v1885_v37, 4  ;;  %v1893_v19 = vrot.slane %v1891_v25, 3  ;;  %v21309_v35 = vld [vmem:[#allocation2 + $0x3c] sm:$0xf] }
 0x12c   :  { %17849 = vmatmul.mubr.bf16.gmra.mxu0 %v1459_v4  ;;  %v1896_v63 = vrot.slane %v1894_v27, 4  ;;  %v1642_v23 = vrot.slane %v1446_v22, 4  ;;  %v14809_v32 = vcombine.low %v21270_v51, %v21281_v33  ;;  %v1632_v26 = vsel %vm1616_vm3, %v21213_v29, %v1631_v50  ;;  %v1086_v14 = vpop.permute.xlu0 %1085  ;;  %v19442_v4 = vld [vmem:[#allocation2 + $0x10] sm:$0xff]  }
 0x12d   :  { %17896 = vmatprep.mubr.bf16.mxu0 %v1880_v13  ;;  %17895 = vmatpush3.bf16.msra.mxu0 %v19423_v5  ;;  %v20197_v7 = vpop.eup %20196  ;;  %v1888_v61 = vor.u32 %v1887_v30, %v1884_v17  ;;  %v1900_v12 = vshrl.u32 %v14808_v49, 16  ;;  %v1636_v22 = vsel %vm1616_vm3, %v1631_v50, %v21274_v31  ;;  %v1903_v62 = vshll.u32 %v14808_v49, 16  ;;  %v19432_v17 = vld [vmem:[%s26336_s4 + $0x120] sm:$0xff]   ;;  %v19433_v30 = vld [vmem:[%s26336_s4 + $0x168] sm:$0xff]  }
 0x12e   :  { %17936 = vmatprep.subr.bf16.mxu0 %v21264_v58  ;;  %v20199_v9 = vpop.eup %20198  ;;  %v1019_v59 = vmul.f32 %v20197_v7, %v20985_v54  ;;  %v21294_v6 = vor.u32 %v1896_v63, %v1893_v19  ;;  %v1639_v43 = vor.u32 %v1638_v34, %v1637_v3  ;;  %v1909_v52 = vshrl.u32 %v14809_v32, 16  ;;  %v19437_v7 = vld [vmem:[%s26336_s4 + $0x160] sm:$0xff]  }
 0x12f   :  { %v20201_v28 = vpop.eup %20200  ;;  %v1017_v29 = vmul.f32 %v20199_v9, %v20999_v0  ;;  %v1912_v5 = vshll.u32 %v14809_v32, 16  ;;  %v1889_v54 = vsel %vm1616_vm3, %v21230_v16, %v1888_v61  ;;  %v21301_v46 = vor.u32 %v1642_v23, %v1641_v48  ;;  %v19430_v16 = vld [vmem:[%s26336_s4 + $0x170] sm:$0xff]  }
 0x130   :  { %17869 = vmatmul.mubr.bf16.vlgmr.msra.gmra.mxu1 %v1632_v26  ;;  %v1020_v21 = vmul.f32 %v20201_v28, %v21018_v42  ;;  %v1103_v47 = vmul.f32 %v1086_v14, %v1019_v59  ;;  %v1898_v44 = vsel %vm1616_vm3, %v1888_v61, %v21294_v6  ;;  %v19429_v42 = vld [vmem:[%s26336_s4 + $0x128] sm:$0xff]   ;;  %v1902_v36 = vrot.slane %v1900_v12, 3  ;;  %v21333_v26 = vld [vmem:[#allocation2 + $0x18] sm:$0xff]  }
 0x131   :  { %v20203_v10 = vpop.eup %20202  ;;  %17872 = vmatprep.mubr.bf16.mxu1 %v1636_v22  ;;  %17909 = vmatpush3.bf16.msra.mxu1 %v21219_v53  ;;  %v1905_v13 = vrot.slane %v1903_v62, 4  ;;  %v1646_v50 = vshrl.u32 %v19435_v41, 16  ;;  %v1649_v3 = vshll.u32 %v19435_v41, 16  ;;  %v1911_v60 = vrot.slane %v1909_v52, 3  ;;  %v19440_v62 = vld [vmem:[%s26336_s4 + $0x110] sm:$0xff]   ;;  %v19444_v14 = vld [vmem:[%s26336_s4 + $0x108] sm:$0xff]  }
 0x132   :  { %v1018_v0 = vmul.f32 %v20203_v10, %v21025_v39  ;;  %17910 = vmatprep.subr.bf16.mxu1 %v19426_v57  ;;  %v1104_v53 = vmul.f32 %v1091_v20, %v1020_v21  ;;  %v1101_v39 = vmul.f32 %v1076_v1, %v1017_v29  ;;  %v1914_v37 = vrot.slane %v1912_v5, 4  ;;  %v19447_v20 = vld [vmem:[%s26336_s4 + $0x148] sm:$0xff]  }
 0x133   :  { %v14810_v27 = vcombine.low %v21309_v35, %v21309_v35  ;;  %v1640_v1 = vsel %vm1616_vm3, %v21274_v31, %v1639_v43  ;;  %v1648_v48 = vrot.slane %v1646_v50, 3  ;;  %v1651_v49 = vrot.slane %v1649_v3, 4  ;;  %v19436_v31 = vld [vmem:[%s26336_s4 + $0x118] sm:$0xff]  }
 0x134   :  { %v1102_v55 = vmul.f32 %v1081_v38, %v1018_v0  ;;  %17897 = vmatmul.mubr.bf16.vlgmr.msra.gmra.mxu0 %v1889_v54  ;;  %v16602_v25 = vpack.c.bf16 %v1104_v53, %v1103_v47  ;;  %v1906_v38 = vor.u32 %v1905_v13, %v1902_v36  ;;  %v1915_v19 = vor.u32 %v1914_v37, %v1911_v60  ;;  %v19452_v54 = vld [vmem:[#allocation2 + $0x20] sm:$0xff]   ;;  %v19460_v53 = vld [vmem:[#allocation2 + $0x30] sm:$0xff]   ;;  %v19454_v50 = vld [vmem:[%s26336_s4 + $0x1f8] sm:$0xff]  }
 0x135   :  { %17900 = vmatprep.mubr.bf16.mxu0 %v1898_v44  ;;  %17911 = vmatpush3.bf16.msra.mxu1 %v19426_v57  ;;  %v2310_v63 = vshll.u32 %v19442_v4, 16  ;;  %v1918_v23 = vshrl.u32 %v14810_v27, 16  ;;  %v1921_v32 = vshll.u32 %v14810_v27, 16  ;;  %v1652_v57 = vor.u32 %v1651_v49, %v1648_v48  ;;  %v19449_v0 = vld [vmem:[%s26336_s4 + $0x140] sm:$0xff]   ;;  %v19450_v44 = vld [vmem:[%s26336_s4 + $0x1b8] sm:$0xff]   ;;  %v19453_v13 = vld [vmem:[%s26336_s4 + $0x1b0] sm:$0xff]  }
 0x136   :  { %v16597_v34 = vpack.c.bf16 %v1102_v55, %v1101_v39  ;;  %17937 = vmatpush3.bf16.msra.mxu0 %v21264_v58  ;;  %17912 = vmatprep.subr.bf16.mxu1 %v19429_v42  ;;  %16891 = vst [vmem:[#allocation2 + $0x98] sm:$0xff] %v16602_v25   ;;  %v1644_v58 = vsel %vm1616_vm3, %v1639_v43, %v21301_v46  ;;  %v2308_v41 = vshrl.u32 %v19442_v4, 16  ;;  %v2315_v28 = vshll.u32 %v21333_v26, 16  ;;  %v19441_v43 = vld [vmem:[%s26336_s4 + $0x158] sm:$0xff]   ;;  %v19457_v27 = vld [vmem:[%s26336_s4 + $0x1a8] sm:$0xff]   ;;  %v19461_v49 = vld [vmem:[%s26336_s4 + $0x1a0] sm:$0xff]  }
 0x137   :  { %17938 = vmatprep.subr.bf16.mxu0 %v19430_v16  ;;  %v1907_v61 = vsel %vm1616_vm3, %v21294_v6, %v1906_v38  ;;  %v1916_v12 = vsel %vm1616_vm3, %v1906_v38, %v1915_v19  ;;  %v2312_v9 = vrot.slane %v2310_v63, 1  ;;  %v1920_v59 = vrot.slane %v1918_v23, 3  ;;  %v2506_v3 = vld [vmem:[#allocation2 + $0x18] sm:$0xf]  ;;  %v21379_v37 = vld [vmem:[#allocation2 + $0x1c] sm:$0xf] }
 0x138   :  { %16890 = vst [vmem:[#allocation2 + $0x90] sm:$0xff] %v16597_v34   ;;  %17873 = vmatmul.mubr.bf16.gmra.mxu1 %v1640_v1  ;;  %v1923_v22 = vrot.slane %v1921_v32, 4  ;;  %v1653_v6 = vsel %vm1616_vm3, %v21301_v46, %v1652_v57  ;;  %v14835_v29 = vcombine.low %v21159_v56, %v21165_v18  ;;  %v2317_v10 = vrot.slane %v2315_v28, 1  ;;  %v19445_v56 = vld [vmem:[%s26336_s4 + $0x150] sm:$0xff]   ;;  %v19446_v46 = vld [vmem:[%s26336_s4 + $0x100] sm:$0xff]  }
 0x139   :  { %17876 = vmatprep.mubr.bf16.mxu1 %v1644_v58  ;;  %17913 = vmatpush3.bf16.msra.mxu1 %v19429_v42  ;;  %v2313_v52 = vor.u32 %v2312_v9, %v2308_v41  ;;  %v2323_v47 = vshll.u32 %v19452_v54, 16  ;;  %v19455_v42 = vld [vmem:[#allocation2 + $0x28] sm:$0xff]   ;;  %v14837_v39 = vcombine.low %v21223_v8, %v21228_v45  ;;  %v2327_v55 = vshrl.u32 %v19452_v54, 16  ;;  %v19458_v34 = vld [vmem:[%s26336_s4 + $0x1f0] sm:$0xff]   ;;  %v21390_v38 = vld [vmem:[#allocation2 + $0x20] sm:$0xff]  }
 0x13a   :  { %17939 = vmatpush3.bf16.msra.mxu0 %v19430_v16  ;;  %17914 = vmatprep.subr.bf16.mxu1 %v19432_v17  ;;  %v1924_v5 = vor.u32 %v1923_v22, %v1920_v59  ;;  %v14836_v16 = vcombine.low %v21180_v24, %v21232_v11  ;;  %v2331_v60 = vshll.u32 %v19455_v42, 16  ;;  %v2319_v24 = vshrl.u32 %v21333_v26, 16  ;;  %v19469_v57 = vld [vmem:[#allocation2 + $0x40] ss:$0 sps:$4 sm:$0x11]   ;;  %v19473_v54 = vld [vmem:[%s26336_s4 + $0x188] sm:$0xff]  }
 0x13b   :  { %17940 = vmatprep.subr.bf16.mxu0 %v19433_v30  ;;  %v2318_v18 = vsel %vm2306_vm4, %v2313_v52, %v2317_v10  ;;  %v2325_v36 = vrot.slane %v2323_v47, 1  ;;  %v2339_v4 = vshll.u32 %v19460_v53, 16  ;;  %v14896_v8 = vcombine.low %v2506_v3, %v21379_v37  ;;  %v19470_v52 = vld [vmem:[%s26336_s4 + $0x190] sm:$0xff]   ;;  %v19479_v3 = vld [vmem:[%s26336_s4 + $0x238] sm:$0xff]  }
 0x13c   :  { %17901 = vmatmul.mubr.bf16.gmra.mxu0 %v1907_v61  ;;  %v1925_v21 = vsel %vm1616_vm3, %v1915_v19, %v1924_v5  ;;  %v2321_v25 = vor.u32 %v2319_v24, %v2317_v10  ;;  %v2333_v45 = vrot.slane %v2331_v60, 1  ;;  %v14838_v58 = vcombine.low %v21234_v15, %v21268_v2  ;;  %v19462_v19 = vld [vmem:[%s26336_s4 + $0x1e8] sm:$0xff]   ;;  %v19471_v5 = vld [vmem:[%s26336_s4 + $0x1d8] sm:$0xff]   ;;  %v21437_v47 = vld [vmem:[#allocation2 + $0x30] sm:$0xff]  }
 0x13d   :  { %17904 = vmatprep.mubr.bf16.mxu0 %v1916_v12  ;;  %17915 = vmatpush3.bf16.msra.mxu1 %v19432_v17  ;;  %v2329_v11 = vor.u32 %v2327_v55, %v2325_v36  ;;  %v19463_v17 = vld [vmem:[#allocation2 + $0x38] sm:$0xff]   ;;  %v2341_v48 = vrot.slane %v2339_v4, 1  ;;  %v2572_v63 = vshll.u32 %v14896_v8, 16  ;;  %v2343_v23 = vshrl.u32 %v19460_v53, 16  ;;  %v19478_v55 = vld [vmem:[%s26336_s4 + $0x1c0] sm:$0xff]  }
 0x13e   :  { %17941 = vmatpush3.bf16.msra.mxu0 %v19433_v30  ;;  %17916 = vmatprep.subr.bf16.mxu1 %v19436_v31  ;;  %v2326_v1 = vsel %vm2306_vm4, %v2321_v25, %v2325_v36  ;;  %v2347_v32 = vshll.u32 %v19463_v17, 16  ;;  %v2577_v26 = vshll.u32 %v21390_v38, 16  ;;  %v2570_v59 = vshrl.u32 %v14896_v8, 16  ;;  %v19476_v36 = vld [vmem:[%s26336_s4 + $0x1c8] sm:$0xff]   ;;  %v21468_v25 = vld [vmem:[#allocation2 + $0x40] sm:$0xff]   ;;  %v19482_v8 = vld [vmem:[%s26336_s4 + $0x78] sm:$0xff]  }
 0x13f   :  { %17942 = vmatprep.subr.bf16.mxu0 %v19437_v7  ;;  %v2334_v30 = vsel %vm2306_vm4, %v2329_v11, %v2333_v45  ;;  %v2345_v61 = vor.u32 %v2343_v23, %v2341_v48  ;;  %v2574_v2 = vrot.slane %v2572_v63, 1  ;;  %v14840_v28 = vcombine.low %v21281_v33, %v21309_v35  ;;  %v19481_v11 = vld [vmem:[%s26336_s4 + $0x230] sm:$0xff]  }
 0x140   :  { %17877 = vmatmul.mubr.bf16.gmra.mxu1 %v1653_v6  ;;  %v2349_v12 = vrot.slane %v2347_v32, 1  ;;  %v2579_v22 = vrot.slane %v2577_v26, 1  ;;  %v2791_v35 = vrot.slane %v21390_v38, 1  ;;  %v2593_v53 = vshll.u32 %v21437_v47, 16  ;;  %v19485_v63 = vld [vmem:[%s26336_s4 + $0x70] sm:$0xff]  }
 0x141   :  { %17917 = vmatpush3.bf16.msra.mxu1 %v19436_v31  ;;  %17924 = vmatprep.mubr.bf16.mxu1 %v14835_v29  ;;  %v14839_v31 = vcombine.low %v21246_v40, %v21270_v51  ;;  %v19465_v40 = vld [vmem:[%s26336_s4 + $0x198] sm:$0xff]   ;;  %v19466_v51 = vld [vmem:[%s26336_s4 + $0x1e0] sm:$0xff]   ;;  %v2575_v6 = vor.u32 %v2574_v2, %v2570_v59  ;;  %v2351_v29 = vshrl.u32 %v19463_v17, 16  ;;  %v2795_v17 = vrot.slane %v21437_v47, 1 }
 0x142   :  { %17943 = vmatpush3.bf16.msra.mxu0 %v19437_v7  ;;  %17918 = vmatprep.subr.bf16.mxu1 %v19440_v62  ;;  %v2335_v7 = vshrl.u32 %v19455_v42, 16  ;;  %v2350_v41 = vsel %vm2306_vm4, %v2345_v61, %v2349_v12  ;;  %v2981_v59 = vrot.slane %v2577_v26, 2  ;;  %v19491_v26 = vld [vmem:[%s26336_s4 + $0x60] sm:$0xff]  }
 0x143   :  { %17944 = vmatprep.subr.bf16.mxu0 %v19441_v43  ;;  %v2353_v33 = vor.u32 %v2351_v29, %v2349_v12 }
 0x144   :  { %17905 = vmatmul.mubr.bf16.gmra.mxu0 %v1925_v21  ;;  %v2337_v15 = vor.u32 %v2335_v7, %v2333_v45  ;;  %v19489_v7 = vld [vmem:[#allocation2 + $0x48] ss:$0 sps:$4 sm:$0x11]  }
 0x145   :  { %17919 = vmatpush3.bf16.msra.mxu1 %v19440_v62  ;;  %17952 = vmatprep.mubr.bf16.mxu0 %v2318_v18  ;;  %v2768_v62 = vld [vmem:[#allocation2 + $0x18] sm:$0xe] }
 0x146   :  { %17945 = vmatpush3.bf16.msra.mxu0 %v19441_v43  ;;  %17920 = vmatprep.subr.bf16.mxu1 %v19444_v14  ;;  %v2342_v9 = vsel %vm2306_vm4, %v2337_v15, %v2341_v48  ;;  %v2355_v43 = vshll.u32 %v19469_v57, 16  ;;  %v21423_v10 = vcombine.low %v2768_v62, %v21379_v37  ;;  %v2595_v37 = vrot.slane %v2593_v53, 1  ;;  %v19487_v15 = vld [vmem:[%s26336_s4 + $0x220] sm:$0xff]  }
 0x147   :  { %17946 = vmatprep.subr.bf16.mxu0 %v19445_v56 }
 0x148   :  { %v2357_v21 = vrot.slane %v2355_v43, 1  ;;  %v2790_v18 = vrot.slane %v21423_v10, 1  ;;  %v2973_v2 = vshrl.u32 %v21423_v10, 16  ;;  %v2976_v57 = vshll.u32 %v21423_v10, 16 }
 0x149   :  { %17921 = vmatpush3.bf16.msra.mxu1 %v19444_v14  ;;  %v2580_v14 = vsel %vm2306_vm4, %v2575_v6, %v2579_v22  ;;  %v2799_v43 = vrot.slane %v21468_v25, 1 }
 0x14a   :  { %17947 = vmatpush3.bf16.msra.mxu0 %v19445_v56  ;;  %17922 = vmatprep.subr.bf16.mxu1 %v19446_v46  ;;  %v21427_v56 = vld [vmem:[#allocation2 + $0x28] sm:$0xff]   ;;  %v2975_v6 = vrot.slane %v2973_v2, 1  ;;  %v2978_v29 = vrot.slane %v2976_v57, 2  ;;  %v19507_v57 = vld [vmem:[%s26336_s4 + $0xb0] sm:$0xff]  }
 0x14b   :  { %17948 = vmatprep.subr.bf16.mxu0 %v19447_v20  ;;  %v2585_v42 = vshll.u32 %v21427_v56, 16  ;;  %v2589_v60 = vshrl.u32 %v21427_v56, 16  ;;  %v19506_v2 = vld [vmem:[%s26336_s4 + $0x28] sm:$0xff]  }
 0x14d   :  { %17923 = vmatpush3.bf16.msra.mxu1 %v19446_v46  ;;  %v19474_v46 = vld [vmem:[%s26336_s4 + $0x1d0] sm:$0xff]  }
 0x14e   :  { %17949 = vmatpush3.bf16.msra.mxu0 %v19447_v20  ;;  %17964 = vmatprep.subr.bf16.mxu1 %v19450_v44  ;;  %v2358_v20 = vsel %vm2306_vm4, %v2353_v33, %v2357_v21 }
 0x14f   :  { %17950 = vmatprep.subr.bf16.mxu0 %v19449_v0 }
 0x150   :  { %17925 = vmatmul.mubr.bf16.vlgmr.msra.gmra.mxu1 %v14836_v16  ;;  %v21448_v16 = vld [vmem:[#allocation2 + $0x38] sm:$0xff]  }
 0x151   :  { %17928 = vmatprep.mubr.bf16.mxu1 %v14837_v39  ;;  %17965 = vmatpush3.bf16.msra.mxu1 %v19450_v44  ;;  %v19475_v44 = vld [vmem:[%s26336_s4 + $0x180] sm:$0xff]   ;;  %v2601_v24 = vshll.u32 %v21448_v16, 16  ;;  %v2605_v48 = vshrl.u32 %v21448_v16, 16  ;;  %v2797_v62 = vrot.slane %v21448_v16, 1 }
 0x152   :  { %17951 = vmatpush3.bf16.msra.mxu0 %v19449_v0  ;;  %17966 = vmatprep.subr.bf16.mxu1 %v19453_v13  ;;  %v2792_v0 = vsel %vm2789_vm5, %v2790_v18, %v2791_v35  ;;  %v2979_v18 = vor.u32 %v2978_v29, %v2975_v6  ;;  %v21593_v16 = vld [vmem:[#allocation2 + $0x5c] sm:$0xff]  }
 0x153   :  { %17992 = vmatprep.subr.bf16.mxu0 %v19454_v50  ;;  %v2800_v33 = vsel %vm2789_vm5, %v2797_v62, %v2799_v43 }
 0x155   :  { %17953 = vmatmul.mubr.bf16.vlgmr.msra.gmra.mxu0 %v2326_v1  ;;  %17967 = vmatpush3.bf16.msra.mxu1 %v19453_v13  ;;  %v2581_v13 = vshrl.u32 %v21390_v38, 16  ;;  %v2597_v1 = vshrl.u32 %v21437_v47, 16  ;;  %v19490_v38 = vld [vmem:[%s26336_s4 + $0x218] sm:$0xff]  }
 0x156   :  { %17956 = vmatprep.mubr.bf16.mxu0 %v2334_v30  ;;  %17993 = vmatpush3.bf16.msra.mxu0 %v19454_v50  ;;  %v2587_v50 = vrot.slane %v2585_v42, 1  ;;  %v2793_v30 = vrot.slane %v21427_v56, 1  ;;  %v19512_v56 = vld [vmem:[#allocation2 + $0x48] ss:$0 sps:$4 sm:$0x33]  }
 0x157   :  { %17968 = vmatprep.subr.bf16.mxu1 %v19457_v27  ;;  %17994 = vmatprep.subr.bf16.mxu0 %v19458_v34  ;;  %v2583_v39 = vor.u32 %v2581_v13, %v2579_v22  ;;  %v3263_v22 = vld [vmem:[#allocation2 + $0x34] sm:$0x8] }
 0x158   :  { %17929 = vmatmul.mubr.bf16.gmra.mxu1 %v14838_v58  ;;  %v2591_v4 = vor.u32 %v2589_v60, %v2587_v50  ;;  %v2599_v58 = vor.u32 %v2597_v1, %v2595_v37  ;;  %v2796_v32 = vsel %vm2789_vm5, %v2793_v30, %v2795_v17 }
 0x159   :  { %17932 = vmatprep.mubr.bf16.mxu1 %v14839_v31  ;;  %17969 = vmatpush3.bf16.msra.mxu1 %v19457_v27  ;;  %v2588_v27 = vsel %vm2306_vm4, %v2583_v39, %v2587_v50  ;;  %v2794_v31 = vsel %vm2789_vm5, %v2791_v35, %v2793_v30  ;;  %v19497_v39 = vld [vmem:[%s26336_s4 + $0x50] sm:$0xff]  }
 0x15a   :  { %17995 = vmatpush3.bf16.msra.mxu0 %v19458_v34  ;;  %17970 = vmatprep.subr.bf16.mxu1 %v19461_v49  ;;  %v2596_v45 = vsel %vm2306_vm4, %v2591_v4, %v2595_v37  ;;  %v2603_v34 = vrot.slane %v2601_v24, 1  ;;  %v19499_v4 = vld [vmem:[%s26336_s4 + $0x48] sm:$0xff]  }
 0x15b   :  { %17996 = vmatprep.subr.bf16.mxu0 %v19462_v19  ;;  %v21568_v30 = vld [vmem:[#allocation2 + $0x4c] sm:$0xff]  }
 0x15c   :  { %v2607_v23 = vor.u32 %v2605_v48, %v2603_v34  ;;  %v2604_v12 = vsel %vm2306_vm4, %v2599_v58, %v2603_v34  ;;  %v2985_v34 = vrot.slane %v2585_v42, 2  ;;  %v3234_v42 = vld [vmem:[#allocation2 + $0x34] sm:$0xc] }
 0x15d   :  { %17957 = vmatmul.mubr.bf16.gmra.mxu0 %v2342_v9  ;;  %17971 = vmatpush3.bf16.msra.mxu1 %v19461_v49  ;;  %v2609_v49 = vshll.u32 %v21468_v25, 16  ;;  %v2980_v9 = vrot.slane %v2581_v13, 1  ;;  %v2801_v13 = vrot.slane %v19489_v7, 1  ;;  %v19503_v58 = vld [vmem:[%s26336_s4 + $0x30] sm:$0xff]  }
 0x15e   :  { %17960 = vmatprep.mubr.bf16.mxu0 %v2350_v41  ;;  %17997 = vmatpush3.bf16.msra.mxu0 %v19462_v19  ;;  %v19484_v19 = vld [vmem:[%s26336_s4 + $0x228] sm:$0xff]   ;;  %v2613_v41 = vshrl.u32 %v21468_v25, 16  ;;  %v19509_v25 = vld [vmem:[%s26336_s4 + $0x20] sm:$0xff]  }
 0x15f   :  { %17972 = vmatprep.subr.bf16.mxu1 %v19465_v40  ;;  %17998 = vmatprep.subr.bf16.mxu0 %v19466_v51  ;;  %v2611_v61 = vrot.slane %v2609_v49, 1  ;;  %v2982_v10 = vor.u32 %v2981_v59, %v2980_v9 }
 0x160   :  { %17933 = vmatmul.mubr.bf16.gmra.mxu1 %v14840_v28  ;;  %v2617_v28 = vshll.u32 %v19489_v7, 16 }
 0x161   :  { %17973 = vmatpush3.bf16.msra.mxu1 %v19465_v40  ;;  %17980 = vmatprep.mubr.bf16.mxu1 %v2580_v14  ;;  %v19488_v40 = vld [vmem:[%s26336_s4 + $0x68] sm:$0xff]   ;;  %v21520_v14 = vld [vmem:[#allocation2 + $0x38] sm:$0xf] }
 0x162   :  { %17999 = vmatpush3.bf16.msra.mxu0 %v19466_v51  ;;  %17974 = vmatprep.subr.bf16.mxu1 %v19470_v52  ;;  %v2612_v51 = vsel %vm2306_vm4, %v2607_v23, %v2611_v61  ;;  %v2619_v35 = vrot.slane %v2617_v28, 1  ;;  %v21524_v21 = vcombine.low %v3263_v22, %v21520_v14  ;;  %v2992_v23 = vrot.slane %v2605_v48, 1  ;;  %v21591_v48 = vld [vmem:[#allocation2 + $0x54] sm:$0xff]  }
 0x163   :  { %18000 = vmatprep.subr.bf16.mxu0 %v19471_v5  ;;  %v15005_v7 = vcombine.low %v3234_v42, %v21520_v14  ;;  %v3494_v42 = vshll.u32 %v21568_v30, 16 }
 0x165   :  { %17961 = vmatmul.mubr.bf16.gmra.mxu0 %v2358_v20  ;;  %17975 = vmatpush3.bf16.msra.mxu1 %v19470_v52  ;;  %v2615_v52 = vor.u32 %v2613_v41, %v2611_v61  ;;  %v19493_v20 = vld [vmem:[%s26336_s4 + $0x58] sm:$0xff]   ;;  %v3465_v22 = vshrl.u32 %v15005_v7, 16 }
 0x166   :  { %18001 = vmatpush3.bf16.msra.mxu0 %v19471_v5  ;;  %18008 = vmatprep.mubr.bf16.mxu0 %v2792_v0  ;;  %v2798_v5 = vsel %vm2789_vm5, %v2795_v17, %v2797_v62  ;;  %v21533_v0 = vld [vmem:[#allocation2 + $0x3c] sm:$0xff]   ;;  %v3468_v62 = vshll.u32 %v15005_v7, 16  ;;  %v3496_v7 = vrot.slane %v3494_v42, 3 }
 0x167   :  { %17976 = vmatprep.subr.bf16.mxu1 %v19473_v54  ;;  %18002 = vmatprep.subr.bf16.mxu0 %v19474_v46  ;;  %v3314_v50 = vrot.slane %v21533_v0, 3  ;;  %v19501_v17 = vld [vmem:[%s26336_s4 + $0x38] sm:$0xff]   ;;  %v3476_v29 = vshll.u32 %v21533_v0, 16  ;;  %v3467_v14 = vrot.slane %v3465_v22, 2  ;;  %v3512_v22 = vshll.u32 %v21593_v16, 16 }
 0x169   :  { %17977 = vmatpush3.bf16.msra.mxu1 %v19473_v54  ;;  %v19492_v54 = vld [vmem:[%s26336_s4 + $0x210] sm:$0xff]  }
 0x16a   :  { %18003 = vmatpush3.bf16.msra.mxu0 %v19474_v46  ;;  %17978 = vmatprep.subr.bf16.mxu1 %v19475_v44  ;;  %v2620_v46 = vsel %vm2306_vm4, %v2615_v52, %v2619_v35  ;;  %v19510_v52 = vld [vmem:[%s26336_s4 + $0xa8] sm:$0xff]   ;;  %v3682_v35 = vshrl.u32 %v21524_v21, 16 }
 0x16b   :  { %18004 = vmatprep.subr.bf16.mxu0 %v19476_v36 }
 0x16d   :  { %17979 = vmatpush3.bf16.msra.mxu1 %v19475_v44  ;;  %v2983_v44 = vsel %vm2971_vm6, %v2979_v18, %v2982_v10  ;;  %v3685_v18 = vshll.u32 %v21524_v21, 16 }
 0x16e   :  { %18005 = vmatpush3.bf16.msra.mxu0 %v19476_v36  ;;  %18020 = vmatprep.subr.bf16.mxu1 %v19479_v3  ;;  %v3313_v36 = vrot.slane %v21524_v21, 3 }
 0x16f   :  { %18006 = vmatprep.subr.bf16.mxu0 %v19478_v55 }
 0x170   :  { %17981 = vmatmul.mubr.bf16.vlgmr.msra.gmra.mxu1 %v2588_v27  ;;  %v3315_v37 = vsel %vm1245_vm1, %v3313_v36, %v3314_v50  ;;  %v2988_v27 = vrot.slane %v2597_v1, 1  ;;  %v19500_v1 = vld [vmem:[%s26336_s4 + $0x40] sm:$0xff]  }
 0x171   :  { %17984 = vmatprep.mubr.bf16.mxu1 %v2596_v45  ;;  %18021 = vmatpush3.bf16.msra.mxu1 %v19479_v3  ;;  %v19496_v3 = vld [vmem:[%s26336_s4 + $0x208] sm:$0xff]   ;;  %v2984_v45 = vrot.slane %v2589_v60, 1 }
 0x172   :  { %18007 = vmatpush3.bf16.msra.mxu0 %v19478_v55  ;;  %18022 = vmatprep.subr.bf16.mxu1 %v19481_v11  ;;  %v2802_v55 = vsel %vm2789_vm5, %v2799_v43, %v2801_v13 }
 0x173   :  { %18048 = vmatprep.subr.bf16.mxu0 %v19482_v8  ;;  %v2986_v60 = vor.u32 %v2985_v34, %v2984_v45 }
 0x175   :  { %18009 = vmatmul.mubr.bf16.vlgmr.msra.gmra.mxu0 %v2794_v31  ;;  %18023 = vmatpush3.bf16.msra.mxu1 %v19481_v11  ;;  %v19498_v11 = vld [vmem:[%s26336_s4 + $0x200] sm:$0xff]  }
 0x176   :  { %18012 = vmatprep.mubr.bf16.mxu0 %v2796_v32  ;;  %18049 = vmatpush3.bf16.msra.mxu0 %v19482_v8  ;;  %v2989_v8 = vrot.slane %v2593_v53, 2  ;;  %v21566_v53 = vld [vmem:[#allocation2 + $0x44] sm:$0xff]   ;;  %v2993_v32 = vrot.slane %v2601_v24, 2  ;;  %v2996_v24 = vrot.slane %v2613_v41, 1  ;;  %v3320_v41 = vrot.slane %v21591_v48, 3 }
 0x177   :  { %18024 = vmatprep.subr.bf16.mxu1 %v19484_v19  ;;  %18050 = vmatprep.subr.bf16.mxu0 %v19485_v63  ;;  %v3316_v61 = vrot.slane %v21566_v53, 3 }
 0x178   :  { %17985 = vmatmul.mubr.bf16.gmra.mxu1 %v2604_v12  ;;  %v2990_v47 = vor.u32 %v2989_v8, %v2988_v27  ;;  %v2997_v12 = vrot.slane %v2609_v49, 2  ;;  %v2994_v59 = vor.u32 %v2993_v32, %v2992_v23  ;;  %v3473_v49 = vshrl.u32 %v21533_v0, 16  ;;  %v21618_v0 = vld [vmem:[#allocation2 + $0x64] ss:$0 sps:$4 sm:$0x77]  }
 0x179   :  { %17988 = vmatprep.mubr.bf16.mxu1 %v2612_v51  ;;  %18025 = vmatpush3.bf16.msra.mxu1 %v19484_v19  ;;  %v2987_v19 = vsel %vm2971_vm6, %v2982_v10, %v2986_v60  ;;  %v3004_v51 = vshll.u32 %v19512_v56, 16  ;;  %v3317_v9 = vsel %vm1245_vm1, %v3314_v50, %v3316_v61  ;;  %v3690_v8 = vrot.slane %v3476_v29, 4  ;;  %v19521_v23 = vld [vmem:[%s26336_s4] sm:$0xff]  }
 0x17a   :  { %18051 = vmatpush3.bf16.msra.mxu0 %v19485_v63  ;;  %18026 = vmatprep.subr.bf16.mxu1 %v19487_v15  ;;  %v19504_v63 = vld [vmem:[%s26336_s4 + $0xb8] sm:$0xff]   ;;  %v2991_v31 = vsel %vm2971_vm6, %v2986_v60, %v2990_v47  ;;  %v2998_v6 = vor.u32 %v2997_v12, %v2996_v24  ;;  %v2995_v43 = vsel %vm2971_vm6, %v2990_v47, %v2994_v59  ;;  %v3689_v27 = vrot.slane %v3473_v49, 3  ;;  %v19520_v47 = vld [vmem:[%s26336_s4 + $0x90] sm:$0xff]   ;;  %v19523_v24 = vld [vmem:[%s26336_s4 + $0x80] sm:$0xff]  }
 0x17b   :  { %18052 = vmatprep.subr.bf16.mxu0 %v19488_v40  ;;  %v3324_v34 = vrot.slane %v21618_v0, 3 }
 0x17c   :  { %v2999_v10 = vsel %vm2971_vm6, %v2994_v59, %v2998_v6  ;;  %v21643_v60 = vor.u32 %v3690_v8, %v3689_v27  ;;  %v3509_v59 = vshrl.u32 %v21593_v16, 16  ;;  %v3706_v27 = vrot.slane %v3512_v22, 4  ;;  %v21703_v8 = vld [vmem:[#allocation2 + $0x54] sm:$0xf] }
 0x17d   :  { %18013 = vmatmul.mubr.bf16.gmra.mxu0 %v2798_v5  ;;  %18027 = vmatpush3.bf16.msra.mxu1 %v19487_v15  ;;  %v3318_v15 = vrot.slane %v21568_v30, 3  ;;  %v3006_v5 = vrot.slane %v3004_v51, 2 }
 0x17e   :  { %18016 = vmatprep.mubr.bf16.mxu0 %v2800_v33  ;;  %18053 = vmatpush3.bf16.msra.mxu0 %v19488_v40  ;;  %v3001_v40 = vshrl.u32 %v19512_v56, 16  ;;  %v3470_v33 = vrot.slane %v3468_v62, 3  ;;  %v3491_v56 = vshrl.u32 %v21568_v30, 16  ;;  %v19522_v30 = vld [vmem:[%s26336_s4 + $0x88] sm:$0xff]   ;;  %v3865_v62 = vld [vmem:[#allocation2 + $0x3c] sm:$0x8] }
 0x17f   :  { %18028 = vmatprep.subr.bf16.mxu1 %v19490_v38  ;;  %18054 = vmatprep.subr.bf16.mxu0 %v19491_v26  ;;  %v3319_v28 = vsel %vm1245_vm1, %v3316_v61, %v3318_v15  ;;  %v3321_v36 = vsel %vm1245_vm1, %v3318_v15, %v3320_v41 }
 0x180   :  { %17989 = vmatmul.mubr.bf16.gmra.mxu1 %v2620_v46  ;;  %v3475_v46 = vrot.slane %v3473_v49, 2  ;;  %v3471_v13 = vor.u32 %v3470_v33, %v3467_v14  ;;  %v3493_v32 = vrot.slane %v3491_v56, 2  ;;  %v21682_v33 = vld [vmem:[#allocation2 + $0x48] sm:$0xf] }
 0x181   :  { %18029 = vmatpush3.bf16.msra.mxu1 %v19490_v38  ;;  %18036 = vmatprep.mubr.bf16.mxu1 %v2983_v44  ;;  %v3322_v38 = vrot.slane %v21593_v16, 3  ;;  %v19514_v44 = vld [vmem:[%s26336_s4 + $0xa0] sm:$0xff]   ;;  %v19526_v16 = vld [vmem:[%s26336_s4 + $0x138] sm:$0xff]  }
 0x182   :  { %18055 = vmatpush3.bf16.msra.mxu0 %v19491_v26  ;;  %18030 = vmatprep.subr.bf16.mxu1 %v19492_v54  ;;  %v3003_v26 = vrot.slane %v3001_v40, 1  ;;  %v3497_v40 = vor.u32 %v3496_v7, %v3493_v32  ;;  %v21722_v7 = vld [vmem:[#allocation2 + $0x5c] sm:$0xf] }
 0x183   :  { %18056 = vmatprep.subr.bf16.mxu0 %v19493_v20  ;;  %v3323_v21 = vsel %vm1245_vm1, %v3320_v41, %v3322_v38  ;;  %v21671_v41 = vld [vmem:[#allocation2 + $0x40] sm:$0xf] }
 0x184   :  { %v3007_v50 = vor.u32 %v3006_v5, %v3003_v26  ;;  %v3514_v26 = vrot.slane %v3512_v22, 3  ;;  %v15055_v5 = vcombine.low %v3865_v62, %v21671_v41  ;;  %v21743_v62 = vld [vmem:[#allocation2 + $0x6c] sm:$0xf] }
 0x185   :  { %18017 = vmatmul.mubr.bf16.gmra.mxu0 %v2802_v55  ;;  %18031 = vmatpush3.bf16.msra.mxu1 %v19492_v54  ;;  %v19513_v54 = vld [vmem:[%s26336_s4 + $0x18] sm:$0xff]  }
 0x186   :  { %18057 = vmatpush3.bf16.msra.mxu0 %v19493_v20  ;;  %18064 = vmatprep.mubr.bf16.mxu0 %v3315_v37  ;;  %v3478_v20 = vrot.slane %v3476_v29, 3  ;;  %v19517_v37 = vld [vmem:[%s26336_s4 + $0x10] sm:$0xff]  }
 0x187   :  { %18032 = vmatprep.subr.bf16.mxu1 %v19496_v3  ;;  %18058 = vmatprep.subr.bf16.mxu0 %v19497_v39 }
 0x188   :  { %v21625_v55 = vor.u32 %v3478_v20, %v3475_v46  ;;  %v19528_v46 = vld [vmem:[%s26336_s4 + $0x130] sm:$0xff]  }
 0x189   :  { %18033 = vmatpush3.bf16.msra.mxu1 %v19496_v3  ;;  %v3684_v3 = vrot.slane %v3682_v35, 3  ;;  %v21684_v35 = vld [vmem:[#allocation2 + $0x64] ss:$0 sps:$4 sm:$0xff]  }
 0x18a   :  { %18059 = vmatpush3.bf16.msra.mxu0 %v19497_v39  ;;  %18034 = vmatprep.subr.bf16.mxu1 %v19498_v11  ;;  %v3687_v39 = vrot.slane %v3685_v18, 4  ;;  %v3480_v45 = vsel %vm1397_vm2, %v3471_v13, %v21625_v55  ;;  %v3518_v13 = vshrl.u32 %v21618_v0, 16 }
 0x18b   :  { %18060 = vmatprep.subr.bf16.mxu0 %v19499_v4 }
 0x18d   :  { %18035 = vmatpush3.bf16.msra.mxu1 %v19498_v11  ;;  %v3008_v11 = vsel %vm2971_vm6, %v2998_v6, %v3007_v50  ;;  %v3698_v6 = vrot.slane %v3494_v42, 4  ;;  %v3520_v42 = vrot.slane %v3518_v13, 2 }
 0x18e   :  { %18061 = vmatpush3.bf16.msra.mxu0 %v19499_v4  ;;  %18076 = vmatprep.subr.bf16.mxu1 %v19501_v17  ;;  %v19518_v4 = vld [vmem:[%s26336_s4 + $0x98] sm:$0xff]  }
 0x18f   :  { %18062 = vmatprep.subr.bf16.mxu0 %v19500_v1 }
 0x190   :  { %18037 = vmatmul.mubr.bf16.vlgmr.msra.gmra.mxu1 %v2987_v19 }
 0x191   :  { %18040 = vmatprep.mubr.bf16.mxu1 %v2991_v31  ;;  %18077 = vmatpush3.bf16.msra.mxu1 %v19501_v17  ;;  %v3688_v17 = vor.u32 %v3687_v39, %v3684_v3  ;;  %v3485_v31 = vshll.u32 %v21566_v53, 16  ;;  %v3928_v39 = vshrl.u32 %v15055_v5, 16 }
 0x192   :  { %18063 = vmatpush3.bf16.msra.mxu0 %v19500_v1  ;;  %18078 = vmatprep.subr.bf16.mxu1 %v19503_v58  ;;  %v19519_v1 = vld [vmem:[%s26336_s4 + $0x8] sm:$0xff]  }
 0x193   :  { %18104 = vmatprep.subr.bf16.mxu0 %v19504_v63  ;;  %v3692_v19 = vsel %vm1616_vm3, %v3688_v17, %v21643_v60  ;;  %v3487_v15 = vrot.slane %v3485_v31, 3  ;;  %v3694_v51 = vrot.slane %v3485_v31, 4  ;;  %v19530_v17 = vld [vmem:[%s26336_s4 + $0x128] sm:$0xff]   ;;  %v21718_v31 = vld [vmem:[#allocation2 + $0x58] sm:$0xf] }
 0x195   :  { %18065 = vmatmul.mubr.bf16.vlgmr.msra.gmra.mxu0 %v3317_v9  ;;  %18079 = vmatpush3.bf16.msra.mxu1 %v19503_v58  ;;  %v3325_v58 = vsel %vm1245_vm1, %v3322_v38, %v3324_v34  ;;  %v19525_v9 = vld [vmem:[%s26336_s4 + $0xf0] sm:$0xff]   ;;  %v3511_v38 = vrot.slane %v3509_v59, 2  ;;  %v19529_v34 = vld [vmem:[%s26336_s4 + $0xe0] sm:$0xff]  }
 0x196   :  { %18068 = vmatprep.mubr.bf16.mxu0 %v3319_v28  ;;  %18105 = vmatpush3.bf16.msra.mxu0 %v19504_v63  ;;  %v3482_v63 = vshrl.u32 %v21566_v53, 16  ;;  %v19524_v53 = vld [vmem:[%s26336_s4 + $0xf8] sm:$0xff]  }
 0x197   :  { %18080 = vmatprep.subr.bf16.mxu1 %v19506_v2  ;;  %18106 = vmatprep.subr.bf16.mxu0 %v19507_v57  ;;  %v21698_v3 = vor.u32 %v3514_v26, %v3511_v38  ;;  %v19536_v26 = vld [vmem:[%s26336_s4 + $0xd0] sm:$0xff]  }
 0x198   :  { %18041 = vmatmul.mubr.bf16.gmra.mxu1 %v2995_v43  ;;  %v3484_v61 = vrot.slane %v3482_v63, 2  ;;  %v3693_v12 = vrot.slane %v3482_v63, 3  ;;  %v3713_v63 = vshll.u32 %v21684_v35, 16 }
 0x199   :  { %18044 = vmatprep.mubr.bf16.mxu1 %v2999_v10  ;;  %18081 = vmatpush3.bf16.msra.mxu1 %v19506_v2  ;;  %v3500_v2 = vshrl.u32 %v21591_v48, 16 }
 0x19a   :  { %18107 = vmatpush3.bf16.msra.mxu0 %v19507_v57  ;;  %18082 = vmatprep.subr.bf16.mxu1 %v19509_v25  ;;  %v3503_v57 = vshll.u32 %v21591_v48, 16  ;;  %v3488_v28 = vor.u32 %v3487_v15, %v3484_v61  ;;  %v3697_v48 = vrot.slane %v3491_v56, 3  ;;  %v3695_v10 = vor.u32 %v3694_v51, %v3693_v12  ;;  %v21714_v56 = vld [vmem:[#allocation2 + $0x60] sm:$0xf] }
 0x19b   :  { %18108 = vmatprep.subr.bf16.mxu0 %v19510_v52  ;;  %v3502_v49 = vrot.slane %v3500_v2, 2  ;;  %v3701_v20 = vrot.slane %v3500_v2, 3  ;;  %v19531_v2 = vld [vmem:[%s26336_s4 + $0xd8] sm:$0xff]   ;;  %v15058_v12 = vcombine.low %v21703_v8, %v21718_v31  ;;  %v15059_v22 = vcombine.low %v21722_v7, %v21714_v56 }
 0x19c   :  { %v3505_v29 = vrot.slane %v3503_v57, 3  ;;  %v3489_v43 = vsel %vm1397_vm2, %v21625_v55, %v3488_v28  ;;  %v3699_v14 = vor.u32 %v3698_v6, %v3697_v48  ;;  %v3696_v50 = vsel %vm1616_vm3, %v21643_v60, %v3695_v10  ;;  %v21712_v60 = vld [vmem:[#allocation2 + $0x4c] sm:$0xf] }
 0x19d   :  { %18069 = vmatmul.mubr.bf16.gmra.mxu0 %v3321_v36  ;;  %18083 = vmatpush3.bf16.msra.mxu1 %v19509_v25  ;;  %v21673_v25 = vld [vmem:[#allocation2 + $0x44] sm:$0xf]  ;;  %v3931_v55 = vshll.u32 %v15055_v5, 16  ;;  %v3715_v6 = vrot.slane %v3713_v63, 4 }
 0x19e   :  { %18072 = vmatprep.mubr.bf16.mxu0 %v3323_v21  ;;  %18109 = vmatpush3.bf16.msra.mxu0 %v19510_v52  ;;  %v3498_v52 = vsel %vm1397_vm2, %v3488_v28, %v3497_v40  ;;  %v3506_v18 = vor.u32 %v3505_v29, %v3502_v49  ;;  %v15056_v36 = vcombine.low %v21673_v25, %v21682_v33  ;;  %v3521_v21 = vshll.u32 %v21618_v0, 16  ;;  %v21792_v63 = vld [vmem:[#allocation2 + $0x60] sm:$0xff]  }
 0x19f   :  { %18084 = vmatprep.subr.bf16.mxu1 %v19513_v54  ;;  %18110 = vmatprep.subr.bf16.mxu0 %v19514_v44  ;;  %v3933_v32 = vrot.slane %v3931_v55, 4 }
 0x1a0   :  { %18045 = vmatmul.mubr.bf16.gmra.mxu1 %v3008_v11  ;;  %v3700_v11 = vsel %vm1616_vm3, %v3695_v10, %v3699_v14  ;;  %v3507_v0 = vsel %vm1397_vm2, %v3497_v40, %v3506_v18  ;;  %v21735_v40 = vld [vmem:[#allocation2 + $0x68] sm:$0xf]  ;;  %v3954_v10 = vshrl.u32 %v15058_v12, 16 }
 0x1a1   :  { %18085 = vmatpush3.bf16.msra.mxu1 %v19513_v54  ;;  %18092 = vmatprep.mubr.bf16.mxu1 %v3480_v45  ;;  %v19527_v54 = vld [vmem:[%s26336_s4 + $0xe8] sm:$0xff]  }
 0x1a2   :  { %18111 = vmatpush3.bf16.msra.mxu0 %v19514_v44  ;;  %18086 = vmatprep.subr.bf16.mxu1 %v19517_v37  ;;  %v3702_v44 = vrot.slane %v3503_v57, 4 }
 0x1a3   :  { %18112 = vmatprep.subr.bf16.mxu0 %v19518_v4 }
 0x1a4   :  { %v3703_v45 = vor.u32 %v3702_v44, %v3701_v20  ;;  %v21761_v20 = vld [vmem:[#allocation2 + $0x40] sm:$0xff]   ;;  %v21763_v44 = vld [vmem:[#allocation2 + $0x48] sm:$0xff]  }
 0x1a5   :  { %18073 = vmatmul.mubr.bf16.gmra.mxu0 %v3325_v58  ;;  %18087 = vmatpush3.bf16.msra.mxu1 %v19517_v37  ;;  %v21700_v37 = vld [vmem:[#allocation2 + $0x50] sm:$0xf]  ;;  %v3523_v58 = vrot.slane %v3521_v21, 3 }
 0x1a6   :  { %18113 = vmatpush3.bf16.msra.mxu0 %v19518_v4  ;;  %18120 = vmatprep.mubr.bf16.mxu0 %v3692_v19  ;;  %v3705_v4 = vrot.slane %v3509_v59, 3  ;;  %v3710_v19 = vshrl.u32 %v21684_v35, 16  ;;  %v15057_v15 = vcombine.low %v21712_v60, %v21700_v37  ;;  %v3704_v51 = vsel %vm1616_vm3, %v3699_v14, %v3703_v45  ;;  %v19532_v59 = vld [vmem:[%s26336_s4 + $0x120] sm:$0xff]  }
 0x1a7   :  { %18088 = vmatprep.subr.bf16.mxu1 %v19519_v1  ;;  %18114 = vmatprep.subr.bf16.mxu0 %v19520_v47  ;;  %v3957_v14 = vshll.u32 %v15058_v12, 16  ;;  %v4375_v12 = vshll.u32 %v21763_v44, 16 }
 0x1a8   :  { %v21724_v61 = vor.u32 %v3706_v27, %v3705_v4  ;;  %v3712_v48 = vrot.slane %v3710_v19, 3  ;;  %v3948_v5 = vshll.u32 %v15057_v15, 16  ;;  %v21773_v4 = vld [vmem:[#allocation2 + $0x58] sm:$0xff]  }
 0x1a9   :  { %18089 = vmatpush3.bf16.msra.mxu1 %v19519_v1  ;;  %v3936_v1 = vshrl.u32 %v15056_v36, 16  ;;  %v21775_v27 = vld [vmem:[#allocation2 + $0x58] sm:$0xff]  }
 0x1aa   :  { %18115 = vmatpush3.bf16.msra.mxu0 %v19520_v47  ;;  %18090 = vmatprep.subr.bf16.mxu1 %v19521_v23  ;;  %v3939_v47 = vshll.u32 %v15056_v36, 16  ;;  %v3708_v29 = vsel %vm1616_vm3, %v3703_v45, %v21724_v61  ;;  %v3716_v13 = vor.u32 %v3715_v6, %v3712_v48  ;;  %v19540_v45 = vld [vmem:[%s26336_s4 + $0x110] sm:$0xff]   ;;  %v4391_v48 = vshll.u32 %v21773_v4, 16 }
 0x1ab   :  { %18116 = vmatprep.subr.bf16.mxu0 %v19522_v30  ;;  %v3938_v57 = vrot.slane %v3936_v1, 3  ;;  %v3959_v1 = vrot.slane %v3957_v14, 4  ;;  %v4644_v6 = vshll.u32 %v21775_v27, 16  ;;  %v19544_v14 = vld [vmem:[%s26336_s4 + $0x100] sm:$0xff]  }
 0x1ad   :  { %18091 = vmatpush3.bf16.msra.mxu1 %v19521_v23  ;;  %v3516_v23 = vsel %vm1397_vm2, %v3506_v18, %v21698_v3  ;;  %v19537_v18 = vld [vmem:[%s26336_s4 + $0x118] sm:$0xff]  }
 0x1ae   :  { %18117 = vmatpush3.bf16.msra.mxu0 %v19522_v30  ;;  %18132 = vmatprep.subr.bf16.mxu1 %v19524_v53  ;;  %v3930_v30 = vrot.slane %v3928_v39, 3  ;;  %v21771_v39 = vld [vmem:[#allocation2 + $0x50] sm:$0xff]  }
 0x1af   :  { %18118 = vmatprep.subr.bf16.mxu0 %v19523_v24 }
 0x1b0   :  { %18093 = vmatmul.mubr.bf16.vlgmr.msra.gmra.mxu1 %v3489_v43  ;;  %v3934_v28 = vor.u32 %v3933_v32, %v3930_v30  ;;  %v3945_v43 = vshrl.u32 %v15057_v15, 16  ;;  %v15086_v30 = vcombine.low %v21671_v41, %v21673_v25  ;;  %v19542_v41 = vld [vmem:[%s26336_s4 + $0x108] sm:$0xff]   ;;  %v4368_v25 = vshrl.u32 %v21761_v20, 16 }
 0x1b1   :  { %18096 = vmatprep.mubr.bf16.mxu1 %v3498_v52  ;;  %18133 = vmatpush3.bf16.msra.mxu1 %v19524_v53  ;;  %v21728_v53 = vld [vmem:[#allocation2 + $0x64] sm:$0xf]  ;;  %v21749_v52 = vld [vmem:[#allocation2 + $0x4c] sm:$0xf] }
 0x1b2   :  { %18119 = vmatpush3.bf16.msra.mxu0 %v19523_v24  ;;  %18134 = vmatprep.subr.bf16.mxu1 %v19525_v9  ;;  %v3941_v24 = vrot.slane %v3939_v47, 4  ;;  %v15060_v49 = vcombine.low %v21728_v53, %v21735_v40  ;;  %v3947_v55 = vrot.slane %v3945_v43, 3 }
 0x1b3   :  { %18160 = vmatprep.subr.bf16.mxu0 %v19526_v16 }
 0x1b4   :  { %v21751_v38 = vor.u32 %v3941_v24, %v3938_v57  ;;  %v3972_v21 = vshrl.u32 %v15060_v49, 16  ;;  %v4370_v24 = vshll.u32 %v21761_v20, 16 }
 0x1b5   :  { %18121 = vmatmul.mubr.bf16.vlgmr.msra.gmra.mxu0 %v3696_v50  ;;  %18135 = vmatpush3.bf16.msra.mxu1 %v19525_v9  ;;  %v3524_v9 = vor.u32 %v3523_v58, %v3520_v42  ;;  %v15061_v50 = vcombine.low %v21743_v62, %v21743_v62  ;;  %v21786_v42 = vld [vmem:[#allocation2 + $0x60] sm:$0xff]  }
 0x1b6   :  { %18124 = vmatprep.mubr.bf16.mxu0 %v3700_v11  ;;  %18161 = vmatpush3.bf16.msra.mxu0 %v19526_v16  ;;  %v4566_v16 = vld [vmem:[#allocation2 + $0x48] sm:$0xf]  ;;  %v3943_v36 = vsel %vm1616_vm3, %v3934_v28, %v21751_v38  ;;  %v3975_v11 = vshll.u32 %v15060_v49, 16  ;;  %v21798_v32 = vrot.slane %v3972_v21, 3  ;;  %v19545_v49 = vld [vmem:[%s26336_s4 + $0x178] sm:$0xff]  }
 0x1b7   :  { %18136 = vmatprep.subr.bf16.mxu1 %v19527_v54  ;;  %18162 = vmatprep.subr.bf16.mxu0 %v19528_v46  ;;  %v3525_v35 = vsel %vm1397_vm2, %v21698_v3, %v3524_v9  ;;  %v21769_v3 = vld [vmem:[#allocation2 + $0x50] sm:$0xff]   ;;  %v21784_v47 = vcombine.low %v4566_v16, %v21749_v52  ;;  %v3981_v15 = vshrl.u32 %v15061_v50, 16  ;;  %v3984_v57 = vshll.u32 %v15061_v50, 16 }
 0x1b8   :  { %18097 = vmatmul.mubr.bf16.gmra.mxu1 %v3507_v0  ;;  %v19539_v0 = vld [vmem:[%s26336_s4 + $0xc8] sm:$0xff]   ;;  %v4636_v9 = vshll.u32 %v21769_v3, 16  ;;  %v4379_v16 = vshrl.u32 %v21763_v44, 16  ;;  %v4640_v21 = vshrl.u32 %v21769_v3, 16 }
 0x1b9   :  { %18100 = vmatprep.mubr.bf16.mxu1 %v3516_v23  ;;  %18137 = vmatpush3.bf16.msra.mxu1 %v19527_v54  ;;  %v3963_v54 = vshrl.u32 %v15059_v22, 16  ;;  %v3717_v23 = vsel %vm1616_vm3, %v21724_v61, %v3716_v13  ;;  %v19541_v61 = vld [vmem:[%s26336_s4 + $0xc0] sm:$0xff]   ;;  %v21821_v43 = vrot.slane %v3981_v15, 3 }
 0x1ba   :  { %18163 = vmatpush3.bf16.msra.mxu0 %v19528_v46  ;;  %18138 = vmatprep.subr.bf16.mxu1 %v19529_v34  ;;  %v3966_v46 = vshll.u32 %v15059_v22, 16  ;;  %v21841_v13 = vrot.slane %v4636_v9, 1 }
 0x1bb   :  { %18164 = vmatprep.subr.bf16.mxu0 %v19530_v17  ;;  %v21788_v58 = vrot.slane %v3963_v54, 3  ;;  %v21835_v54 = vrot.slane %v4375_v12, 1 }
 0x1bc   :  { %v21790_v19 = vrot.slane %v3966_v46, 4  ;;  %v4399_v46 = vshll.u32 %v21792_v63, 16 }
 0x1bd   :  { %18125 = vmatmul.mubr.bf16.gmra.mxu0 %v3704_v51  ;;  %18139 = vmatpush3.bf16.msra.mxu1 %v19529_v34  ;;  %v3950_v34 = vrot.slane %v3948_v5, 4  ;;  %v4631_v51 = vshll.u32 %v21784_v47, 16  ;;  %v26351_v5 = vshll.u32 %v21786_v42, 16 }
 0x1be   :  { %18128 = vmatprep.mubr.bf16.mxu0 %v3708_v29  ;;  %18165 = vmatpush3.bf16.msra.mxu0 %v19530_v17  ;;  %v3956_v17 = vrot.slane %v3954_v10, 3  ;;  %v21826_v10 = vld [vmem:[#allocation2 + $0x68] sm:$0xff]  }
 0x1bf   :  { %18140 = vmatprep.subr.bf16.mxu1 %v19531_v2  ;;  %18166 = vmatprep.subr.bf16.mxu0 %v19532_v59  ;;  %v3951_v22 = vor.u32 %v3950_v34, %v3947_v55  ;;  %v21846_v55 = vrot.slane %v4631_v51, 1  ;;  %v21851_v34 = vrot.slane %v4644_v6, 1  ;;  %v21873_v51 = vld [vmem:[#allocation2 + $0x68] sm:$0xff]  }
 0x1c0   :  { %18101 = vmatmul.mubr.bf16.gmra.mxu1 %v3525_v35  ;;  %v21814_v28 = vor.u32 %v3959_v1, %v3956_v17  ;;  %v21831_v35 = vrot.slane %v3984_v57, 4  ;;  %v19548_v17 = vld [vmem:[%s26336_s4 + $0x170] sm:$0xff]   ;;  %v21858_v1 = vrot.slane %v26351_v5, 1  ;;  %v19549_v57 = vld [vmem:[%s26336_s4 + $0x1b8] sm:$0xff]  }
 0x1c1   :  { %18141 = vmatpush3.bf16.msra.mxu1 %v19531_v2  ;;  %18148 = vmatprep.mubr.bf16.mxu1 %v3943_v36  ;;  %v21800_v2 = vrot.slane %v3975_v11, 4  ;;  %v4629_v36 = vshrl.u32 %v21784_v47, 16  ;;  %v4387_v11 = vshrl.u32 %v21771_v39, 16  ;;  %v19572_v47 = vld [vmem:[%s26336_s4 + $0x188] sm:$0xff]  }
 0x1c2   :  { %18167 = vmatpush3.bf16.msra.mxu0 %v19532_v59  ;;  %18142 = vmatprep.subr.bf16.mxu1 %v19536_v26  ;;  %v4383_v59 = vshll.u32 %v21771_v39, 16 }
 0x1c3   :  { %18168 = vmatprep.subr.bf16.mxu0 %v19537_v18 }
 0x1c4   :  { %v21844_v50 = vrot.slane %v4383_v59, 1  ;;  %v21875_v59 = vld [vmem:[#allocation2 + $0x70] sm:$0xff]  }
 0x1c5   :  { %18129 = vmatmul.mubr.bf16.gmra.mxu0 %v3717_v23  ;;  %18143 = vmatpush3.bf16.msra.mxu1 %v19536_v26  ;;  %v26350_v26 = vshrl.u32 %v21775_v27, 16 }
 0x1c6   :  { %18169 = vmatpush3.bf16.msra.mxu0 %v19537_v18  ;;  %18176 = vmatprep.mubr.bf16.mxu0 %v15086_v30  ;;  %v21833_v18 = vrot.slane %v4370_v24, 1  ;;  %v21864_v30 = vrot.slane %v4644_v6, 2  ;;  %v21870_v24 = vrot.slane %v4399_v46, 1  ;;  %v26353_v6 = vshrl.u32 %v21786_v42, 16 }
 0x1c7   :  { %18144 = vmatprep.subr.bf16.mxu1 %v19539_v0  ;;  %18170 = vmatprep.subr.bf16.mxu0 %v19540_v45  ;;  %v21862_v23 = vrot.slane %v26350_v26, 1  ;;  %v3961_v46 = vsel %vm1616_vm3, %v3951_v22, %v21814_v28 }
 0x1c8   :  { %v17814_v29 = vpop.f32.mrf.mxu1  ;;  %v22040_v44 = vrot.slane %v26353_v6, 1  ;;  %v22065_v6 = vld [vmem:[#allocation2 + $0x6c] sm:$0xff]  }
 0x1c9   :  { %18145 = vmatpush3.bf16.msra.mxu1 %v19539_v0  ;;  %v21849_v0 = vrot.slane %v4391_v48, 1  ;;  %v4407_v48 = vshll.u32 %v21826_v10, 16 }
 0x1ca   :  { %18171 = vmatpush3.bf16.msra.mxu0 %v19540_v45  ;;  %18146 = vmatprep.subr.bf16.mxu1 %v19541_v61  ;;  %v1347_v45 = vpop.f32.mrf.mxu1 }
 0x1cb   :  { %18172 = vmatprep.subr.bf16.mxu0 %v19542_v41 }
 0x1cc   :  { %v21883_v15 = vpop.f32.mrf.mxu1 }
 0x1cd   :  { %18147 = vmatpush3.bf16.msra.mxu1 %v19541_v61  ;;  %v3952_v61 = vsel %vm1616_vm3, %v21751_v38, %v3951_v22  ;;  %v15087_v38 = vcombine.low %v21682_v33, %v21712_v60  ;;  %v3969_v22 = vor.u32 %v21790_v19, %v21788_v58  ;;  %v15088_v33 = vcombine.low %v21700_v37, %v21703_v8  ;;  %v19556_v19 = vld [vmem:[%s26336_s4 + $0x160] sm:$0xff]   ;;  %v19589_v8 = vld [vmem:[#allocation2 + $0x70] ss:$0 sps:$4 sm:$0x11]  }
 0x1ce   :  { %18173 = vmatpush3.bf16.msra.mxu0 %v19542_v41  ;;  %18188 = vmatprep.subr.bf16.mxu1 %v19545_v49  ;;  %v19552_v41 = vld [vmem:[%s26336_s4 + $0x168] sm:$0xff]   ;;  %v21904_v60 = vpop.f32.mrf.mxu1  ;;  %v3978_v58 = vor.u32 %v21800_v2, %v21798_v32  ;;  %v21918_v32 = vld [vmem:[#allocation2 + $0x78] ss:$0 sps:$4 sm:$0x11]  }
 0x1cf   :  { %18174 = vmatprep.subr.bf16.mxu0 %v19544_v14  ;;  %v17842_v12 = vpop.f32.mrf.mxu0  ;;  %v3970_v37 = vsel %vm1616_vm3, %v21814_v28, %v3969_v22  ;;  %v19561_v28 = vld [vmem:[%s26336_s4 + $0x1a0] sm:$0xff]  }
 0x1d0   :  { %18149 = vmatmul.mubr.bf16.vlgmr.msra.gmra.mxu1 %v3952_v61  ;;  %v21885_v26 = vadd.f32 %v17842_v12, %v17814_v29  ;;  %v4660_v29 = vshll.u32 %v21873_v51, 16  ;;  %v17818_v2 = vpop.f32.mrf.mxu1  ;;  %v3979_v12 = vsel %vm1616_vm3, %v3969_v22, %v3978_v58  ;;  %v21934_v22 = vrot.slane %v4407_v48, 1  ;;  %v19565_v48 = vld [vmem:[%s26336_s4 + $0x150] sm:$0xff]  }
 0x1d1   :  { %18152 = vmatprep.mubr.bf16.mxu1 %v3961_v46  ;;  %18189 = vmatpush3.bf16.msra.mxu1 %v19545_v49  ;;  %v1548_v61 = vpop.f32.mrf.mxu0  ;;  %v19553_v49 = vld [vmem:[%s26336_s4 + $0x1b0] sm:$0xff]  }
 0x1d2   :  { %18175 = vmatpush3.bf16.msra.mxu0 %v19544_v14  ;;  %18190 = vmatprep.subr.bf16.mxu1 %v19548_v17  ;;  %v21894_v5 = vadd.f32 %v1548_v61, %v1347_v45  ;;  %v26352_v14 = vshll.u32 %v21875_v59, 16  ;;  %v4827_v45 = vld [vmem:[#allocation2 + $0x48] sm:$0xe] }
 0x1d3   :  { %18216 = vmatprep.subr.bf16.mxu0 %v19549_v57  ;;  %v21906_v46 = vpop.f32.mrf.mxu0  ;;  %v19557_v61 = vld [vmem:[%s26336_s4 + $0x1a8] sm:$0xff]  }
 0x1d5   :  { %18177 = vmatmul.mubr.bf16.vlgmr.msra.gmra.mxu0 %v15087_v38  ;;  %18191 = vmatpush3.bf16.msra.mxu1 %v19548_v17  ;;  %v21921_v38 = vpop.f32.mrf.mxu0  ;;  %v19560_v17 = vld [vmem:[%s26336_s4 + $0x158] sm:$0xff]  }
 0x1d6   :  { %18180 = vmatprep.mubr.bf16.mxu0 %v15088_v33  ;;  %18217 = vmatpush3.bf16.msra.mxu0 %v19549_v57  ;;  %v21930_v57 = vcombine.low %v4827_v45, %v21749_v52  ;;  %v15089_v33 = vcombine.low %v21718_v31, %v21722_v7  ;;  %v1363_v52 = vpop.f32.mrf.mxu1  ;;  %v3987_v31 = vor.u32 %v21831_v35, %v21821_v43 }
 0x1d7   :  { %18192 = vmatprep.subr.bf16.mxu1 %v19552_v41  ;;  %18218 = vmatprep.subr.bf16.mxu0 %v19553_v49  ;;  %v4373_v7 = vor.u32 %v21833_v18, %v4368_v25 }
 0x1d8   :  { %18153 = vmatmul.mubr.bf16.gmra.mxu1 %v3970_v37  ;;  %v19566_v37 = vld [vmem:[%s26336_s4 + $0x198] sm:$0xff]   ;;  %v5028_v43 = vshrl.u32 %v21930_v57, 16  ;;  %v3988_v35 = vsel %vm1616_vm3, %v3978_v58, %v3987_v31  ;;  %v21965_v18 = vpop.f32.mrf.mxu1  ;;  %v15091_v58 = vcombine.low %v21735_v40, %v21743_v62  ;;  %v19571_v62 = vld [vmem:[%s26336_s4 + $0x140] sm:$0xff]   ;;  %v5031_v31 = vshll.u32 %v21930_v57, 16 }
 0x1d9   :  { %18156 = vmatprep.mubr.bf16.mxu1 %v3979_v12  ;;  %18193 = vmatpush3.bf16.msra.mxu1 %v19552_v41  ;;  %v21938_v41 = vrot.slane %v4660_v29, 1  ;;  %v21942_v12 = vrot.slane %v26352_v14, 1 }
 0x1da   :  { %18219 = vmatpush3.bf16.msra.mxu0 %v19553_v49  ;;  %18194 = vmatprep.subr.bf16.mxu1 %v19556_v19  ;;  %v15090_v49 = vcombine.low %v21714_v56, %v21728_v53  ;;  %v4415_v56 = vshll.u32 %v19589_v8, 16  ;;  %v4676_v53 = vshll.u32 %v21918_v32, 16  ;;  %v19569_v8 = vld [vmem:[%s26336_s4 + $0x148] sm:$0xff]  }
 0x1db   :  { %18220 = vmatprep.subr.bf16.mxu0 %v19557_v61 }
 0x1dc   :  { %v17846_v45 = vpop.f32.mrf.mxu0 }
 0x1dd   :  { %18181 = vmatmul.mubr.bf16.gmra.mxu0 %v15089_v33  ;;  %v21955_v14 = vadd.f32 %v17846_v45, %v17818_v2  ;;  %18195 = vmatpush3.bf16.msra.mxu1 %v19556_v19  ;;  %v4378_v19 = vsel %vm2306_vm4, %v4373_v7, %v21835_v54  ;;  %v4634_v2 = vor.u32 %v21846_v55, %v4629_v36  ;;  %v26354_v45 = vshrl.u32 %v21875_v59, 16 }
 0x1de   :  { %18184 = vmatprep.mubr.bf16.mxu0 %v15090_v49  ;;  %18221 = vmatpush3.bf16.msra.mxu0 %v19557_v61  ;;  %v1564_v20 = vpop.f32.mrf.mxu0  ;;  %v19570_v61 = vld [vmem:[%s26336_s4 + $0x190] sm:$0xff]   ;;  %v21985_v49 = vpop.f32.mrf.mxu1  ;;  %v21997_v36 = vrot.slane %v4676_v53, 1  ;;  %v21999_v55 = vrot.slane %v5028_v43, 1  ;;  %v22004_v7 = vrot.slane %v4640_v21, 1  ;;  %v19575_v53 = vld [vmem:[%s26336_s4 + $0x1f8] sm:$0xff]   ;;  %v19574_v43 = vld [vmem:[%s26336_s4 + $0x180] sm:$0xff]  }
 0x1df   :  { %v21962_v25 = vadd.f32 %v1564_v20, %v1363_v52  ;;  %18196 = vmatprep.subr.bf16.mxu1 %v19560_v17  ;;  %18222 = vmatprep.subr.bf16.mxu0 %v19561_v28  ;;  %v4639_v40 = vsel %vm2306_vm4, %v4634_v2, %v21841_v13 }
 0x1e0   :  { %18157 = vmatmul.mubr.bf16.gmra.mxu1 %v3988_v35  ;;  %v22018_v35 = vrot.slane %v4636_v9, 2  ;;  %v19578_v9 = vld [vmem:[%s26336_s4 + $0x1f0] sm:$0xff]  }
 0x1e1   :  { %18197 = vmatpush3.bf16.msra.mxu1 %v19560_v17  ;;  %18204 = vmatprep.mubr.bf16.mxu1 %v4378_v19  ;;  %v21980_v17 = vrot.slane %v4415_v56, 1 }
 0x1e2   :  { %18223 = vmatpush3.bf16.msra.mxu0 %v19561_v28  ;;  %18198 = vmatprep.subr.bf16.mxu1 %v19565_v48  ;;  %v21987_v28 = vpop.f32.mrf.mxu0 }
 0x1e3   :  { %18224 = vmatprep.subr.bf16.mxu0 %v19566_v37 }
 0x1e5   :  { %18185 = vmatmul.mubr.bf16.gmra.mxu0 %v15091_v58  ;;  %18199 = vmatpush3.bf16.msra.mxu1 %v19565_v48  ;;  %v22006_v48 = vpop.f32.mrf.mxu0  ;;  %v19579_v58 = vld [vmem:[%s26336_s4 + $0x238] sm:$0xff]  }
 0x1e6   :  { %18225 = vmatpush3.bf16.msra.mxu0 %v19566_v37  ;;  %18232 = vmatprep.mubr.bf16.mxu0 %v4639_v40  ;;  %v22014_v37 = vrot.slane %v5031_v31, 2 }
 0x1e7   :  { %18200 = vmatprep.subr.bf16.mxu1 %v19569_v8  ;;  %18226 = vmatprep.subr.bf16.mxu0 %v19570_v61 }
 0x1e8   :  { %v17822_v56 = vpop.f32.mrf.mxu1 }
 0x1e9   :  { %18201 = vmatpush3.bf16.msra.mxu1 %v19569_v8  ;;  %v4381_v8 = vor.u32 %v4379_v16, %v21835_v54  ;;  %v26432_v16 = vshll.u32 %v21786_v42, 16 }
 0x1ea   :  { %v1379_v20 = vpop.f32.mrf.mxu1  ;;  %18227 = vmatpush3.bf16.msra.mxu0 %v19570_v61  ;;  %18202 = vmatprep.subr.bf16.mxu1 %v19571_v62  ;;  %v4389_v61 = vor.u32 %v4387_v11, %v21844_v50 }
 0x1eb   :  { %18228 = vmatprep.subr.bf16.mxu0 %v19572_v47  ;;  %v22044_v54 = vrot.slane %v26432_v16, 2  ;;  %v4386_v52 = vsel %vm2306_vm4, %v4381_v8, %v21844_v50  ;;  %v4642_v16 = vor.u32 %v4640_v21, %v21841_v13  ;;  %v19582_v13 = vld [vmem:[%s26336_s4 + $0x1e8] sm:$0xff]   ;;  %v19583_v21 = vld [vmem:[%s26336_s4 + $0x230] sm:$0xff]   ;;  %v22080_v50 = vrot.slane %v4660_v29, 2 }
 0x1ec   :  { %v22025_v2 = vpop.f32.mrf.mxu1  ;;  %v17850_v40 = vpop.f32.mrf.mxu0  ;;  %v26439_v29 = vshrl.u32 %v21775_v27, 16 }
 0x1ed   :  { %26431 = vst [vmem:[#allocation8_spill] sm:$0xff] %v22025_v2  ;;  %v22030_v31 = vadd.f32 %v17850_v40, %v17822_v56  ;;  %18203 = vmatpush3.bf16.msra.mxu1 %v19571_v62  ;;  %v26434_v40 = vshrl.u32 %v21873_v51, 16  ;;  %v4394_v56 = vsel %vm2306_vm4, %v4389_v61, %v21849_v0  ;;  %v5283_v2 = vld [vmem:[#allocation2 + $0x64] sm:$0xc] }
 0x1ee   :  { %v22047_v11 = vpop.f32.mrf.mxu1  ;;  %v1580_v62 = vpop.f32.mrf.mxu0  ;;  %18229 = vmatpush3.bf16.msra.mxu0 %v19572_v47  ;;  %18244 = vmatprep.subr.bf16.mxu1 %v19575_v53 }
 0x1ef   :  { %26433 = vst [vmem:[#allocation9_spill] sm:$0xff] %v22047_v11  ;;  %v22052_v19 = vrot.slane %v26434_v40, 1  ;;  %v22054_v33 = vadd.f32 %v1580_v62, %v1379_v20  ;;  %18230 = vmatprep.subr.bf16.mxu0 %v19574_v43  ;;  %v22067_v40 = vld [vmem:[#allocation2 + $0x78] ss:$0 sps:$4 sm:$0x33]  }
 0x1f0   :  { %v22061_v39 = vpop.f32.mrf.mxu0  ;;  %v17870_v47 = vpop.f32.mrf.mxu1  ;;  %18205 = vmatmul.mubr.bf16.vlgmr.msra.gmra.mxu1 %v4386_v52  ;;  %v22084_v52 = vrot.slane %v26354_v45, 1  ;;  %v5284_v45 = vld [vmem:[#allocation2 + $0x68] sm:$0xf] }
 0x1f1   :  { %26435 = vst [vmem:[#allocation11_spill] sm:$0xff] %v22061_v39  ;;  %v22070_v20 = vadd.f32 %v17870_v47, %v21885_v26  ;;  %18208 = vmatprep.mubr.bf16.mxu1 %v4394_v56  ;;  %18245 = vmatpush3.bf16.msra.mxu1 %v19575_v53  ;;  %v26436_v26 = vshll.u32 %v21875_v59, 16  ;;  %v5312_v53 = vld [vmem:[#allocation2 + $0x64] sm:$0x8]  ;;  %v4650_v47 = vor.u32 %v26439_v29, %v21851_v34  ;;  %v26441_v29 = vshrl.u32 %v21773_v4, 16 }
 0x1f2   :  { %v22090_v61 = vpop.f32.mrf.mxu0  ;;  %18231 = vmatpush3.bf16.msra.mxu0 %v19574_v43  ;;  %v1742_v62 = vpop.f32.mrf.mxu1  ;;  %18246 = vmatprep.subr.bf16.mxu1 %v19578_v9  ;;  %v26440_v43 = vshrl.u32 %v21792_v63, 16  ;;  %v5056_v4 = vshrl.u32 %v22067_v40, 16 }
 0x1f3   :  { %v22088_v8 = vrot.slane %v26436_v26, 2  ;;  %26437 = vst [vmem:[#allocation6_spill] sm:$0xff] %v22090_v61  ;;  %v22093_v56 = vadd.f32 %v1742_v62, %v21894_v5  ;;  %18272 = vmatprep.subr.bf16.mxu0 %v19579_v58  ;;  %v4647_v26 = vsel %vm2306_vm4, %v4642_v16, %v21851_v34  ;;  %v19586_v5 = vld [vmem:[%s26336_s4 + $0x1e0] sm:$0xff]   ;;  %v4655_v62 = vsel %vm2306_vm4, %v4650_v47, %v21858_v1  ;;  %v19587_v16 = vld [vmem:[%s26336_s4 + $0x228] sm:$0xff]  }
 0x1f4   :  { %v22098_v11 = vpop.f32.mrf.mxu1  ;;  %v22100_v39 = vpop.f32.mrf.mxu0  ;;  %v4405_v61 = vor.u32 %v26440_v43, %v21870_v24  ;;  %v22123_v43 = vcombine.low %v5312_v53, %v5284_v45  ;;  %v26442_v53 = vshrl.u32 %v21786_v42, 16 }
 0x1f5   :  { %26438 = vst [vmem:[#allocation12_spill] sm:$0xff] %v22093_v56  ;;  %18233 = vmatmul.mubr.bf16.vlgmr.msra.gmra.mxu0 %v4647_v26  ;;  %18247 = vmatpush3.bf16.msra.mxu1 %v19578_v9  ;;  %v4397_v56 = vor.u32 %v26441_v29, %v21849_v0 }
 0x1f6   :  { %18236 = vmatprep.mubr.bf16.mxu0 %v4655_v62  ;;  %18273 = vmatpush3.bf16.msra.mxu0 %v19579_v58  ;;  %v22115_v34 = vpop.f32.mrf.mxu1  ;;  %v22117_v63 = vpop.f32.mrf.mxu0  ;;  %v4410_v62 = vsel %vm2306_vm4, %v4405_v61, %v21934_v22  ;;  %v4658_v29 = vor.u32 %v26442_v53, %v21858_v1  ;;  %v19591_v61 = vld [vmem:[%s26336_s4 + $0x220] sm:$0xff]  }
 0x1f7   :  { %v4402_v0 = vsel %vm2306_vm4, %v4397_v56, %v21870_v24  ;;  %18248 = vmatprep.subr.bf16.mxu1 %v19582_v13  ;;  %18274 = vmatprep.subr.bf16.mxu0 %v19583_v21  ;;  %v19590_v24 = vld [vmem:[%s26336_s4 + $0x1d8] sm:$0xff]  }
 0x1f8   :  { %v17874_v58 = vpop.f32.mrf.mxu1  ;;  %v22129_v47 = vpop.f32.mrf.mxu0  ;;  %18209 = vmatmul.mubr.bf16.gmra.mxu1 %v4402_v0  ;;  %v22149_v0 = vcombine.low %v5283_v2, %v5284_v45  ;;  %v4663_v1 = vsel %vm2306_vm4, %v4658_v29, %v21938_v41  ;;  %v19594_v45 = vld [vmem:[%s26336_s4 + $0x1d0] sm:$0xff]  }
 0x1f9   :  { %v22137_v9 = vadd.f32 %v17874_v58, %v21955_v14  ;;  %18212 = vmatprep.mubr.bf16.mxu1 %v4410_v62  ;;  %18249 = vmatpush3.bf16.msra.mxu1 %v19582_v13  ;;  %v5059_v14 = vshll.u32 %v22067_v40, 16  ;;  %v22167_v2 = vld [vmem:[#allocation2 + $0x74] sm:$0xff]   ;;  %v26446_v40 = vshrl.u32 %v21826_v10, 16  ;;  %v22181_v13 = vrot.slane %v5056_v4, 1 }
 0x1fa   :  { %18275 = vmatpush3.bf16.msra.mxu0 %v19583_v21  ;;  %v1758_v56 = vpop.f32.mrf.mxu1  ;;  %v22142_v26 = vpop.f32.mrf.mxu0  ;;  %18250 = vmatprep.subr.bf16.mxu1 %v19586_v5  ;;  %v26445_v21 = vshrl.u32 %v21873_v51, 16  ;;  %v26451_v4 = vrot.slane %v21930_v57, 1  ;;  %v19596_v57 = vld [vmem:[%s26336_s4 + $0x1c8] sm:$0xff]  }
 0x1fb   :  { %26443 = vst [vmem:[#allocation10_spill] sm:$0xff] %v22137_v9  ;;  %v22153_v58 = vadd.f32 %v1758_v56, %v21962_v25  ;;  %18276 = vmatprep.subr.bf16.mxu0 %v19587_v16  ;;  %v4413_v56 = vor.u32 %v26446_v40, %v21934_v22  ;;  %v26452_v40 = vshrl.u32 %v21875_v59, 16 }
 0x1fc   :  { %v4666_v62 = vor.u32 %v26445_v21, %v21938_v41  ;;  %v22158_v53 = vpop.f32.mrf.mxu1  ;;  %v22160_v9 = vpop.f32.mrf.mxu0  ;;  %v19595_v21 = vld [vmem:[%s26336_s4 + $0x218] sm:$0xff]  }
 0x1fd   :  { %26444 = vst [vmem:[#allocation13_spill] sm:$0xff] %v22153_v58  ;;  %18237 = vmatmul.mubr.bf16.gmra.mxu0 %v4663_v1  ;;  %18251 = vmatpush3.bf16.msra.mxu1 %v19586_v5  ;;  %v22183_v1 = vrot.slane %v5059_v14, 2  ;;  %v5514_v5 = vshrl.u32 %v22149_v0, 16  ;;  %v4418_v10 = vsel %vm2306_vm4, %v4413_v56, %v21980_v17  ;;  %v22206_v56 = vor.u32 %v22018_v35, %v22004_v7 }
 0x1fe   :  { %v4671_v25 = vsel %vm2306_vm4, %v4666_v62, %v21942_v12  ;;  %18277 = vmatpush3.bf16.msra.mxu0 %v19587_v16  ;;  %v22177_v41 = vpop.f32.mrf.mxu1  ;;  %v22179_v29 = vpop.f32.mrf.mxu0  ;;  %v5517_v62 = vshll.u32 %v22149_v0, 16  ;;  %18252 = vmatprep.subr.bf16.mxu1 %v19590_v24  ;;  %v26450_v16 = vrot.slane %v21769_v3, 1  ;;  %v22199_v0 = vld [vmem:[#allocation2 + $0x7c] sm:$0xff]   ;;  %v26355_v7 = vshll.u32 %v22065_v6, 16 }
 0x1ff   :  { %18240 = vmatprep.mubr.bf16.mxu0 %v4671_v25  ;;  %26447 = vst [vmem:[#allocation14_spill] sm:$0xff] %v22177_v41  ;;  %26448 = vst [vmem:[#allocation7_spill] sm:$0xff] %v22179_v29  ;;  %18278 = vmatprep.subr.bf16.mxu0 %v19591_v61  ;;  %v4674_v29 = vor.u32 %v26452_v40, %v21942_v12 }
 0x200   :  { %v17878_v22 = vpop.f32.mrf.mxu1  ;;  %v22189_v25 = vpop.f32.mrf.mxu0  ;;  %18213 = vmatmul.mubr.bf16.gmra.mxu1 %v4418_v10  ;;  %v4849_v14 = vsel %vm2789_vm5, %v26451_v4, %v26450_v16  ;;  %v19597_v10 = vld [vmem:[%s26336_s4 + $0x210] sm:$0xff]   ;;  %v22214_v16 = vrot.slane %v5514_v5, 2 }
 0x201   :  { %26449 = vst [vmem:[#allocation15_spill] sm:$0xff] %v22189_v25  ;;  %v22202_v17 = vadd.f32 %v17878_v22, %v22030_v31  ;;  %18253 = vmatpush3.bf16.msra.mxu1 %v19590_v24  ;;  %18260 = vmatprep.mubr.bf16.mxu1 %v4849_v14  ;;  %v26454_v31 = vshrl.u32 %v22065_v6, 16  ;;  %v4679_v5 = vsel %vm2306_vm4, %v4674_v29, %v21997_v36  ;;  %v19598_v14 = vld [vmem:[%s26336_s4 + $0x1c0] sm:$0xff]   ;;  %v26357_v36 = vshll.u32 %v22167_v2, 16 }
 0x202   :  { %18279 = vmatpush3.bf16.msra.mxu0 %v19591_v61  ;;  %v1774_v12 = vpop.f32.mrf.mxu1  ;;  %18254 = vmatprep.subr.bf16.mxu1 %v19594_v45  ;;  %v22225_v4 = vpop.f32.mrf.mxu0  ;;  %v5034_v61 = vor.u32 %v22014_v37, %v21999_v55  ;;  %v26356_v37 = vshrl.u32 %v22167_v2, 16  ;;  %v22261_v55 = vrot.slane %v26355_v7, 3 }
 0x203   :  { %26453 = vst [vmem:[#allocation16_spill] sm:$0xff] %v22202_v17  ;;  %v22218_v24 = vrot.slane %v26454_v31, 2  ;;  %v22223_v22 = vadd.f32 %v1774_v12, %v22054_v33  ;;  %26456 = vst [vmem:[#allocation18_spill] sm:$0xff] %v22225_v4  ;;  %18280 = vmatprep.subr.bf16.mxu0 %v19595_v21  ;;  %v19599_v33 = vld [vmem:[%s26336_s4 + $0x208] sm:$0xff]  }
 0x204   :  { %v5038_v40 = vsel %vm2971_vm6, %v5034_v61, %v22206_v56  ;;  %v22243_v12 = vld [vmem:[#allocation2 + $0x84] sm:$0xff]   ;;  %v22247_v31 = vpop.f32.mrf.mxu0  ;;  %v22265_v35 = vrot.slane %v26356_v37, 2 }
 0x205   :  { %26455 = vst [vmem:[#allocation17_spill] sm:$0xff] %v22223_v22  ;;  %18241 = vmatmul.mubr.bf16.gmra.mxu0 %v4679_v5  ;;  %18255 = vmatpush3.bf16.msra.mxu1 %v19594_v45  ;;  %v22245_v45 = vld [vmem:[#allocation2 + $0x8c] sm:$0xff]   ;;  %26457 = vst [vmem:[#allocation19_spill] sm:$0xff] %v22247_v31  ;;  %v19600_v61 = vld [vmem:[%s26336_s4 + $0x200] sm:$0xff]   ;;  %v22255_v5 = vpop.f32.mrf.mxu1 }
 0x206   :  { %18281 = vmatpush3.bf16.msra.mxu0 %v19595_v21  ;;  %18288 = vmatprep.mubr.bf16.mxu0 %v5038_v40  ;;  %v19601_v21 = vld [vmem:[%s26336_s4 + $0x78] sm:$0xff]   ;;  %26458 = vst [vmem:[#allocation20_spill] sm:$0xff] %v22255_v5  ;;  %v22257_v40 = vrot.slane %v5517_v62, 3  ;;  %v22271_v29 = vpop.f32.mrf.mxu0  ;;  %v19602_v62 = vld [vmem:[%s26336_s4 + $0x70] sm:$0xff]   ;;  %v26464_v5 = vrot.slane %v21769_v3, 1  ;;  %v19604_v3 = vld [vmem:[%s26336_s4 + $0x68] sm:$0xff]  }
 0x207   :  { %18256 = vmatprep.subr.bf16.mxu1 %v19596_v57  ;;  %18282 = vmatprep.subr.bf16.mxu0 %v19597_v10  ;;  %26459 = vst [vmem:[#allocation21_spill] sm:$0xff] %v22271_v29  ;;  %v22286_v29 = vpop.f32.mrf.mxu1 }
 0x208   :  { %26461 = vst [vmem:[#allocation22_spill] sm:$0xff] %v22286_v29  ;;  %v22288_v17 = vpop.f32.mrf.mxu0 }
 0x209   :  { %18257 = vmatpush3.bf16.msra.mxu1 %v19596_v57  ;;  %v22269_v57 = vrot.slane %v26357_v36, 3  ;;  %v19603_v36 = vld [vmem:[%s26336_s4 + $0x38] sm:$0xff]   ;;  %26462 = vst [vmem:[#allocation23_spill] sm:$0xff] %v22288_v17  ;;  %v26474_v17 = vrot.slane %v21873_v51, 1  ;;  %v19609_v51 = vld [vmem:[%s26336_s4 + $0x20] sm:$0xff]  }
 0x20a   :  { %18283 = vmatpush3.bf16.msra.mxu0 %v19597_v10  ;;  %18258 = vmatprep.subr.bf16.mxu1 %v19598_v14  ;;  %v26460_v10 = vshrl.u32 %v22199_v0, 16 }
 0x20b   :  { %18284 = vmatprep.subr.bf16.mxu0 %v19599_v33 }
 0x20c   :  { %v22278_v22 = vrot.slane %v26460_v10, 2  ;;  %v26463_v10 = vrot.slane %v21775_v27, 1  ;;  %v26358_v27 = vshrl.u32 %v22243_v12, 16 }
 0x20d   :  { %18259 = vmatpush3.bf16.msra.mxu1 %v19598_v14  ;;  %v26465_v14 = vrot.slane %v21786_v42, 1 }
 0x20e   :  { %18285 = vmatpush3.bf16.msra.mxu0 %v19599_v33  ;;  %18300 = vmatprep.subr.bf16.mxu1 %v19601_v21  ;;  %v4851_v7 = vsel %vm2789_vm5, %v26464_v5, %v26463_v10  ;;  %v26466_v31 = vmov %v26463_v10  ;;  %v5045_v33 = vor.u32 %v22044_v54, %v22040_v44  ;;  %v19605_v5 = vld [vmem:[%s26336_s4 + $0x30] sm:$0xff]   ;;  %v5041_v54 = vor.u32 %v21864_v30, %v21862_v23 }
 0x20f   :  { %18286 = vmatprep.subr.bf16.mxu0 %v19600_v61  ;;  %v4853_v29 = vsel %vm2789_vm5, %v26466_v31, %v26465_v14  ;;  %v19606_v31 = vld [vmem:[%s26336_s4 + $0x60] sm:$0xff]  }
 0x210   :  { %v22295_v37 = vpop.f32.mrf.mxu1  ;;  %18261 = vmatmul.mubr.bf16.vlgmr.msra.gmra.mxu1 %v4851_v7  ;;  %v26467_v7 = vshll.u32 %v22199_v0, 16  ;;  %v5046_v23 = vsel %vm2971_vm6, %v5041_v54, %v5045_v33 }
 0x211   :  { %18264 = vmatprep.mubr.bf16.mxu1 %v4853_v29  ;;  %18301 = vmatpush3.bf16.msra.mxu1 %v19601_v21  ;;  %v22321_v21 = vpop.f32.mrf.mxu0 }
 0x212   :  { %v22312_v10 = vrot.slane %v26467_v7, 3  ;;  %18287 = vmatpush3.bf16.msra.mxu0 %v19600_v61  ;;  %v22319_v29 = vpop.f32.mrf.mxu1  ;;  %18302 = vmatprep.subr.bf16.mxu1 %v19602_v62  ;;  %26469 = vst [vmem:[#allocation25_spill] sm:$0xff] %v22321_v21  ;;  %v5042_v7 = vsel %vm2971_vm6, %v22206_v56, %v5041_v54  ;;  %v19607_v61 = vld [vmem:[%s26336_s4 + $0x28] sm:$0xff]   ;;  %v22340_v56 = vrot.slane %v26358_v27, 2  ;;  %v26477_v54 = vrot.slane %v21875_v59, 1 }
 0x213   :  { %26468 = vst [vmem:[#allocation24_spill] sm:$0xff] %v22319_v29  ;;  %18328 = vmatprep.subr.bf16.mxu0 %v19603_v36 }
 0x214   :  { %v22323_v14 = vpop.f32.mrf.mxu1 }
 0x215   :  { %26470 = vst [vmem:[#allocation26_spill] sm:$0xff] %v22323_v14  ;;  %v22330_v44 = vpop.f32.mrf.mxu0  ;;  %18289 = vmatmul.mubr.bf16.vlgmr.msra.gmra.mxu0 %v5042_v7  ;;  %18303 = vmatpush3.bf16.msra.mxu1 %v19602_v62  ;;  %v26475_v7 = vrot.slane %v21786_v42, 1  ;;  %v5053_v42 = vor.u32 %v22088_v8, %v22084_v52 }
 0x216   :  { %26471 = vst [vmem:[#allocation27_spill] sm:$0xff] %v22330_v44  ;;  %18292 = vmatprep.mubr.bf16.mxu0 %v5046_v23  ;;  %18329 = vmatpush3.bf16.msra.mxu0 %v19603_v36  ;;  %v22333_v30 = vpop.f32.mrf.mxu1  ;;  %v26478_v23 = vmov %v26474_v17 }
 0x217   :  { %26472 = vst [vmem:[#allocation28_spill] sm:$0xff] %v22333_v30  ;;  %v22342_v21 = vpop.f32.mrf.mxu0  ;;  %v4855_v62 = vsel %vm2789_vm5, %v26475_v7, %v26474_v17  ;;  %18304 = vmatprep.subr.bf16.mxu1 %v19604_v3  ;;  %18330 = vmatprep.subr.bf16.mxu0 %v19605_v5  ;;  %v4857_v27 = vsel %vm2789_vm5, %v26478_v23, %v26477_v54  ;;  %v19608_v17 = vld [vmem:[%s26336_s4 + $0x58] sm:$0xff]  }
 0x218   :  { %26473 = vst [vmem:[#allocation29_spill] sm:$0xff] %v22342_v21  ;;  %v22349_v36 = vpop.f32.mrf.mxu1  ;;  %18265 = vmatmul.mubr.bf16.gmra.mxu1 %v4855_v62  ;;  %v5049_v62 = vor.u32 %v22080_v50, %v22052_v19  ;;  %v19613_v19 = vld [vmem:[%s26336_s4 + $0x50] sm:$0xff]  }
 0x219   :  { %26476 = vst [vmem:[#allocation30_spill] sm:$0xff] %v22349_v36  ;;  %v22356_v4 = vpop.f32.mrf.mxu0  ;;  %18268 = vmatprep.mubr.bf16.mxu1 %v4857_v27  ;;  %18305 = vmatpush3.bf16.msra.mxu1 %v19604_v3  ;;  %v26481_v3 = vshll.u32 %v22243_v12, 16  ;;  %v22382_v50 = vld [vmem:[#allocation2 + $0x94] ss:$0 sps:$4 sm:$0x77]   ;;  %v26487_v36 = vrot.slane %v21918_v32, 1  ;;  %v22409_v32 = vor.u32 %v22261_v55, %v22218_v24 }
 0x21a   :  { %26479 = vst [vmem:[#allocation31_spill] sm:$0xff] %v22356_v4  ;;  %18331 = vmatpush3.bf16.msra.mxu0 %v19605_v5  ;;  %v22363_v7 = vpop.f32.mrf.mxu1  ;;  %18306 = vmatprep.subr.bf16.mxu1 %v19606_v31  ;;  %v5050_v5 = vsel %vm2971_vm6, %v5045_v33, %v5049_v62  ;;  %v5054_v23 = vsel %vm2971_vm6, %v5049_v62, %v5053_v42  ;;  %v19614_v33 = vld [vmem:[%s26336_s4 + $0x18] sm:$0xff]   ;;  %v26500_v24 = vshll.u32 %v22065_v6, 16 }
 0x21b   :  { %26480 = vst [vmem:[#allocation32_spill] sm:$0xff] %v22363_v7  ;;  %v22372_v27 = vrot.slane %v26481_v3, 3  ;;  %v22374_v52 = vpop.f32.mrf.mxu0  ;;  %18332 = vmatprep.subr.bf16.mxu0 %v19607_v61 }
 0x21c   :  { %26482 = vst [vmem:[#allocation33_spill] sm:$0xff] %v22374_v52  ;;  %v22376_v8 = vpop.f32.mrf.mxu1  ;;  %v26507_v52 = vrot.slane %v22199_v0, 3 }
 0x21d   :  { %26483 = vst [vmem:[#allocation34_spill] sm:$0xff] %v22376_v8  ;;  %v22384_v54 = vpop.f32.mrf.mxu0  ;;  %18293 = vmatmul.mubr.bf16.gmra.mxu0 %v5050_v5  ;;  %18307 = vmatpush3.bf16.msra.mxu1 %v19606_v31  ;;  %v26359_v8 = vshll.u32 %v22245_v45, 16  ;;  %v26489_v31 = vrot.slane %v22065_v6, 3 }
 0x21e   :  { %26484 = vst [vmem:[#allocation35_spill] sm:$0xff] %v22384_v54  ;;  %18296 = vmatprep.mubr.bf16.mxu0 %v5054_v23  ;;  %18333 = vmatpush3.bf16.msra.mxu0 %v19607_v61  ;;  %v22387_v3 = vpop.f32.mrf.mxu1  ;;  %v26488_v54 = vrot.slane %v21875_v59, 1  ;;  %v26490_v61 = vrot.slane %v22123_v43, 3 }
 0x21f   :  { %26485 = vst [vmem:[#allocation36_spill] sm:$0xff] %v22387_v3  ;;  %v22393_v7 = vpop.f32.mrf.mxu0  ;;  %18308 = vmatprep.subr.bf16.mxu1 %v19608_v17  ;;  %18334 = vmatprep.subr.bf16.mxu0 %v19609_v51 }
 0x220   :  { %26486 = vst [vmem:[#allocation37_spill] sm:$0xff] %v22393_v7  ;;  %v4859_v5 = vsel %vm2789_vm5, %v26488_v54, %v26487_v36  ;;  %v5364_v62 = vsel %vm1245_vm1, %v26490_v61, %v26489_v31  ;;  %v22411_v59 = vpop.f32.mrf.mxu1  ;;  %v5062_v36 = vor.u32 %v22183_v1, %v22181_v13  ;;  %v19616_v54 = vld [vmem:[%s26336_s4 + $0x48] sm:$0xff]   ;;  %v5520_v13 = vor.u32 %v22257_v40, %v22214_v16  ;;  %v19618_v16 = vld [vmem:[%s26336_s4 + $0x40] sm:$0xff]  }
 0x221   :  { %18269 = vmatmul.mubr.bf16.gmra.mxu1 %v4859_v5  ;;  %v22405_v23 = vpop.f32.mrf.mxu0  ;;  %26492 = vst [vmem:[#allocation39_spill] sm:$0xff] %v22411_v59  ;;  %v26493_v5 = vshrl.u32 %v22245_v45, 16  ;;  %v5731_v61 = vshrl.u32 %v22123_v43, 16  ;;  %v19619_v40 = vld [vmem:[%s26336_s4 + $0x8] sm:$0xff]   ;;  %v26505_v7 = vrot.slane %v22065_v6, 3 }
 0x222   :  { %26491 = vst [vmem:[#allocation38_spill] sm:$0xff] %v22405_v23  ;;  %18309 = vmatpush3.bf16.msra.mxu1 %v19608_v17  ;;  %18316 = vmatprep.mubr.bf16.mxu1 %v5364_v62  ;;  %v19617_v17 = vld [vmem:[%s26336_s4 + $0x10] sm:$0xff]   ;;  %v5063_v1 = vsel %vm2971_vm6, %v5053_v42, %v5062_v36  ;;  %v5529_v62 = vsel %vm1397_vm2, %v5520_v13, %v22409_v32  ;;  %v5734_v42 = vshll.u32 %v22123_v43, 16  ;;  %v26496_v36 = vshrl.u32 %v22065_v6, 16  ;;  %v19622_v43 = vld [vmem:[%s26336_s4 + $0xb8] sm:$0xff]   ;;  %v19627_v6 = vld [vmem:[%s26336_s4 + $0xa8] sm:$0xff]  }
 0x223   :  { %18335 = vmatpush3.bf16.msra.mxu0 %v19609_v51  ;;  %18310 = vmatprep.subr.bf16.mxu1 %v19613_v19  ;;  %v22423_v31 = vrot.slane %v26493_v5, 2  ;;  %v22426_v55 = vpop.f32.mrf.mxu0  ;;  %v22433_v51 = vrot.slane %v26359_v8, 3  ;;  %v22438_v5 = vpop.f32.mrf.mxu1  ;;  %v26504_v23 = vrot.slane %v22167_v2, 3 }
 0x224   :  { %26494 = vst [vmem:[#allocation40_spill] sm:$0xff] %v22426_v55  ;;  %18336 = vmatprep.subr.bf16.mxu0 %v19614_v33  ;;  %26495 = vst [vmem:[#allocation41_spill] sm:$0xff] %v22438_v5  ;;  %v22466_v8 = vrot.slane %v5734_v42, 4  ;;  %v22472_v5 = vld [vmem:[#allocation2 + $0x70] sm:$0xf] }
 0x225   :  { %18297 = vmatmul.mubr.bf16.gmra.mxu0 %v5063_v1  ;;  %v22449_v1 = vpop.f32.mrf.mxu0  ;;  %v22454_v13 = vpop.f32.mrf.mxu1  ;;  %v5914_v42 = vld [vmem:[#allocation2 + $0x6c] sm:$0x8]  ;;  %v22481_v55 = vld [vmem:[#allocation2 + $0x78] sm:$0xf]  ;;  %v5366_v3 = vsel %vm1245_vm1, %v26505_v7, %v26504_v23 }
 0x226   :  { %18311 = vmatpush3.bf16.msra.mxu1 %v19613_v19  ;;  %18344 = vmatprep.mubr.bf16.mxu0 %v5529_v62  ;;  %v5738_v19 = vrot.slane %v26496_v36, 3  ;;  %26497 = vst [vmem:[#allocation42_spill] sm:$0xff] %v22449_v1  ;;  %26498 = vst [vmem:[#allocation43_spill] sm:$0xff] %v22454_v13  ;;  %v22459_v62 = vrot.slane %v5731_v61, 3  ;;  %v5739_v1 = vrot.slane %v26500_v24, 4  ;;  %v5570_v13 = vshll.u32 %v22382_v50, 16 }
 0x227   :  { %18337 = vmatpush3.bf16.msra.mxu0 %v19614_v33  ;;  %18312 = vmatprep.subr.bf16.mxu1 %v19616_v54  ;;  %v19621_v33 = vld [vmem:[%s26336_s4] sm:$0xff]   ;;  %v22461_v36 = vpop.f32.mrf.mxu0  ;;  %v22474_v61 = vld [vmem:[#allocation2 + $0x74] sm:$0xf]  ;;  %v22479_v59 = vpop.f32.mrf.mxu1  ;;  %26502 = vst [vmem:[#allocation46_spill] sm:$0xff] %v22481_v55 }
 0x228   :  { %18338 = vmatprep.subr.bf16.mxu0 %v19617_v17  ;;  %26499 = vst [vmem:[#allocation44_spill] sm:$0xff] %v22461_v36  ;;  %v19625_v36 = vld [vmem:[%s26336_s4 + $0xf8] sm:$0xff]   ;;  %26501 = vst [vmem:[#allocation45_spill] sm:$0xff] %v22479_v59  ;;  %v5546_v59 = vor.u32 %v22312_v10, %v22278_v22  ;;  %v22507_v22 = vcombine.low %v22474_v61, %v22481_v55  ;;  %v22511_v10 = vld [vmem:[#allocation2 + $0x84] sm:$0xf] }
 0x229   :  { %v22483_v24 = vpop.f32.mrf.mxu0  ;;  %26510 = vst [vmem:[#allocation50_spill] sm:$0xff] %v22511_v10 }
 0x22a   :  { %18313 = vmatpush3.bf16.msra.mxu1 %v19616_v54  ;;  %v19624_v54 = vld [vmem:[%s26336_s4 + $0xb0] sm:$0xff]   ;;  %26503 = vst [vmem:[#allocation47_spill] sm:$0xff] %v22483_v24  ;;  %v26508_v24 = vmov %v26504_v23 }
 0x22b   :  { %18339 = vmatpush3.bf16.msra.mxu0 %v19617_v17  ;;  %18314 = vmatprep.subr.bf16.mxu1 %v19618_v16  ;;  %v5567_v17 = vshrl.u32 %v22382_v50, 16  ;;  %v5368_v4 = vsel %vm1245_vm1, %v26508_v24, %v26507_v52  ;;  %v22520_v23 = vpop.f32.mrf.mxu0  ;;  %v26514_v24 = vrot.slane %v22245_v45, 3 }
 0x22c   :  { %18340 = vmatprep.subr.bf16.mxu0 %v19619_v40  ;;  %26513 = vst [vmem:[#allocation52_spill] sm:$0xff] %v22520_v23  ;;  %v22537_v23 = vld [vmem:[#allocation2 + $0x88] sm:$0xf] }
 0x22d   :  { %26517 = vst [vmem:[#allocation54_spill] sm:$0xff] %v22537_v23  ;;  %v26520_v21 = vmov %v26514_v24 }
 0x22e   :  { %18315 = vmatpush3.bf16.msra.mxu1 %v19618_v16  ;;  %v5537_v16 = vor.u32 %v22269_v57, %v22265_v35  ;;  %v15305_v35 = vcombine.low %v5914_v42, %v22472_v5  ;;  %v22509_v57 = vld [vmem:[#allocation2 + $0x80] sm:$0xf] }
 0x22f   :  { %18341 = vmatpush3.bf16.msra.mxu0 %v19619_v40  ;;  %18356 = vmatprep.subr.bf16.mxu1 %v19622_v43  ;;  %26509 = vst [vmem:[#allocation49_spill] sm:$0xff] %v22509_v57 }
 0x230   :  { %18342 = vmatprep.subr.bf16.mxu0 %v19621_v33  ;;  %v22494_v40 = vpop.f32.mrf.mxu1  ;;  %v5547_v42 = vsel %vm1397_vm2, %v5537_v16, %v5546_v59 }
 0x231   :  { %26506 = vst [vmem:[#allocation48_spill] sm:$0xff] %v22494_v40  ;;  %18317 = vmatmul.mubr.bf16.vlgmr.msra.gmra.mxu1 %v5366_v3  ;;  %v26519_v40 = vrot.slane %v22382_v50, 3 }
 0x232   :  { %18320 = vmatprep.mubr.bf16.mxu1 %v5368_v4  ;;  %18357 = vmatpush3.bf16.msra.mxu1 %v19622_v43  ;;  %v22513_v7 = vpop.f32.mrf.mxu1  ;;  %v26512_v4 = vrot.slane %v22243_v12, 3  ;;  %v5538_v43 = vsel %vm1397_vm2, %v22409_v32, %v5537_v16  ;;  %v22543_v16 = vor.u32 %v22433_v51, %v22423_v31 }
 0x233   :  { %18343 = vmatpush3.bf16.msra.mxu0 %v19621_v33  ;;  %26511 = vst [vmem:[#allocation51_spill] sm:$0xff] %v22513_v7  ;;  %18358 = vmatprep.subr.bf16.mxu1 %v19624_v54  ;;  %v19628_v33 = vld [vmem:[%s26336_s4 + $0xf0] sm:$0xff]   ;;  %v22550_v30 = vsel %vm1245_vm1, %v26520_v21, %v26519_v40 }
 0x234   :  { %v5370_v3 = vsel %vm1245_vm1, %v26507_v52, %v26512_v4  ;;  %18384 = vmatprep.subr.bf16.mxu0 %v19625_v36  ;;  %v26515_v55 = vmov %v26512_v4  ;;  %v5555_v4 = vor.u32 %v22372_v27, %v22340_v56  ;;  %v22535_v52 = vld [vmem:[#allocation2 + $0x7c] sm:$0xf]  ;;  %v22539_v32 = vpop.f32.mrf.mxu1  ;;  %v22554_v56 = vrot.slane %v5567_v17, 2  ;;  %v22556_v27 = vld [vmem:[#allocation2 + $0x90] sm:$0xf] }
 0x235   :  { %v5372_v7 = vsel %vm1245_vm1, %v26515_v55, %v26514_v24  ;;  %26516 = vst [vmem:[#allocation53_spill] sm:$0xff] %v22535_v52  ;;  %26518 = vst [vmem:[#allocation55_spill] sm:$0xff] %v22539_v32  ;;  %v22552_v55 = vor.u32 %v5739_v1, %v5738_v19 }
 0x236   :  { %26521 = vst [vmem:[#allocation56_spill] sm:$0xff] %v22556_v27 }
 0x237   :  { %11 = vsyncpa [#allocation4], 0  ;;  %v22558_v24 = vpop.f32.mrf.mxu0  ;;  %18345 = vmatmul.mubr.bf16.vlgmr.msra.gmra.mxu0 %v5538_v43  ;;  %18359 = vmatpush3.bf16.msra.mxu1 %v19624_v54  ;;  %v22560_v31 = vrot.slane %v5570_v13, 3  ;;  %v5977_v51 = vshrl.u32 %v15305_v35, 16  ;;  %v5980_v50 = vshll.u32 %v15305_v35, 16  ;;  %v5985_v32 = vshrl.u32 %v22507_v22, 16  ;;  %v22565_v21 = vpop.f32.mrf.mxu1 }
 0x238   :  { %26522 = vst [vmem:[#allocation57_spill] sm:$0xff] %v22558_v24  ;;  %v22563_v25 = vld [vmem:[#allocation2 + $0x94] sm:$0xf]  ;;  %18348 = vmatprep.mubr.bf16.mxu0 %v5547_v42  ;;  %18385 = vmatpush3.bf16.msra.mxu0 %v19625_v36  ;;  %26524 = vst [vmem:[#allocation59_spill] sm:$0xff] %v22565_v21  ;;  %v19630_v19 = vld [vmem:[%s26336_s4 + $0xa0] sm:$0xff]   ;;  %v5737_v1 = vor.u32 %v22466_v8, %v22459_v62  ;;  %v15307_v13 = vcombine.low %v22535_v52, %v22509_v57  ;;  %v5988_v8 = vshll.u32 %v22507_v22, 16 }
 0x239   :  { %26523 = vst [vmem:[#allocation58_spill] sm:$0xff] %v22563_v25  ;;  %v15308_v54 = vcombine.low %v22511_v10, %v22537_v23  ;;  %v22576_v17 = vld [vmem:[#allocation2 + $0x8c] sm:$0xf]  ;;  %v22578_v40 = vpop.f32.mrf.mxu0  ;;  %18360 = vmatprep.subr.bf16.mxu1 %v19627_v6  ;;  %18386 = vmatprep.subr.bf16.mxu0 %v19628_v33  ;;  %v5556_v36 = vsel %vm1397_vm2, %v5546_v59, %v5555_v4  ;;  %v26527_v62 = vshrl.u32 %v22167_v2, 16  ;;  %v26528_v42 = vshll.u32 %v22167_v2, 16  ;;  %v22591_v10 = vpop.f32.mrf.mxu1 }
 0x23a   :  { %26525 = vst [vmem:[#allocation60_spill] sm:$0xff] %v22576_v17  ;;  %26526 = vst [vmem:[#allocation61_spill] sm:$0xff] %v22578_v40  ;;  %v19631_v35 = vld [vmem:[%s26336_s4 + $0xe8] sm:$0xff]   ;;  %v22589_v57 = vld [vmem:[#allocation2 + $0x98] sm:$0xf]  ;;  %18321 = vmatmul.mubr.bf16.gmra.mxu1 %v5370_v3  ;;  %v5565_v59 = vsel %vm1397_vm2, %v5555_v4, %v22543_v16  ;;  %v5741_v52 = vsel %vm1616_vm3, %v5737_v1, %v22552_v55  ;;  %v15309_v22 = vcombine.low %v22576_v17, %v22556_v27 }
 0x23b   :  { %v5742_v43 = vrot.slane %v26527_v62, 3  ;;  %v5743_v23 = vrot.slane %v26528_v42, 4  ;;  %26529 = vst [vmem:[#allocation62_spill] sm:$0xff] %v22589_v57  ;;  %26530 = vst [vmem:[#allocation63_spill] sm:$0xff] %v22591_v10  ;;  %v15310_v62 = vcombine.low %v22563_v25, %v22589_v57  ;;  %v22601_v40 = vpop.f32.mrf.mxu0  ;;  %18324 = vmatprep.mubr.bf16.mxu1 %v5372_v7  ;;  %18361 = vmatpush3.bf16.msra.mxu1 %v19627_v6  ;;  %v22605_v3 = vrot.slane %v5977_v51, 3  ;;  %v22609_v1 = vpop.f32.mrf.mxu1  ;;  %v19633_v6 = vld [vmem:[%s26336_s4 + $0x98] sm:$0xff]  }
 0x23c   :  { %26531 = vst [vmem:[#allocation64_spill] sm:$0xff] %v22601_v40  ;;  %v22607_v42 = vrot.slane %v5980_v50, 4  ;;  %v5987_v4 = vrot.slane %v5985_v32, 3  ;;  %v19656_v10 = vld [vmem:[#allocation2 + $0x94] ss:$0 sps:$4 sm:$0xff]   ;;  %18387 = vmatpush3.bf16.msra.mxu0 %v19628_v33  ;;  %26532 = vst [vmem:[#allocation65_spill] sm:$0xff] %v22609_v1  ;;  %18362 = vmatprep.subr.bf16.mxu1 %v19630_v19 }
 0x23d   :  { %v5994_v27 = vshrl.u32 %v15307_v13, 16  ;;  %v5997_v17 = vshll.u32 %v15307_v13, 16  ;;  %v6003_v57 = vshrl.u32 %v15308_v54, 16  ;;  %v6006_v25 = vshll.u32 %v15308_v54, 16  ;;  %v22611_v40 = vpop.f32.mrf.mxu0  ;;  %18388 = vmatprep.subr.bf16.mxu0 %v19631_v35  ;;  %v19634_v7 = vld [vmem:[%s26336_s4 + $0xe0] sm:$0xff]   ;;  %v22625_v2 = vpop.f32.mrf.mxu1 }
 0x23e   :  { %26533 = vst [vmem:[#allocation66_spill] sm:$0xff] %v22611_v40  ;;  %v5990_v32 = vrot.slane %v5988_v8, 4  ;;  %v22619_v33 = vor.u32 %v5743_v23, %v5742_v43  ;;  %v26534_v51 = vshrl.u32 %v22199_v0, 16  ;;  %v26535_v13 = vshll.u32 %v22199_v0, 16  ;;  %26536 = vst [vmem:[#allocation67_spill] sm:$0xff] %v22625_v2  ;;  %v22633_v0 = vld [vmem:[#allocation2 + $0x70] sm:$0xff]  }
 0x23f   :  { %v6012_v1 = vshrl.u32 %v15309_v22, 16  ;;  %v6015_v40 = vshll.u32 %v15309_v22, 16  ;;  %v6021_v21 = vshrl.u32 %v15310_v62, 16  ;;  %v6024_v24 = vshll.u32 %v15310_v62, 16  ;;  %v22627_v58 = vpop.f32.mrf.mxu0  ;;  %18349 = vmatmul.mubr.bf16.gmra.mxu0 %v5556_v36  ;;  %18363 = vmatpush3.bf16.msra.mxu1 %v19630_v19  ;;  %v19635_v22 = vld [vmem:[%s26336_s4 + $0x90] sm:$0xff]  }
 0x240   :  { %v5746_v50 = vrot.slane %v26534_v51, 3  ;;  %v5747_v54 = vrot.slane %v26535_v13, 4  ;;  %26537 = vst [vmem:[#allocation68_spill] sm:$0xff] %v22627_v58  ;;  %v26538_v8 = vshrl.u32 %v22243_v12, 16  ;;  %v26539_v43 = vshll.u32 %v22243_v12, 16  ;;  %18352 = vmatprep.mubr.bf16.mxu0 %v5565_v59  ;;  %18389 = vmatpush3.bf16.msra.mxu0 %v19631_v35  ;;  %v22635_v13 = vpop.f32.mrf.mxu1  ;;  %v19636_v12 = vld [vmem:[%s26336_s4 + $0xd8] sm:$0xff]  }
 0x241   :  { %v5759_v51 = vshrl.u32 %v19656_v10, 16  ;;  %v5762_v14 = vshll.u32 %v19656_v10, 16  ;;  %26540 = vst [vmem:[#allocation69_spill] sm:$0xff] %v22635_v13  ;;  %v5996_v36 = vrot.slane %v5994_v27, 3  ;;  %v5999_v19 = vrot.slane %v5997_v17, 4  ;;  %18364 = vmatprep.subr.bf16.mxu1 %v19633_v6  ;;  %18390 = vmatprep.subr.bf16.mxu0 %v19634_v7 }
 0x242   :  { %v5750_v23 = vrot.slane %v26538_v8, 3  ;;  %v5751_v44 = vrot.slane %v26539_v43, 4  ;;  %v6005_v62 = vrot.slane %v6003_v57, 3  ;;  %v6008_v58 = vrot.slane %v6006_v25, 4  ;;  %v22640_v8 = vpop.f32.mrf.mxu0  ;;  %18325 = vmatmul.mubr.bf16.gmra.mxu1 %v22550_v30 }
 0x243   :  { %26541 = vst [vmem:[#allocation70_spill] sm:$0xff] %v22640_v8  ;;  %v5983_v10 = vor.u32 %v22607_v42, %v22605_v3  ;;  %v5991_v35 = vor.u32 %v5990_v32, %v5987_v4  ;;  %v26542_v59 = vshrl.u32 %v22245_v45, 16  ;;  %v26543_v27 = vshll.u32 %v22245_v45, 16  ;;  %18365 = vmatpush3.bf16.msra.mxu1 %v19633_v6  ;;  %18372 = vmatprep.mubr.bf16.mxu1 %v5741_v52  ;;  %v22655_v4 = vpop.f32.mrf.mxu1 }
 0x244   :  { %v6014_v25 = vrot.slane %v6012_v1, 3  ;;  %v6017_v57 = vrot.slane %v6015_v40, 4  ;;  %v6023_v8 = vrot.slane %v6021_v21, 3  ;;  %v6026_v13 = vrot.slane %v6024_v24, 4  ;;  %v22652_v2 = vpop.f32.mrf.mxu0  ;;  %18391 = vmatpush3.bf16.msra.mxu0 %v19634_v7  ;;  %18366 = vmatprep.subr.bf16.mxu1 %v19635_v22  ;;  %v19640_v24 = vld [vmem:[%s26336_s4 + $0x88] sm:$0xff]  }
 0x245   :  { %v5754_v43 = vrot.slane %v26542_v59, 3  ;;  %v5755_v17 = vrot.slane %v26543_v27, 4  ;;  %v5748_v29 = vor.u32 %v5747_v54, %v5746_v50  ;;  %v5761_v41 = vrot.slane %v5759_v51, 3  ;;  %18392 = vmatprep.subr.bf16.mxu0 %v19636_v12  ;;  %v22684_v54 = vpop.f32.mrf.mxu1 }
 0x246   :  { %v5764_v3 = vrot.slane %v5762_v14, 4  ;;  %v6419_v42 = vshll.u32 %v22633_v0, 16  ;;  %v6000_v45 = vor.u32 %v5999_v19, %v5996_v36  ;;  %v6009_v32 = vor.u32 %v6008_v58, %v6005_v62  ;;  %v22657_v1 = vpop.f32.mrf.mxu0  ;;  %v19641_v14 = vld [vmem:[%s26336_s4 + $0xd0] sm:$0xff]  }
 0x247   :  { %v5752_v30 = vor.u32 %v5751_v44, %v5750_v23  ;;  %v5756_v52 = vor.u32 %v5755_v17, %v5754_v43  ;;  %v26544_v21 = vor.u32 %v22560_v31, %v22554_v56  ;;  %v22673_v58 = vsel %vm1616_vm3, %v22552_v55, %v22619_v33  ;;  %18367 = vmatpush3.bf16.msra.mxu1 %v19635_v22  ;;  %v22682_v31 = vld [vmem:[#allocation2 + $0x9c] sm:$0xf]  ;;  %v19642_v55 = vld [vmem:[%s26336_s4 + $0x80] sm:$0xff]   ;;  %v19643_v22 = vld [vmem:[%s26336_s4 + $0xc8] sm:$0xff]   ;;  %v22737_v43 = vpop.f32.mrf.mxu1 }
 0x248   :  { %v6018_v44 = vor.u32 %v6017_v57, %v6014_v25  ;;  %v22675_v6 = vor.u32 %v6026_v13, %v6023_v8  ;;  %v5992_v7 = vsel %vm1616_vm3, %v5983_v10, %v5991_v35  ;;  %v22680_v50 = vsel %vm1616_vm3, %v22619_v33, %v5748_v29  ;;  %18393 = vmatpush3.bf16.msra.mxu0 %v19636_v12  ;;  %v22700_v13 = vpop.f32.mrf.mxu0  ;;  %v26547_v17 = vld [vmem:[#allocation12_spill] sm:$0xff]  ;;  %v26549_v57 = vld [vmem:[#allocation6_spill] sm:$0xff] }
 0x249   :  { %v5574_v40 = vsel %vm1397_vm2, %v22543_v16, %v26544_v21  ;;  %v5765_v56 = vor.u32 %v5764_v3, %v5761_v41  ;;  %v6421_v16 = vrot.slane %v6419_v42, 1  ;;  %v22690_v23 = vsel %vm1616_vm3, %v5991_v35, %v6000_v45  ;;  %18368 = vmatprep.subr.bf16.mxu1 %v19640_v24  ;;  %18394 = vmatprep.subr.bf16.mxu0 %v19641_v14  ;;  %v26554_v21 = vld [vmem:[#allocation27_spill] sm:$0xff] }
 0x24a   :  { %18353 = vmatmul.mubr.bf16.gmra.mxu0 %v5574_v40  ;;  %v22693_v51 = vsel %vm1616_vm3, %v6000_v45, %v6009_v32  ;;  %v22696_v33 = vsel %vm1616_vm3, %v5748_v29, %v5752_v30  ;;  %v1560_v41 = vadd.f32 %v21906_v46, %v21883_v15  ;;  %v22706_v36 = vsel %vm1616_vm3, %v5752_v30, %v5756_v52 }
 0x24b   :  { %18400 = vmatprep.mubr.bf16.mxu0 %v5992_v7  ;;  %v15336_v19 = vcombine.low %v22472_v5, %v22474_v61  ;;  %v6417_v29 = vshrl.u32 %v22633_v0, 16  ;;  %v1552_v62 = vadd.f32 %v21921_v38, %v21904_v60  ;;  %v22714_v15 = vsel %vm1616_vm3, %v6009_v32, %v6018_v44  ;;  %18369 = vmatpush3.bf16.msra.mxu1 %v19640_v24  ;;  %v26550_v32 = vld [vmem:[#allocation10_spill] sm:$0xff]  ;;  %v26556_v7 = vld [vmem:[#allocation7_spill] sm:$0xff]  ;;  %v19665_v5 = vld [vmem:[%s26336_s4 + $0x108] sm:$0xff]  }
 0x24c   :  { %v22718_v46 = vsel %vm1616_vm3, %v6018_v44, %v22675_v6  ;;  %v22722_v8 = vcombine.low %v22682_v31, %v22682_v31  ;;  %v1792_v12 = vadd.f32 %v22098_v11, %v1560_v41  ;;  %v2063_v10 = vadd.f32 %v22100_v39, %v22070_v20  ;;  %18395 = vmatpush3.bf16.msra.mxu0 %v19641_v14  ;;  %v19645_v39 = vld [vmem:[%s26336_s4 + $0x138] sm:$0xff]   ;;  %v26545_v11 = vld [vmem:[#allocation8_spill] sm:$0xff]  ;;  %v26553_v14 = vld [vmem:[#allocation26_spill] sm:$0xff] }
 0x24d   :  { %v22728_v0 = vsel %vm1616_vm3, %v5756_v52, %v5765_v56  ;;  %v22730_v60 = vor.u32 %v6421_v16, %v6417_v29  ;;  %v1576_v38 = vadd.f32 %v21987_v28, %v21965_v18  ;;  %v1568_v35 = vadd.f32 %v22006_v48, %v21985_v49  ;;  %18370 = vmatprep.subr.bf16.mxu1 %v19642_v55  ;;  %v26546_v20 = vld [vmem:[#allocation11_spill] sm:$0xff]  ;;  %v22748_v28 = vpop.f32.mrf.mxu0  ;;  %v19644_v48 = vld [vmem:[%s26336_s4 + $0xc0] sm:$0xff]   ;;  %v26555_v44 = vld [vmem:[#allocation13_spill] sm:$0xff] }
 0x24e   :  { %v1790_v59 = vadd.f32 %v22115_v34, %v1552_v62  ;;  %v1592_v27 = vadd.f32 %v26546_v20, %v26545_v11  ;;  %v2061_v25 = vadd.f32 %v22117_v63, %v26547_v17  ;;  %v2064_v18 = vadd.f32 %v22129_v47, %v1792_v12  ;;  %18396 = vmatprep.subr.bf16.mxu0 %v19643_v22  ;;  %v26548_v34 = vld [vmem:[#allocation9_spill] sm:$0xff]  ;;  %v26551_v47 = vld [vmem:[#allocation14_spill] sm:$0xff]  ;;  %v26557_v16 = vld [vmem:[#allocation15_spill] sm:$0xff] }
 0x24f   :  { %v2233_v49 = vadd.f32 %v22295_v37, %v2063_v10  ;;  %v1584_v3 = vadd.f32 %v26549_v57, %v26548_v34  ;;  %v1796_v45 = vadd.f32 %v22158_v53, %v1576_v38  ;;  %v2067_v63 = vadd.f32 %v22160_v9, %v26550_v32  ;;  %v26552_v37 = vld [vmem:[#allocation24_spill] sm:$0xff]  ;;  %18371 = vmatpush3.bf16.msra.mxu1 %v19642_v55  ;;  %v22767_v53 = vpop.f32.mrf.mxu1  ;;  %v19647_v9 = vld [vmem:[%s26336_s4 + $0x130] sm:$0xff]   ;;  %v26560_v10 = vld [vmem:[#allocation29_spill] sm:$0xff]  ;;  %v22776_v20 = vpop.f32.mrf.mxu0 }
 0x250   :  { %v2062_v42 = vadd.f32 %v22142_v26, %v1790_v59  ;;  %v1794_v30 = vadd.f32 %v26551_v47, %v1568_v35  ;;  %v2231_v24 = vadd.f32 %v26552_v37, %v2061_v25  ;;  %v2234_v52 = vadd.f32 %v26553_v14, %v2064_v18  ;;  %v26558_v26 = vld [vmem:[#allocation28_spill] sm:$0xff]  ;;  %18397 = vmatpush3.bf16.msra.mxu0 %v19643_v22  ;;  %v26559_v62 = vld [vmem:[#allocation18_spill] sm:$0xff]  ;;  %v26561_v55 = vld [vmem:[#allocation31_spill] sm:$0xff] }
 0x251   :  { %v2496_v40 = vadd.f32 %v26554_v21, %v2233_v49  ;;  %v2065_v56 = vadd.f32 %v26556_v7, %v26555_v44  ;;  %v2068_v41 = vadd.f32 %v26557_v16, %v1796_v45  ;;  %18412 = vmatprep.subr.bf16.mxu1 %v19645_v39  ;;  %v26562_v59 = vld [vmem:[#allocation48_spill] sm:$0xff]  ;;  %18398 = vmatprep.subr.bf16.mxu0 %v19644_v48  ;;  %v19648_v22 = vld [vmem:[%s26336_s4 + $0x178] sm:$0xff]   ;;  %v26566_v57 = vld [vmem:[#allocation22_spill] sm:$0xff]  ;;  %v18038_v47 = vpop.f32.mrf.mxu1 }
 0x252   :  { %v2232_v29 = vadd.f32 %v26558_v26, %v2062_v42  ;;  %v2066_v12 = vadd.f32 %v26559_v62, %v1794_v30  ;;  %v2494_v38 = vadd.f32 %v26560_v10, %v2231_v24  ;;  %v2497_v35 = vadd.f32 %v26561_v55, %v2234_v52  ;;  %v26563_v17 = vld [vmem:[#allocation20_spill] sm:$0xff]  ;;  %v26565_v49 = vld [vmem:[#allocation19_spill] sm:$0xff]  ;;  %v26567_v45 = vld [vmem:[#allocation33_spill] sm:$0xff]  ;;  %18373 = vmatmul.mubr.bf16.vlgmr.msra.gmra.mxu1 %v22673_v58 }
 0x253   :  { %v2758_v11 = vadd.f32 %v26562_v59, %v2496_v40  ;;  %v1800_v25 = vadd.f32 %v26563_v17, %v1592_v27  ;;  %v26564_v18 = vld [vmem:[#allocation16_spill] sm:$0xff]  ;;  %v22787_v42 = vadd.f32 %v26566_v57, %v1584_v3  ;;  %v26568_v30 = vld [vmem:[#allocation51_spill] sm:$0xff]  ;;  %v26570_v52 = vld [vmem:[#allocation57_spill] sm:$0xff]  ;;  %18376 = vmatprep.mubr.bf16.mxu1 %v22680_v50  ;;  %18413 = vmatpush3.bf16.msra.mxu1 %v19645_v39  ;;  %v3097_v58 = vpop.f32.mrf.mxu1  ;;  %v22806_v50 = vpop.f32.mrf.mxu0 }
 0x254   :  { %v22784_v34 = vadd.f32 %v26565_v49, %v26564_v18  ;;  %v2495_v32 = vadd.f32 %v26567_v45, %v2232_v29  ;;  %v2756_v37 = vadd.f32 %v26568_v30, %v2494_v38  ;;  %v26569_v24 = vld [vmem:[#allocation55_spill] sm:$0xff]  ;;  %v26571_v27 = vld [vmem:[#allocation17_spill] sm:$0xff]  ;;  %v26574_v16 = vld [vmem:[#allocation30_spill] sm:$0xff]  ;;  %18399 = vmatpush3.bf16.msra.mxu0 %v19644_v48  ;;  %18414 = vmatprep.subr.bf16.mxu1 %v19647_v9 }
 0x255   :  { %v2759_v14 = vadd.f32 %v26569_v24, %v2497_v35  ;;  %v2940_v21 = vadd.f32 %v26570_v52, %v2758_v11  ;;  %v26572_v40 = vld [vmem:[#allocation21_spill] sm:$0xff]  ;;  %v26573_v3 = vld [vmem:[#allocation23_spill] sm:$0xff]  ;;  %v2237_v26 = vadd.f32 %v26574_v16, %v2067_v63  ;;  %v26577_v55 = vld [vmem:[#allocation64_spill] sm:$0xff]  ;;  %18440 = vmatprep.subr.bf16.mxu0 %v19648_v22  ;;  %v18039_v30 = vpop.f32.mrf.mxu1 }
 0x256   :  { %v22797_v44 = vadd.f32 %v26572_v40, %v26571_v27  ;;  %v22800_v7 = vadd.f32 %v26573_v3, %v1800_v25  ;;  %v26575_v29 = vld [vmem:[#allocation59_spill] sm:$0xff]  ;;  %v26576_v10 = vld [vmem:[#allocation61_spill] sm:$0xff]  ;;  %v19651_v48 = vld [vmem:[%s26336_s4 + $0x170] sm:$0xff]  }
 0x257   :  { %v2757_v62 = vadd.f32 %v26575_v29, %v2495_v32  ;;  %v2938_v38 = vadd.f32 %v26576_v10, %v2756_v37  ;;  %v2941_v35 = vadd.f32 %v26577_v55, %v2759_v14  ;;  %v3146_v39 = vadd.f32 %v18038_v47, %v2940_v21  ;;  %v19650_v59 = vld [vmem:[%s26336_s4 + $0x128] sm:$0xff]   ;;  %v22814_v63 = vld [vmem:[#allocation2 + $0x78] sm:$0xff]   ;;  %v26578_v11 = vld [vmem:[#allocation32_spill] sm:$0xff]  ;;  %v22826_v21 = vpop.f32.mrf.mxu0  ;;  %18401 = vmatmul.mubr.bf16.vlgmr.msra.gmra.mxu0 %v22690_v23  ;;  %v3100_v16 = vpop.f32.mrf.mxu1 }
 0x258   :  { %v2235_v17 = vadd.f32 %v26578_v11, %v2065_v56  ;;  %v26579_v25 = vld [vmem:[#allocation34_spill] sm:$0xff]  ;;  %v26580_v49 = vld [vmem:[#allocation35_spill] sm:$0xff]  ;;  %v26581_v45 = vld [vmem:[#allocation36_spill] sm:$0xff]  ;;  %18415 = vmatpush3.bf16.msra.mxu1 %v19647_v9  ;;  %18404 = vmatprep.mubr.bf16.mxu0 %v22693_v51  ;;  %v6424_v51 = vshll.u32 %v22814_v63, 16 }
 0x259   :  { %v2238_v18 = vadd.f32 %v26579_v25, %v2068_v41  ;;  %v2500_v57 = vadd.f32 %v26580_v49, %v2237_v26  ;;  %v2236_v32 = vadd.f32 %v26581_v45, %v2066_v12  ;;  %v22823_v47 = vld [vmem:[%s26337_s5] ss:$0 sm:$0xff]  ;;  %v26582_v37 = vld [vmem:[#allocation66_spill] sm:$0xff]  ;;  %v3144_v14 = vadd.f32 %v3097_v58, %v2938_v38  ;;  %v26583_v56 = vld [vmem:[#allocation37_spill] sm:$0xff]  ;;  %18441 = vmatpush3.bf16.msra.mxu0 %v19648_v22  ;;  %v22838_v9 = vpop.f32.mrf.mxu0  ;;  %v18042_v25 = vpop.f32.mrf.mxu1 }
 0x25a   :  { %v2939_v24 = vadd.f32 %v26582_v37, %v2757_v62  ;;  %v3147_v52 = vadd.f32 %v18039_v30, %v2941_v35  ;;  %v2498_v41 = vadd.f32 %v26583_v56, %v2235_v17  ;;  %v26584_v27 = vld [vmem:[#allocation38_spill] sm:$0xff]  ;;  %v26585_v12 = vld [vmem:[#allocation63_spill] sm:$0xff]  ;;  %v19653_v26 = vld [vmem:[%s26336_s4 + $0x120] sm:$0xff]   ;;  %v3164_v58 = vadd.f32 %v22823_v47, %v3146_v39  ;;  %18416 = vmatprep.subr.bf16.mxu1 %v19650_v59 }
 0x25b   :  { %v2501_v40 = vadd.f32 %v26584_v27, %v2238_v18  ;;  %v2762_v3 = vadd.f32 %v26585_v12, %v2500_v57  ;;  %18442 = vmatprep.subr.bf16.mxu0 %v19651_v48  ;;  %v19654_v62 = vld [vmem:[%s26336_s4 + $0x168] sm:$0xff]   ;;  %v26586_v22 = vld [vmem:[#allocation40_spill] sm:$0xff]  ;;  %v26588_v35 = vld [vmem:[#allocation67_spill] sm:$0xff]  ;;  %18377 = vmatmul.mubr.bf16.gmra.mxu1 %v22696_v33  ;;  %v3162_v18 = vadd.f32 %v22823_v47, %v3144_v14  ;;  %v22851_v45 = vpop.f32.mrf.mxu0  ;;  %v3113_v14 = vpop.f32.mrf.mxu1 }
 0x25c   :  { %v3165_v29 = vadd.f32 %v22823_v47, %v3147_v52  ;;  %v3145_v23 = vadd.f32 %v3100_v16, %v2939_v24  ;;  %v2499_v10 = vadd.f32 %v26586_v22, %v2236_v32  ;;  %v26587_v38 = vld [vmem:[#allocation65_spill] sm:$0xff]  ;;  %v26589_v39 = vld [vmem:[#allocation68_spill] sm:$0xff]  ;;  %18380 = vmatprep.mubr.bf16.mxu1 %v22706_v36  ;;  %18417 = vmatpush3.bf16.msra.mxu1 %v19650_v59  ;;  %v6030_v32 = vshrl.u32 %v22722_v8, 16  ;;  %v26591_v24 = vld [vmem:[#allocation39_spill] sm:$0xff] }
 0x25d   :  { %v2760_v55 = vadd.f32 %v26587_v38, %v2498_v41  ;;  %v2763_v11 = vadd.f32 %v26588_v35, %v2501_v40  ;;  %v2944_v17 = vadd.f32 %v26589_v39, %v2762_v3  ;;  %v26590_v30 = vld [vmem:[#allocation25_spill] sm:$0xff]  ;;  %v2241_v52 = vadd.f32 %v26591_v24, %v22784_v34  ;;  %18443 = vmatpush3.bf16.msra.mxu0 %v19651_v48  ;;  %v26593_v27 = vld [vmem:[#allocation70_spill] sm:$0xff]  ;;  %v22863_v3 = vpop.f32.mrf.mxu0  ;;  %v19657_v34 = vld [vmem:[%s26336_s4 + $0x118] sm:$0xff]  }
 0x25e   :  { %v16612_v49 = vpack.c.bf16 %v3165_v29, %v3164_v58  ;;  %v3163_v57 = vadd.f32 %v22823_v47, %v3145_v23  ;;  %v2070_v37 = vadd.f32 %v26590_v30, %v22787_v42  ;;  %v26592_v56 = vld [vmem:[#allocation69_spill] sm:$0xff]  ;;  %18418 = vmatprep.subr.bf16.mxu1 %v19653_v26  ;;  %v6033_v41 = vshll.u32 %v22722_v8, 16  ;;  %18444 = vmatprep.subr.bf16.mxu0 %v19654_v62  ;;  %v19658_v42 = vld [vmem:[%s26336_s4 + $0x160] sm:$0xff]   ;;  %v26595_v16 = vld [vmem:[#allocation43_spill] sm:$0xff] }
 0x25f   :  { %v2761_v33 = vadd.f32 %v26592_v56, %v2499_v10  ;;  %v2942_v40 = vadd.f32 %v26593_v27, %v2760_v55  ;;  %v2945_v36 = vadd.f32 %v22652_v2, %v2763_v11  ;;  %v3150_v12 = vadd.f32 %v18042_v25, %v2944_v17  ;;  %v26594_v8 = vld [vmem:[#allocation41_spill] sm:$0xff]  ;;  %v26596_v58 = vld [vmem:[#allocation42_spill] sm:$0xff]  ;;  %v18043_v10 = vpop.f32.mrf.mxu1  ;;  %v22878_v11 = vpop.f32.mrf.mxu0  ;;  %18405 = vmatmul.mubr.bf16.gmra.mxu0 %v22714_v15  ;;  %v26599_v25 = vld [vmem:[#allocation47_spill] sm:$0xff] }
 0x260   :  { %16892 = vst [vmem:[#allocation3 + $0x8] sm:$0xff] %v16612_v49   ;;  %v16607_v59 = vpack.c.bf16 %v3163_v57, %v3162_v18  ;;  %v2239_v48 = vadd.f32 %v26594_v8, %v22797_v44  ;;  %v2242_v2 = vadd.f32 %v26595_v16, %v22800_v7  ;;  %v2504_v29 = vadd.f32 %v26596_v58, %v2241_v52  ;;  %v26597_v23 = vld [vmem:[#allocation45_spill] sm:$0xff]  ;;  %v26598_v44 = vld [vmem:[#allocation44_spill] sm:$0xff]  ;;  %v19661_v57 = vld [vmem:[%s26336_s4 + $0x110] sm:$0xff]  }
 0x261   :  { %v2240_v22 = vadd.f32 %v26597_v23, %v2070_v37  ;;  %v2943_v38 = vadd.f32 %v22657_v1, %v2761_v33  ;;  %v3148_v55 = vadd.f32 %v3113_v14, %v2942_v40  ;;  %v3151_v35 = vadd.f32 %v18043_v10, %v2945_v36  ;;  %18419 = vmatpush3.bf16.msra.mxu1 %v19653_v26  ;;  %v3116_v49 = vpop.f32.mrf.mxu1  ;;  %v19666_v61 = vld [vmem:[%s26336_s4 + $0x150] sm:$0xff]   ;;  %v19672_v8 = vld [vmem:[#allocation2 + $0x80] sm:$0xff]   ;;  %v19668_v58 = vld [vmem:[%s26336_s4 + $0x148] sm:$0xff]  }
 0x262   :  { %16608 = vst [vmem:[#allocation3] sm:$0xff] %v16607_v59   ;;  %v6032_v39 = vrot.slane %v6030_v32, 3  ;;  %v2502_v17 = vadd.f32 %v26598_v44, %v2239_v48  ;;  %v2505_v7 = vadd.f32 %v26599_v25, %v2242_v2  ;;  %v2766_v18 = vadd.f32 %v22655_v4, %v2504_v29  ;;  %18408 = vmatprep.mubr.bf16.mxu0 %v22718_v46  ;;  %v22890_v32 = vpop.f32.mrf.mxu0  ;;  %v19662_v4 = vld [vmem:[%s26336_s4 + $0x158] sm:$0xff]   ;;  %v26600_v46 = vld [vmem:[#allocation52_spill] sm:$0xff]  ;;  %v22948_v44 = vld [vmem:[#allocation2 + $0x88] sm:$0xff]  }
 0x263   :  { %18445 = vmatpush3.bf16.msra.mxu0 %v19654_v62  ;;  %v6035_v1 = vrot.slane %v6033_v41, 4  ;;  %v3168_v30 = vadd.f32 %v22823_v47, %v3150_v12  ;;  %v3169_v15 = vadd.f32 %v22823_v47, %v3151_v35  ;;  %v3149_v26 = vadd.f32 %v3116_v49, %v2943_v38  ;;  %18420 = vmatprep.subr.bf16.mxu1 %v19657_v34  ;;  %v18046_v56 = vpop.f32.mrf.mxu1  ;;  %v19667_v16 = vld [vmem:[%s26336_s4 + $0x100] sm:$0xff]   ;;  %v19670_v38 = vld [vmem:[%s26336_s4 + $0x1b8] sm:$0xff]   ;;  %v26601_v25 = vld [vmem:[#allocation53_spill] sm:$0xff] }
 0x264   :  { %18446 = vmatprep.subr.bf16.mxu0 %v19658_v42  ;;  %v2503_v62 = vadd.f32 %v26600_v46, %v2240_v22  ;;  %v2764_v37 = vadd.f32 %v22684_v54, %v2502_v17  ;;  %v2767_v24 = vadd.f32 %v22737_v43, %v2505_v7  ;;  %v2948_v52 = vadd.f32 %v22700_v13, %v2766_v18  ;;  %v22902_v27 = vpop.f32.mrf.mxu0  ;;  %v22950_v17 = vld [vmem:[#allocation2 + $0x90] sm:$0xff]  }
 0x265   :  { %18381 = vmatmul.mubr.bf16.gmra.mxu1 %v22728_v0  ;;  %v3166_v33 = vadd.f32 %v22823_v47, %v3148_v55  ;;  %v16622_v14 = vpack.c.bf16 %v3169_v15, %v3168_v30  ;;  %v3167_v41 = vadd.f32 %v22823_v47, %v3149_v26  ;;  %v3129_v43 = vpop.f32.mrf.mxu1  ;;  %v6036_v13 = vor.u32 %v6035_v1, %v6032_v39  ;;  %v19669_v39 = vld [vmem:[%s26336_s4 + $0x140] sm:$0xff]   ;;  %v26602_v7 = vld [vmem:[#allocation46_spill] sm:$0xff]  ;;  %v6615_v1 = vld [vmem:[#allocation2 + $0x78] sm:$0xf] }
 0x266   :  { %18421 = vmatpush3.bf16.msra.mxu1 %v19657_v34  ;;  %18428 = vmatprep.mubr.bf16.mxu1 %v15336_v19  ;;  %v2765_v54 = vadd.f32 %v22767_v53, %v2503_v62  ;;  %v22910_v0 = vrot.slane %v6424_v51, 1  ;;  %v2946_v40 = vadd.f32 %v22748_v28, %v2764_v37  ;;  %v2949_v36 = vadd.f32 %v22776_v20, %v2767_v24  ;;  %v22914_v34 = vpop.f32.mrf.mxu0  ;;  %v19673_v49 = vld [vmem:[%s26336_s4 + $0x1b0] sm:$0xff]   ;;  %v26604_v15 = vld [vmem:[#allocation49_spill] sm:$0xff]  ;;  %v22965_v37 = vld [vmem:[#allocation2 + $0x7c] sm:$0xf] }
 0x267   :  { %18447 = vmatpush3.bf16.msra.mxu0 %v19658_v42  ;;  %18422 = vmatprep.subr.bf16.mxu1 %v19661_v57  ;;  %16894 = vst [vmem:[#allocation3 + $0x18] sm:$0xff] %v16622_v14   ;;  %v16617_v59 = vpack.c.bf16 %v3167_v41, %v3166_v33  ;;  %v3154_v12 = vadd.f32 %v18046_v56, %v2948_v52  ;;  %v18047_v19 = vpop.f32.mrf.mxu1  ;;  %v6432_v10 = vshll.u32 %v19672_v8, 16  ;;  %v26603_v30 = vld [vmem:[#allocation50_spill] sm:$0xff]  ;;  %v6436_v46 = vshrl.u32 %v19672_v8, 16  ;;  %v19681_v8 = vld [vmem:[%s26336_s4 + $0x1a0] sm:$0xff]  }
 0x268   :  { %18448 = vmatprep.subr.bf16.mxu0 %v19662_v4  ;;  %v6037_v28 = vsel %vm1616_vm3, %v22675_v6, %v6036_v13  ;;  %v6427_v53 = vsel %vm2306_vm4, %v22730_v60, %v22910_v0  ;;  %v2947_v20 = vadd.f32 %v22806_v50, %v2765_v54  ;;  %v3152_v51 = vadd.f32 %v3129_v43, %v2946_v40  ;;  %v22933_v60 = vpop.f32.mrf.mxu0 }
 0x269   :  { %16893 = vst [vmem:[#allocation3 + $0x10] sm:$0xff] %v16617_v59   ;;  %v3155_v42 = vadd.f32 %v18047_v19, %v2949_v36  ;;  %18409 = vmatmul.mubr.bf16.gmra.mxu0 %v6037_v28  ;;  %v3132_v48 = vpop.f32.mrf.mxu1  ;;  %v3172_v6 = vadd.f32 %v22823_v47, %v3154_v12  ;;  %v15337_v18 = vcombine.low %v26602_v7, %v26601_v25  ;;  %v6440_v62 = vshll.u32 %v22948_v44, 16  ;;  %v22983_v36 = vld [vmem:[#allocation2 + $0x98] sm:$0xff]  }
 0x26a   :  { %18423 = vmatpush3.bf16.msra.mxu1 %v19661_v57  ;;  %18456 = vmatprep.mubr.bf16.mxu0 %v6427_v53  ;;  %v3153_v50 = vadd.f32 %v3132_v48, %v2947_v20  ;;  %v3170_v29 = vadd.f32 %v22823_v47, %v3152_v51  ;;  %v22943_v35 = vpop.f32.mrf.mxu0  ;;  %v15338_v26 = vcombine.low %v26604_v15, %v26603_v30  ;;  %v6428_v24 = vshrl.u32 %v22814_v63, 16  ;;  %v26605_v20 = vld [vmem:[#allocation60_spill] sm:$0xff]  ;;  %v26606_v51 = vld [vmem:[#allocation54_spill] sm:$0xff] }
 0x26b   :  { %18449 = vmatpush3.bf16.msra.mxu0 %v19662_v4  ;;  %v3173_v2 = vadd.f32 %v22823_v47, %v3155_v42  ;;  %18424 = vmatprep.subr.bf16.mxu1 %v19665_v5  ;;  %v19674_v4 = vld [vmem:[%s26336_s4 + $0x1f8] sm:$0xff]   ;;  %v6448_v14 = vshll.u32 %v22950_v17, 16  ;;  %v22972_v43 = vcombine.low %v6615_v1, %v22965_v37  ;;  %v6442_v40 = vrot.slane %v6440_v62, 1  ;;  %v19686_v15 = vld [vmem:[%s26336_s4 + $0x1e0] sm:$0xff]  }
 0x26c   :  { %18450 = vmatprep.subr.bf16.mxu0 %v19666_v61  ;;  %v3171_v22 = vadd.f32 %v22823_v47, %v3153_v50  ;;  %v6434_v47 = vrot.slane %v6432_v10, 1  ;;  %v22957_v57 = vpop.f32.mrf.mxu0  ;;  %v6430_v41 = vor.u32 %v6428_v24, %v22910_v0  ;;  %v19678_v0 = vld [vmem:[%s26336_s4 + $0x1f0] sm:$0xff]   ;;  %v15339_v42 = vcombine.low %v26606_v51, %v26605_v20  ;;  %v6876_v24 = vld [vmem:[#allocation2 + $0x78] sm:$0xe] }
 0x26d   :  { %v16632_v23 = vpack.c.bf16 %v3173_v2, %v3172_v6  ;;  %v6450_v19 = vrot.slane %v6448_v14, 1  ;;  %v6680_v48 = vshll.u32 %v22972_v43, 16  ;;  %v26607_v6 = vld [vmem:[#allocation58_spill] sm:$0xff]  ;;  %v26608_v2 = vld [vmem:[#allocation56_spill] sm:$0xff] }
 0x26e   :  { %18425 = vmatpush3.bf16.msra.mxu1 %v19665_v5  ;;  %v16627_v55 = vpack.c.bf16 %v3171_v22, %v3170_v29  ;;  %v6438_v33 = vor.u32 %v6436_v46, %v6434_v47  ;;  %v22974_v13 = vpop.f32.mrf.mxu0  ;;  %v6435_v12 = vsel %vm2306_vm4, %v6430_v41, %v6434_v47  ;;  %v22988_v5 = vld [vmem:[#allocation2 + $0x80] sm:$0xff]   ;;  %v15340_v50 = vcombine.low %v26608_v2, %v26607_v6  ;;  %v26609_v41 = vld [vmem:[#allocation62_spill] sm:$0xff] }
 0x26f   :  { %18451 = vmatpush3.bf16.msra.mxu0 %v19666_v61  ;;  %18426 = vmatprep.subr.bf16.mxu1 %v19667_v16  ;;  %16896 = vst [vmem:[#allocation3 + $0x28] sm:$0xff] %v16632_v23   ;;  %v6452_v29 = vshrl.u32 %v22950_v17, 16  ;;  %v6456_v23 = vshll.u32 %v22983_v36, 16  ;;  %v6678_v46 = vshrl.u32 %v22972_v43, 16  ;;  %v19694_v2 = vld [vmem:[%s26336_s4 + $0x1d0] sm:$0xff]  }
 0x270   :  { %18452 = vmatprep.subr.bf16.mxu0 %v19668_v58  ;;  %16895 = vst [vmem:[#allocation3 + $0x20] sm:$0xff] %v16627_v55   ;;  %v18094_v52 = vpop.f32.mrf.mxu1  ;;  %v6685_v55 = vshll.u32 %v22988_v5, 16 }
 0x271   :  { %v3623_v56 = vadd.f32 %v18094_v52, %v22826_v21  ;;  %v19677_v21 = vld [vmem:[%s26336_s4 + $0x1a8] sm:$0xff]   ;;  %v6454_v7 = vor.u32 %v6452_v29, %v6450_v19 }
 0x272   :  { %18427 = vmatpush3.bf16.msra.mxu1 %v19667_v16  ;;  %v3614_v54 = vpop.f32.mrf.mxu1 }
 0x273   :  { %18453 = vmatpush3.bf16.msra.mxu0 %v19668_v58  ;;  %18468 = vmatprep.subr.bf16.mxu1 %v19670_v38  ;;  %v3615_v63 = vadd.f32 %v3614_v54, %v22838_v9  ;;  %v6443_v9 = vsel %vm2306_vm4, %v6438_v33, %v6442_v40  ;;  %v19682_v58 = vld [vmem:[%s26336_s4 + $0x1e8] sm:$0xff]   ;;  %v15341_v54 = vcombine.low %v26609_v41, %v22682_v31  ;;  %v23114_v41 = vld [vmem:[#allocation2 + $0xa0] sm:$0xff]  }
 0x274   :  { %18454 = vmatprep.subr.bf16.mxu0 %v19669_v39  ;;  %v22985_v59 = vpop.f32.mrf.mxu1 }
 0x275   :  { %18429 = vmatmul.mubr.bf16.vlgmr.msra.gmra.mxu1 %v15337_v18  ;;  %v18122_v61 = vpop.f32.mrf.mxu0 }
 0x276   :  { %18432 = vmatprep.mubr.bf16.mxu1 %v15338_v26  ;;  %18469 = vmatpush3.bf16.msra.mxu1 %v19670_v38  ;;  %v22991_v28 = vadd.f32 %v18122_v61, %v3623_v56  ;;  %v22993_v53 = vpop.f32.mrf.mxu1  ;;  %v6444_v38 = vshrl.u32 %v22948_v44, 16  ;;  %v6458_v44 = vrot.slane %v6456_v23, 1 }
 0x277   :  { %18455 = vmatpush3.bf16.msra.mxu0 %v19669_v39  ;;  %18470 = vmatprep.subr.bf16.mxu1 %v19673_v49  ;;  %v3806_v16 = vpop.f32.mrf.mxu0  ;;  %v19689_v39 = vld [vmem:[#allocation2 + $0xa0] ss:$0 sps:$4 sm:$0x11]  }
 0x278   :  { %18496 = vmatprep.subr.bf16.mxu0 %v19674_v4  ;;  %v23008_v22 = vadd.f32 %v3806_v16, %v3615_v63  ;;  %v18098_v10 = vpop.f32.mrf.mxu1  ;;  %v6446_v18 = vor.u32 %v6444_v38, %v6442_v40  ;;  %v6464_v62 = vshll.u32 %v19689_v39, 16  ;;  %v6459_v56 = vsel %vm2306_vm4, %v6454_v7, %v6458_v44  ;;  %v19690_v40 = vld [vmem:[%s26336_s4 + $0x190] sm:$0xff]  }
 0x279   :  { %v3639_v47 = vadd.f32 %v18098_v10, %v22878_v11  ;;  %v23013_v25 = vpop.f32.mrf.mxu0  ;;  %v19685_v11 = vld [vmem:[%s26336_s4 + $0x198] sm:$0xff]   ;;  %v6460_v63 = vshrl.u32 %v22983_v36, 16  ;;  %v19695_v10 = vld [vmem:[%s26336_s4 + $0x180] sm:$0xff]  }
 0x27a   :  { %18457 = vmatmul.mubr.bf16.vlgmr.msra.gmra.mxu0 %v6435_v12  ;;  %18471 = vmatpush3.bf16.msra.mxu1 %v19673_v49  ;;  %v3630_v17 = vpop.f32.mrf.mxu1  ;;  %v6682_v49 = vrot.slane %v6680_v48, 1  ;;  %v23047_v12 = vcombine.low %v6876_v24, %v22965_v37 }
 0x27b   :  { %18460 = vmatprep.mubr.bf16.mxu0 %v6443_v9  ;;  %18497 = vmatpush3.bf16.msra.mxu0 %v19674_v4  ;;  %v3631_v1 = vadd.f32 %v3630_v17, %v22890_v32  ;;  %v23016_v30 = vpop.f32.mrf.mxu0  ;;  %v6451_v4 = vsel %vm2306_vm4, %v6446_v18, %v6450_v19  ;;  %v23030_v32 = vrot.slane %v6685_v55, 1  ;;  %v6462_v9 = vor.u32 %v6460_v63, %v6458_v44  ;;  %v23087_v18 = vld [vmem:[#allocation2 + $0x98] sm:$0xff]  }
 0x27c   :  { %18472 = vmatprep.subr.bf16.mxu1 %v19677_v21  ;;  %18498 = vmatprep.subr.bf16.mxu0 %v19678_v0  ;;  %v23024_v26 = vpop.f32.mrf.mxu1  ;;  %v6683_v43 = vor.u32 %v6682_v49, %v6678_v46  ;;  %v6466_v19 = vrot.slane %v6464_v62, 1  ;;  %v6896_v6 = vrot.slane %v23047_v12, 1  ;;  %v6689_v49 = vshrl.u32 %v22988_v5, 16 }
 0x27d   :  { %18433 = vmatmul.mubr.bf16.gmra.mxu1 %v15339_v42  ;;  %v18126_v52 = vpop.f32.mrf.mxu0  ;;  %v6897_v42 = vrot.slane %v22988_v5, 1  ;;  %v26370_v24 = vshll.u32 %v23087_v18, 16  ;;  %v19707_v5 = vld [vmem:[%s26336_s4 + $0x218] sm:$0xff]  }
 0x27e   :  { %18436 = vmatprep.mubr.bf16.mxu1 %v15340_v50  ;;  %18473 = vmatpush3.bf16.msra.mxu1 %v19677_v21  ;;  %v23033_v33 = vadd.f32 %v18126_v52, %v3639_v47  ;;  %v23035_v14 = vpop.f32.mrf.mxu1  ;;  %v6688_v36 = vsel %vm2306_vm4, %v6683_v43, %v23030_v32  ;;  %v6467_v50 = vsel %vm2306_vm4, %v6462_v9, %v6466_v19  ;;  %v19696_v47 = vld [vmem:[%s26336_s4 + $0x1c8] sm:$0xff]  }
 0x27f   :  { %18499 = vmatpush3.bf16.msra.mxu0 %v19678_v0  ;;  %18474 = vmatprep.subr.bf16.mxu1 %v19681_v8  ;;  %v3822_v21 = vpop.f32.mrf.mxu0  ;;  %v19691_v0 = vld [vmem:[%s26336_s4 + $0x1d8] sm:$0xff]  }
 0x280   :  { %18500 = vmatprep.subr.bf16.mxu0 %v19682_v58  ;;  %v23049_v61 = vadd.f32 %v3822_v21, %v3631_v1  ;;  %v18102_v31 = vpop.f32.mrf.mxu1  ;;  %v6711_v21 = vrot.slane %v26370_v24, 1 }
 0x281   :  { %v3655_v20 = vadd.f32 %v18102_v31, %v22933_v60  ;;  %v23054_v51 = vpop.f32.mrf.mxu0  ;;  %v19693_v60 = vld [vmem:[%s26336_s4 + $0x188] sm:$0xff]  }
 0x282   :  { %18461 = vmatmul.mubr.bf16.gmra.mxu0 %v6451_v4  ;;  %18475 = vmatpush3.bf16.msra.mxu1 %v19681_v8  ;;  %v3646_v37 = vpop.f32.mrf.mxu1  ;;  %v23057_v8 = vld [vmem:[#allocation2 + $0x88] sm:$0xff]   ;;  %v19698_v4 = vld [vmem:[%s26336_s4 + $0x1c0] sm:$0xff]  }
 0x283   :  { %18464 = vmatprep.mubr.bf16.mxu0 %v6459_v56  ;;  %18501 = vmatpush3.bf16.msra.mxu0 %v19682_v58  ;;  %v3647_v48 = vadd.f32 %v3646_v37, %v22943_v35  ;;  %v23060_v16 = vpop.f32.mrf.mxu0  ;;  %v23070_v58 = vld [vmem:[#allocation2 + $0x90] sm:$0xff]   ;;  %v6898_v35 = vsel %vm2789_vm5, %v6896_v6, %v6897_v42  ;;  %v26373_v38 = vshll.u32 %v23057_v8, 16  ;;  %v6697_v46 = vshrl.u32 %v23057_v8, 16  ;;  %v23138_v6 = vld [vmem:[%s26335_s3 + $0x8] sm:$0xff]  }
 0x284   :  { %18476 = vmatprep.subr.bf16.mxu1 %v19685_v11  ;;  %18502 = vmatprep.subr.bf16.mxu0 %v19686_v15  ;;  %v6701_v17 = vshll.u32 %v23070_v58, 16  ;;  %v23090_v1 = vpop.f32.mrf.mxu1  ;;  %v19701_v56 = vld [vmem:[%s26336_s4 + $0x230] sm:$0xff]   ;;  %v6705_v31 = vshrl.u32 %v23070_v58, 16  ;;  %v6899_v19 = vrot.slane %v23057_v8, 1  ;;  %v26369_v37 = vshll.u32 %v23114_v41, 16 }
 0x285   :  { %18437 = vmatmul.mubr.bf16.gmra.mxu1 %v15341_v54  ;;  %v18130_v29 = vpop.f32.mrf.mxu0  ;;  %v6695_v44 = vrot.slane %v26373_v38, 1 }
 0x286   :  { %18477 = vmatpush3.bf16.msra.mxu1 %v19685_v11  ;;  %18484 = vmatprep.mubr.bf16.mxu1 %v6688_v36  ;;  %v23075_v23 = vadd.f32 %v18130_v29, %v3655_v20  ;;  %v19699_v11 = vld [vmem:[%s26336_s4 + $0x238] sm:$0xff]   ;;  %v6703_v62 = vrot.slane %v6701_v17, 1  ;;  %v23107_v52 = vpop.f32.mrf.mxu1  ;;  %v23126_v36 = vld [vmem:[#allocation2 + $0xa8] ss:$0 sps:$4 sm:$0x11]   ;;  %v26372_v20 = vshrl.u32 %v23087_v18, 16  ;;  %v6900_v29 = vsel %vm2789_vm5, %v6897_v42, %v6899_v19 }
 0x287   :  { %18503 = vmatpush3.bf16.msra.mxu0 %v19686_v15  ;;  %18478 = vmatprep.subr.bf16.mxu1 %v19690_v40  ;;  %v3838_v39 = vpop.f32.mrf.mxu0  ;;  %v6691_v15 = vor.u32 %v6689_v49, %v23030_v32  ;;  %v6699_v32 = vor.u32 %v6697_v46, %v6695_v44  ;;  %v19705_v42 = vld [vmem:[%s26336_s4 + $0x220] sm:$0xff]   ;;  %v6907_v38 = vrot.slane %v23126_v36, 1 }
 0x288   :  { %18504 = vmatprep.subr.bf16.mxu0 %v19691_v0  ;;  %v23084_v7 = vadd.f32 %v3838_v39, %v3647_v48 }
 0x289   :  { %v23116_v54 = vpop.f32.mrf.mxu0  ;;  %v6696_v43 = vsel %vm2306_vm4, %v6691_v15, %v6695_v44  ;;  %v6725_v44 = vshll.u32 %v23126_v36, 16  ;;  %v7077_v15 = vshrl.u32 %v23047_v12, 16  ;;  %v19709_v36 = vld [vmem:[%s26336_s4 + $0x208] sm:$0xff]  }
 0x28a   :  { %18465 = vmatmul.mubr.bf16.gmra.mxu0 %v6467_v50  ;;  %18479 = vmatpush3.bf16.msra.mxu1 %v19690_v40  ;;  %26610 = vst [vmem:[#allocation8_spill] sm:$0xff] %v23084_v7  ;;  %v6704_v40 = vsel %vm2306_vm4, %v6699_v32, %v6703_v62 }
 0x28b   :  { %18505 = vmatpush3.bf16.msra.mxu0 %v19691_v0  ;;  %18512 = vmatprep.mubr.bf16.mxu0 %v6898_v35  ;;  %v6901_v0 = vrot.slane %v23070_v58, 1  ;;  %v23133_v48 = vpop.f32.mrf.mxu0  ;;  %v6715_v35 = vor.u32 %v26372_v20, %v6711_v21 }
 0x28c   :  { %18480 = vmatprep.subr.bf16.mxu1 %v19693_v60  ;;  %18506 = vmatprep.subr.bf16.mxu0 %v19694_v2 }
 0x28e   :  { %18481 = vmatpush3.bf16.msra.mxu1 %v19693_v60  ;;  %v6707_v60 = vor.u32 %v6705_v31, %v6703_v62 }
 0x28f   :  { %18507 = vmatpush3.bf16.msra.mxu0 %v19694_v2  ;;  %18482 = vmatprep.subr.bf16.mxu1 %v19695_v10  ;;  %v19703_v2 = vld [vmem:[%s26336_s4 + $0x228] sm:$0xff]  }
 0x290   :  { %18508 = vmatprep.subr.bf16.mxu0 %v19696_v47  ;;  %v23119_v63 = vpop.f32.mrf.mxu1  ;;  %v6712_v32 = vsel %vm2306_vm4, %v6707_v60, %v6711_v21  ;;  %v7085_v21 = vrot.slane %v6685_v55, 2  ;;  %v7079_v55 = vrot.slane %v7077_v15, 1 }
 0x292   :  { %18483 = vmatpush3.bf16.msra.mxu1 %v19695_v10  ;;  %v23128_v9 = vpop.f32.mrf.mxu1  ;;  %v6719_v10 = vrot.slane %v26369_v37, 1 }
 0x293   :  { %18509 = vmatpush3.bf16.msra.mxu0 %v19696_v47  ;;  %18524 = vmatprep.subr.bf16.mxu1 %v19699_v11  ;;  %v6902_v47 = vsel %vm2789_vm5, %v6899_v19, %v6901_v0 }
 0x294   :  { %18510 = vmatprep.subr.bf16.mxu0 %v19698_v4  ;;  %v23146_v50 = vpop.f32.mrf.mxu1  ;;  %v6720_v19 = vsel %vm2306_vm4, %v6715_v35, %v6719_v10 }
 0x295   :  { %18485 = vmatmul.mubr.bf16.vlgmr.msra.gmra.mxu1 %v6696_v43  ;;  %v23155_v39 = vpop.f32.mrf.mxu0  ;;  %v23174_v43 = vld [vmem:[%s26335_s3] sm:$0xff]  }
 0x296   :  { %18488 = vmatprep.mubr.bf16.mxu1 %v6704_v40  ;;  %18525 = vmatpush3.bf16.msra.mxu1 %v19699_v11  ;;  %v23160_v11 = vpop.f32.mrf.mxu1 }
 0x297   :  { %18511 = vmatpush3.bf16.msra.mxu0 %v19698_v4  ;;  %18526 = vmatprep.subr.bf16.mxu1 %v19701_v56  ;;  %v7080_v4 = vshll.u32 %v23047_v12, 16  ;;  %v23167_v62 = vpop.f32.mrf.mxu0  ;;  %v7084_v12 = vrot.slane %v6689_v49, 1 }
 0x298   :  { %18552 = vmatprep.subr.bf16.mxu0 %v23138_v6  ;;  %v23177_v40 = vpop.f32.mrf.mxu1 }
 0x299   :  { %v23184_v60 = vpop.f32.mrf.mxu0  ;;  %v7082_v49 = vrot.slane %v7080_v4, 2 }
 0x29a   :  { %18513 = vmatmul.mubr.bf16.vlgmr.msra.gmra.mxu0 %v6900_v29  ;;  %18527 = vmatpush3.bf16.msra.mxu1 %v19701_v56  ;;  %v26371_v56 = vshrl.u32 %v23114_v41, 16  ;;  %v6903_v29 = vrot.slane %v23087_v18, 1  ;;  %v23190_v24 = vpop.f32.mrf.mxu1 }
 0x29b   :  { %18516 = vmatprep.mubr.bf16.mxu0 %v6902_v47  ;;  %18553 = vmatpush3.bf16.msra.mxu0 %v23138_v6  ;;  %v6905_v47 = vrot.slane %v23114_v41, 1  ;;  %v7083_v20 = vor.u32 %v7082_v49, %v7079_v55  ;;  %v7093_v55 = vrot.slane %v6701_v17, 2  ;;  %v7088_v49 = vrot.slane %v6697_v46, 1 }
 0x29c   :  { %18528 = vmatprep.subr.bf16.mxu1 %v19703_v2  ;;  %18554 = vmatprep.subr.bf16.mxu0 %v23174_v43  ;;  %v6723_v37 = vor.u32 %v26371_v56, %v6719_v10  ;;  %v23199_v35 = vpop.f32.mrf.mxu1  ;;  %v6904_v10 = vsel %vm2789_vm5, %v6901_v0, %v6903_v29  ;;  %v19708_v0 = vld [vmem:[%s26336_s4 + $0x210] sm:$0xff]  }
 0x29d   :  { %18489 = vmatmul.mubr.bf16.gmra.mxu1 %v6712_v32  ;;  %v6727_v32 = vrot.slane %v6725_v44, 1  ;;  %v7086_v44 = vor.u32 %v7085_v21, %v7084_v12  ;;  %v6906_v56 = vsel %vm2789_vm5, %v6903_v29, %v6905_v47 }
 0x29e   :  { %18492 = vmatprep.mubr.bf16.mxu1 %v6720_v19  ;;  %18529 = vmatpush3.bf16.msra.mxu1 %v19703_v2  ;;  %v23196_v2 = vpop.f32.mrf.mxu0  ;;  %v23206_v4 = vpop.f32.mrf.mxu1 }
 0x29f   :  { %18530 = vmatprep.subr.bf16.mxu1 %v19705_v42  ;;  %18555 = vmatpush3.bf16.msra.mxu0 %v23174_v43  ;;  %v6728_v15 = vsel %vm2306_vm4, %v6723_v37, %v6727_v32  ;;  %v7087_v21 = vsel %vm2971_vm6, %v7083_v20, %v7086_v44 }
 0x2a0   :  { %18584 = vmatprep.subr.bf16.mxu0 %v23138_v6  ;;  %v23202_v19 = vpop.f32.mrf.mxu0  ;;  %v23217_v37 = vpop.f32.mrf.mxu1 }
 0x2a2   :  { %18517 = vmatmul.mubr.bf16.gmra.mxu0 %v6904_v10  ;;  %18531 = vmatpush3.bf16.msra.mxu1 %v19705_v42  ;;  %v23212_v12 = vpop.f32.mrf.mxu0  ;;  %v6908_v42 = vsel %vm2789_vm5, %v6905_v47, %v6907_v38  ;;  %v23228_v20 = vpop.f32.mrf.mxu1  ;;  %v19711_v38 = vld [vmem:[%s26336_s4 + $0x200] sm:$0xff]   ;;  %v26613_v10 = vshll.u32 %v23057_v8, 16  ;;  %v19717_v8 = vld [vmem:[#allocation2 + $0xa8] ss:$0 sps:$4 sm:$0x33]  }
 0x2a3   :  { %18520 = vmatprep.mubr.bf16.mxu0 %v6906_v56  ;;  %18532 = vmatprep.subr.bf16.mxu1 %v19707_v5  ;;  %v19710_v56 = vld [vmem:[%s26332_s0 + $0x90] sm:$0xff]   ;;  %26611 = vst [vmem:[#allocation11_spill] sm:$0xff] %v23228_v20 }
 0x2a4   :  { %v23215_v29 = vpop.f32.mrf.mxu0 }
 0x2a5   :  { %18493 = vmatmul.mubr.bf16.gmra.mxu1 %v6728_v15  ;;  %v7089_v15 = vrot.slane %v26613_v10, 2  ;;  %v26618_v10 = vshrl.u32 %v23087_v18, 16 }
 0x2a6   :  { %18533 = vmatpush3.bf16.msra.mxu1 %v19707_v5  ;;  %18540 = vmatprep.mubr.bf16.mxu1 %v7087_v21  ;;  %v23226_v32 = vpop.f32.mrf.mxu0  ;;  %v7092_v5 = vrot.slane %v6705_v31, 1  ;;  %v23247_v21 = vpop.f32.mrf.mxu1  ;;  %v19713_v31 = vld [vmem:[%s26332_s0 + $0xa0] sm:$0xff]  }
 0x2a7   :  { %18534 = vmatprep.subr.bf16.mxu1 %v19708_v0  ;;  %26614 = vst [vmem:[#allocation9_spill] sm:$0xff] %v23247_v21 }
 0x2a8   :  { %v23234_v47 = vpop.f32.mrf.mxu0  ;;  %v7094_v17 = vor.u32 %v7093_v55, %v7092_v5  ;;  %v23255_v46 = vpop.f32.mrf.mxu1  ;;  %v26619_v55 = vshll.u32 %v23087_v18, 16  ;;  %v19715_v18 = vld [vmem:[%s26332_s0 + $0xb0] sm:$0xff]  }
 0x2a9   :  { %26612 = vst [vmem:[#allocation12_spill] sm:$0xff] %v23234_v47  ;;  %26616 = vst [vmem:[#allocation10_spill] sm:$0xff] %v23255_v46  ;;  %v7096_v47 = vrot.slane %v26618_v10, 1  ;;  %v19714_v10 = vld [vmem:[%s26332_s0 + $0xa8] sm:$0xff]  }
 0x2aa   :  { %18521 = vmatmul.mubr.bf16.gmra.mxu0 %v6908_v42  ;;  %18535 = vmatpush3.bf16.msra.mxu1 %v19708_v0  ;;  %v19712_v0 = vld [vmem:[%s26332_s0 + $0x98] sm:$0xff]   ;;  %v23252_v58 = vpop.f32.mrf.mxu0  ;;  %v7090_v42 = vor.u32 %v7089_v15, %v7088_v49  ;;  %v7097_v49 = vrot.slane %v26619_v55, 2  ;;  %v26620_v15 = vshrl.u32 %v23114_v41, 16 }
 0x2ab   :  { %18536 = vmatprep.subr.bf16.mxu1 %v19709_v36  ;;  %18556 = vmatprep.mubr.msk.bf16.mxu0 %vm99_vm0, %v19710_v56  ;;  %26615 = vst [vmem:[#allocation6_spill] sm:$0xff] %v23252_v58  ;;  %v7108_v58 = vshll.u32 %v19717_v8, 16 }
 0x2ac   :  { %v7091_v56 = vsel %vm2971_vm6, %v7086_v44, %v7090_v42  ;;  %v26621_v44 = vshll.u32 %v23114_v41, 16 }
 0x2ae   :  { %18537 = vmatpush3.bf16.msra.mxu1 %v19709_v36  ;;  %v23259_v36 = vpop.f32.mrf.mxu0 }
 0x2af   :  { %18538 = vmatprep.subr.bf16.mxu1 %v19711_v38  ;;  %26617 = vst [vmem:[#allocation14_spill] sm:$0xff] %v23259_v36  ;;  %v7105_v36 = vshrl.u32 %v19717_v8, 16  ;;  %v7110_v8 = vrot.slane %v7108_v58, 2 }
 0x2b0   :  { %v23266_v5 = vpop.f32.mrf.mxu1  ;;  %v23286_v41 = vpop.f32.mrf.mxu0 }
 0x2b1   :  { %26622 = vst [vmem:[#allocation24_spill] sm:$0xff] %v23286_v41 }
 0x2b2   :  { %18557 = vmatmul.mubr.msk.bf16.vlgmr.msra.gmra.mxu0 %vm99_vm0, %v19712_v0  ;;  %18539 = vmatpush3.bf16.msra.mxu1 %v19711_v38  ;;  %v7095_v38 = vsel %vm2971_vm6, %v7090_v42, %v7094_v17  ;;  %v7100_v0 = vrot.slane %v26620_v15, 1 }
 0x2b3   :  { %18560 = vmatprep.mubr.msk.bf16.mxu0 %vm99_vm0, %v19713_v31  ;;  %18585 = vmatpush3.bf16.msra.mxu0 %v23138_v6  ;;  %v7101_v31 = vrot.slane %v26621_v44, 2 }
 0x2b4   :  { %18568 = vmatprep.subr.bf16.mxu1 %v23138_v6  ;;  %18586 = vmatprep.subr.bf16.mxu0 %v23174_v43 }
 0x2b5   :  { %18541 = vmatmul.mubr.bf16.vlgmr.msra.gmra.mxu1 %v7091_v56  ;;  %v23279_v56 = vpop.f32.mrf.mxu1  ;;  %v7102_v55 = vor.u32 %v7101_v31, %v7100_v0  ;;  %v23290_v15 = vpop.f32.mrf.mxu0  ;;  %v19718_v0 = vld [vmem:[%s26332_s0 + $0xf0] sm:$0xff]  }
 0x2b6   :  { %18544 = vmatprep.mubr.bf16.mxu1 %v7095_v38  ;;  %18569 = vmatpush3.bf16.msra.mxu1 %v23138_v6  ;;  %v7098_v38 = vor.u32 %v7097_v49, %v7096_v47  ;;  %v7107_v6 = vrot.slane %v7105_v36, 1 }
 0x2b7   :  { %18587 = vmatpush3.bf16.msra.mxu0 %v23174_v43  ;;  %18570 = vmatprep.subr.bf16.mxu1 %v23174_v43  ;;  %v23288_v42 = vpop.f32.mrf.mxu1  ;;  %v23297_v46 = vpop.f32.mrf.mxu0 }
 0x2b8   :  { %v7099_v41 = vsel %vm2971_vm6, %v7094_v17, %v7098_v38  ;;  %v7103_v47 = vsel %vm2971_vm6, %v7098_v38, %v7102_v55  ;;  %v7111_v58 = vor.u32 %v7110_v8, %v7107_v6 }
 0x2b9   :  { %v23294_v44 = vpop.f32.mrf.mxu1  ;;  %v23303_v49 = vpop.f32.mrf.mxu0 }
 0x2ba   :  { %18561 = vmatmul.mubr.msk.bf16.gmra.mxu0 %vm99_vm0, %v19714_v10  ;;  %18571 = vmatpush3.bf16.msra.mxu1 %v23174_v43  ;;  %v19716_v43 = vld [vmem:[%s26332_s0 + $0xb8] sm:$0xff]  }
 0x2bb   :  { %18564 = vmatprep.mubr.msk.bf16.mxu0 %vm99_vm0, %v19715_v18  ;;  %v23300_v21 = vpop.f32.mrf.mxu1  ;;  %v23313_v17 = vpop.f32.mrf.mxu0  ;;  %v7112_v18 = vsel %vm2971_vm6, %v7102_v55, %v7111_v58 }
 0x2bd   :  { %18545 = vmatmul.mubr.bf16.gmra.mxu1 %v7099_v41  ;;  %v23308_v36 = vpop.f32.mrf.mxu1  ;;  %v23317_v10 = vpop.f32.mrf.mxu0  ;;  %v19720_v41 = vld [vmem:[%s26332_s0 + $0xc0] sm:$0xff]  }
 0x2be   :  { %18548 = vmatprep.mubr.bf16.mxu1 %v7103_v47  ;;  %v19719_v47 = vld [vmem:[%s26332_s0 + $0xf8] sm:$0xff]  }
 0x2bf   :  { %v23315_v31 = vpop.f32.mrf.mxu1  ;;  %v23327_v6 = vpop.f32.mrf.mxu0 }
 0x2c1   :  { %v23324_v38 = vpop.f32.mrf.mxu1  ;;  %v23329_v8 = vpop.f32.mrf.mxu0 }
 0x2c2   :  { %18565 = vmatmul.mubr.msk.bf16.gmra.mxu0 %vm99_vm0, %v19716_v43  ;;  %26623 = vst [vmem:[#allocation26_spill] sm:$0xff] %v23329_v8  ;;  %v19722_v43 = vld [vmem:[%s26332_s0 + $0x100] sm:$0xff]  }
 0x2c3   :  { %18588 = vmatprep.mubr.msk.bf16.mxu0 %vm99_vm0, %v19718_v0  ;;  %v23335_v55 = vpop.f32.mrf.mxu1  ;;  %v23340_v58 = vpop.f32.mrf.mxu0  ;;  %v19721_v0 = vld [vmem:[%s26332_s0 + $0xc8] sm:$0xff]  }
 0x2c4   :  { %26624 = vst [vmem:[#allocation27_spill] sm:$0xff] %v23335_v55  ;;  %26625 = vst [vmem:[#allocation13_spill] sm:$0xff] %v23340_v58  ;;  %v19723_v55 = vld [vmem:[%s26332_s0 + $0x108] sm:$0xff]  }
 0x2c5   :  { %18549 = vmatmul.mubr.bf16.gmra.mxu1 %v7112_v18  ;;  %v19724_v18 = vld [vmem:[%s26332_s0 + $0xd0] sm:$0xff]   ;;  %v23349_v20 = vpop.f32.mrf.mxu1 }
 0x2c6   :  { %18572 = vmatprep.mubr.msk.bf16.mxu1 %vm99_vm0, %v19720_v41  ;;  %26626 = vst [vmem:[#allocation7_spill] sm:$0xff] %v23349_v20  ;;  %v23352_v41 = vpop.f32.mrf.mxu0 }
 0x2c7   :  { %26627 = vst [vmem:[#allocation15_spill] sm:$0xff] %v23352_v41  ;;  %v23359_v58 = vpop.f32.mrf.mxu1  ;;  %v3618_v41 = vadd.f32 %v22993_v53, %v22863_v3 }
 0x2c8   :  { %26628 = vst [vmem:[#allocation28_spill] sm:$0xff] %v23359_v58  ;;  %v23364_v7 = vpop.f32.mrf.mxu0 }
 0x2c9   :  { %26629 = vst [vmem:[#allocation18_spill] sm:$0xff] %v23364_v7  ;;  %v4126_v7 = vadd.f32 %v23119_v63, %v22991_v28  ;;  %v23380_v20 = vpop.f32.mrf.mxu1  ;;  %v19727_v28 = vld [vmem:[%s26332_s0 + $0x118] sm:$0xff]  }
 0x2ca   :  { %18589 = vmatmul.mubr.msk.bf16.vlgmr.msra.gmra.mxu0 %vm99_vm0, %v19719_v47  ;;  %v19726_v47 = vld [vmem:[%s26332_s0 + $0x110] sm:$0xff]  }
 0x2cb   :  { %18592 = vmatprep.mubr.msk.bf16.mxu0 %vm99_vm0, %v19722_v43  ;;  %v3626_v43 = vadd.f32 %v22985_v59, %v22851_v45  ;;  %v23383_v45 = vpop.f32.mrf.mxu0  ;;  %v3854_v59 = vadd.f32 %v23016_v30, %v3618_v41  ;;  %v4295_v3 = vadd.f32 %v23155_v39, %v4126_v7  ;;  %v3642_v7 = vadd.f32 %v23024_v26, %v22902_v27 }
 0x2cd   :  { %18573 = vmatmul.mubr.msk.bf16.vlgmr.msra.gmra.mxu1 %vm99_vm0, %v19721_v0  ;;  %v19725_v0 = vld [vmem:[%s26332_s0 + $0xd8] sm:$0xff]   ;;  %v3856_v58 = vadd.f32 %v23013_v25, %v3626_v43  ;;  %v4125_v25 = vadd.f32 %v23160_v11, %v3854_v59  ;;  %v23403_v39 = vpop.f32.mrf.mxu0  ;;  %v3860_v27 = vadd.f32 %v23054_v51, %v3642_v7  ;;  %v3650_v51 = vadd.f32 %v23107_v52, %v22974_v13 }
 0x2ce   :  { %18576 = vmatprep.mubr.msk.bf16.mxu1 %vm99_vm0, %v19724_v18  ;;  %v19728_v18 = vld [vmem:[%s26332_s0 + $0xe0] sm:$0xff]  }
 0x2cf   :  { %v4127_v8 = vadd.f32 %v23146_v50, %v3856_v58  ;;  %v3634_v50 = vadd.f32 %v23035_v14, %v22914_v34  ;;  %v4294_v58 = vadd.f32 %v23196_v2, %v4125_v25  ;;  %v3658_v34 = vadd.f32 %v23090_v1, %v22957_v57 }
 0x2d0   :  { %v18262_v53 = vpop.f32.mrf.mxu1  ;;  %v4130_v14 = vadd.f32 %v23177_v40, %v23033_v33  ;;  %v4128_v57 = vadd.f32 %v23190_v24, %v23049_v61 }
 0x2d1   :  { %v4296_v63 = vadd.f32 %v23184_v60, %v4127_v8  ;;  %v3858_v26 = vadd.f32 %v23060_v16, %v3634_v50  ;;  %v4131_v16 = vadd.f32 %v23199_v35, %v3860_v27 }
 0x2d2   :  { %18593 = vmatmul.mubr.msk.bf16.gmra.mxu0 %vm99_vm0, %v19723_v55  ;;  %v4124_v55 = vadd.f32 %v23128_v9, %v23008_v22  ;;  %v4556_v22 = vadd.f32 %v23266_v5, %v4295_v3  ;;  %v4948_v9 = vpop.f32.mrf.mxu1  ;;  %v19729_v5 = vld [vmem:[%s26332_s0 + $0xe8] sm:$0xff]   ;;  %v4299_v33 = vadd.f32 %v23202_v19, %v4130_v14  ;;  %v4297_v52 = vadd.f32 %v23212_v12, %v4128_v57 }
 0x2d3   :  { %18596 = vmatprep.mubr.msk.bf16.mxu0 %vm99_vm0, %v19726_v47  ;;  %v4557_v11 = vadd.f32 %v23288_v42, %v4296_v63  ;;  %v4129_v13 = vadd.f32 %v23206_v4, %v3858_v26  ;;  %v4300_v61 = vadd.f32 %v23215_v29, %v4131_v16  ;;  %v23443_v29 = vld [vmem:[%s26337_s5] ss:$0 sm:$0xff] }
 0x2d4   :  { %v4293_v30 = vadd.f32 %v23167_v62, %v4124_v55  ;;  %v4817_v62 = vadd.f32 %v23290_v15, %v4556_v22  ;;  %v18263_v60 = vpop.f32.mrf.mxu1  ;;  %v4560_v35 = vadd.f32 %v23300_v21, %v4299_v33  ;;  %v3862_v55 = vadd.f32 %v23133_v48, %v3650_v51  ;;  %26630 = vst [vmem:[#allocation29_spill] sm:$0xff] %v23443_v29  ;;  %v26639_v51 = vld [vmem:[#allocation14_spill] sm:$0xff]  ;;  %v26640_v33 = vld [vmem:[#allocation27_spill] sm:$0xff] }
 0x2d5   :  { %18577 = vmatmul.mubr.msk.bf16.gmra.mxu1 %vm99_vm0, %v19725_v0  ;;  %v18290_v2 = vpop.f32.mrf.mxu0  ;;  %v4818_v15 = vadd.f32 %v23303_v49, %v4557_v11  ;;  %v3864_v49 = vadd.f32 %v23116_v54, %v3658_v34  ;;  %v4298_v3 = vadd.f32 %v23226_v32, %v4129_v13  ;;  %v4561_v54 = vadd.f32 %v23315_v31, %v4300_v61  ;;  %v26633_v11 = vld [vmem:[#allocation11_spill] sm:$0xff]  ;;  %v26643_v61 = vld [vmem:[#allocation28_spill] sm:$0xff] }
 0x2d6   :  { %18580 = vmatprep.mubr.msk.bf16.mxu1 %vm99_vm0, %v19728_v18  ;;  %v4554_v41 = vadd.f32 %v23279_v56, %v4293_v30  ;;  %v4555_v56 = vadd.f32 %v23294_v44, %v4294_v58  ;;  %v4997_v8 = vadd.f32 %v18262_v53, %v4817_v62  ;;  %v4951_v47 = vpop.f32.mrf.mxu1  ;;  %v4558_v53 = vadd.f32 %v23308_v36, %v4297_v52  ;;  %v26631_v30 = vld [vmem:[#allocation26_spill] sm:$0xff]  ;;  %v26642_v13 = vld [vmem:[#allocation7_spill] sm:$0xff] }
 0x2d7   :  { %v5152_v1 = vpop.f32.mrf.mxu0  ;;  %v4998_v43 = vadd.f32 %v18263_v60, %v4818_v15  ;;  %v4821_v12 = vadd.f32 %v23317_v10, %v4560_v35  ;;  %v4134_v32 = vadd.f32 %v23217_v37, %v23075_v23  ;;  %v4559_v36 = vadd.f32 %v23324_v38, %v4298_v3  ;;  %v26634_v60 = vld [vmem:[#allocation9_spill] sm:$0xff]  ;;  %v26635_v23 = vld [vmem:[#allocation12_spill] sm:$0xff] }
 0x2d8   :  { %v4815_v42 = vadd.f32 %v23297_v46, %v4554_v41  ;;  %v4816_v40 = vadd.f32 %v23313_v17, %v4555_v56  ;;  %v5201_v46 = vadd.f32 %v18290_v2, %v4997_v8  ;;  %v18266_v0 = vpop.f32.mrf.mxu1  ;;  %v4819_v31 = vadd.f32 %v23327_v6, %v4558_v53  ;;  %v26632_v41 = vld [vmem:[#allocation8_spill] sm:$0xff]  ;;  %v26636_v38 = vld [vmem:[#allocation13_spill] sm:$0xff]  ;;  %v26638_v8 = vld [vmem:[#allocation6_spill] sm:$0xff] }
 0x2d9   :  { %v18291_v24 = vpop.f32.mrf.mxu0  ;;  %v4822_v10 = vadd.f32 %v26631_v30, %v4561_v54  ;;  %v4132_v62 = vadd.f32 %v26633_v11, %v26632_v41  ;;  %v4303_v37 = vadd.f32 %v26635_v23, %v4134_v32  ;;  %v4820_v27 = vadd.f32 %v26636_v38, %v4559_v36  ;;  %v26645_v54 = vld [vmem:[#allocation18_spill] sm:$0xff] }
 0x2da   :  { %18597 = vmatmul.mubr.msk.bf16.gmra.mxu0 %vm99_vm0, %v19727_v28  ;;  %v4995_v44 = vadd.f32 %v4948_v9, %v4815_v42  ;;  %v4996_v19 = vadd.f32 %v4951_v47, %v4816_v40  ;;  %v5202_v17 = vadd.f32 %v18291_v24, %v4998_v43  ;;  %v4964_v59 = vpop.f32.mrf.mxu1  ;;  %v5213_v21 = vadd.f32 %v23443_v29, %v5201_v46  ;;  %v26637_v42 = vld [vmem:[#allocation10_spill] sm:$0xff] }
 0x2db   :  { %v5155_v4 = vpop.f32.mrf.mxu0  ;;  %v5001_v9 = vadd.f32 %v18266_v0, %v4821_v12  ;;  %v4999_v26 = vadd.f32 %v4964_v59, %v4819_v31  ;;  %v4133_v15 = vadd.f32 %v26637_v42, %v3862_v55  ;;  %v4301_v47 = vadd.f32 %v26638_v8, %v4132_v62  ;;  %v26641_v0 = vld [vmem:[#allocation24_spill] sm:$0xff] }
 0x2dc   :  { %v5199_v18 = vadd.f32 %v5152_v1, %v4995_v44  ;;  %v5214_v28 = vadd.f32 %v23443_v29, %v5202_v17  ;;  %v5200_v25 = vadd.f32 %v5155_v4, %v4996_v19  ;;  %v18267_v48 = vpop.f32.mrf.mxu1  ;;  %v4564_v1 = vadd.f32 %v26640_v33, %v4303_v37  ;;  %v26644_v19 = vld [vmem:[#allocation15_spill] sm:$0xff] }
 0x2dd   :  { %18581 = vmatmul.mubr.msk.bf16.gmra.mxu1 %vm99_vm0, %v19729_v5  ;;  %v18294_v63 = vpop.f32.mrf.mxu0  ;;  %v4135_v5 = vadd.f32 %v26634_v60, %v3864_v49  ;;  %v5002_v14 = vadd.f32 %v18267_v48, %v4822_v10  ;;  %v4302_v49 = vadd.f32 %v26641_v0, %v4133_v15  ;;  %v4562_v52 = vadd.f32 %v26642_v13, %v4301_v47 }
 0x2de   :  { %v5211_v22 = vadd.f32 %v23443_v29, %v5199_v18  ;;  %v16642_v7 = vpack.c.bf16 %v5214_v28, %v5213_v21  ;;  %v5212_v50 = vadd.f32 %v23443_v29, %v5200_v25  ;;  %v4967_v58 = vpop.f32.mrf.mxu1  ;;  %v5205_v2 = vadd.f32 %v18294_v63, %v5001_v9 }
 0x2df   :  { %v5168_v6 = vpop.f32.mrf.mxu0  ;;  %v4304_v57 = vadd.f32 %v26639_v51, %v4135_v5  ;;  %v5000_v40 = vadd.f32 %v4967_v58, %v4820_v27  ;;  %v4825_v18 = vadd.f32 %v26644_v19, %v4564_v1  ;;  %v4563_v53 = vadd.f32 %v23380_v20, %v4302_v49 }
 0x2e0   :  { %16898 = vst [vmem:[#allocation3 + $0x38] sm:$0xff] %v16642_v7   ;;  %v16637_v34 = vpack.c.bf16 %v5212_v50, %v5211_v22  ;;  %v5203_v44 = vadd.f32 %v5168_v6, %v4999_v26  ;;  %v5217_v17 = vadd.f32 %v23443_v29, %v5205_v2  ;;  %v4823_v4 = vadd.f32 %v26645_v54, %v4562_v52 }
 0x2e1   :  { %v18270_v56 = vpop.f32.mrf.mxu1  ;;  %v18295_v16 = vpop.f32.mrf.mxu0  ;;  %v4565_v24 = vadd.f32 %v26643_v61, %v4304_v57  ;;  %v4824_v36 = vadd.f32 %v23403_v39, %v4563_v53 }
 0x2e2   :  { %16897 = vst [vmem:[#allocation3 + $0x30] sm:$0xff] %v16637_v34   ;;  %v5206_v43 = vadd.f32 %v18295_v16, %v5002_v14  ;;  %v5215_v28 = vadd.f32 %v23443_v29, %v5203_v44  ;;  %v5005_v25 = vadd.f32 %v18270_v56, %v4825_v18 }
 0x2e3   :  { %v4980_v46 = vpop.f32.mrf.mxu1  ;;  %v5171_v35 = vpop.f32.mrf.mxu0  ;;  %v4826_v12 = vadd.f32 %v23383_v45, %v4565_v24 }
 0x2e4   :  { %v5218_v59 = vadd.f32 %v23443_v29, %v5206_v43  ;;  %v5204_v55 = vadd.f32 %v5171_v35, %v5000_v40  ;;  %v5003_v10 = vadd.f32 %v4980_v46, %v4823_v4 }
 0x2e5   :  { %v18271_v3 = vpop.f32.mrf.mxu1  ;;  %v18298_v21 = vpop.f32.mrf.mxu0 }
 0x2e6   :  { %v16652_v48 = vpack.c.bf16 %v5218_v59, %v5217_v17  ;;  %v5216_v32 = vadd.f32 %v23443_v29, %v5204_v55  ;;  %v5006_v22 = vadd.f32 %v18271_v3, %v4826_v12  ;;  %v5209_v20 = vadd.f32 %v18298_v21, %v5005_v25 }
 0x2e7   :  { %v4983_v31 = vpop.f32.mrf.mxu1  ;;  %v5184_v30 = vpop.f32.mrf.mxu0 }
 0x2e8   :  { %16900 = vst [vmem:[#allocation3 + $0x48] sm:$0xff] %v16652_v48   ;;  %v16647_v63 = vpack.c.bf16 %v5216_v32, %v5215_v28  ;;  %v5004_v7 = vadd.f32 %v4983_v31, %v4824_v36  ;;  %v5207_v45 = vadd.f32 %v5184_v30, %v5003_v10  ;;  %v5221_v41 = vadd.f32 %v23443_v29, %v5209_v20 }
 0x2e9   :  { %v18299_v9 = vpop.f32.mrf.mxu0 }
 0x2ea   :  { %16899 = vst [vmem:[#allocation3 + $0x40] sm:$0xff] %v16647_v63   ;;  %v5210_v50 = vadd.f32 %v18299_v9, %v5006_v22  ;;  %v5219_v39 = vadd.f32 %v23443_v29, %v5207_v45 }
 0x2eb   :  { %v5187_v58 = vpop.f32.mrf.mxu0 }
 0x2ec   :  { %v5222_v11 = vadd.f32 %v23443_v29, %v5210_v50  ;;  %v5208_v62 = vadd.f32 %v5187_v58, %v5004_v7 }
 0x2ee   :  { %v16662_v60 = vpack.c.bf16 %v5222_v11, %v5221_v41  ;;  %v5220_v5 = vadd.f32 %v23443_v29, %v5208_v62  ;;  %v19743_v29 = vld [vmem:[%s26336_s4 + $0x40] sm:$0xff]  }
 0x2f0   :  { %16902 = vst [vmem:[#allocation3 + $0x58] sm:$0xff] %v16662_v60   ;;  %v16657_v23 = vpack.c.bf16 %v5220_v5, %v5219_v39 }
 0x2f1   :  { %v18318_v37 = vpop.f32.mrf.mxu1 }
 0x2f2   :  { %16901 = vst [vmem:[#allocation3 + $0x50] sm:$0xff] %v16657_v23  }
 0x2f3   :  { %v5463_v38 = vpop.f32.mrf.mxu1 }
 0x2f5   :  { %v18319_v27 = vpop.f32.mrf.mxu1 }
 0x2f7   :  { %v18346_v6 = vpop.f32.mrf.mxu0  ;;  %v23479_v34 = vpop.f32.mrf.mxu1 }
 0x2f8   :  { %v5672_v26 = vadd.f32 %v18346_v6, %v18318_v37 }
 0x2f9   :  { %v5663_v14 = vpop.f32.mrf.mxu0 }
 0x2fa   :  { %v5664_v2 = vadd.f32 %v5663_v14, %v5463_v38  ;;  %v18322_v56 = vpop.f32.mrf.mxu1 }
 0x2fb   :  { %v18347_v42 = vpop.f32.mrf.mxu0 }
 0x2fc   :  { %v5675_v15 = vadd.f32 %v18347_v42, %v18319_v27  ;;  %v5479_v8 = vpop.f32.mrf.mxu1 }
 0x2fd   :  { %v23481_v47 = vpop.f32.mrf.mxu0 }
 0x2fe   :  { %v18323_v51 = vpop.f32.mrf.mxu1 }
 0x2ff   :  { %v18350_v57 = vpop.f32.mrf.mxu0 }
 0x300   :  { %v5688_v16 = vadd.f32 %v18350_v57, %v18322_v56  ;;  %v23483_v33 = vpop.f32.mrf.mxu1 }
 0x301   :  { %v5679_v1 = vpop.f32.mrf.mxu0 }
 0x302   :  { %v5680_v40 = vadd.f32 %v5679_v1, %v5479_v8  ;;  %v18326_v44 = vpop.f32.mrf.mxu1 }
 0x303   :  { %v18351_v43 = vpop.f32.mrf.mxu0 }
 0x304   :  { %v5691_v46 = vadd.f32 %v18351_v43, %v18323_v51  ;;  %v5495_v49 = vpop.f32.mrf.mxu1 }
 0x305   :  { %v23485_v0 = vpop.f32.mrf.mxu0 }
 0x306   :  { %v18327_v35 = vpop.f32.mrf.mxu1 }
 0x308   :  { %v23487_v17 = vpop.f32.mrf.mxu1 }
 0x30a   :  { %v18354_v13 = vpop.f32.mrf.mxu0 }
 0x30b   :  { %v5704_v52 = vadd.f32 %v18354_v13, %v18326_v44  ;;  %v19730_v44 = vld [vmem:[%s26336_s4 + $0x78] sm:$0xff]  }
 0x30c   :  { %v5695_v61 = vpop.f32.mrf.mxu0  ;;  %18600 = vmatprep.subr.bf16.mxu1 %v19730_v44 }
 0x30d   :  { %v5696_v24 = vadd.f32 %v5695_v61, %v5495_v49  ;;  %18601 = vmatpush3.bf16.msra.mxu1 %v19730_v44  ;;  %v19731_v61 = vld [vmem:[%s26336_s4 + $0x70] sm:$0xff]  }
 0x30e   :  { %v18355_v19 = vpop.f32.mrf.mxu0  ;;  %18602 = vmatprep.subr.bf16.mxu1 %v19731_v61  ;;  %v19739_v44 = vld [vmem:[%s26336_s4 + $0x50] sm:$0xff]  }
 0x30f   :  { %v5707_v18 = vadd.f32 %v18355_v19, %v18327_v35 }
 0x310   :  { %v23489_v53 = vpop.f32.mrf.mxu0 }
 0x311   :  { %18603 = vmatpush3.bf16.msra.mxu1 %v19731_v61  ;;  %v19740_v61 = vld [vmem:[%s26336_s4 + $0x18] sm:$0xff]  }
 0x312   :  { %v18374_v59 = vpop.f32.mrf.mxu1 }
 0x313   :  { %v5904_v55 = vadd.f32 %v18374_v59, %v5672_v26 }
 0x314   :  { %v5855_v3 = vpop.f32.mrf.mxu1 }
 0x315   :  { %v5902_v54 = vadd.f32 %v5855_v3, %v5664_v2 }
 0x316   :  { %v18375_v4 = vpop.f32.mrf.mxu1 }
 0x317   :  { %v18402_v12 = vpop.f32.mrf.mxu0  ;;  %v5905_v48 = vadd.f32 %v18375_v4, %v5675_v15 }
 0x318   :  { %v23491_v21 = vadd.f32 %v18402_v12, %v5904_v55  ;;  %v23493_v28 = vpop.f32.mrf.mxu1  ;;  %v19733_v12 = vld [vmem:[%s26336_s4 + $0x68] sm:$0xff]  }
 0x319   :  { %v6126_v25 = vpop.f32.mrf.mxu0  ;;  %18604 = vmatprep.subr.bf16.mxu1 %v19733_v12 }
 0x31a   :  { %v23495_v32 = vadd.f32 %v6126_v25, %v5902_v54  ;;  %v19734_v25 = vld [vmem:[%s26336_s4 + $0x30] sm:$0xff]   ;;  %18605 = vmatpush3.bf16.msra.mxu1 %v19733_v12 }
 0x31b   :  { %v18378_v36 = vpop.f32.mrf.mxu1  ;;  %v18403_v30 = vpop.f32.mrf.mxu0 }
 0x31c   :  { %v5908_v31 = vadd.f32 %v18378_v36, %v5688_v16  ;;  %v23497_v10 = vadd.f32 %v18403_v30, %v5905_v48 }
 0x31d   :  { %v5871_v63 = vpop.f32.mrf.mxu1  ;;  %v23499_v20 = vpop.f32.mrf.mxu0 }
 0x31e   :  { %v5906_v22 = vadd.f32 %v5871_v63, %v5680_v40  ;;  %v19735_v63 = vld [vmem:[%s26336_s4 + $0x60] sm:$0xff]  }
 0x31f   :  { %v18379_v9 = vpop.f32.mrf.mxu1  ;;  %v18406_v7 = vpop.f32.mrf.mxu0  ;;  %18606 = vmatprep.subr.bf16.mxu1 %v19735_v63 }
 0x320   :  { %v23501_v45 = vadd.f32 %v18406_v7, %v5908_v31  ;;  %v5909_v41 = vadd.f32 %v18379_v9, %v5691_v46  ;;  %18607 = vmatpush3.bf16.msra.mxu1 %v19735_v63  ;;  %v19742_v63 = vld [vmem:[%s26336_s4 + $0x10] sm:$0xff]  }
 0x321   :  { %v23503_v50 = vpop.f32.mrf.mxu1  ;;  %v6142_v58 = vpop.f32.mrf.mxu0 }
 0x322   :  { %v23505_v11 = vadd.f32 %v6142_v58, %v5906_v22  ;;  %v19736_v22 = vld [vmem:[%s26336_s4 + $0x28] sm:$0xff]  }
 0x323   :  { %v18407_v60 = vpop.f32.mrf.mxu0 }
 0x324   :  { %v23507_v5 = vadd.f32 %v18407_v60, %v5909_v41 }
 0x325   :  { %v18382_v62 = vpop.f32.mrf.mxu1  ;;  %v23509_v38 = vpop.f32.mrf.mxu0 }
 0x326   :  { %v5912_v39 = vadd.f32 %v18382_v62, %v5704_v52 }
 0x327   :  { %v5887_v23 = vpop.f32.mrf.mxu1 }
 0x328   :  { %v5910_v37 = vadd.f32 %v5887_v23, %v5696_v24  ;;  %v19732_v24 = vld [vmem:[%s26336_s4 + $0x38] sm:$0xff]  }
 0x329   :  { %v18383_v27 = vpop.f32.mrf.mxu1  ;;  %v18410_v6 = vpop.f32.mrf.mxu0  ;;  %18628 = vmatprep.subr.bf16.mxu0 %v19732_v24  ;;  %v19737_v23 = vld [vmem:[%s26336_s4 + $0x58] sm:$0xff]  }
 0x32a   :  { %v23511_v26 = vadd.f32 %v18410_v6, %v5912_v39  ;;  %v5913_v2 = vadd.f32 %v18383_v27, %v5707_v18  ;;  %18629 = vmatpush3.bf16.msra.mxu0 %v19732_v24  ;;  %18608 = vmatprep.subr.bf16.mxu1 %v19737_v23 }
 0x32b   :  { %v6158_v14 = vpop.f32.mrf.mxu0  ;;  %v23517_v8 = vpop.f32.mrf.mxu1  ;;  %18630 = vmatprep.subr.bf16.mxu0 %v19734_v25  ;;  %18609 = vmatpush3.bf16.msra.mxu1 %v19737_v23 }
 0x32c   :  { %v23513_v56 = vadd.f32 %v6158_v14, %v5910_v37  ;;  %v19738_v37 = vld [vmem:[%s26336_s4 + $0x20] sm:$0xff]   ;;  %18610 = vmatprep.subr.bf16.mxu1 %v19739_v44  ;;  %v23632_v23 = vpop.permute.xlu0 %7580 }
 0x32d   :  { %v18411_v42 = vpop.f32.mrf.mxu0  ;;  %26651 = vst [vmem:[#allocation22_spill] sm:$0xff] %v23632_v23 }
 0x32e   :  { %v23515_v15 = vadd.f32 %v18411_v42, %v5913_v2  ;;  %18631 = vmatpush3.bf16.msra.mxu0 %v19734_v25  ;;  %v19741_v25 = vld [vmem:[%s26336_s4 + $0x48] sm:$0xff]  }
 0x32f   :  { %v23523_v16 = vpop.f32.mrf.mxu0  ;;  %18632 = vmatprep.subr.bf16.mxu0 %v19736_v22  ;;  %18611 = vmatpush3.bf16.msra.mxu1 %v19739_v44  ;;  %v23646_v44 = vpop.permute.xlu1 %7585 }
 0x330   :  { %18612 = vmatprep.subr.bf16.mxu1 %v19741_v25  ;;  %26655 = vst [vmem:[#allocation57_spill] sm:$0xff] %v23646_v44 }
 0x332   :  { %18633 = vmatpush3.bf16.msra.mxu0 %v19736_v22 }
 0x333   :  { %18634 = vmatprep.subr.bf16.mxu0 %v19738_v37  ;;  %18613 = vmatpush3.bf16.msra.mxu1 %v19741_v25 }
 0x334   :  { %18614 = vmatprep.subr.bf16.mxu1 %v19743_v29 }
 0x335   :  { %v23519_v51 = vpop.f32.mrf.mxu1 }
 0x336   :  { %18635 = vmatpush3.bf16.msra.mxu0 %v19738_v37 }
 0x337   :  { %v23521_v57 = vpop.f32.mrf.mxu1  ;;  %18636 = vmatprep.subr.bf16.mxu0 %v19740_v61  ;;  %18615 = vmatpush3.bf16.msra.mxu1 %v19743_v29 }
 0x338   :  { %v6342_v29 = vadd.f32 %v23521_v57, %v23495_v32 }
 0x339   :  { %v23525_v1 = vpop.f32.mrf.mxu1 }
 0x33a   :  { %v23527_v40 = vpop.f32.mrf.mxu0  ;;  %18637 = vmatpush3.bf16.msra.mxu0 %v19740_v61  ;;  %v5667_v61 = vadd.f32 %v23481_v47, %v23479_v34  ;;  %v5683_v34 = vadd.f32 %v23485_v0, %v23483_v33  ;;  %v5699_v47 = vadd.f32 %v23489_v53, %v23487_v17  ;;  %v19752_v33 = vld [vmem:[%s26336_s4 + $0xf8] sm:$0xff]   ;;  %v6344_v0 = vadd.f32 %v23519_v51, %v23491_v21  ;;  %v23686_v53 = vpop.permute.xlu1 %7595 }
 0x33b   :  { %v23532_v43 = vpop.f32.mrf.mxu1  ;;  %18638 = vmatprep.subr.bf16.mxu0 %v19742_v63 }
 0x33c   :  { %v23534_v46 = vpop.f32.mrf.mxu0  ;;  %v5903_v44 = vadd.f32 %v23493_v28, %v5667_v61 }
 0x33d   :  { %v23536_v49 = vpop.f32.mrf.mxu1  ;;  %v6603_v21 = vadd.f32 %v23534_v46, %v6342_v29 }
 0x33e   :  { %v23538_v13 = vpop.f32.mrf.mxu0  ;;  %18639 = vmatpush3.bf16.msra.mxu0 %v19742_v63  ;;  %v23662_v63 = vpop.permute.xlu0 %7590  ;;  %v6348_v32 = vadd.f32 %v23536_v49, %v23501_v45 }
 0x33f   :  { %v23540_v52 = vpop.f32.mrf.mxu1 }
 0x340   :  { %v23548_v35 = vpop.f32.mrf.mxu0  ;;  %v6346_v51 = vadd.f32 %v23540_v52, %v23505_v11 }
 0x341   :  { %v23550_v19 = vpop.f32.mrf.mxu1 }
 0x342   :  { %v23552_v18 = vpop.f32.mrf.mxu0 }
 0x343   :  { %v23554_v59 = vpop.f32.mrf.mxu1  ;;  %v6609_v45 = vadd.f32 %v23552_v18, %v6348_v32 }
 0x344   :  { %v23556_v55 = vpop.f32.mrf.mxu0 }
 0x345   :  { %v23560_v54 = vpop.f32.mrf.mxu1  ;;  %v6607_v11 = vadd.f32 %v23556_v55, %v6346_v51 }
 0x346   :  { %v23558_v3 = vpop.f32.mrf.mxu0  ;;  %v6352_v46 = vadd.f32 %v23560_v54, %v23511_v26  ;;  %v8449_v26 = vld [vmem:[#allocation2 + $0x8] sm:$0xf] }
 0x347   :  { %v23570_v48 = vpop.f32.mrf.mxu1 }
 0x348   :  { %v23562_v4 = vpop.f32.mrf.mxu0  ;;  %v6350_v49 = vadd.f32 %v23570_v48, %v23513_v56 }
 0x349   :  { %v23574_v31 = vpop.f32.mrf.mxu1 }
 0x34a   :  { %v23572_v36 = vpop.f32.mrf.mxu0 }
 0x34b   :  { %v23584_v9 = vpop.f32.mrf.mxu1  ;;  %v6613_v56 = vadd.f32 %v23572_v36, %v6352_v46 }
 0x34c   :  { %v23576_v30 = vpop.f32.mrf.mxu0 }
 0x34d   :  { %v23730_v55 = vadd.f32 %v23576_v30, %v6350_v49  ;;  %v8448_v30 = vld [vmem:[#allocation2 + $0x4] sm:$0xc] }
 0x34e   :  { %v23586_v7 = vpop.f32.mrf.mxu0 }
 0x350   :  { %v23592_v62 = vpop.f32.mrf.mxu0 }
 0x355   :  { %v23588_v58 = vpop.f32.mrf.mxu1 }
 0x357   :  { %v23590_v41 = vpop.f32.mrf.mxu1 }
 0x358   :  { %v6864_v48 = vadd.f32 %v23590_v41, %v6603_v21 }
 0x359   :  { %v23594_v39 = vpop.f32.mrf.mxu1 }
 0x35a   :  { %v23596_v60 = vpop.f32.mrf.mxu0 }
 0x35b   :  { %v23604_v27 = vpop.f32.mrf.mxu1 }
 0x35c   :  { %v23606_v6 = vpop.f32.mrf.mxu0 }
 0x35d   :  { %v23608_v14 = vpop.f32.mrf.mxu1 }
 0x35e   :  { %v23610_v2 = vpop.f32.mrf.mxu0 }
 0x35f   :  { %26646 = vst [vmem:[#allocation31_spill] sm:$0xff] %v23610_v2  ;;  %v23612_v42 = vpop.f32.mrf.mxu1 }
 0x360   :  { %26647 = vst [vmem:[#allocation48_spill] sm:$0xff] %v23612_v42  ;;  %v23620_v24 = vpop.f32.mrf.mxu0 }
 0x361   :  { %26648 = vst [vmem:[#allocation20_spill] sm:$0xff] %v23620_v24  ;;  %v23622_v12 = vpop.f32.mrf.mxu1 }
 0x362   :  { %26649 = vst [vmem:[#allocation16_spill] sm:$0xff] %v23622_v12  ;;  %v23630_v22 = vpop.f32.mrf.mxu0  ;;  %v19744_v12 = vld [vmem:[%s26336_s4 + $0x8] sm:$0xff]  }
 0x363   :  { %26650 = vst [vmem:[#allocation19_spill] sm:$0xff] %v23630_v22  ;;  %v23634_v37 = vpop.f32.mrf.mxu1  ;;  %18640 = vmatprep.subr.bf16.mxu0 %v19744_v12  ;;  %v5907_v22 = vadd.f32 %v23503_v50, %v5683_v34  ;;  %v6345_v50 = vadd.f32 %v23525_v1, %v23497_v10  ;;  %v6349_v1 = vadd.f32 %v23550_v19, %v23507_v5  ;;  %v23721_v5 = vld [vmem:[%s26333_s1 + $0x1] ss:$0 sm:$0xff] }
 0x364   :  { %26652 = vst [vmem:[#allocation33_spill] sm:$0xff] %v23634_v37  ;;  %v23642_v24 = vpop.f32.mrf.mxu0  ;;  %v19747_v37 = vld [vmem:[%s26336_s4] sm:$0xff]   ;;  %18641 = vmatpush3.bf16.msra.mxu0 %v19744_v12  ;;  %v6605_v12 = vadd.f32 %v23527_v40, %v6344_v0  ;;  %v6353_v19 = vadd.f32 %v23574_v31, %v23515_v15 }
 0x365   :  { %26653 = vst [vmem:[#allocation51_spill] sm:$0xff] %v23642_v24  ;;  %v23650_v23 = vpop.f32.mrf.mxu1  ;;  %v23658_v24 = vld [vmem:[%s26336_s4 + $0xb8] sm:$0xff]   ;;  %18642 = vmatprep.subr.bf16.mxu0 %v19747_v37  ;;  %v6178_v28 = vadd.f32 %v23509_v38, %v5907_v22  ;;  %v23701_v38 = vpop.permute.xlu0 %7600  ;;  %v6610_v52 = vadd.f32 %v23558_v3, %v6349_v1 }
 0x366   :  { %v23644_v42 = vpop.f32.mrf.mxu0  ;;  %26656 = vst [vmem:[#allocation17_spill] sm:$0xff] %v23650_v23  ;;  %v6174_v23 = vadd.f32 %v23499_v20, %v5903_v44  ;;  %18656 = vmatprep.subr.bf16.mxu1 %v23658_v24  ;;  %v6866_v54 = vadd.f32 %v23588_v58, %v6605_v12  ;;  %v23734_v3 = vpop.permute.xlu1 %7605 }
 0x367   :  { %26654 = vst [vmem:[#allocation55_spill] sm:$0xff] %v23644_v42  ;;  %v23674_v2 = vpop.f32.mrf.mxu1  ;;  %v6347_v40 = vadd.f32 %v23554_v59, %v6178_v28  ;;  %v8477_v59 = vld [vmem:[#allocation2 + $0x4] sm:$0x8] }
 0x368   :  { %v23660_v25 = vpop.f32.mrf.mxu0  ;;  %18643 = vmatpush3.bf16.msra.mxu0 %v19747_v37  ;;  %v7046_v58 = vadd.f32 %v23596_v60, %v6866_v54  ;;  %v26659_v60 = vld [vmem:[#allocation48_spill] sm:$0xff] }
 0x369   :  { %26657 = vst [vmem:[#allocation21_spill] sm:$0xff] %v23660_v25  ;;  %v5911_v25 = vadd.f32 %v23517_v8, %v5699_v47  ;;  %v6343_v8 = vadd.f32 %v23532_v43, %v6174_v23  ;;  %v23708_v43 = vpop.f32.mrf.mxu1  ;;  %18684 = vmatprep.subr.bf16.mxu0 %v19752_v33  ;;  %v7044_v23 = vadd.f32 %v23606_v6, %v6864_v48  ;;  %v23753_v44 = vpop.permute.xlu0 %7610  ;;  %v26661_v6 = vld [vmem:[#allocation16_spill] sm:$0xff] }
 0x36a   :  { %v23669_v42 = vpop.f32.mrf.mxu0  ;;  %v6868_v33 = vadd.f32 %v26659_v60, %v6607_v11  ;;  %v6871_v29 = vadd.f32 %v26661_v6, %v6610_v52  ;;  %v23772_v11 = vpop.permute.xlu1 %7615 }
 0x36b   :  { %v6182_v20 = vadd.f32 %v23523_v16, %v5911_v25  ;;  %v6606_v16 = vadd.f32 %v23538_v13, %v6345_v50  ;;  %v6604_v10 = vadd.f32 %v23548_v35, %v6343_v8  ;;  %v6608_v35 = vadd.f32 %v23562_v4, %v6347_v40  ;;  %v26662_v50 = vld [vmem:[#allocation19_spill] sm:$0xff]  ;;  %v26663_v32 = vld [vmem:[#allocation33_spill] sm:$0xff] }
 0x36c   :  { %v23684_v17 = vpop.f32.mrf.mxu0  ;;  %v23737_v4 = vadd.f32 %v23586_v7, %v6353_v19  ;;  %v23751_v7 = vcombine.low %v8477_v59, %v8449_v26 }
 0x36d   :  { %v6351_v18 = vadd.f32 %v23584_v9, %v6182_v20  ;;  %v6867_v31 = vadd.f32 %v23594_v39, %v6606_v16  ;;  %v23743_v9 = vpop.f32.mrf.mxu1  ;;  %v6865_v41 = vadd.f32 %v23604_v27, %v6604_v10  ;;  %v26658_v39 = vld [vmem:[#allocation31_spill] sm:$0xff]  ;;  %v26660_v27 = vld [vmem:[#allocation20_spill] sm:$0xff]  ;;  %v15651_v20 = vcombine.low %v8448_v30, %v8449_v26 }
 0x36e   :  { %v23699_v57 = vpop.f32.mrf.mxu0  ;;  %v6869_v51 = vadd.f32 %v26663_v32, %v6608_v35  ;;  %v26664_v16 = vld [vmem:[#allocation51_spill] sm:$0xff]  ;;  %v8899_v19 = vshll.u32 %v23751_v7, 16 }
 0x36f   :  { %v23740_v15 = vadd.f32 %v23592_v62, %v6351_v18  ;;  %v6870_v62 = vadd.f32 %v23608_v14, %v6609_v45  ;;  %v7047_v61 = vadd.f32 %v26658_v39, %v6867_v31  ;;  %v7045_v0 = vadd.f32 %v26660_v27, %v6865_v41  ;;  %v26665_v18 = vld [vmem:[#allocation17_spill] sm:$0xff] }
 0x370   :  { %v23716_v13 = vpop.f32.mrf.mxu0  ;;  %v7048_v10 = vadd.f32 %v26664_v16, %v6868_v33  ;;  %v8896_v45 = vshrl.u32 %v23751_v7, 16  ;;  %v6874_v26 = vadd.f32 %v26665_v18, %v6613_v56  ;;  %v8679_v48 = vshrl.u32 %v15651_v20, 16  ;;  %v26667_v39 = vld [vmem:[#allocation29_spill] sm:$0xff] }
 0x371   :  { %v7050_v8 = vadd.f32 %v26662_v50, %v6870_v62  ;;  %v8682_v41 = vshll.u32 %v15651_v20, 16  ;;  %v23797_v50 = vrot.slane %v8899_v19, 4  ;;  %v26670_v18 = vld [vmem:[#allocation21_spill] sm:$0xff] }
 0x372   :  { %v18558_v22 = vpop.f32.mrf.mxu0  ;;  %v23793_v27 = vrot.slane %v8896_v45, 3 }
 0x373   :  { %v23746_v36 = vadd.f32 %v18558_v22, %v23721_v5  ;;  %v23780_v22 = vpop.permute.xlu0 %7620  ;;  %26669 = vst [vmem:[#allocation30_spill] sm:$0xff] %v23797_v50 }
 0x374   :  { %v7435_v37 = vpop.f32.mrf.mxu0  ;;  %26668 = vst [vmem:[#allocation23_spill] sm:$0xff] %v23793_v27 }
 0x375   :  { %v15502_v25 = vmul.f32 -1.442695, %v23746_v36  ;;  %v23759_v34 = vadd.f32 %v23721_v5, %v7435_v37  ;;  %v18542_v47 = vpop.f32.mrf.mxu1  ;;  %v26666_v37 = vld [vmem:[#allocation55_spill] sm:$0xff] }
 0x376   :  { %v18559_v28 = vpop.f32.mrf.mxu0  ;;  %v7250_v1 = vadd.f32 %v18542_v47, %v7046_v58  ;;  %v7051_v62 = vadd.f32 %v26666_v37, %v6871_v29 }
 0x377   :  { %20204 = vpow2.f32 %v15502_v25  ;;  %v15500_v14 = vmul.f32 -1.442695, %v23759_v34  ;;  %v23767_v12 = vadd.f32 %v18559_v28, %v23721_v5  ;;  %v7201_v21 = vpop.f32.mrf.mxu1  ;;  %v23811_v19 = vpop.permute.xlu0 %7630 }
 0x378   :  { %v7438_v40 = vpop.f32.mrf.mxu0  ;;  %v7248_v35 = vadd.f32 %v7201_v21, %v7044_v23  ;;  %v7262_v25 = vadd.f32 %v26667_v39, %v7250_v1 }
 0x379   :  { %20206 = vpow2.f32 %v15500_v14  ;;  %v15503_v46 = vmul.f32 -1.442695, %v23767_v12  ;;  %v23776_v49 = vadd.f32 %v23721_v5, %v7438_v40  ;;  %v18543_v52 = vpop.f32.mrf.mxu1  ;;  %v23799_v14 = vpop.permute.xlu1 %7625 }
 0x37a   :  { %v7251_v59 = vadd.f32 %v18543_v52, %v7047_v61  ;;  %v18562_v54 = vpop.f32.mrf.mxu0  ;;  %v7260_v6 = vadd.f32 %v26667_v39, %v7248_v35  ;;  %v23809_v52 = vrot.slane %v8682_v41, 3  ;;  %v7049_v35 = vadd.f32 %v26670_v18, %v6869_v51 }
 0x37b   :  { %20208 = vpow2.f32 %v15503_v46  ;;  %v15501_v31 = vmul.f32 -1.442695, %v23776_v49  ;;  %v23784_v30 = vadd.f32 %v18562_v54, %v23721_v5  ;;  %v7204_v58 = vpop.f32.mrf.mxu1  ;;  %v23807_v46 = vrot.slane %v8679_v48, 2 }
 0x37c   :  { %v7263_v56 = vadd.f32 %v26667_v39, %v7251_v59  ;;  %v7249_v23 = vadd.f32 %v7204_v58, %v7045_v0  ;;  %v7451_v61 = vpop.f32.mrf.mxu0  ;;  %v6872_v0 = vadd.f32 %v23674_v2, %v23730_v55  ;;  %v6875_v54 = vadd.f32 %v23708_v43, %v23737_v4 }
 0x37d   :  { %20210 = vpow2.f32 %v15501_v31  ;;  %v15506_v47 = vmul.f32 -1.442695, %v23784_v30  ;;  %v23791_v60 = vadd.f32 %v23721_v5, %v7451_v61  ;;  %v18546_v33 = vpop.f32.mrf.mxu1  ;;  %v6873_v41 = vadd.f32 %v23743_v9, %v23740_v15 }
 0x37e   :  { %v16672_v28 = vpack.c.bf16 %v7263_v56, %v7262_v25  ;;  %v7261_v29 = vadd.f32 %v26667_v39, %v7249_v23  ;;  %v18563_v20 = vpop.f32.mrf.mxu0  ;;  %v7254_v40 = vadd.f32 %v18546_v33, %v7050_v8  ;;  %v7054_v8 = vadd.f32 %v23669_v42, %v6874_v26  ;;  %v23830_v26 = vpop.permute.xlu1 %7635 }
 0x37f   :  { %20212 = vpow2.f32 %v15506_v47  ;;  %v15504_v21 = vmul.f32 -1.442695, %v23791_v60  ;;  %v23805_v32 = vadd.f32 %v18563_v20, %v23721_v5  ;;  %v7217_v16 = vpop.f32.mrf.mxu1  ;;  %v7052_v23 = vadd.f32 %v23684_v17, %v6872_v0  ;;  %v23838_v20 = vpop.permute.xlu0 %7949 }
 0x380   :  { %16904 = vst [vmem:[#allocation3 + $0x68] sm:$0xff] %v16672_v28   ;;  %v16667_v1 = vpack.c.bf16 %v7261_v29, %v7260_v6  ;;  %v7454_v45 = vpop.f32.mrf.mxu0  ;;  %v7252_v48 = vadd.f32 %v7217_v16, %v7048_v10  ;;  %v7266_v43 = vadd.f32 %v26667_v39, %v7254_v40 }
 0x381   :  { %20214 = vpow2.f32 %v15504_v21  ;;  %v15507_v2 = vmul.f32 -1.442695, %v23805_v32  ;;  %v23816_v55 = vadd.f32 %v23721_v5, %v7454_v45  ;;  %v18547_v59 = vpop.f32.mrf.mxu1  ;;  %v7055_v45 = vadd.f32 %v23699_v57, %v6875_v54 }
 0x382   :  { %16903 = vst [vmem:[#allocation3 + $0x60] sm:$0xff] %v16667_v1   ;;  %v7255_v31 = vadd.f32 %v18547_v59, %v7051_v62  ;;  %v18566_v58 = vpop.f32.mrf.mxu0  ;;  %v7264_v33 = vadd.f32 %v26667_v39, %v7252_v48 }
 0x383   :  { %20216 = vpow2.f32 %v15507_v2  ;;  %v15505_v51 = vmul.f32 -1.442695, %v23816_v55  ;;  %v23825_v37 = vadd.f32 %v18566_v58, %v23721_v5  ;;  %v7220_v25 = vpop.f32.mrf.mxu1 }
 0x384   :  { %v20205_v56 = vpop.eup %20204  ;;  %v7267_v42 = vadd.f32 %v26667_v39, %v7255_v31  ;;  %v7253_v4 = vadd.f32 %v7220_v25, %v7049_v35  ;;  %v7467_v10 = vpop.f32.mrf.mxu0 }
 0x385   :  { %v7520_v62 = vadd.f32 1.0, %v20205_v56  ;;  %20218 = vpow2.f32 %v15505_v51  ;;  %v15510_v15 = vmul.f32 -1.442695, %v23825_v37  ;;  %v23834_v9 = vadd.f32 %v23721_v5, %v7467_v10  ;;  %v18550_v61 = vpop.f32.mrf.mxu1  ;;  %v23851_v56 = vpop.permute.xlu1 %7954 }
 0x386   :  { %v20207_v47 = vpop.eup %20206  ;;  %v16682_v17 = vpack.c.bf16 %v7267_v42, %v7266_v43  ;;  %v7265_v6 = vadd.f32 %v26667_v39, %v7253_v4  ;;  %v7258_v28 = vadd.f32 %v18550_v61, %v7054_v8  ;;  %v18567_v29 = vpop.f32.mrf.mxu0  ;;  %v7053_v51 = vadd.f32 %v23716_v13, %v6873_v41 }
 0x387   :  { %20220 = vrcp.f32 %v7520_v62  ;;  %v7518_v0 = vadd.f32 1.0, %v20207_v47  ;;  %v15508_v21 = vmul.f32 -1.442695, %v23834_v9  ;;  %v23842_v16 = vadd.f32 %v18567_v29, %v23721_v5  ;;  %v7233_v1 = vpop.f32.mrf.mxu1  ;;  %v23859_v61 = vpop.permute.xlu0 %7959 }
 0x388   :  { %v20209_v40 = vpop.eup %20208  ;;  %16906 = vst [vmem:[#allocation3 + $0x78] sm:$0xff] %v16682_v17   ;;  %20222 = vpow2.f32 %v15510_v15  ;;  %v16677_v18 = vpack.c.bf16 %v7265_v6, %v7264_v33  ;;  %v7256_v35 = vadd.f32 %v7233_v1, %v7052_v23  ;;  %v7470_v2 = vpop.f32.mrf.mxu0  ;;  %v7270_v57 = vadd.f32 %v26667_v39, %v7258_v28 }
 0x389   :  { %20224 = vrcp.f32 %v7518_v0  ;;  %v7521_v59 = vadd.f32 1.0, %v20209_v40  ;;  %v15511_v8 = vmul.f32 -1.442695, %v23842_v16  ;;  %v23847_v48 = vadd.f32 %v23721_v5, %v7470_v2  ;;  %v18551_v31 = vpop.f32.mrf.mxu1 }
 0x38a   :  { %v20211_v58 = vpop.eup %20210  ;;  %16905 = vst [vmem:[#allocation3 + $0x70] sm:$0xff] %v16677_v18   ;;  %20226 = vpow2.f32 %v15508_v21  ;;  %v7259_v54 = vadd.f32 %v18551_v31, %v7055_v45  ;;  %v18590_v25 = vpop.f32.mrf.mxu0  ;;  %v7268_v13 = vadd.f32 %v26667_v39, %v7256_v35 }
 0x38b   :  { %20228 = vrcp.f32 %v7521_v59  ;;  %v7519_v23 = vadd.f32 1.0, %v20211_v58  ;;  %v15509_v43 = vmul.f32 -1.442695, %v23847_v48  ;;  %v23855_v42 = vadd.f32 %v18590_v25, %v23721_v5  ;;  %v7236_v4 = vpop.f32.mrf.mxu1  ;;  %v23877_v58 = vpop.permute.xlu1 %7964 }
 0x38c   :  { %v20213_v10 = vpop.eup %20212  ;;  %20230 = vpow2.f32 %v15511_v8  ;;  %v7271_v41 = vadd.f32 %v26667_v39, %v7259_v54  ;;  %v7257_v62 = vadd.f32 %v7236_v4, %v7053_v51  ;;  %v8173_v15 = vpop.f32.mrf.mxu0 }
 0x38d   :  { %20232 = vrcp.f32 %v7519_v23  ;;  %v7524_v47 = vadd.f32 1.0, %v20213_v10  ;;  %v15598_v33 = vmul.f32 -1.442695, %v23855_v42  ;;  %v23863_v17 = vadd.f32 %v23721_v5, %v8173_v15  ;;  %v18574_v6 = vpop.f32.mrf.mxu1 }
 0x38e   :  { %v20215_v28 = vpop.eup %20214  ;;  %20234 = vpow2.f32 %v15509_v43  ;;  %v16692_v29 = vpack.c.bf16 %v7271_v41, %v7270_v57  ;;  %v7269_v0 = vadd.f32 %v26667_v39, %v7257_v62  ;;  %v23867_v21 = vadd.f32 %v18574_v6, %v23721_v5  ;;  %v18591_v1 = vpop.f32.mrf.mxu0 }
 0x38f   :  { %20236 = vrcp.f32 %v7524_v47  ;;  %v7522_v40 = vadd.f32 1.0, %v20215_v28  ;;  %v15596_v45 = vmul.f32 -1.442695, %v23863_v17  ;;  %v23871_v18 = vadd.f32 %v18591_v1, %v23721_v5  ;;  %v7804_v35 = vpop.f32.mrf.mxu1  ;;  %v23889_v41 = vpop.permute.xlu0 %7969 }
 0x390   :  { %v20217_v2 = vpop.eup %20216  ;;  %16908 = vst [vmem:[#allocation3 + $0x88] sm:$0xff] %v16692_v29   ;;  %20238 = vpow2.f32 %v15598_v33  ;;  %v16687_v59 = vpack.c.bf16 %v7269_v0, %v7268_v13  ;;  %v15550_v8 = vmul.f32 -1.442695, %v23867_v21  ;;  %v23875_v39 = vadd.f32 %v23721_v5, %v7804_v35  ;;  %v8176_v31 = vpop.f32.mrf.mxu0  ;;  %26671 = vst [vmem:[#allocation59_spill] sm:$0xff] %v23889_v41 }
 0x391   :  { %20240 = vrcp.f32 %v7522_v40  ;;  %v7525_v51 = vadd.f32 1.0, %v20217_v2  ;;  %v23880_v57 = vadd.f32 %v23721_v5, %v8176_v31  ;;  %v18575_v54 = vpop.f32.mrf.mxu1  ;;  %v15599_v43 = vmul.f32 -1.442695, %v23871_v18 }
 0x392   :  { %v20219_v23 = vpop.eup %20218  ;;  %16907 = vst [vmem:[#allocation3 + $0x80] sm:$0xff] %v16687_v59   ;;  %20242 = vpow2.f32 %v15596_v45  ;;  %v23885_v4 = vadd.f32 %v18575_v54, %v23721_v5  ;;  %v18594_v10 = vpop.f32.mrf.mxu0  ;;  %v15548_v15 = vmul.f32 -1.442695, %v23875_v39 }
 0x393   :  { %20244 = vrcp.f32 %v7525_v51  ;;  %v7523_v62 = vadd.f32 1.0, %v20219_v23  ;;  %v23893_v47 = vadd.f32 %v18594_v10, %v23721_v5  ;;  %v7807_v33 = vpop.f32.mrf.mxu1  ;;  %v15597_v28 = vmul.f32 -1.442695, %v23880_v57  ;;  %v23919_v41 = vpop.permute.xlu0 %7979 }
 0x394   :  { %v20221_v6 = vpop.eup %20220  ;;  %20246 = vpow2.f32 %v15550_v8  ;;  %v23897_v29 = vadd.f32 %v23721_v5, %v7807_v33  ;;  %v8189_v0 = vpop.f32.mrf.mxu0  ;;  %v15551_v35 = vmul.f32 -1.442695, %v23885_v4  ;;  %26676 = vst [vmem:[#allocation35_spill] sm:$0xff] %v23919_v41 }
 0x395   :  { %v20223_v40 = vpop.eup %20222  ;;  %v7556_v45 = vmul.f32 %v20221_v6, %v23746_v36  ;;  %20248 = vrcp.f32 %v7523_v62  ;;  %v23904_v2 = vadd.f32 %v23721_v5, %v8189_v0  ;;  %v18578_v59 = vpop.f32.mrf.mxu1  ;;  %v15602_v51 = vmul.f32 -1.442695, %v23893_v47 }
 0x396   :  { %v20225_v8 = vpop.eup %20224  ;;  %v7528_v31 = vadd.f32 1.0, %v20223_v40  ;;  %20250 = vpow2.f32 %v15599_v43  ;;  %v23908_v54 = vadd.f32 %v18578_v59, %v23721_v5  ;;  %v18595_v23 = vpop.f32.mrf.mxu0  ;;  %v15549_v6 = vmul.f32 -1.442695, %v23897_v29 }
 0x397   :  { %26672 = vst [vmem:[#allocation61_spill] sm:$0xff] %v23904_v2  ;;  %v20227_v10 = vpop.eup %20226  ;;  %v23910_v33 = vpop.permute.xlu1 %7974  ;;  %v7640_v36 = vmul.f32 %v23662_v63, %v7556_v45  ;;  %v7554_v62 = vmul.f32 %v20225_v8, %v23759_v34  ;;  %20252 = vpow2.f32 %v15548_v15  ;;  %v15600_v40 = vmul.f32 -1.442695, %v23904_v2 }
 0x398   :  { %26673 = vst [vmem:[#allocation64_spill] sm:$0xff] %v23908_v54  ;;  %26674 = vst [vmem:[#allocation32_spill] sm:$0xff] %v23910_v33  ;;  %v7820_v0 = vpop.f32.mrf.mxu1  ;;  %v20229_v13 = vpop.eup %20228  ;;  %20254 = vrcp.f32 %v7528_v31  ;;  %v7526_v43 = vadd.f32 1.0, %v20227_v10  ;;  %v23917_v59 = vadd.f32 %v18595_v23, %v23721_v5  ;;  %v15554_v34 = vmul.f32 -1.442695, %v23908_v54  ;;  %v26678_v31 = vld [vmem:[#allocation22_spill] sm:$0xff] }
 0x399   :  { %v8192_v1 = vpop.f32.mrf.mxu0  ;;  %v20231_v25 = vpop.eup %20230  ;;  %v7557_v63 = vmul.f32 %v20229_v13, %v23767_v12  ;;  %20256 = vpow2.f32 %v15597_v28  ;;  %v23924_v15 = vadd.f32 %v23721_v5, %v7820_v0  ;;  %v7638_v10 = vmul.f32 %v26678_v31, %v7554_v62 }
 0x39a   :  { %26675 = vst [vmem:[#allocation34_spill] sm:$0xff] %v23917_v59  ;;  %v18579_v45 = vpop.f32.mrf.mxu1  ;;  %v20233_v8 = vpop.eup %20232  ;;  %20258 = vrcp.f32 %v7526_v43  ;;  %v7529_v33 = vadd.f32 1.0, %v20231_v25  ;;  %v23928_v23 = vadd.f32 %v23721_v5, %v8192_v1  ;;  %v15603_v13 = vmul.f32 -1.442695, %v23917_v59 }
 0x39b   :  { %26677 = vst [vmem:[#allocation36_spill] sm:$0xff] %v23924_v15  ;;  %v18598_v27 = vpop.f32.mrf.mxu0  ;;  %v20235_v50 = vpop.eup %20234  ;;  %v7641_v41 = vmul.f32 %v23686_v53, %v7557_v63  ;;  %v7555_v12 = vmul.f32 %v20233_v8, %v23776_v49  ;;  %20260 = vpow2.f32 %v15551_v35  ;;  %v23934_v62 = vmul.f32 -1.442695, %v23924_v15  ;;  %v26679_v63 = vld [vmem:[#allocation57_spill] sm:$0xff] }
 0x39c   :  { %v7823_v28 = vpop.f32.mrf.mxu1  ;;  %v20237_v0 = vpop.eup %20236  ;;  %20262 = vrcp.f32 %v7529_v33  ;;  %v7527_v54 = vadd.f32 1.0, %v20235_v50  ;;  %v23937_v25 = vadd.f32 %v18579_v45, %v23721_v5  ;;  %v23944_v33 = vmul.f32 -1.442695, %v23928_v23 }
 0x39d   :  { %v8205_v1 = vpop.f32.mrf.mxu0  ;;  %v20239_v43 = vpop.eup %20238  ;;  %v16702_v53 = vpack.c.bf16 %v7641_v41, %v7640_v36  ;;  %v7639_v49 = vmul.f32 %v26679_v63, %v7555_v12  ;;  %v7560_v35 = vmul.f32 %v20237_v0, %v23784_v30  ;;  %20264 = vpow2.f32 %v15602_v51 }
 0x39e   :  { %v23939_v31 = vpop.permute.xlu1 %7984  ;;  %v18582_v8 = vpop.f32.mrf.mxu1  ;;  %20266 = vrcp.f32 %v7527_v54  ;;  %v8258_v50 = vadd.f32 1.0, %v20239_v43  ;;  %v23947_v45 = vadd.f32 %v18598_v27, %v23721_v5  ;;  %v23953_v30 = vmul.f32 -1.442695, %v23937_v25 }
 0x39f   :  { %v20241_v59 = vpop.eup %20240  ;;  %v23949_v2 = vpop.permute.xlu0 %7989  ;;  %16910 = vst [vmem:[#allocation2 + $0x18] sm:$0xff] %v16702_v53   ;;  %v16697_v41 = vpack.c.bf16 %v7639_v49, %v7638_v10  ;;  %20268 = vpow2.f32 %v15549_v6  ;;  %v7644_v54 = vmul.f32 %v23753_v44, %v7560_v35  ;;  %v23957_v0 = vadd.f32 %v23721_v5, %v7823_v28 }
 0x3a0   :  { %v20243_v15 = vpop.eup %20242  ;;  %v7558_v36 = vmul.f32 %v20241_v59, %v23791_v60  ;;  %20270 = vrcp.f32 %v8258_v50  ;;  %v18599_v27 = vpop.f32.mrf.mxu0  ;;  %v23961_v60 = vmul.f32 -1.442695, %v23947_v45  ;;  %v23964_v6 = vadd.f32 %v23721_v5, %v8205_v1 }
 0x3a1   :  { %v20245_v51 = vpop.eup %20244  ;;  %v8256_v12 = vadd.f32 1.0, %v20243_v15  ;;  %v7836_v43 = vpop.f32.mrf.mxu1  ;;  %16909 = vst [vmem:[#allocation2 + $0x10] sm:$0xff] %v16697_v41   ;;  %20272 = vpow2.f32 %v15600_v40  ;;  %v23968_v28 = vadd.f32 %v18582_v8, %v23721_v5  ;;  %v23975_v35 = vmul.f32 -1.442695, %v23957_v0 }
 0x3a2   :  { %v20247_v63 = vpop.eup %20246  ;;  %v7561_v10 = vmul.f32 %v20245_v51, %v23805_v32  ;;  %v7642_v44 = vmul.f32 %v23701_v38, %v7558_v36  ;;  %v23970_v49 = vpop.permute.xlu1 %7994  ;;  %v23978_v38 = vmul.f32 -1.442695, %v23964_v6  ;;  %v23981_v8 = vadd.f32 %v18599_v27, %v23721_v5 }
 0x3a3   :  { %v20249_v59 = vpop.eup %20248  ;;  %20274 = vrcp.f32 %v8256_v12  ;;  %v7889_v15 = vadd.f32 1.0, %v20247_v63  ;;  %26680 = vst [vmem:[#allocation66_spill] sm:$0xff] %v23970_v49  ;;  %v8208_v41 = vpop.f32.mrf.mxu0  ;;  %v23991_v27 = vadd.f32 %v23721_v5, %v7836_v43 }
 0x3a4   :  { %v20251_v53 = vpop.eup %20250  ;;  %v7645_v32 = vmul.f32 %v23772_v11, %v7561_v10  ;;  %v7559_v40 = vmul.f32 %v20249_v59, %v23816_v55  ;;  %20276 = vpow2.f32 %v15554_v34  ;;  %v18583_v36 = vpop.f32.mrf.mxu1  ;;  %v23988_v59 = vmul.f32 -1.442695, %v23968_v28 }
 0x3a5   :  { %v20253_v1 = vpop.eup %20252  ;;  %20278 = vrcp.f32 %v7889_v15  ;;  %v8259_v50 = vadd.f32 1.0, %v20251_v53  ;;  %v23983_v12 = vpop.permute.xlu0 %7999 }
 0x3a6   :  { %v20255_v51 = vpop.eup %20254  ;;  %v16712_v11 = vpack.c.bf16 %v7645_v32, %v7644_v54  ;;  %v7643_v55 = vmul.f32 %v23734_v3, %v7559_v40  ;;  %v7887_v34 = vadd.f32 1.0, %v20253_v1  ;;  %20280 = vpow2.f32 %v15603_v13  ;;  %v7839_v43 = vpop.f32.mrf.mxu1 }
 0x3a7   :  { %v20257_v63 = vpop.eup %20256  ;;  %v7564_v10 = vmul.f32 %v20255_v51, %v23825_v37  ;;  %20282 = vrcp.f32 %v8259_v50  ;;  %v23994_v54 = vadd.f32 %v23721_v5, %v8208_v41  ;;  %v24000_v32 = vmul.f32 -1.442695, %v23981_v8 }
 0x3a8   :  { %v20259_v15 = vpop.eup %20258  ;;  %16912 = vst [vmem:[#allocation2 + $0x28] sm:$0xff] %v16712_v11   ;;  %v16707_v53 = vpack.c.bf16 %v7643_v55, %v7642_v44  ;;  %20284 = vrcp.f32 %v7887_v34  ;;  %v8257_v49 = vadd.f32 1.0, %v20257_v63  ;;  %v24002_v40 = vld [vmem:[#allocation2 + $0xc] sm:$0xff]   ;;  %v24004_v44 = vpop.permute.xlu1 %8004  ;;  %v24007_v41 = vmul.f32 -1.442695, %v23991_v27 }
 0x3a9   :  { %v20261_v3 = vpop.eup %20260  ;;  %v7648_v13 = vmul.f32 %v23811_v19, %v7564_v10  ;;  %v7562_v37 = vmul.f32 %v20259_v15, %v23834_v9  ;;  %20286 = vpow2.f32 %v23934_v62  ;;  %v24010_v19 = vadd.f32 %v18583_v36, %v23721_v5  ;;  %v24012_v9 = vld [vmem:[#allocation2 + $0x14] sm:$0xff]   ;;  %v8319_v34 = vpop.permute.xlu0 %8318 }
 0x3aa   :  { %v20263_v1 = vpop.eup %20262  ;;  %16911 = vst [vmem:[#allocation2 + $0x20] sm:$0xff] %v16707_v53   ;;  %20288 = vrcp.f32 %v8257_v49  ;;  %v7890_v50 = vadd.f32 1.0, %v20261_v3  ;;  %v24018_v55 = vmul.f32 -1.442695, %v23994_v54  ;;  %v24021_v10 = vadd.f32 %v23721_v5, %v7839_v43 }
 0x3ab   :  { %v20265_v62 = vpop.eup %20264  ;;  %v7646_v51 = vmul.f32 %v23780_v22, %v7562_v37  ;;  %v7565_v11 = vmul.f32 %v20263_v1, %v23842_v16  ;;  %20290 = vpow2.f32 %v23944_v33  ;;  %v8528_v36 = vrot.slane %v24002_v40, 3 }
 0x3ac   :  { %v20267_v49 = vpop.eup %20266  ;;  %20292 = vrcp.f32 %v7890_v50  ;;  %v8262_v63 = vadd.f32 1.0, %v20265_v62  ;;  %v24028_v16 = vmul.f32 -1.442695, %v24010_v19  ;;  %v26681_v37 = vrot.slane %v23751_v7, 3 }
 0x3ad   :  { %v20269_v15 = vpop.eup %20268  ;;  %v7649_v53 = vmul.f32 %v23830_v26, %v7565_v11  ;;  %v7563_v22 = vmul.f32 %v20267_v49, %v23847_v48  ;;  %20294 = vpow2.f32 %v23953_v30  ;;  %v8530_v43 = vrot.slane %v24012_v9, 3  ;;  %v19751_v30 = vld [vmem:[%s26336_s4 + $0xb0] sm:$0xff]   ;;  %v24040_v11 = vpop.permute.xlu1 %8323 }
 0x3ae   :  { %v20271_v33 = vpop.eup %20270  ;;  %20296 = vrcp.f32 %v8262_v63  ;;  %v7888_v3 = vadd.f32 1.0, %v20269_v15  ;;  %v8529_v5 = vsel %vm1245_vm1, %v26681_v37, %v8528_v36  ;;  %v24049_v63 = vmul.f32 -1.442695, %v24021_v10 }
 0x3af   :  { %v20273_v1 = vpop.eup %20272  ;;  %v16722_v50 = vpack.c.bf16 %v7649_v53, %v7648_v13  ;;  %v7647_v26 = vmul.f32 %v23799_v14, %v7563_v22  ;;  %v8294_v48 = vmul.f32 %v20271_v33, %v23855_v42  ;;  %20298 = vpow2.f32 %v23961_v60  ;;  %18616 = vmatprep.mubr.bf16.mxu1 %v8529_v5  ;;  %v8329_v53 = vpop.permute.xlu0 %8328 }
 0x3b0   :  { %v20275_v62 = vpop.eup %20274  ;;  %20300 = vrcp.f32 %v7888_v3  ;;  %v8260_v7 = vadd.f32 1.0, %v20273_v1  ;;  %v8531_v13 = vsel %vm1245_vm1, %v8528_v36, %v8530_v43  ;;  %v8687_v14 = vshrl.u32 %v24002_v40, 16 }
 0x3b1   :  { %v20277_v49 = vpop.eup %20276  ;;  %16914 = vst [vmem:[#allocation2 + $0x38] sm:$0xff] %v16722_v50   ;;  %v16717_v42 = vpack.c.bf16 %v7647_v26, %v7646_v51  ;;  %v8292_v60 = vmul.f32 %v20275_v62, %v23863_v17  ;;  %20302 = vpow2.f32 %v23975_v35  ;;  %18617 = vmatmul.mubr.bf16.vlgmr.msra.gmra.mxu1 %v8531_v13  ;;  %v8690_v33 = vshll.u32 %v24002_v40, 16  ;;  %v24058_v37 = vld [vmem:[#allocation2 + $0x1c] sm:$0xff]   ;;  %v8334_v13 = vpop.permute.xlu1 %8333 }
 0x3b2   :  { %v20279_v15 = vpop.eup %20278  ;;  %20304 = vrcp.f32 %v8260_v7  ;;  %v7893_v22 = vadd.f32 1.0, %v20277_v49  ;;  %18657 = vmatpush3.bf16.msra.mxu1 %v23658_v24  ;;  %v8689_v36 = vrot.slane %v8687_v14, 2  ;;  %v8378_v17 = vmul.f32 %v8329_v53, %v8294_v48  ;;  %v19754_v24 = vld [vmem:[%s26336_s4 + $0xa8] sm:$0xff]  }
 0x3b3   :  { %v20281_v51 = vpop.eup %20280  ;;  %16913 = vst [vmem:[#allocation2 + $0x30] sm:$0xff] %v16717_v42   ;;  %v7925_v35 = vmul.f32 %v20279_v15, %v23867_v21  ;;  %20306 = vpow2.f32 %v23978_v38  ;;  %18658 = vmatprep.subr.bf16.mxu1 %v19751_v30  ;;  %v8696_v3 = vshrl.u32 %v24012_v9, 16  ;;  %v8692_v50 = vrot.slane %v8690_v33, 3 }
 0x3b4   :  { %v20283_v5 = vpop.eup %20282  ;;  %20308 = vrcp.f32 %v7893_v22  ;;  %v8263_v1 = vadd.f32 1.0, %v20281_v51  ;;  %v8699_v26 = vshll.u32 %v24012_v9, 16  ;;  %v24066_v48 = vmul.f32 %v8319_v34, %v8292_v60  ;;  %v24077_v34 = vld [vmem:[#allocation2 + $0x24] sm:$0xff]  }
 0x3b5   :  { %v20285_v21 = vpop.eup %20284  ;;  %v8295_v38 = vmul.f32 %v20283_v5, %v23871_v18  ;;  %20310 = vpow2.f32 %v23988_v59  ;;  %v8698_v62 = vrot.slane %v8696_v3, 2  ;;  %v24073_v49 = vmul.f32 %v23859_v61, %v7925_v35  ;;  %v24082_v18 = vld [vmem:[%s26336_s4 + $0xa0] sm:$0xff]  }
 0x3b6   :  { %v20287_v7 = vpop.eup %20286  ;;  %20312 = vrcp.f32 %v8263_v1  ;;  %v8693_v42 = vor.u32 %v8692_v50, %v8689_v36  ;;  %v8701_v15 = vrot.slane %v8699_v26, 3  ;;  %18659 = vmatpush3.bf16.msra.mxu1 %v19751_v30  ;;  %v8532_v61 = vrot.slane %v24058_v37, 3 }
 0x3b7   :  { %v20289_v59 = vpop.eup %20288  ;;  %v8379_v60 = vmul.f32 %v8334_v13, %v8295_v38  ;;  %v7891_v53 = vadd.f32 1.0, %v20287_v7  ;;  %20314 = vpow2.f32 %v24000_v32  ;;  %18660 = vmatprep.subr.bf16.mxu1 %v19754_v24  ;;  %v7923_v36 = vmul.f32 %v20285_v21, %v23875_v39 }
 0x3b8   :  { %v20291_v22 = vpop.eup %20290  ;;  %v8293_v30 = vmul.f32 %v20289_v59, %v23880_v57  ;;  %20316 = vpow2.f32 %v24007_v41  ;;  %v26682_v51 = vor.u32 %v23809_v52, %v23807_v46  ;;  %v24093_v32 = vor.u32 %v8701_v15, %v8698_v62  ;;  %v19755_v52 = vld [vmem:[%s26336_s4 + $0xf0] sm:$0xff]   ;;  %v24104_v41 = vpop.permute.xlu0 %8338  ;;  %v19760_v62 = vld [vmem:[%s26336_s4 + $0x98] sm:$0xff]  }
 0x3b9   :  { %v20293_v5 = vpop.eup %20292  ;;  %v16762_v1 = vpack.c.bf16 %v8379_v60, %v8378_v17  ;;  %20318 = vrcp.f32 %v7891_v53  ;;  %v8261_v50 = vadd.f32 1.0, %v20291_v22  ;;  %v8533_v46 = vsel %vm1245_vm1, %v8530_v43, %v8532_v61  ;;  %v20353_v15 = vld [vmem:[%s26336_s4 + $0xf8] sm:$0xff]  }
 0x3ba   :  { %v8694_v35 = vsel %vm1397_vm2, %v26682_v51, %v8693_v42  ;;  %v20295_v38 = vpop.eup %20294  ;;  %v8377_v7 = vmul.f32 %v24040_v11, %v8293_v30  ;;  %v7926_v39 = vmul.f32 %v20293_v5, %v23885_v4  ;;  %20320 = vpow2.f32 %v24018_v55  ;;  %18661 = vmatpush3.bf16.msra.mxu1 %v19754_v24  ;;  %18620 = vmatprep.mubr.bf16.mxu1 %v8533_v46 }
 0x3bb   :  { %18644 = vmatprep.mubr.bf16.mxu0 %v8694_v35  ;;  %v20297_v57 = vpop.eup %20296  ;;  %16922 = vst [vmem:[#allocation2 + $0x78] sm:$0xff] %v16762_v1   ;;  %20322 = vrcp.f32 %v8261_v50  ;;  %v7894_v17 = vadd.f32 1.0, %v20295_v38  ;;  %v8703_v4 = vsel %vm1397_vm2, %v8693_v42, %v24093_v32  ;;  %v8534_v55 = vrot.slane %v24077_v34, 3  ;;  %18662 = vmatprep.subr.bf16.mxu1 %v24082_v18  ;;  %v24143_v50 = vld [vmem:[#allocation2 + $0x34] ss:$0 sps:$4 sm:$0x77]  }
 0x3bc   :  { %v20299_v43 = vpop.eup %20298  ;;  %v8007_v11 = vmul.f32 %v23838_v20, %v7923_v36  ;;  %v16757_v21 = vpack.c.bf16 %v8377_v7, %v24066_v48  ;;  %v8010_v24 = vmul.f32 %v23877_v58, %v7926_v39  ;;  %20324 = vpow2.f32 %v24028_v16  ;;  %18645 = vmatmul.mubr.bf16.vlgmr.msra.gmra.mxu0 %v8703_v4  ;;  %v19758_v16 = vld [vmem:[%s26336_s4 + $0xe8] sm:$0xff]   ;;  %v24133_v36 = vpop.permute.xlu1 %8343  ;;  %v19763_v38 = vld [vmem:[%s26336_s4 + $0x90] sm:$0xff]  }
 0x3bd   :  { %v20301_v13 = vpop.eup %20300  ;;  %20326 = vrcp.f32 %v7894_v17  ;;  %v8266_v42 = vadd.f32 1.0, %v20299_v43  ;;  %18685 = vmatpush3.bf16.msra.mxu0 %v20353_v15  ;;  %v8535_v20 = vsel %vm1245_vm1, %v8532_v61, %v8534_v55  ;;  %v8705_v58 = vshrl.u32 %v24058_v37, 16  ;;  %v24127_v48 = vld [vmem:[#allocation2 + $0x2c] sm:$0xff]   ;;  %v8349_v39 = vpop.permute.xlu0 %8348  ;;  %v26684_v43 = vld [vmem:[#allocation64_spill] sm:$0xff] }
 0x3be   :  { %v20303_v59 = vpop.eup %20302  ;;  %16921 = vst [vmem:[#allocation2 + $0x70] sm:$0xff] %v16757_v21   ;;  %v16732_v60 = vpack.c.bf16 %v8010_v24, %v24073_v49  ;;  %v8298_v53 = vmul.f32 %v20297_v57, %v23893_v47  ;;  %v7924_v22 = vmul.f32 %v20301_v13, %v23897_v29  ;;  %20328 = vpow2.f32 %v24049_v63  ;;  %18686 = vmatprep.subr.bf16.mxu0 %v19755_v52  ;;  %v26683_v29 = vld [vmem:[#allocation61_spill] sm:$0xff]  ;;  %v19761_v13 = vld [vmem:[%s26336_s4 + $0xe0] sm:$0xff]  }
 0x3bf   :  { %18621 = vmatmul.mubr.bf16.gmra.mxu1 %v8535_v20  ;;  %v20305_v61 = vpop.eup %20304  ;;  %20330 = vrcp.f32 %v8266_v42  ;;  %v7892_v30 = vadd.f32 1.0, %v20303_v59  ;;  %v8707_v51 = vrot.slane %v8705_v58, 2  ;;  %v8708_v35 = vshll.u32 %v24058_v37, 16  ;;  %v19776_v37 = vld [vmem:[%s26336_s4 + $0x178] sm:$0xff]  }
 0x3c0   :  { %18663 = vmatpush3.bf16.msra.mxu1 %v24082_v18  ;;  %v20307_v49 = vpop.eup %20306  ;;  %16916 = vst [vmem:[#allocation2 + $0x48] sm:$0xff] %v16732_v60   ;;  %v8008_v47 = vmul.f32 %v23851_v56, %v7924_v22  ;;  %v8296_v63 = vmul.f32 %v20305_v61, %v26683_v29  ;;  %v8714_v5 = vshrl.u32 %v24077_v34, 16  ;;  %v8717_v1 = vshll.u32 %v24077_v34, 16  ;;  %v26685_v60 = vld [vmem:[#allocation34_spill] sm:$0xff] }
 0x3c1   :  { %18664 = vmatprep.subr.bf16.mxu1 %v19760_v62  ;;  %v20309_v7 = vpop.eup %20308  ;;  %20332 = vrcp.f32 %v7892_v30  ;;  %v8264_v18 = vadd.f32 1.0, %v20307_v49  ;;  %18687 = vmatpush3.bf16.msra.mxu0 %v19755_v52  ;;  %v8710_v56 = vrot.slane %v8708_v35, 3  ;;  %v8536_v46 = vrot.slane %v24127_v48, 3  ;;  %v19779_v34 = vld [vmem:[%s26336_s4 + $0x170] sm:$0xff]  }
 0x3c2   :  { %v20311_v57 = vpop.eup %20310  ;;  %v8382_v17 = vmul.f32 %v8349_v39, %v8298_v53  ;;  %v16727_v4 = vpack.c.bf16 %v8008_v47, %v8007_v11  ;;  %v7929_v21 = vmul.f32 %v20309_v7, %v26684_v43  ;;  %18688 = vmatprep.subr.bf16.mxu0 %v19758_v16  ;;  %v8716_v24 = vrot.slane %v8714_v5, 2 }
 0x3c3   :  { %v20313_v42 = vpop.eup %20312  ;;  %20334 = vrcp.f32 %v8264_v18  ;;  %v7897_v52 = vadd.f32 1.0, %v20311_v57  ;;  %v8711_v15 = vor.u32 %v8710_v56, %v8707_v51  ;;  %v8719_v20 = vrot.slane %v8717_v1, 3  ;;  %v8354_v51 = vpop.permute.xlu1 %8353  ;;  %v26686_v18 = vld [vmem:[#allocation35_spill] sm:$0xff] }
 0x3c4   :  { %18665 = vmatpush3.bf16.msra.mxu1 %v19760_v62  ;;  %v20315_v59 = vpop.eup %20314  ;;  %16915 = vst [vmem:[#allocation2 + $0x40] sm:$0xff] %v16727_v4   ;;  %v24160_v11 = vmul.f32 %v24104_v41, %v8296_v63  ;;  %v8299_v53 = vmul.f32 %v20313_v42, %v26685_v60  ;;  %v8537_v22 = vsel %vm1245_vm1, %v8534_v55, %v8536_v46  ;;  %v8538_v61 = vrot.slane %v24143_v50, 3  ;;  %v19769_v41 = vld [vmem:[%s26336_s4 + $0x88] sm:$0xff]  }
 0x3c5   :  { %18666 = vmatprep.subr.bf16.mxu1 %v19763_v38  ;;  %v20317_v30 = vpop.eup %20316  ;;  %20336 = vrcp.f32 %v7897_v52  ;;  %v8267_v49 = vadd.f32 1.0, %v20315_v59  ;;  %v8712_v62 = vsel %vm1397_vm2, %v24093_v32, %v8711_v15  ;;  %v24169_v47 = vor.u32 %v8719_v20, %v8716_v24  ;;  %18689 = vmatpush3.bf16.msra.mxu0 %v19758_v16  ;;  %v19764_v32 = vld [vmem:[%s26336_s4 + $0xd8] sm:$0xff]   ;;  %v24188_v52 = vpop.permute.xlu0 %8358 }
 0x3c6   :  { %18624 = vmatprep.mubr.bf16.mxu1 %v8537_v22  ;;  %v20319_v29 = vpop.eup %20318  ;;  %v8383_v55 = vmul.f32 %v8354_v51, %v8299_v53  ;;  %v7895_v63 = vadd.f32 1.0, %v20317_v30  ;;  %18648 = vmatprep.mubr.bf16.mxu0 %v8712_v62  ;;  %v8539_v7 = vsel %vm1245_vm1, %v8536_v46, %v8538_v61  ;;  %v8903_v39 = vrot.slane %v8687_v14, 3  ;;  %v19771_v22 = vld [vmem:[%s26336_s4 + $0x80] sm:$0xff]   ;;  %v26689_v62 = vld [vmem:[#allocation23_spill] sm:$0xff] }
 0x3c7   :  { %18690 = vmatprep.subr.bf16.mxu0 %v19761_v13  ;;  %v20321_v16 = vpop.eup %20320  ;;  %v24181_v56 = vmul.f32 %v26686_v18, %v7929_v21  ;;  %20338 = vrcp.f32 %v8267_v49  ;;  %v8721_v57 = vsel %vm1397_vm2, %v8711_v15, %v24169_v47  ;;  %18625 = vmatmul.mubr.bf16.gmra.mxu1 %v8539_v7  ;;  %v8904_v4 = vrot.slane %v8690_v33, 4  ;;  %v26687_v21 = vld [vmem:[#allocation36_spill] sm:$0xff]  ;;  %v9079_v33 = vld [vmem:[#allocation2 + $0xc] sm:$0x8]  ;;  %v26688_v49 = vld [vmem:[#allocation30_spill] sm:$0xff] }
 0x3c8   :  { %v20323_v46 = vpop.eup %20322  ;;  %v16772_v43 = vpack.c.bf16 %v8383_v55, %v8382_v17  ;;  %20340 = vrcp.f32 %v7895_v63  ;;  %v8265_v14 = vadd.f32 1.0, %v20321_v16  ;;  %18649 = vmatmul.mubr.bf16.gmra.mxu0 %v8721_v57  ;;  %v8723_v24 = vshrl.u32 %v24127_v48, 16  ;;  %18667 = vmatpush3.bf16.msra.mxu1 %v19763_v38  ;;  %v19770_v17 = vld [vmem:[%s26336_s4 + $0xd0] sm:$0xff]  }
 0x3c9   :  { %v20325_v42 = vpop.eup %20324  ;;  %v7927_v20 = vmul.f32 %v20319_v29, %v26687_v21  ;;  %v8297_v59 = vmul.f32 %v20323_v46, %v23928_v23  ;;  %18691 = vmatpush3.bf16.msra.mxu0 %v19761_v13  ;;  %v24192_v15 = vor.u32 %v8904_v4, %v8903_v39  ;;  %v8726_v40 = vshll.u32 %v24127_v48, 16  ;;  %18668 = vmatprep.subr.bf16.mxu1 %v19769_v41  ;;  %v24201_v13 = vld [vmem:[#allocation2 + $0x10] sm:$0xf]  ;;  %v24215_v7 = vld [vmem:[#allocation2 + $0x14] sm:$0xf] }
 0x3ca   :  { %v20327_v60 = vpop.eup %20326  ;;  %16924 = vst [vmem:[#allocation2 + $0x88] sm:$0xff] %v16772_v43   ;;  %20342 = vrcp.f32 %v8265_v14  ;;  %v7898_v38 = vadd.f32 1.0, %v20325_v42  ;;  %v8725_v53 = vrot.slane %v8723_v24, 2  ;;  %18692 = vmatprep.subr.bf16.mxu0 %v19764_v32  ;;  %v8732_v23 = vshrl.u32 %v24143_v50, 16  ;;  %v24226_v14 = vld [vmem:[#allocation2 + $0x18] sm:$0xf] }
 0x3cb   :  { %v20329_v61 = vpop.eup %20328  ;;  %v8381_v30 = vmul.f32 %v24133_v36, %v8297_v59  ;;  %v7930_v51 = vmul.f32 %v20327_v60, %v23937_v25  ;;  %v26690_v29 = vor.u32 %v26688_v49, %v26689_v62  ;;  %v8728_v63 = vrot.slane %v8726_v40, 3  ;;  %v24221_v25 = vld [vmem:[%s26336_s4 + $0x138] sm:$0xff]  }
 0x3cc   :  { %v20331_v39 = vpop.eup %20330  ;;  %20344 = vrcp.f32 %v7898_v38  ;;  %v7896_v16 = vadd.f32 1.0, %v20329_v61  ;;  %v8734_v18 = vrot.slane %v8732_v23, 2  ;;  %v8735_v36 = vshll.u32 %v24143_v50, 16  ;;  %18669 = vmatpush3.bf16.msra.mxu1 %v19769_v41  ;;  %v24239_v38 = vld [vmem:[#allocation2 + $0x20] sm:$0xf]  ;;  %v24241_v23 = vpop.permute.xlu1 %8363 }
 0x3cd   :  { %v8906_v55 = vsel %vm1616_vm3, %v26690_v29, %v24192_v15  ;;  %v16767_v57 = vpack.c.bf16 %v8381_v30, %v24160_v11  ;;  %v8014_v4 = vmul.f32 %v23939_v31, %v7930_v51  ;;  %v8302_v46 = vmul.f32 %v20331_v39, %v23947_v45  ;;  %18693 = vmatpush3.bf16.msra.mxu0 %v19764_v32  ;;  %v19772_v31 = vld [vmem:[%s26336_s4 + $0xc8] sm:$0xff]   ;;  %v8369_v11 = vpop.permute.xlu0 %8368  ;;  %v26691_v45 = vld [vmem:[#allocation59_spill] sm:$0xff] }
 0x3ce   :  { %18672 = vmatprep.mubr.bf16.mxu1 %v8906_v55  ;;  %v8729_v43 = vor.u32 %v8728_v63, %v8725_v53  ;;  %v20333_v42 = vpop.eup %20332  ;;  %20346 = vrcp.f32 %v7896_v16  ;;  %v8737_v21 = vrot.slane %v8735_v36, 3  ;;  %v15701_v50 = vcombine.low %v9079_v33, %v24201_v13  ;;  %18694 = vmatprep.subr.bf16.mxu0 %v19770_v17  ;;  %v24250_v62 = vld [vmem:[#allocation2 + $0x1c] sm:$0xf] }
 0x3cf   :  { %v15702_v41 = vcombine.low %v24215_v7, %v24226_v14  ;;  %18670 = vmatprep.subr.bf16.mxu1 %v19771_v22  ;;  %v8011_v59 = vmul.f32 %v26691_v45, %v7927_v20  ;;  %16923 = vst [vmem:[#allocation2 + $0x80] sm:$0xff] %v16767_v57   ;;  %v16742_v32 = vpack.c.bf16 %v8014_v4, %v24181_v56  ;;  %v19773_v56 = vld [vmem:[%s26336_s4 + $0xc0] sm:$0xff]   ;;  %v8911_v45 = vrot.slane %v8705_v58, 3 }
 0x3d0   :  { %v7928_v60 = vmul.f32 %v20333_v42, %v23957_v0  ;;  %v8730_v33 = vsel %vm1397_vm2, %v24169_v47, %v8729_v43  ;;  %v20335_v53 = vpop.eup %20334  ;;  %v24243_v61 = vmul.f32 %v8369_v11, %v8302_v46  ;;  %v8738_v30 = vor.u32 %v8737_v21, %v8734_v18  ;;  %18671 = vmatpush3.bf16.msra.mxu1 %v19771_v22  ;;  %v26692_v0 = vld [vmem:[#allocation32_spill] sm:$0xff]  ;;  %v8374_v9 = vpop.permute.xlu1 %8373 }
 0x3d1   :  { %18652 = vmatprep.mubr.bf16.mxu0 %v8730_v33  ;;  %v9142_v51 = vshrl.u32 %v15701_v50, 16  ;;  %v9145_v49 = vshll.u32 %v15701_v50, 16  ;;  %16918 = vst [vmem:[#allocation2 + $0x58] sm:$0xff] %v16742_v32   ;;  %v8300_v47 = vmul.f32 %v20335_v53, %v23964_v6  ;;  %v9150_v29 = vshrl.u32 %v15702_v41, 16  ;;  %18695 = vmatpush3.bf16.msra.mxu0 %v19770_v17  ;;  %v24264_v50 = vld [vmem:[#allocation2 + $0x24] sm:$0xf] }
 0x3d2   :  { %v8012_v20 = vmul.f32 %v26692_v0, %v7928_v60  ;;  %v9153_v55 = vshll.u32 %v15702_v41, 16  ;;  %18712 = vmatprep.subr.bf16.mxu1 %v24221_v25  ;;  %v20337_v63 = vpop.eup %20336  ;;  %v8739_v39 = vsel %vm1397_vm2, %v8729_v43, %v8738_v30  ;;  %v15703_v22 = vcombine.low %v24250_v62, %v24239_v38  ;;  %18696 = vmatprep.subr.bf16.mxu0 %v19772_v31  ;;  %v24266_v41 = vld [vmem:[#allocation2 + $0x28] sm:$0xf] }
 0x3d3   :  { %v9144_v16 = vrot.slane %v9142_v51, 3  ;;  %v9147_v18 = vrot.slane %v9145_v49, 4  ;;  %v24257_v57 = vmul.f32 %v24188_v52, %v8300_v47  ;;  %v7933_v6 = vmul.f32 %v20337_v63, %v23968_v28  ;;  %18653 = vmatmul.mubr.bf16.gmra.mxu0 %v8739_v39 }
 0x3d4   :  { %v16737_v36 = vpack.c.bf16 %v8012_v20, %v8011_v59  ;;  %v9152_v4 = vrot.slane %v9150_v29, 3  ;;  %v20339_v17 = vpop.eup %20338  ;;  %v9155_v42 = vrot.slane %v9153_v55, 4  ;;  %v8907_v43 = vrot.slane %v8696_v3, 3  ;;  %v24294_v55 = vld [vmem:[#allocation2 + $0x30] sm:$0xf] }
 0x3d5   :  { %v9148_v46 = vor.u32 %v9147_v18, %v9144_v16  ;;  %v8908_v21 = vrot.slane %v8699_v26, 4  ;;  %v20341_v11 = vpop.eup %20340  ;;  %v24269_v52 = vmul.f32 %v23983_v12, %v7933_v6  ;;  %v8303_v28 = vmul.f32 %v20339_v17, %v23981_v8  ;;  %18697 = vmatpush3.bf16.msra.mxu0 %v19772_v31  ;;  %v19775_v12 = vld [vmem:[%s26336_s4 + $0x130] sm:$0xff]   ;;  %v24310_v18 = vld [vmem:[#allocation2 + $0x2c] sm:$0xf] }
 0x3d6   :  { %16917 = vst [vmem:[#allocation2 + $0x50] sm:$0xff] %v16737_v36   ;;  %v8912_v3 = vrot.slane %v8708_v35, 4  ;;  %v7931_v26 = vmul.f32 %v20341_v11, %v23991_v27  ;;  %v9156_v59 = vor.u32 %v9155_v42, %v9152_v4  ;;  %18698 = vmatprep.subr.bf16.mxu0 %v19773_v56  ;;  %v9159_v60 = vshrl.u32 %v15703_v22, 16  ;;  %v19784_v36 = vld [vmem:[#allocation2 + $0x34] ss:$0 sps:$4 sm:$0xff]  }
 0x3d7   :  { %v8909_v32 = vor.u32 %v8908_v21, %v8907_v43  ;;  %v20343_v33 = vpop.eup %20342  ;;  %v8387_v8 = vmul.f32 %v8374_v9, %v8303_v28  ;;  %v9162_v53 = vshll.u32 %v15703_v22, 16  ;;  %v15704_v58 = vcombine.low %v24264_v50, %v24266_v41  ;;  %v24321_v42 = vld [vmem:[#allocation2 + $0x38] sm:$0xf]  ;;  %v19781_v21 = vld [vmem:[%s26336_s4 + $0x120] sm:$0xff]  }
 0x3d8   :  { %v8913_v31 = vor.u32 %v8912_v3, %v8911_v45  ;;  %v24286_v27 = vmul.f32 %v23949_v2, %v7931_v26  ;;  %v8301_v35 = vmul.f32 %v20343_v33, %v23994_v54  ;;  %v9157_v30 = vsel %vm1616_vm3, %v9148_v46, %v9156_v59  ;;  %v24336_v3 = vld [vmem:[#allocation2 + $0x3c] sm:$0xf] }
 0x3d9   :  { %v8910_v51 = vsel %vm1616_vm3, %v24192_v15, %v8909_v32  ;;  %v20345_v49 = vpop.eup %20344  ;;  %v16782_v0 = vpack.c.bf16 %v8387_v8, %v24243_v61  ;;  %18700 = vmatprep.mubr.bf16.mxu0 %v9157_v30  ;;  %v9161_v47 = vrot.slane %v9159_v60, 3  ;;  %v9164_v29 = vrot.slane %v9162_v53, 4  ;;  %18699 = vmatpush3.bf16.msra.mxu0 %v19773_v56  ;;  %v24298_v15 = vld [vmem:[#allocation2 + $0x34] sm:$0xf] }
 0x3da   :  { %18673 = vmatmul.mubr.bf16.vlgmr.msra.gmra.mxu1 %v8910_v51  ;;  %v8914_v20 = vsel %vm1616_vm3, %v8909_v32, %v8913_v31  ;;  %v8385_v2 = vmul.f32 %v24241_v23, %v8301_v35  ;;  %v7934_v54 = vmul.f32 %v20345_v49, %v24010_v19  ;;  %v9168_v63 = vshrl.u32 %v15704_v58, 16  ;;  %18740 = vmatprep.subr.bf16.mxu0 %v19776_v37  ;;  %v19778_v19 = vld [vmem:[%s26336_s4 + $0x128] sm:$0xff]   ;;  %v19791_v60 = vld [vmem:[#allocation2 + $0x10] sm:$0xff]  }
 0x3db   :  { %18676 = vmatprep.mubr.bf16.mxu1 %v8914_v20  ;;  %v9171_v39 = vshll.u32 %v15704_v58, 16  ;;  %v20347_v22 = vpop.eup %20346  ;;  %16926 = vst [vmem:[#allocation2 + $0x98] sm:$0xff] %v16782_v0   ;;  %18713 = vmatpush3.bf16.msra.mxu1 %v24221_v25  ;;  %v9165_v61 = vor.u32 %v9164_v29, %v9161_v47  ;;  %v8915_v16 = vrot.slane %v8714_v5, 3  ;;  %v8916_v23 = vrot.slane %v8717_v1, 4  ;;  %v19785_v47 = vld [vmem:[%s26336_s4 + $0x118] sm:$0xff]  }
 0x3dc   :  { %v8919_v56 = vrot.slane %v8723_v24, 3  ;;  %v16777_v25 = vpack.c.bf16 %v8385_v2, %v24257_v57  ;;  %v8018_v6 = vmul.f32 %v24004_v44, %v7934_v54  ;;  %v7932_v4 = vmul.f32 %v20347_v22, %v24021_v10  ;;  %18714 = vmatprep.subr.bf16.mxu1 %v19775_v12  ;;  %v26693_v57 = vld [vmem:[#allocation66_spill] sm:$0xff]  ;;  %v24346_v54 = vld [vmem:[#allocation2 + $0x18] sm:$0xff]   ;;  %v19786_v22 = vld [vmem:[%s26336_s4 + $0x160] sm:$0xff]  }
 0x3dd   :  { %v9170_v5 = vrot.slane %v9168_v63, 3  ;;  %v9166_v1 = vsel %vm1616_vm3, %v9156_v59, %v9165_v61  ;;  %v9173_v17 = vrot.slane %v9171_v39, 4  ;;  %v8917_v46 = vor.u32 %v8916_v23, %v8915_v16 }
 0x3de   :  { %v8920_v24 = vrot.slane %v8726_v40, 4  ;;  %16925 = vst [vmem:[#allocation2 + $0x90] sm:$0xff] %v16777_v25   ;;  %v16752_v44 = vpack.c.bf16 %v8018_v6, %v24269_v52  ;;  %v8016_v10 = vmul.f32 %v26693_v57, %v7932_v4  ;;  %18701 = vmatmul.mubr.bf16.vlgmr.msra.gmra.mxu0 %v9166_v1  ;;  %v15705_v43 = vcombine.low %v24310_v18, %v24294_v55  ;;  %v19782_v52 = vld [vmem:[%s26336_s4 + $0x168] sm:$0xff]   ;;  %v19789_v25 = vld [vmem:[%s26336_s4 + $0x110] sm:$0xff]   ;;  %v19790_v6 = vld [vmem:[%s26336_s4 + $0x158] sm:$0xff]  }
 0x3df   :  { %v15706_v11 = vcombine.low %v24298_v15, %v24321_v42  ;;  %v9174_v48 = vor.u32 %v9173_v17, %v9170_v5  ;;  %18715 = vmatpush3.bf16.msra.mxu1 %v19775_v12  ;;  %18741 = vmatpush3.bf16.msra.mxu0 %v19776_v37  ;;  %v8918_v40 = vsel %vm1616_vm3, %v8913_v31, %v8917_v46  ;;  %v8924_v45 = vshrl.u32 %v19784_v36, 16  ;;  %v19793_v1 = vld [vmem:[%s26336_s4 + $0x108] sm:$0xff]   ;;  %v19794_v17 = vld [vmem:[%s26336_s4 + $0x150] sm:$0xff]   ;;  %v19795_v57 = vld [vmem:[%s26336_s4 + $0x100] sm:$0xff]  }
 0x3e0   :  { %v8921_v28 = vor.u32 %v8920_v24, %v8919_v56  ;;  %16920 = vst [vmem:[#allocation2 + $0x68] sm:$0xff] %v16752_v44   ;;  %v16747_v9 = vpack.c.bf16 %v8016_v10, %v24286_v27  ;;  %18716 = vmatprep.subr.bf16.mxu1 %v19778_v19  ;;  %18742 = vmatprep.subr.bf16.mxu0 %v19779_v34  ;;  %v9177_v26 = vshrl.u32 %v15705_v43, 16  ;;  %v9180_v59 = vshll.u32 %v15705_v43, 16  ;;  %v19800_v44 = vld [vmem:[#allocation2 + $0x20] sm:$0xff]   ;;  %v19796_v10 = vld [vmem:[%s26336_s4 + $0x148] sm:$0xff]  }
 0x3e1   :  { %v9186_v32 = vshrl.u32 %v15706_v11, 16  ;;  %v9175_v12 = vsel %vm1616_vm3, %v9165_v61, %v9174_v48  ;;  %v9189_v8 = vshll.u32 %v15706_v11, 16  ;;  %v8926_v31 = vrot.slane %v8924_v45, 3  ;;  %v19798_v11 = vld [vmem:[%s26336_s4 + $0x1b8] sm:$0xff]   ;;  %v19801_v45 = vld [vmem:[%s26336_s4 + $0x1b0] sm:$0xff]  }
 0x3e2   :  { %18677 = vmatmul.mubr.bf16.gmra.mxu1 %v8918_v40  ;;  %v8922_v33 = vsel %vm1616_vm3, %v8917_v46, %v8921_v28  ;;  %16919 = vst [vmem:[#allocation2 + $0x60] sm:$0xff] %v16747_v9   ;;  %18704 = vmatprep.mubr.bf16.mxu0 %v9175_v12  ;;  %v9179_v53 = vrot.slane %v9177_v26, 3  ;;  %v9182_v37 = vrot.slane %v9180_v59, 4  ;;  %v8927_v27 = vshll.u32 %v19784_v36, 16  ;;  %v19802_v9 = vld [vmem:[%s26336_s4 + $0x1f8] sm:$0xff]  }
 0x3e3   :  { %18680 = vmatprep.mubr.bf16.mxu1 %v8922_v33  ;;  %v9188_v58 = vrot.slane %v9186_v32, 3  ;;  %18717 = vmatpush3.bf16.msra.mxu1 %v19778_v19  ;;  %v9191_v35 = vrot.slane %v9189_v8, 4  ;;  %v15707_v30 = vcombine.low %v24336_v3, %v24336_v3  ;;  %v9584_v0 = vshll.u32 %v19791_v60, 16  ;;  %v24393_v12 = vld [vmem:[#allocation2 + $0x1c] sm:$0xf] }
 0x3e4   :  { %18743 = vmatpush3.bf16.msra.mxu0 %v19779_v34  ;;  %v9183_v51 = vor.u32 %v9182_v37, %v9179_v53  ;;  %18718 = vmatprep.subr.bf16.mxu1 %v19781_v21  ;;  %v8929_v49 = vrot.slane %v8927_v27, 4  ;;  %v15732_v19 = vcombine.low %v24201_v13, %v24215_v7  ;;  %v9582_v4 = vshrl.u32 %v19791_v60, 16  ;;  %v9780_v60 = vld [vmem:[#allocation2 + $0x18] sm:$0xf]  ;;  %v24404_v27 = vld [vmem:[#allocation2 + $0x20] sm:$0xff]  }
 0x3e5   :  { %18744 = vmatprep.subr.bf16.mxu0 %v19782_v52  ;;  %v9192_v20 = vor.u32 %v9191_v35, %v9188_v58  ;;  %v9195_v29 = vshrl.u32 %v15707_v30, 16  ;;  %v9198_v2 = vshll.u32 %v15707_v30, 16  ;;  %v9586_v16 = vrot.slane %v9584_v0, 1  ;;  %v19811_v37 = vld [vmem:[#allocation2 + $0x38] sm:$0xff]  }
 0x3e6   :  { %v9184_v63 = vsel %vm1616_vm3, %v9174_v48, %v9183_v51  ;;  %v8930_v39 = vor.u32 %v8929_v49, %v8926_v31  ;;  %v9589_v5 = vshll.u32 %v24346_v54, 16  ;;  %v9597_v43 = vshll.u32 %v19800_v44, 16  ;;  %v19803_v48 = vld [vmem:[#allocation2 + $0x28] sm:$0xff]   ;;  %v19809_v49 = vld [vmem:[%s26336_s4 + $0x1a0] sm:$0xff]  }
 0x3e7   :  { %18705 = vmatmul.mubr.bf16.gmra.mxu0 %v9184_v63  ;;  %v9193_v61 = vsel %vm1616_vm3, %v9183_v51, %v9192_v20  ;;  %18719 = vmatpush3.bf16.msra.mxu1 %v19781_v21  ;;  %v9197_v56 = vrot.slane %v9195_v29, 3  ;;  %v9200_v36 = vrot.slane %v9198_v2, 4  ;;  %v9587_v34 = vor.u32 %v9586_v16, %v9582_v4  ;;  %v19797_v21 = vld [vmem:[%s26336_s4 + $0x140] sm:$0xff]  }
 0x3e8   :  { %18708 = vmatprep.mubr.bf16.mxu0 %v9193_v61  ;;  %18745 = vmatpush3.bf16.msra.mxu0 %v19782_v52  ;;  %v8931_v23 = vsel %vm1616_vm3, %v8921_v28, %v8930_v39  ;;  %v9591_v7 = vrot.slane %v9589_v5, 1  ;;  %v9599_v40 = vrot.slane %v9597_v43, 1  ;;  %v19808_v28 = vld [vmem:[#allocation2 + $0x30] sm:$0xff]   ;;  %v15733_v52 = vcombine.low %v24226_v14, %v24250_v62  ;;  %v19814_v61 = vld [vmem:[%s26336_s4 + $0x1e0] sm:$0xff]  }
 0x3e9   :  { %18720 = vmatprep.subr.bf16.mxu1 %v19785_v47  ;;  %18746 = vmatprep.subr.bf16.mxu0 %v19786_v22  ;;  %v9201_v13 = vor.u32 %v9200_v36, %v9197_v56  ;;  %v15734_v26 = vcombine.low %v24239_v38, %v24264_v50  ;;  %v9601_v59 = vshrl.u32 %v19800_v44, 16  ;;  %v9605_v32 = vshll.u32 %v19803_v48, 16  ;;  %v19805_v38 = vld [vmem:[%s26336_s4 + $0x1a8] sm:$0xff]   ;;  %v19806_v50 = vld [vmem:[%s26336_s4 + $0x1f0] sm:$0xff]   ;;  %v10041_v36 = vld [vmem:[#allocation2 + $0x18] sm:$0xe] }
 0x3ea   :  { %18681 = vmatmul.mubr.bf16.gmra.mxu1 %v8931_v23  ;;  %v9592_v24 = vsel %vm2306_vm4, %v9587_v34, %v9591_v7  ;;  %v9593_v14 = vshrl.u32 %v24346_v54, 16  ;;  %v9613_v33 = vshll.u32 %v19808_v28, 16  ;;  %v15793_v31 = vcombine.low %v9780_v60, %v24393_v12  ;;  %v19818_v5 = vld [vmem:[%s26336_s4 + $0x190] sm:$0xff]   ;;  %v19819_v34 = vld [vmem:[%s26336_s4 + $0x1d8] sm:$0xff]   ;;  %v19821_v44 = vld [vmem:[%s26336_s4 + $0x188] sm:$0xff]  }
 0x3eb   :  { %18728 = vmatprep.mubr.bf16.mxu1 %v15732_v19  ;;  %18721 = vmatpush3.bf16.msra.mxu1 %v19785_v47  ;;  %v9202_v46 = vsel %vm1616_vm3, %v9192_v20, %v9201_v13  ;;  %v9603_v62 = vor.u32 %v9601_v59, %v9599_v40  ;;  %v9607_v53 = vrot.slane %v9605_v32, 1  ;;  %v15735_v51 = vcombine.low %v24266_v41, %v24310_v18  ;;  %v19810_v47 = vld [vmem:[%s26336_s4 + $0x1e8] sm:$0xff]   ;;  %v19817_v18 = vld [vmem:[#allocation2 + $0x40] ss:$0 sps:$4 sm:$0x11]   ;;  %v24451_v43 = vld [vmem:[#allocation2 + $0x30] sm:$0xff]  }
 0x3ec   :  { %18747 = vmatpush3.bf16.msra.mxu0 %v19786_v22  ;;  %18722 = vmatprep.subr.bf16.mxu1 %v19789_v25  ;;  %v9595_v8 = vor.u32 %v9593_v14, %v9591_v7  ;;  %v9615_v30 = vrot.slane %v9613_v33, 1  ;;  %v9845_v0 = vshll.u32 %v15793_v31, 16  ;;  %v15736_v20 = vcombine.low %v24294_v55, %v24298_v15  ;;  %v19813_v15 = vld [vmem:[%s26336_s4 + $0x198] sm:$0xff]   ;;  %v24476_v14 = vld [vmem:[#allocation2 + $0x40] sm:$0xff]   ;;  %v19829_v33 = vld [vmem:[%s26336_s4 + $0x230] sm:$0xff]  }
 0x3ed   :  { %18748 = vmatprep.subr.bf16.mxu0 %v19790_v6  ;;  %v9608_v35 = vsel %vm2306_vm4, %v9603_v62, %v9607_v53  ;;  %v9617_v29 = vshrl.u32 %v19808_v28, 16  ;;  %v9621_v2 = vshll.u32 %v19811_v37, 16  ;;  %v9609_v54 = vshrl.u32 %v19803_v48, 16  ;;  %v24471_v59 = vld [vmem:[#allocation2 + $0x38] sm:$0xff]  }
 0x3ee   :  { %v9600_v58 = vsel %vm2306_vm4, %v9595_v8, %v9599_v40  ;;  %v9850_v41 = vshll.u32 %v24404_v27, 16  ;;  %v9847_v22 = vrot.slane %v9845_v0, 1  ;;  %v9843_v23 = vshrl.u32 %v15793_v31, 16  ;;  %v19824_v40 = vld [vmem:[%s26336_s4 + $0x1c8] sm:$0xff]   ;;  %v19833_v0 = vld [vmem:[%s26336_s4 + $0x70] sm:$0xff]  }
 0x3ef   :  { %18709 = vmatmul.mubr.bf16.gmra.mxu0 %v9202_v46  ;;  %18723 = vmatpush3.bf16.msra.mxu1 %v19789_v25  ;;  %v9619_v63 = vor.u32 %v9617_v29, %v9615_v30  ;;  %v9611_v39 = vor.u32 %v9609_v54, %v9607_v53  ;;  %v9623_v55 = vrot.slane %v9621_v2, 1  ;;  %v9629_v56 = vshll.u32 %v19817_v18, 16  ;;  %v24441_v46 = vld [vmem:[#allocation2 + $0x28] sm:$0xff]   ;;  %v19830_v53 = vld [vmem:[%s26336_s4 + $0x78] sm:$0xff]  }
 0x3f0   :  { %18749 = vmatpush3.bf16.msra.mxu0 %v19790_v6  ;;  %18756 = vmatprep.mubr.bf16.mxu0 %v9592_v24  ;;  %v9852_v19 = vrot.slane %v9850_v41, 1  ;;  %v15737_v6 = vcombine.low %v24321_v42, %v24336_v3  ;;  %v9848_v4 = vor.u32 %v9847_v22, %v9843_v23  ;;  %v24437_v13 = vcombine.low %v10041_v36, %v24393_v12  ;;  %v19837_v54 = vld [vmem:[#allocation2 + $0x48] ss:$0 sps:$4 sm:$0x11]  }
 0x3f1   :  { %18724 = vmatprep.subr.bf16.mxu1 %v19793_v1  ;;  %18750 = vmatprep.subr.bf16.mxu0 %v19794_v17  ;;  %v9616_v16 = vsel %vm2306_vm4, %v9611_v39, %v9615_v30  ;;  %v9624_v25 = vsel %vm2306_vm4, %v9619_v63, %v9623_v55  ;;  %v10062_v42 = vrot.slane %v24404_v27, 1  ;;  %v9858_v48 = vshll.u32 %v24441_v46, 16  ;;  %v19835_v63 = vld [vmem:[%s26336_s4 + $0x220] sm:$0xff]  }
 0x3f2   :  { %v9853_v7 = vsel %vm2306_vm4, %v9848_v4, %v9852_v19  ;;  %v10061_v24 = vrot.slane %v24437_v13, 1  ;;  %v9866_v28 = vshll.u32 %v24451_v43, 16  ;;  %v9862_v60 = vshrl.u32 %v24441_v46, 16 }
 0x3f3   :  { %18725 = vmatpush3.bf16.msra.mxu1 %v19793_v1  ;;  %v9625_v1 = vshrl.u32 %v19811_v37, 16  ;;  %v9874_v8 = vshll.u32 %v24471_v59, 16  ;;  %v10066_v37 = vrot.slane %v24451_v43, 1  ;;  %v10064_v30 = vrot.slane %v24441_v46, 1  ;;  %v19851_v46 = vld [vmem:[%s26336_s4 + $0x30] sm:$0xff]  }
 0x3f4   :  { %18751 = vmatpush3.bf16.msra.mxu0 %v19794_v17  ;;  %18726 = vmatprep.subr.bf16.mxu1 %v19795_v57  ;;  %v9631_v17 = vrot.slane %v9629_v56, 1  ;;  %v9868_v12 = vrot.slane %v9866_v28, 1  ;;  %v10242_v39 = vshrl.u32 %v24437_v13, 16  ;;  %v10245_v22 = vshll.u32 %v24437_v13, 16 }
 0x3f5   :  { %18752 = vmatprep.subr.bf16.mxu0 %v19796_v10  ;;  %v9627_v3 = vor.u32 %v9625_v1, %v9623_v55  ;;  %v10067_v2 = vsel %vm2789_vm5, %v10064_v30, %v10066_v37  ;;  %v10250_v23 = vrot.slane %v9850_v41, 2  ;;  %v9886_v56 = vshrl.u32 %v24476_v14, 16  ;;  %v19839_v41 = vld [vmem:[%s26336_s4 + $0x60] sm:$0xff]  }
 0x3f6   :  { %v9890_v36 = vshll.u32 %v19837_v54, 16  ;;  %v10247_v4 = vrot.slane %v10245_v22, 2 }
 0x3f7   :  { %18727 = vmatpush3.bf16.msra.mxu1 %v19795_v57  ;;  %v19822_v57 = vld [vmem:[%s26336_s4 + $0x1d0] sm:$0xff]  }
 0x3f8   :  { %18753 = vmatpush3.bf16.msra.mxu0 %v19796_v10  ;;  %18768 = vmatprep.subr.bf16.mxu1 %v19798_v11  ;;  %v9632_v10 = vsel %vm2306_vm4, %v9627_v3, %v9631_v17  ;;  %v9892_v17 = vrot.slane %v9890_v36, 1  ;;  %v19857_v36 = vld [vmem:[%s26336_s4 + $0x20] sm:$0xff]  }
 0x3f9   :  { %18754 = vmatprep.subr.bf16.mxu0 %v19797_v21 }
 0x3fa   :  { %18729 = vmatmul.mubr.bf16.vlgmr.msra.gmra.mxu1 %v15733_v52  ;;  %v9854_v52 = vshrl.u32 %v24404_v27, 16  ;;  %v19838_v27 = vld [vmem:[%s26336_s4 + $0x218] sm:$0xff]  }
 0x3fb   :  { %18732 = vmatprep.mubr.bf16.mxu1 %v15734_v26  ;;  %18769 = vmatpush3.bf16.msra.mxu1 %v19798_v11  ;;  %v19823_v11 = vld [vmem:[%s26336_s4 + $0x180] sm:$0xff]   ;;  %v19827_v26 = vld [vmem:[%s26336_s4 + $0x238] sm:$0xff]  }
 0x3fc   :  { %18755 = vmatpush3.bf16.msra.mxu0 %v19797_v21  ;;  %18770 = vmatprep.subr.bf16.mxu1 %v19801_v45  ;;  %v10063_v21 = vsel %vm2789_vm5, %v10061_v24, %v10062_v42  ;;  %v9856_v32 = vor.u32 %v9854_v52, %v9852_v19  ;;  %v10070_v19 = vrot.slane %v24476_v14, 1  ;;  %v19840_v24 = vld [vmem:[%s26336_s4 + $0x210] sm:$0xff]  }
 0x3fd   :  { %18796 = vmatprep.subr.bf16.mxu0 %v19802_v9 }
 0x3ff   :  { %18757 = vmatmul.mubr.bf16.vlgmr.msra.gmra.mxu0 %v9600_v58  ;;  %18771 = vmatpush3.bf16.msra.mxu1 %v19801_v45  ;;  %v19826_v45 = vld [vmem:[%s26336_s4 + $0x1c0] sm:$0xff]   ;;  %v9870_v58 = vshrl.u32 %v24451_v43, 16 }
 0x400   :  { %18760 = vmatprep.mubr.bf16.mxu0 %v9608_v35  ;;  %18797 = vmatpush3.bf16.msra.mxu0 %v19802_v9  ;;  %v9860_v9 = vrot.slane %v9858_v48, 1  ;;  %v19832_v35 = vld [vmem:[%s26336_s4 + $0x228] sm:$0xff]  }
 0x401   :  { %18772 = vmatprep.subr.bf16.mxu1 %v19805_v38  ;;  %18798 = vmatprep.subr.bf16.mxu0 %v19806_v50 }
 0x402   :  { %18733 = vmatmul.mubr.bf16.gmra.mxu1 %v15735_v51  ;;  %v9864_v62 = vor.u32 %v9862_v60, %v9860_v9  ;;  %v9861_v31 = vsel %vm2306_vm4, %v9856_v32, %v9860_v9  ;;  %v9876_v51 = vrot.slane %v9874_v8, 1  ;;  %v19844_v9 = vld [vmem:[%s26336_s4 + $0x208] sm:$0xff]  }
 0x403   :  { %18736 = vmatprep.mubr.bf16.mxu1 %v15736_v20  ;;  %18773 = vmatpush3.bf16.msra.mxu1 %v19805_v38  ;;  %v10065_v20 = vsel %vm2789_vm5, %v10062_v42, %v10064_v30  ;;  %v24535_v42 = vld [vmem:[#allocation2 + $0x3c] sm:$0xff]  }
 0x404   :  { %18799 = vmatpush3.bf16.msra.mxu0 %v19806_v50  ;;  %18774 = vmatprep.subr.bf16.mxu1 %v19809_v49  ;;  %v9869_v38 = vsel %vm2306_vm4, %v9864_v62, %v9868_v12  ;;  %v9882_v50 = vshll.u32 %v24476_v14, 16  ;;  %v19846_v62 = vld [vmem:[%s26336_s4 + $0x200] sm:$0xff]   ;;  %v19854_v14 = vld [vmem:[%s26336_s4 + $0x28] sm:$0xff]  }
 0x405   :  { %18800 = vmatprep.subr.bf16.mxu0 %v19810_v47 }
 0x406   :  { %v9884_v29 = vrot.slane %v9882_v50, 1 }
 0x407   :  { %18761 = vmatmul.mubr.bf16.gmra.mxu0 %v9616_v16  ;;  %18775 = vmatpush3.bf16.msra.mxu1 %v19809_v49  ;;  %v9872_v49 = vor.u32 %v9870_v58, %v9868_v12  ;;  %v10249_v16 = vrot.slane %v9854_v52, 1  ;;  %v10072_v52 = vrot.slane %v19837_v54, 1 }
 0x408   :  { %18764 = vmatprep.mubr.bf16.mxu0 %v9624_v25  ;;  %18801 = vmatpush3.bf16.msra.mxu0 %v19810_v47  ;;  %v9878_v47 = vshrl.u32 %v24471_v59, 16  ;;  %v10068_v25 = vrot.slane %v24471_v59, 1  ;;  %v10737_v59 = vshrl.u32 %v24535_v42, 16 }
 0x409   :  { %18776 = vmatprep.subr.bf16.mxu1 %v19813_v15  ;;  %18802 = vmatprep.subr.bf16.mxu0 %v19814_v61  ;;  %v9877_v55 = vsel %vm2306_vm4, %v9872_v49, %v9876_v51  ;;  %v10251_v13 = vor.u32 %v10250_v23, %v10249_v16  ;;  %v10073_v32 = vsel %vm2789_vm5, %v10070_v19, %v10072_v52  ;;  %v10498_v49 = vld [vmem:[#allocation2 + $0x34] sm:$0xc]  ;;  %v24615_v23 = vld [vmem:[#allocation2 + $0x5c] sm:$0xff]   ;;  %v24638_v52 = vld [vmem:[#allocation2 + $0x64] ss:$0 sps:$4 sm:$0x77]  }
 0x40a   :  { %18737 = vmatmul.mubr.bf16.gmra.mxu1 %v15737_v6  ;;  %v9880_v18 = vor.u32 %v9878_v47, %v9876_v51  ;;  %v10244_v6 = vrot.slane %v10242_v39, 1  ;;  %v10071_v1 = vsel %vm2789_vm5, %v10068_v25, %v10070_v19  ;;  %v19852_v51 = vld [vmem:[%s26336_s4 + $0xb8] sm:$0xff]   ;;  %v19860_v39 = vld [vmem:[#allocation2 + $0x48] ss:$0 sps:$4 sm:$0x33]  }
 0x40b   :  { %18777 = vmatpush3.bf16.msra.mxu1 %v19813_v15  ;;  %18784 = vmatprep.mubr.bf16.mxu1 %v9853_v7  ;;  %v19836_v15 = vld [vmem:[%s26336_s4 + $0x68] sm:$0xff]   ;;  %v10527_v7 = vld [vmem:[#allocation2 + $0x34] sm:$0x8]  ;;  %v10270_v19 = vshrl.u32 %v19860_v39, 16 }
 0x40c   :  { %18803 = vmatpush3.bf16.msra.mxu0 %v19814_v61  ;;  %18778 = vmatprep.subr.bf16.mxu1 %v19818_v5  ;;  %v9885_v61 = vsel %vm2306_vm4, %v9880_v18, %v9884_v29  ;;  %v10248_v3 = vor.u32 %v10247_v4, %v10244_v6  ;;  %v10261_v18 = vrot.slane %v9878_v47, 1 }
 0x40d   :  { %18804 = vmatprep.subr.bf16.mxu0 %v19819_v34 }
 0x40f   :  { %18765 = vmatmul.mubr.bf16.gmra.mxu0 %v9632_v10  ;;  %18779 = vmatpush3.bf16.msra.mxu1 %v19818_v5  ;;  %v9888_v5 = vor.u32 %v9886_v56, %v9884_v29  ;;  %v19841_v10 = vld [vmem:[%s26336_s4 + $0x58] sm:$0xff]   ;;  %v10265_v29 = vrot.slane %v9886_v56, 1  ;;  %v10273_v56 = vshll.u32 %v19860_v39, 16 }
 0x410   :  { %18805 = vmatpush3.bf16.msra.mxu0 %v19819_v34  ;;  %18812 = vmatprep.mubr.bf16.mxu0 %v10063_v21  ;;  %v10069_v34 = vsel %vm2789_vm5, %v10066_v37, %v10068_v25  ;;  %v10254_v37 = vrot.slane %v9858_v48, 2 }
 0x411   :  { %18780 = vmatprep.subr.bf16.mxu1 %v19821_v44  ;;  %18806 = vmatprep.subr.bf16.mxu0 %v19822_v57 }
 0x413   :  { %18781 = vmatpush3.bf16.msra.mxu1 %v19821_v44  ;;  %v24540_v44 = vld [vmem:[#allocation2 + $0x38] sm:$0xf] }
 0x414   :  { %18807 = vmatpush3.bf16.msra.mxu0 %v19822_v57  ;;  %18782 = vmatprep.subr.bf16.mxu1 %v19823_v11  ;;  %v9893_v57 = vsel %vm2306_vm4, %v9888_v5, %v9892_v17  ;;  %v24547_v21 = vcombine.low %v10527_v7, %v24540_v44  ;;  %v15901_v22 = vcombine.low %v10498_v49, %v24540_v44  ;;  %v19858_v5 = vld [vmem:[%s26336_s4 + $0xa8] sm:$0xff]   ;;  %v10586_v7 = vrot.slane %v24615_v23, 3  ;;  %v19862_v44 = vld [vmem:[%s26336_s4 + $0xa0] sm:$0xff]  }
 0x415   :  { %18808 = vmatprep.subr.bf16.mxu0 %v19824_v40  ;;  %v10275_v17 = vrot.slane %v10273_v56, 2 }
 0x416   :  { %v10729_v25 = vshrl.u32 %v15901_v22, 16  ;;  %v10732_v6 = vshll.u32 %v15901_v22, 16 }
 0x417   :  { %18783 = vmatpush3.bf16.msra.mxu1 %v19823_v11  ;;  %v10252_v11 = vsel %vm2971_vm6, %v10248_v3, %v10251_v13 }
 0x418   :  { %18809 = vmatpush3.bf16.msra.mxu0 %v19824_v40  ;;  %18824 = vmatprep.subr.bf16.mxu1 %v19827_v26  ;;  %v10578_v40 = vrot.slane %v24535_v42, 3  ;;  %v10734_v3 = vrot.slane %v10732_v6, 3 }
 0x419   :  { %18810 = vmatprep.subr.bf16.mxu0 %v19826_v45 }
 0x41a   :  { %18785 = vmatmul.mubr.bf16.vlgmr.msra.gmra.mxu1 %v9861_v31  ;;  %v10257_v31 = vrot.slane %v9870_v58, 1  ;;  %v19848_v58 = vld [vmem:[%s26336_s4 + $0x40] sm:$0xff]  }
 0x41b   :  { %18788 = vmatprep.mubr.bf16.mxu1 %v9869_v38  ;;  %18825 = vmatpush3.bf16.msra.mxu1 %v19827_v26  ;;  %v19845_v26 = vld [vmem:[%s26336_s4 + $0x50] sm:$0xff]   ;;  %v10253_v38 = vrot.slane %v9862_v60, 1 }
 0x41c   :  { %18811 = vmatpush3.bf16.msra.mxu0 %v19826_v45  ;;  %18826 = vmatprep.subr.bf16.mxu1 %v19829_v33  ;;  %v10577_v45 = vrot.slane %v24547_v21, 3  ;;  %v24582_v60 = vld [vmem:[#allocation2 + $0x4c] sm:$0xff]  }
 0x41d   :  { %18852 = vmatprep.subr.bf16.mxu0 %v19830_v53  ;;  %v10255_v30 = vor.u32 %v10254_v37, %v10253_v38  ;;  %v10582_v54 = vrot.slane %v24582_v60, 3  ;;  %v10588_v37 = vrot.slane %v24638_v52, 3  ;;  %v10755_v49 = vshrl.u32 %v24582_v60, 16 }
 0x41e   :  { %v10579_v12 = vsel %vm1245_vm1, %v10577_v45, %v10578_v40 }
 0x41f   :  { %18813 = vmatmul.mubr.bf16.vlgmr.msra.gmra.mxu0 %v10065_v20  ;;  %18827 = vmatpush3.bf16.msra.mxu1 %v19829_v33  ;;  %v19847_v33 = vld [vmem:[%s26336_s4 + $0x48] sm:$0xff]   ;;  %v10256_v48 = vsel %vm2971_vm6, %v10251_v13, %v10255_v30 }
 0x420   :  { %18816 = vmatprep.mubr.bf16.mxu0 %v10067_v2  ;;  %18853 = vmatpush3.bf16.msra.mxu0 %v19830_v53  ;;  %v10258_v53 = vrot.slane %v9866_v28, 2  ;;  %v24580_v28 = vld [vmem:[#allocation2 + $0x44] sm:$0xff]   ;;  %v10266_v2 = vrot.slane %v9882_v50, 2  ;;  %v19855_v50 = vld [vmem:[%s26336_s4 + $0xb0] sm:$0xff]  }
 0x421   :  { %18828 = vmatprep.subr.bf16.mxu1 %v19832_v35  ;;  %18854 = vmatprep.subr.bf16.mxu0 %v19833_v0  ;;  %v10580_v20 = vrot.slane %v24580_v28, 3 }
 0x422   :  { %18789 = vmatmul.mubr.bf16.gmra.mxu1 %v9877_v55  ;;  %v10259_v43 = vor.u32 %v10258_v53, %v10257_v31  ;;  %v10267_v47 = vor.u32 %v10266_v2, %v10265_v29  ;;  %v19869_v29 = vld [vmem:[%s26336_s4] sm:$0xff]  }
 0x423   :  { %18792 = vmatprep.mubr.bf16.mxu1 %v9885_v61  ;;  %18829 = vmatpush3.bf16.msra.mxu1 %v19832_v35  ;;  %v19849_v35 = vld [vmem:[%s26336_s4 + $0x38] sm:$0xff]   ;;  %v10581_v55 = vsel %vm1245_vm1, %v10578_v40, %v10580_v20  ;;  %v10583_v61 = vsel %vm1245_vm1, %v10580_v20, %v10582_v54 }
 0x424   :  { %18855 = vmatpush3.bf16.msra.mxu0 %v19833_v0  ;;  %18830 = vmatprep.subr.bf16.mxu1 %v19835_v63  ;;  %v10260_v0 = vsel %vm2971_vm6, %v10255_v30, %v10259_v43  ;;  %v19868_v30 = vld [vmem:[%s26336_s4 + $0x90] sm:$0xff]  }
 0x425   :  { %18856 = vmatprep.subr.bf16.mxu0 %v19836_v15 }
 0x427   :  { %18817 = vmatmul.mubr.bf16.gmra.mxu0 %v10069_v34  ;;  %18831 = vmatpush3.bf16.msra.mxu1 %v19835_v63  ;;  %v10262_v63 = vrot.slane %v9874_v8, 2  ;;  %v10740_v8 = vshll.u32 %v24535_v42, 16  ;;  %v10739_v34 = vrot.slane %v10737_v59, 2  ;;  %v10731_v42 = vrot.slane %v10729_v25, 2 }
 0x428   :  { %18820 = vmatprep.mubr.bf16.mxu0 %v10071_v1  ;;  %18857 = vmatpush3.bf16.msra.mxu0 %v19836_v15  ;;  %v24610_v15 = vld [vmem:[#allocation2 + $0x54] sm:$0xff]   ;;  %v10272_v1 = vrot.slane %v10270_v19, 1  ;;  %v10961_v19 = vrot.slane %v10755_v49, 3 }
 0x429   :  { %18832 = vmatprep.subr.bf16.mxu1 %v19838_v27  ;;  %18858 = vmatprep.subr.bf16.mxu0 %v19839_v41  ;;  %v10263_v16 = vor.u32 %v10262_v63, %v10261_v18  ;;  %v10742_v13 = vrot.slane %v10740_v8, 3  ;;  %v19872_v63 = vld [vmem:[%s26336_s4 + $0xf8] sm:$0xff]   ;;  %v10764_v39 = vshrl.u32 %v24610_v15, 16  ;;  %v10767_v22 = vshll.u32 %v24610_v15, 16 }
 0x42a   :  { %18793 = vmatmul.mubr.bf16.gmra.mxu1 %v9893_v57  ;;  %v10946_v57 = vshrl.u32 %v24547_v21, 16 }
 0x42b   :  { %18833 = vmatpush3.bf16.msra.mxu1 %v19838_v27  ;;  %18840 = vmatprep.mubr.bf16.mxu1 %v10252_v11  ;;  %v10264_v4 = vsel %vm2971_vm6, %v10259_v43, %v10263_v16  ;;  %v10268_v27 = vsel %vm2971_vm6, %v10263_v16, %v10267_v47  ;;  %v24636_v40 = vor.u32 %v10742_v13, %v10739_v34  ;;  %v19867_v43 = vld [vmem:[%s26336_s4 + $0x8] sm:$0xff]   ;;  %v24682_v16 = vld [vmem:[#allocation2 + $0x40] sm:$0xf]  ;;  %v10766_v25 = vrot.slane %v10764_v39, 2 }
 0x42c   :  { %18859 = vmatpush3.bf16.msra.mxu0 %v19839_v41  ;;  %18834 = vmatprep.subr.bf16.mxu1 %v19840_v24  ;;  %v10584_v41 = vrot.slane %v24610_v15, 3  ;;  %v10948_v31 = vrot.slane %v10946_v57, 3  ;;  %v19873_v15 = vld [vmem:[%s26336_s4 + $0xf0] sm:$0xff]   ;;  %v10769_v6 = vrot.slane %v10767_v22, 3  ;;  %v24694_v34 = vld [vmem:[#allocation2 + $0x48] sm:$0xf] }
 0x42d   :  { %18860 = vmatprep.subr.bf16.mxu0 %v19841_v10  ;;  %v10782_v57 = vshrl.u32 %v24638_v52, 16 }
 0x42e   :  { %v10585_v11 = vsel %vm1245_vm1, %v10582_v54, %v10584_v41  ;;  %v10587_v45 = vsel %vm1245_vm1, %v10584_v41, %v10586_v7 }
 0x42f   :  { %18821 = vmatmul.mubr.bf16.gmra.mxu0 %v10073_v32  ;;  %18835 = vmatpush3.bf16.msra.mxu1 %v19840_v24  ;;  %v19861_v24 = vld [vmem:[%s26336_s4 + $0x18] sm:$0xff]   ;;  %v10954_v32 = vrot.slane %v10740_v8, 4 }
 0x430   :  { %18861 = vmatpush3.bf16.msra.mxu0 %v19841_v10  ;;  %18868 = vmatprep.mubr.bf16.mxu0 %v10579_v12  ;;  %v10949_v10 = vshll.u32 %v24547_v21, 16  ;;  %v10735_v12 = vor.u32 %v10734_v3, %v10731_v42  ;;  %v19865_v21 = vld [vmem:[%s26336_s4 + $0x10] sm:$0xff]   ;;  %v10770_v3 = vor.u32 %v10769_v6, %v10766_v25 }
 0x431   :  { %18836 = vmatprep.subr.bf16.mxu1 %v19844_v9  ;;  %18862 = vmatprep.subr.bf16.mxu0 %v19845_v26 }
 0x432   :  { %v10951_v53 = vrot.slane %v10949_v10, 4  ;;  %v10744_v38 = vsel %vm1397_vm2, %v10735_v12, %v24636_v40  ;;  %v19875_v10 = vld [vmem:[%s26336_s4 + $0xe8] sm:$0xff]  }
 0x433   :  { %18837 = vmatpush3.bf16.msra.mxu1 %v19844_v9  ;;  %v10276_v9 = vor.u32 %v10275_v17, %v10272_v1 }
 0x434   :  { %18863 = vmatpush3.bf16.msra.mxu0 %v19845_v26  ;;  %18838 = vmatprep.subr.bf16.mxu1 %v19846_v62  ;;  %v10953_v26 = vrot.slane %v10737_v59, 3 }
 0x435   :  { %18864 = vmatprep.subr.bf16.mxu0 %v19847_v33 }
 0x437   :  { %18839 = vmatpush3.bf16.msra.mxu1 %v19846_v62  ;;  %v10277_v62 = vsel %vm2971_vm6, %v10267_v47, %v10276_v9  ;;  %v10776_v47 = vshll.u32 %v24615_v23, 16 }
 0x438   :  { %18865 = vmatpush3.bf16.msra.mxu0 %v19847_v33  ;;  %18880 = vmatprep.subr.bf16.mxu1 %v19849_v35  ;;  %v19866_v33 = vld [vmem:[%s26336_s4 + $0x98] sm:$0xff]  }
 0x439   :  { %18866 = vmatprep.subr.bf16.mxu0 %v19848_v58  ;;  %v10778_v41 = vrot.slane %v10776_v47, 3 }
 0x43a   :  { %18841 = vmatmul.mubr.bf16.vlgmr.msra.gmra.mxu1 %v10256_v48  ;;  %v10749_v48 = vshll.u32 %v24580_v28, 16 }
 0x43b   :  { %18844 = vmatprep.mubr.bf16.mxu1 %v10260_v0  ;;  %18881 = vmatpush3.bf16.msra.mxu1 %v19849_v35  ;;  %v24651_v35 = vor.u32 %v10954_v32, %v10953_v26  ;;  %v10758_v0 = vshll.u32 %v24582_v60, 16  ;;  %v10757_v60 = vrot.slane %v10755_v49, 2  ;;  %v19885_v26 = vld [vmem:[#allocation2 + $0x64] ss:$0 sps:$4 sm:$0xff]  }
 0x43c   :  { %18867 = vmatpush3.bf16.msra.mxu0 %v19848_v58  ;;  %18882 = vmatprep.subr.bf16.mxu1 %v19851_v46  ;;  %v10952_v58 = vor.u32 %v10951_v53, %v10948_v31  ;;  %v10751_v54 = vrot.slane %v10749_v48, 3  ;;  %v10970_v53 = vrot.slane %v10776_v47, 4  ;;  %v24733_v47 = vld [vmem:[#allocation2 + $0x4c] sm:$0xf] }
 0x43d   :  { %18908 = vmatprep.subr.bf16.mxu0 %v19852_v51  ;;  %v10760_v18 = vrot.slane %v10758_v0, 3  ;;  %v10962_v56 = vrot.slane %v10758_v0, 4 }
 0x43e   :  { %v10956_v20 = vsel %vm1616_vm3, %v10952_v58, %v24651_v35  ;;  %v10784_v58 = vrot.slane %v10782_v57, 2 }
 0x43f   :  { %18869 = vmatmul.mubr.bf16.vlgmr.msra.gmra.mxu0 %v10581_v55  ;;  %18883 = vmatpush3.bf16.msra.mxu1 %v19851_v46  ;;  %v10746_v46 = vshrl.u32 %v24580_v28, 16  ;;  %v19870_v28 = vld [vmem:[%s26336_s4 + $0x88] sm:$0xff]   ;;  %v10773_v55 = vshrl.u32 %v24615_v23, 16  ;;  %v10761_v59 = vor.u32 %v10760_v18, %v10757_v60  ;;  %v10963_v42 = vor.u32 %v10962_v56, %v10961_v19  ;;  %v19880_v60 = vld [vmem:[%s26336_s4 + $0x120] sm:$0xff]   ;;  %v24726_v18 = vld [vmem:[#allocation2 + $0x50] sm:$0xf] }
 0x440   :  { %18872 = vmatprep.mubr.bf16.mxu0 %v10583_v61  ;;  %18909 = vmatpush3.bf16.msra.mxu0 %v19852_v51  ;;  %v10589_v51 = vsel %vm1245_vm1, %v10586_v7, %v10588_v37  ;;  %v10958_v61 = vrot.slane %v10749_v48, 4  ;;  %v10974_v48 = vshrl.u32 %v19885_v26, 16  ;;  %v19887_v19 = vld [vmem:[%s26336_s4 + $0x118] sm:$0xff]  }
 0x441   :  { %18884 = vmatprep.subr.bf16.mxu1 %v19854_v14  ;;  %18910 = vmatprep.subr.bf16.mxu0 %v19855_v50  ;;  %v10748_v2 = vrot.slane %v10746_v46, 2  ;;  %v10957_v8 = vrot.slane %v10746_v46, 3  ;;  %v10969_v31 = vrot.slane %v10773_v55, 3  ;;  %v24744_v56 = vld [vmem:[#allocation2 + $0x58] sm:$0xf] }
 0x442   :  { %18845 = vmatmul.mubr.bf16.gmra.mxu1 %v10264_v4  ;;  %v11129_v4 = vld [vmem:[#allocation2 + $0x3c] sm:$0x8] }
 0x443   :  { %18848 = vmatprep.mubr.bf16.mxu1 %v10268_v27  ;;  %18885 = vmatpush3.bf16.msra.mxu1 %v19854_v14  ;;  %v10752_v14 = vor.u32 %v10751_v54, %v10748_v2  ;;  %v10775_v27 = vrot.slane %v10773_v55, 2  ;;  %v15951_v13 = vcombine.low %v11129_v4, %v24682_v16  ;;  %v10959_v1 = vor.u32 %v10958_v61, %v10957_v8  ;;  %v19879_v54 = vld [vmem:[%s26336_s4 + $0xd8] sm:$0xff]   ;;  %v24731_v55 = vld [vmem:[#allocation2 + $0x54] sm:$0xf]  ;;  %v19889_v4 = vld [vmem:[%s26336_s4 + $0xc8] sm:$0xff]  }
 0x444   :  { %18911 = vmatpush3.bf16.msra.mxu0 %v19855_v50  ;;  %18886 = vmatprep.subr.bf16.mxu1 %v19857_v36  ;;  %v19871_v50 = vld [vmem:[%s26336_s4 + $0x80] sm:$0xff]   ;;  %v15953_v61 = vcombine.low %v24733_v47, %v24726_v18  ;;  %v15954_v6 = vcombine.low %v24731_v55, %v24744_v56 }
 0x445   :  { %18912 = vmatprep.subr.bf16.mxu0 %v19858_v5  ;;  %v10753_v23 = vsel %vm1397_vm2, %v24636_v40, %v10752_v14  ;;  %v10762_v7 = vsel %vm1397_vm2, %v10752_v14, %v10761_v59  ;;  %v10779_v40 = vor.u32 %v10778_v41, %v10775_v27  ;;  %v11192_v9 = vshrl.u32 %v15951_v13, 16 }
 0x446   :  { %v10960_v32 = vsel %vm1616_vm3, %v24651_v35, %v10959_v1  ;;  %v11195_v12 = vshll.u32 %v15951_v13, 16  ;;  %v11212_v27 = vshll.u32 %v15953_v61, 16 }
 0x447   :  { %18873 = vmatmul.mubr.bf16.gmra.mxu0 %v10585_v11  ;;  %18887 = vmatpush3.bf16.msra.mxu1 %v19857_v36  ;;  %v24684_v36 = vld [vmem:[#allocation2 + $0x44] sm:$0xf]  ;;  %v19876_v11 = vld [vmem:[%s26336_s4 + $0x130] sm:$0xff]   ;;  %v10780_v35 = vsel %vm1397_vm2, %v10770_v3, %v10779_v40  ;;  %v11194_v46 = vrot.slane %v11192_v9, 3 }
 0x448   :  { %18876 = vmatprep.mubr.bf16.mxu0 %v10587_v45  ;;  %18913 = vmatpush3.bf16.msra.mxu0 %v19858_v5  ;;  %v19874_v5 = vld [vmem:[%s26336_s4 + $0x138] sm:$0xff]   ;;  %v15952_v17 = vcombine.low %v24684_v36, %v24694_v34  ;;  %v10785_v45 = vshll.u32 %v24638_v52, 16  ;;  %v19877_v52 = vld [vmem:[%s26336_s4 + $0xe0] sm:$0xff]   ;;  %v15982_v13 = vcombine.low %v24682_v16, %v24684_v36  ;;  %v19892_v16 = vld [vmem:[%s26336_s4 + $0x108] sm:$0xff]  }
 0x449   :  { %18888 = vmatprep.subr.bf16.mxu1 %v19861_v24  ;;  %18914 = vmatprep.subr.bf16.mxu0 %v19862_v44 }
 0x44a   :  { %18849 = vmatmul.mubr.bf16.gmra.mxu1 %v10277_v62  ;;  %v11203_v62 = vshll.u32 %v15952_v17, 16 }
 0x44b   :  { %18889 = vmatpush3.bf16.msra.mxu1 %v19861_v24  ;;  %18896 = vmatprep.mubr.bf16.mxu1 %v10744_v38  ;;  %v10965_v24 = vrot.slane %v10764_v39, 3  ;;  %v10771_v38 = vsel %vm1397_vm2, %v10761_v59, %v10770_v3  ;;  %v19886_v59 = vld [vmem:[%s26336_s4 + $0xd0] sm:$0xff]   ;;  %v19891_v3 = vld [vmem:[%s26336_s4 + $0xc0] sm:$0xff]  }
 0x44c   :  { %18915 = vmatpush3.bf16.msra.mxu0 %v19862_v44  ;;  %18890 = vmatprep.subr.bf16.mxu1 %v19865_v21  ;;  %v10966_v44 = vrot.slane %v10767_v22, 4  ;;  %v11205_v0 = vrot.slane %v11203_v62, 4  ;;  %v10976_v22 = vrot.slane %v10974_v48, 3 }
 0x44d   :  { %18916 = vmatprep.subr.bf16.mxu0 %v19866_v33 }
 0x44e   :  { %v10967_v37 = vor.u32 %v10966_v44, %v10965_v24  ;;  %v24766_v24 = vld [vmem:[#allocation2 + $0x5c] sm:$0xf]  ;;  %v11214_v44 = vrot.slane %v11212_v27, 4 }
 0x44f   :  { %18877 = vmatmul.mubr.bf16.gmra.mxu0 %v10589_v51  ;;  %18891 = vmatpush3.bf16.msra.mxu1 %v19865_v21  ;;  %v11200_v21 = vshrl.u32 %v15952_v17, 16  ;;  %v11197_v51 = vrot.slane %v11195_v12, 4  ;;  %v24759_v17 = vld [vmem:[#allocation2 + $0x60] sm:$0xf] }
 0x450   :  { %18917 = vmatpush3.bf16.msra.mxu0 %v19866_v33  ;;  %18924 = vmatprep.mubr.bf16.mxu0 %v10956_v20  ;;  %v10964_v33 = vsel %vm1616_vm3, %v10959_v1, %v10963_v42  ;;  %v10977_v20 = vshll.u32 %v19885_v26, 16  ;;  %v11221_v1 = vshll.u32 %v15954_v6, 16 }
 0x451   :  { %18892 = vmatprep.subr.bf16.mxu1 %v19867_v43  ;;  %18918 = vmatprep.subr.bf16.mxu0 %v19868_v30  ;;  %v11202_v49 = vrot.slane %v11200_v21, 3  ;;  %v19893_v21 = vld [vmem:[%s26336_s4 + $0x100] sm:$0xff]  }
 0x452   :  { %v10979_v14 = vrot.slane %v10977_v20, 4  ;;  %v19910_v20 = vld [vmem:[#allocation2 + $0x40] sm:$0xff]  }
 0x453   :  { %18893 = vmatpush3.bf16.msra.mxu1 %v19867_v43  ;;  %v19878_v43 = vld [vmem:[%s26336_s4 + $0x128] sm:$0xff]   ;;  %v24728_v39 = vor.u32 %v11205_v0, %v11202_v49 }
 0x454   :  { %18919 = vmatpush3.bf16.msra.mxu0 %v19868_v30  ;;  %18894 = vmatprep.subr.bf16.mxu1 %v19869_v29  ;;  %v10787_v30 = vrot.slane %v10785_v45, 3  ;;  %v10980_v25 = vor.u32 %v10979_v14, %v10976_v22  ;;  %v11223_v45 = vrot.slane %v11221_v1, 4  ;;  %v15984_v22 = vcombine.low %v24726_v18, %v24731_v55  ;;  %v19904_v18 = vld [vmem:[%s26336_s4 + $0x160] sm:$0xff]   ;;  %v24821_v55 = vld [vmem:[#allocation2 + $0x48] sm:$0xff]  }
 0x455   :  { %18920 = vmatprep.subr.bf16.mxu0 %v19870_v28 }
 0x456   :  { %v10788_v2 = vor.u32 %v10787_v30, %v10784_v58  ;;  %v24788_v58 = vld [vmem:[#allocation2 + $0x6c] sm:$0xf] }
 0x457   :  { %18895 = vmatpush3.bf16.msra.mxu1 %v19869_v29  ;;  %v10971_v29 = vor.u32 %v10970_v53, %v10969_v31 }
 0x458   :  { %18921 = vmatpush3.bf16.msra.mxu0 %v19870_v28  ;;  %18936 = vmatprep.subr.bf16.mxu1 %v19872_v63  ;;  %v10968_v28 = vsel %vm1616_vm3, %v10963_v42, %v10967_v37  ;;  %v10789_v8 = vsel %vm1397_vm2, %v10779_v40, %v10788_v2  ;;  %v24761_v42 = vld [vmem:[#allocation2 + $0x64] sm:$0xf]  ;;  %v15983_v2 = vcombine.low %v24694_v34, %v24733_v47  ;;  %v11830_v34 = vld [vmem:[#allocation2 + $0x48] sm:$0xf]  ;;  %v24812_v47 = vld [vmem:[#allocation2 + $0x4c] sm:$0xf] }
 0x459   :  { %18922 = vmatprep.subr.bf16.mxu0 %v19871_v50  ;;  %v10981_v41 = vsel %vm1616_vm3, %v10971_v29, %v10980_v25 }
 0x45a   :  { %18897 = vmatmul.mubr.bf16.vlgmr.msra.gmra.mxu1 %v10753_v23  ;;  %v19890_v23 = vld [vmem:[%s26336_s4 + $0x110] sm:$0xff]  }
 0x45b   :  { %18900 = vmatprep.mubr.bf16.mxu1 %v10762_v7  ;;  %18937 = vmatpush3.bf16.msra.mxu1 %v19872_v63  ;;  %v11198_v63 = vor.u32 %v11197_v51, %v11194_v46  ;;  %v11218_v7 = vshrl.u32 %v15954_v6, 16 }
 0x45c   :  { %18923 = vmatpush3.bf16.msra.mxu0 %v19871_v50  ;;  %18938 = vmatprep.subr.bf16.mxu1 %v19873_v15  ;;  %v10972_v50 = vsel %vm1616_vm3, %v10967_v37, %v10971_v29  ;;  %v15957_v29 = vcombine.low %v24788_v58, %v24788_v58 }
 0x45d   :  { %18964 = vmatprep.subr.bf16.mxu0 %v19874_v5  ;;  %v11220_v40 = vrot.slane %v11218_v7, 3 }
 0x45f   :  { %18925 = vmatmul.mubr.bf16.vlgmr.msra.gmra.mxu0 %v10960_v32  ;;  %18939 = vmatpush3.bf16.msra.mxu1 %v19873_v15  ;;  %v11207_v15 = vsel %vm1616_vm3, %v11198_v63, %v24728_v39  ;;  %v19894_v32 = vld [vmem:[%s26336_s4 + $0x178] sm:$0xff]   ;;  %v11224_v31 = vor.u32 %v11223_v45, %v11220_v40  ;;  %v19900_v63 = vld [vmem:[%s26336_s4 + $0x168] sm:$0xff]   ;;  %v19909_v40 = vld [vmem:[%s26336_s4 + $0x1a0] sm:$0xff]  }
 0x460   :  { %18928 = vmatprep.mubr.bf16.mxu0 %v10964_v33  ;;  %18965 = vmatpush3.bf16.msra.mxu0 %v19874_v5  ;;  %v11209_v5 = vshrl.u32 %v15953_v61, 16 }
 0x461   :  { %18940 = vmatprep.subr.bf16.mxu1 %v19875_v10  ;;  %18966 = vmatprep.subr.bf16.mxu0 %v19876_v11 }
 0x462   :  { %18901 = vmatmul.mubr.bf16.gmra.mxu1 %v10771_v38  ;;  %v11211_v36 = vrot.slane %v11209_v5, 3  ;;  %v16043_v5 = vcombine.low %v11830_v34, %v24812_v47  ;;  %v24890_v34 = vld [vmem:[#allocation2 + $0x60] sm:$0xff]  }
 0x463   :  { %18904 = vmatprep.mubr.bf16.mxu1 %v10780_v35  ;;  %18941 = vmatpush3.bf16.msra.mxu1 %v19875_v10  ;;  %v15955_v10 = vcombine.low %v24766_v24, %v24759_v17 }
 0x464   :  { %18967 = vmatpush3.bf16.msra.mxu0 %v19876_v11  ;;  %18942 = vmatprep.subr.bf16.mxu1 %v19877_v52  ;;  %v24773_v11 = vld [vmem:[#allocation2 + $0x68] sm:$0xf]  ;;  %v11215_v12 = vor.u32 %v11214_v44, %v11211_v36  ;;  %v11632_v36 = vshrl.u32 %v19910_v20, 16  ;;  %v11639_v44 = vshll.u32 %v24821_v55, 16  ;;  %v11895_v45 = vshll.u32 %v16043_v5, 16 }
 0x465   :  { %18968 = vmatprep.subr.bf16.mxu0 %v19878_v43  ;;  %v15956_v9 = vcombine.low %v24761_v42, %v24773_v11  ;;  %v11227_v62 = vshrl.u32 %v15955_v10, 16  ;;  %v11230_v33 = vshll.u32 %v15955_v10, 16  ;;  %v19908_v10 = vld [vmem:[%s26336_s4 + $0x158] sm:$0xff]  }
 0x466   :  { %v11216_v35 = vsel %vm1616_vm3, %v24728_v39, %v11215_v12  ;;  %v11225_v48 = vsel %vm1616_vm3, %v11215_v12, %v11224_v31  ;;  %v19901_v39 = vld [vmem:[%s26336_s4 + $0x1b0] sm:$0xff]  }
 0x467   :  { %18929 = vmatmul.mubr.bf16.gmra.mxu0 %v10968_v28  ;;  %18943 = vmatpush3.bf16.msra.mxu1 %v19877_v52  ;;  %v11236_v38 = vshrl.u32 %v15956_v9, 16  ;;  %v11239_v37 = vshll.u32 %v15956_v9, 16  ;;  %v19896_v52 = vld [vmem:[%s26336_s4 + $0x170] sm:$0xff]   ;;  %v11229_v30 = vrot.slane %v11227_v62, 3  ;;  %v11232_v46 = vrot.slane %v11230_v33, 4 }
 0x468   :  { %18932 = vmatprep.mubr.bf16.mxu0 %v10972_v50  ;;  %18969 = vmatpush3.bf16.msra.mxu0 %v19878_v43  ;;  %v19897_v43 = vld [vmem:[%s26336_s4 + $0x1b8] sm:$0xff]   ;;  %v15986_v9 = vcombine.low %v24759_v17, %v24761_v42  ;;  %v19913_v62 = vld [vmem:[%s26336_s4 + $0x150] sm:$0xff]  }
 0x469   :  { %18944 = vmatprep.subr.bf16.mxu1 %v19879_v54  ;;  %18970 = vmatprep.subr.bf16.mxu0 %v19880_v60  ;;  %v11238_v49 = vrot.slane %v11236_v38, 3  ;;  %v11241_v0 = vrot.slane %v11239_v37, 4  ;;  %v19914_v42 = vld [vmem:[%s26336_s4 + $0x198] sm:$0xff]  }
 0x46a   :  { %18905 = vmatmul.mubr.bf16.gmra.mxu1 %v10789_v8  ;;  %v11634_v8 = vshll.u32 %v19910_v20, 16  ;;  %v19917_v20 = vld [vmem:[%s26336_s4 + $0x148] sm:$0xff]  }
 0x46b   :  { %18945 = vmatpush3.bf16.msra.mxu1 %v19879_v54  ;;  %18952 = vmatprep.mubr.bf16.mxu1 %v11207_v15  ;;  %v11248_v15 = vshll.u32 %v15957_v29, 16 }
 0x46c   :  { %18971 = vmatpush3.bf16.msra.mxu0 %v19880_v60  ;;  %18946 = vmatprep.subr.bf16.mxu1 %v19886_v59  ;;  %v11233_v60 = vor.u32 %v11232_v46, %v11229_v30  ;;  %v11893_v30 = vshrl.u32 %v16043_v5, 16  ;;  %v19922_v5 = vld [vmem:[%s26336_s4 + $0x180] sm:$0xff]  }
 0x46d   :  { %18972 = vmatprep.subr.bf16.mxu0 %v19887_v19  ;;  %v11250_v1 = vrot.slane %v11248_v15, 4  ;;  %v19923_v15 = vld [vmem:[%s26336_s4 + $0x1f8] sm:$0xff]  }
 0x46f   :  { %18933 = vmatmul.mubr.bf16.gmra.mxu0 %v10981_v41  ;;  %18947 = vmatpush3.bf16.msra.mxu1 %v19886_v59  ;;  %v11242_v59 = vor.u32 %v11241_v0, %v11238_v49  ;;  %v11636_v41 = vrot.slane %v11634_v8, 1  ;;  %v15987_v49 = vcombine.low %v24773_v11, %v24788_v58  ;;  %v19919_v11 = vld [vmem:[%s26336_s4 + $0x140] sm:$0xff]   ;;  %v24879_v58 = vld [vmem:[#allocation2 + $0x58] sm:$0xff]  }
 0x470   :  { %18973 = vmatpush3.bf16.msra.mxu0 %v19887_v19  ;;  %18980 = vmatprep.mubr.bf16.mxu0 %v15982_v13  ;;  %v11245_v19 = vshrl.u32 %v15957_v29, 16  ;;  %v19918_v29 = vld [vmem:[%s26336_s4 + $0x190] sm:$0xff]  }
 0x471   :  { %18948 = vmatprep.subr.bf16.mxu1 %v19889_v4  ;;  %18974 = vmatprep.subr.bf16.mxu0 %v19890_v23  ;;  %v18618_v57 = vpop.f32.mrf.mxu1  ;;  %v11243_v27 = vsel %vm1616_vm3, %v11233_v60, %v11242_v59 }
 0x472   :  { %v11247_v7 = vrot.slane %v11245_v19, 3 }
 0x473   :  { %18949 = vmatpush3.bf16.msra.mxu1 %v19889_v4  ;;  %v8628_v26 = vpop.f32.mrf.mxu1  ;;  %v11234_v4 = vsel %vm1616_vm3, %v11224_v31, %v11233_v60  ;;  %v11897_v31 = vrot.slane %v11895_v45, 1 }
 0x474   :  { %18975 = vmatpush3.bf16.msra.mxu0 %v19890_v23  ;;  %18950 = vmatprep.subr.bf16.mxu1 %v19891_v3  ;;  %v19905_v23 = vld [vmem:[%s26336_s4 + $0x1a8] sm:$0xff]   ;;  %v11251_v12 = vor.u32 %v11250_v1, %v11247_v7 }
 0x475   :  { %18976 = vmatprep.subr.bf16.mxu0 %v19892_v16  ;;  %v24783_v53 = vpop.f32.mrf.mxu1  ;;  %v11898_v0 = vor.u32 %v11897_v31, %v11893_v30 }
 0x476   :  { %v11252_v17 = vsel %vm1616_vm3, %v11242_v59, %v11251_v12 }
 0x477   :  { %18951 = vmatpush3.bf16.msra.mxu1 %v19891_v3  ;;  %v24796_v51 = vpop.f32.mrf.mxu1  ;;  %v24831_v3 = vld [vmem:[#allocation2 + $0x50] sm:$0xff]  }
 0x478   :  { %18977 = vmatpush3.bf16.msra.mxu0 %v19892_v16  ;;  %18992 = vmatprep.subr.bf16.mxu1 %v19894_v32 }
 0x479   :  { %18978 = vmatprep.subr.bf16.mxu0 %v19893_v21 }
 0x47a   :  { %18953 = vmatmul.mubr.bf16.vlgmr.msra.gmra.mxu1 %v11216_v35 }
 0x47b   :  { %18956 = vmatprep.mubr.bf16.mxu1 %v11225_v48  ;;  %18993 = vmatpush3.bf16.msra.mxu1 %v19894_v32 }
 0x47c   :  { %18979 = vmatpush3.bf16.msra.mxu0 %v19893_v21  ;;  %18994 = vmatprep.subr.bf16.mxu1 %v19896_v52  ;;  %v18646_v28 = vpop.f32.mrf.mxu0  ;;  %v11641_v21 = vrot.slane %v11639_v44, 1 }
 0x47d   :  { %19020 = vmatprep.subr.bf16.mxu0 %v19897_v43  ;;  %v24802_v54 = vadd.f32 %v18646_v28, %v18618_v57  ;;  %v15985_v57 = vcombine.low %v24744_v56, %v24766_v24  ;;  %v11900_v56 = vshll.u32 %v24831_v3, 16 }
 0x47e   :  { %v8828_v14 = vpop.f32.mrf.mxu0 }
 0x47f   :  { %v18622_v50 = vpop.f32.mrf.mxu1  ;;  %18981 = vmatmul.mubr.bf16.vlgmr.msra.gmra.mxu0 %v15983_v2  ;;  %18995 = vmatpush3.bf16.msra.mxu1 %v19896_v52  ;;  %v24814_v61 = vadd.f32 %v8828_v14, %v8628_v26  ;;  %v11637_v26 = vor.u32 %v11636_v41, %v11632_v36  ;;  %v19921_v52 = vld [vmem:[#allocation2 + $0x50] sm:$0xff]   ;;  %v11902_v46 = vrot.slane %v11900_v56, 1 }
 0x480   :  { %18984 = vmatprep.mubr.bf16.mxu0 %v15984_v22  ;;  %19021 = vmatpush3.bf16.msra.mxu0 %v19897_v43  ;;  %v24816_v25 = vpop.f32.mrf.mxu0  ;;  %v11647_v28 = vshll.u32 %v19921_v52, 16  ;;  %v24884_v22 = vld [vmem:[#allocation2 + $0x58] sm:$0xff]  }
 0x481   :  { %v8644_v6 = vpop.f32.mrf.mxu1  ;;  %18996 = vmatprep.subr.bf16.mxu1 %v19900_v63  ;;  %19022 = vmatprep.subr.bf16.mxu0 %v19901_v39  ;;  %v11642_v37 = vsel %vm2306_vm4, %v11637_v26, %v11641_v21  ;;  %v24917_v26 = vld [vmem:[#allocation2 + $0x68] sm:$0xff]  }
 0x482   :  { %18957 = vmatmul.mubr.bf16.gmra.mxu1 %v11234_v4  ;;  %v24833_v16 = vpop.f32.mrf.mxu0  ;;  %v11649_v14 = vrot.slane %v11647_v28, 1  ;;  %v11643_v4 = vshrl.u32 %v24821_v55, 16  ;;  %v24909_v55 = vld [vmem:[#allocation2 + $0x68] sm:$0xff]   ;;  %v11659_v28 = vshrl.u32 %v24879_v58, 16 }
 0x483   :  { %18960 = vmatprep.mubr.bf16.mxu1 %v11243_v27  ;;  %18997 = vmatpush3.bf16.msra.mxu1 %v19900_v63  ;;  %v24829_v13 = vpop.f32.mrf.mxu1  ;;  %v11903_v63 = vsel %vm2306_vm4, %v11898_v0, %v11902_v46  ;;  %v11908_v27 = vshll.u32 %v24884_v22, 16  ;;  %v11924_v30 = vshll.u32 %v24909_v55, 16  ;;  %v11671_v0 = vshll.u32 %v24917_v26, 16 }
 0x484   :  { %19023 = vmatpush3.bf16.msra.mxu0 %v19901_v39  ;;  %18998 = vmatprep.subr.bf16.mxu1 %v19904_v18  ;;  %v19920_v39 = vld [vmem:[%s26336_s4 + $0x188] sm:$0xff]   ;;  %v11645_v36 = vor.u32 %v11643_v4, %v11641_v21 }
 0x485   :  { %19024 = vmatprep.subr.bf16.mxu0 %v19905_v23  ;;  %v24846_v32 = vpop.f32.mrf.mxu1  ;;  %v11910_v21 = vrot.slane %v11908_v27, 1 }
 0x487   :  { %18985 = vmatmul.mubr.bf16.gmra.mxu0 %v15985_v57  ;;  %18999 = vmatpush3.bf16.msra.mxu1 %v19904_v18  ;;  %v18626_v43 = vpop.f32.mrf.mxu1  ;;  %v11655_v18 = vshll.u32 %v24879_v58, 16  ;;  %v11916_v57 = vshll.u32 %v24890_v34, 16 }
 0x488   :  { %v18650_v24 = vpop.f32.mrf.mxu0  ;;  %18988 = vmatprep.mubr.bf16.mxu0 %v15986_v9  ;;  %19025 = vmatpush3.bf16.msra.mxu0 %v19905_v23  ;;  %v19926_v9 = vld [vmem:[%s26336_s4 + $0x1f0] sm:$0xff]  }
 0x489   :  { %v24852_v33 = vadd.f32 %v18650_v24, %v18622_v50  ;;  %19000 = vmatprep.subr.bf16.mxu1 %v19908_v10  ;;  %19026 = vmatprep.subr.bf16.mxu0 %v19909_v40  ;;  %v8660_v2 = vpop.f32.mrf.mxu1  ;;  %v24886_v50 = vld [vmem:[#allocation2 + $0x60] sm:$0xff]   ;;  %v11657_v45 = vrot.slane %v11655_v18, 1  ;;  %v11650_v24 = vsel %vm2306_vm4, %v11645_v36, %v11649_v14  ;;  %v19937_v18 = vld [vmem:[#allocation2 + $0x70] ss:$0 sps:$4 sm:$0x11]  }
 0x48a   :  { %v8844_v38 = vpop.f32.mrf.mxu0  ;;  %18961 = vmatmul.mubr.bf16.gmra.mxu1 %v11252_v17  ;;  %v11663_v1 = vshll.u32 %v24886_v50, 16 }
 0x48b   :  { %v24859_v35 = vadd.f32 %v8844_v38, %v8644_v6  ;;  %19001 = vmatpush3.bf16.msra.mxu1 %v19908_v10  ;;  %19008 = vmatprep.mubr.bf16.mxu1 %v11642_v37  ;;  %v24888_v59 = vpop.f32.mrf.mxu1  ;;  %v11651_v6 = vshrl.u32 %v19921_v52, 16  ;;  %v11904_v10 = vshrl.u32 %v24831_v3, 16  ;;  %v11912_v52 = vshrl.u32 %v24884_v22, 16 }
 0x48c   :  { %v24863_v48 = vpop.f32.mrf.mxu0  ;;  %19027 = vmatpush3.bf16.msra.mxu0 %v19909_v40  ;;  %19002 = vmatprep.subr.bf16.mxu1 %v19913_v62  ;;  %v11665_v38 = vrot.slane %v11663_v1, 1 }
 0x48d   :  { %19028 = vmatprep.subr.bf16.mxu0 %v19914_v42  ;;  %v11653_v7 = vor.u32 %v11651_v6, %v11649_v14  ;;  %v24906_v44 = vpop.f32.mrf.mxu1  ;;  %v11906_v17 = vor.u32 %v11904_v10, %v11902_v46  ;;  %v11667_v46 = vshrl.u32 %v24886_v50, 16  ;;  %v12091_v50 = vld [vmem:[#allocation2 + $0x48] sm:$0xe]  ;;  %v11926_v6 = vrot.slane %v11924_v30, 1 }
 0x48e   :  { %v24873_v60 = vpop.f32.mrf.mxu0  ;;  %26694 = vst [vmem:[#allocation37_spill] sm:$0xff] %v24906_v44 }
 0x48f   :  { %18989 = vmatmul.mubr.bf16.gmra.mxu0 %v15987_v49  ;;  %19003 = vmatpush3.bf16.msra.mxu1 %v19913_v62  ;;  %v19927_v62 = vld [vmem:[%s26336_s4 + $0x238] sm:$0xff]   ;;  %v11658_v31 = vsel %vm2306_vm4, %v11653_v7, %v11657_v45  ;;  %v11669_v14 = vor.u32 %v11667_v46, %v11665_v38  ;;  %v19934_v7 = vld [vmem:[%s26336_s4 + $0x1e0] sm:$0xff]   ;;  %v11675_v46 = vshrl.u32 %v24917_v26, 16 }
 0x490   :  { %19029 = vmatpush3.bf16.msra.mxu0 %v19914_v42  ;;  %19036 = vmatprep.mubr.bf16.mxu0 %v11903_v63  ;;  %v24953_v63 = vld [vmem:[#allocation2 + $0x70] sm:$0xff]   ;;  %v19938_v26 = vld [vmem:[%s26336_s4 + $0x1d8] sm:$0xff]  }
 0x491   :  { %19004 = vmatprep.subr.bf16.mxu1 %v19917_v20  ;;  %19030 = vmatprep.subr.bf16.mxu0 %v19918_v29 }
 0x493   :  { %v18654_v8 = vpop.f32.mrf.mxu0  ;;  %19005 = vmatpush3.bf16.msra.mxu1 %v19917_v20 }
 0x494   :  { %v24892_v19 = vadd.f32 %v18654_v8, %v18626_v43  ;;  %19031 = vmatpush3.bf16.msra.mxu0 %v19918_v29  ;;  %19006 = vmatprep.subr.bf16.mxu1 %v19919_v11  ;;  %v11918_v43 = vrot.slane %v11916_v57, 1  ;;  %v11914_v29 = vor.u32 %v11912_v52, %v11910_v21 }
 0x495   :  { %v8860_v23 = vpop.f32.mrf.mxu0  ;;  %19032 = vmatprep.subr.bf16.mxu0 %v19920_v39 }
 0x496   :  { %v24903_v41 = vadd.f32 %v8860_v23, %v8660_v2  ;;  %v19930_v2 = vld [vmem:[%s26336_s4 + $0x1e8] sm:$0xff]   ;;  %v11919_v8 = vsel %vm2306_vm4, %v11914_v29, %v11918_v43  ;;  %v11673_v23 = vrot.slane %v11671_v0, 1  ;;  %v24992_v29 = vld [vmem:[#allocation2 + $0x78] ss:$0 sps:$4 sm:$0x11]  }
 0x497   :  { %19007 = vmatpush3.bf16.msra.mxu1 %v19919_v11  ;;  %v24912_v40 = vpop.f32.mrf.mxu0 }
 0x498   :  { %19033 = vmatpush3.bf16.msra.mxu0 %v19920_v39  ;;  %19048 = vmatprep.subr.bf16.mxu1 %v19923_v15  ;;  %v11911_v39 = vsel %vm2306_vm4, %v11906_v17, %v11910_v21  ;;  %v11674_v17 = vsel %vm2306_vm4, %v11669_v14, %v11673_v23 }
 0x499   :  { %19034 = vmatprep.subr.bf16.mxu0 %v19922_v5  ;;  %v24935_v49 = vpop.f32.mrf.mxu0 }
 0x49a   :  { %v18674_v12 = vpop.f32.mrf.mxu1  ;;  %19009 = vmatmul.mubr.bf16.vlgmr.msra.gmra.mxu1 %v11650_v24  ;;  %26695 = vst [vmem:[#allocation38_spill] sm:$0xff] %v24935_v49  ;;  %v16074_v24 = vcombine.low %v12091_v50, %v24812_v47  ;;  %v11679_v47 = vshll.u32 %v19937_v18, 16  ;;  %v12112_v50 = vrot.slane %v24831_v3, 1  ;;  %v12547_v3 = vld [vmem:[#allocation2 + $0x64] sm:$0xc] }
 0x49b   :  { %v24928_v42 = vadd.f32 %v18674_v12, %v24802_v54  ;;  %19012 = vmatprep.mubr.bf16.mxu1 %v11658_v31  ;;  %19049 = vmatpush3.bf16.msra.mxu1 %v19923_v15  ;;  %v11661_v15 = vor.u32 %v11659_v28, %v11657_v45  ;;  %v19935_v45 = vld [vmem:[%s26336_s4 + $0x228] sm:$0xff]   ;;  %v26382_v12 = vshll.u32 %v24953_v63, 16 }
 0x49c   :  { %v9020_v37 = vpop.f32.mrf.mxu1  ;;  %19035 = vmatpush3.bf16.msra.mxu0 %v19922_v5  ;;  %19050 = vmatprep.subr.bf16.mxu1 %v19926_v9  ;;  %v11920_v5 = vshrl.u32 %v24890_v34, 16 }
 0x49d   :  { %v24938_v54 = vadd.f32 %v9020_v37, %v24814_v61  ;;  %19076 = vmatprep.subr.bf16.mxu0 %v19927_v62  ;;  %v19931_v61 = vld [vmem:[%s26336_s4 + $0x230] sm:$0xff]   ;;  %v11666_v36 = vsel %vm2306_vm4, %v11661_v15, %v11665_v38 }
 0x49e   :  { %v24942_v20 = vpop.f32.mrf.mxu1  ;;  %v24955_v11 = vpop.f32.mrf.mxu0  ;;  %v11922_v31 = vor.u32 %v11920_v5, %v11918_v43  ;;  %v11934_v43 = vrot.slane %v26382_v12, 1  ;;  %v12120_v12 = vrot.slane %v24953_v63, 1 }
 0x49f   :  { %19037 = vmatmul.mubr.bf16.vlgmr.msra.gmra.mxu0 %v11911_v39  ;;  %19051 = vmatpush3.bf16.msra.mxu1 %v19926_v9  ;;  %v11928_v9 = vshrl.u32 %v24909_v55, 16  ;;  %v12295_v39 = vshll.u32 %v16074_v24, 16 }
 0x4a0   :  { %v24959_v58 = vpop.f32.mrf.mxu1  ;;  %19040 = vmatprep.mubr.bf16.mxu0 %v11919_v8  ;;  %19077 = vmatpush3.bf16.msra.mxu0 %v19927_v62  ;;  %v24963_v4 = vpop.f32.mrf.mxu0  ;;  %v11927_v14 = vsel %vm2306_vm4, %v11922_v31, %v11926_v6  ;;  %v11940_v31 = vshll.u32 %v24992_v29, 16 }
 0x4a1   :  { %26696 = vst [vmem:[#allocation63_spill] sm:$0xff] %v24963_v4  ;;  %19052 = vmatprep.subr.bf16.mxu1 %v19930_v2  ;;  %19078 = vmatprep.subr.bf16.mxu0 %v19931_v61  ;;  %v11930_v37 = vor.u32 %v11928_v9, %v11926_v6  ;;  %v12111_v6 = vrot.slane %v16074_v24, 1 }
 0x4a2   :  { %v18678_v1 = vpop.f32.mrf.mxu1  ;;  %v24979_v62 = vpop.f32.mrf.mxu0  ;;  %19013 = vmatmul.mubr.bf16.gmra.mxu1 %v11666_v36  ;;  %v12300_v36 = vrot.slane %v11900_v56, 2  ;;  %v19943_v56 = vld [vmem:[%s26336_s4 + $0x218] sm:$0xff]  }
 0x4a3   :  { %v24977_v21 = vadd.f32 %v18678_v1, %v24852_v33  ;;  %26698 = vst [vmem:[#allocation65_spill] sm:$0xff] %v24979_v62  ;;  %19016 = vmatprep.mubr.bf16.mxu1 %v11674_v17  ;;  %19053 = vmatpush3.bf16.msra.mxu1 %v19930_v2  ;;  %v11677_v2 = vor.u32 %v11675_v46, %v11673_v23  ;;  %v11681_v23 = vrot.slane %v11679_v47, 1  ;;  %v12299_v1 = vrot.slane %v11904_v10, 1 }
 0x4a4   :  { %v9036_v38 = vpop.f32.mrf.mxu1  ;;  %19079 = vmatpush3.bf16.msra.mxu0 %v19931_v61  ;;  %v24990_v0 = vpop.f32.mrf.mxu0  ;;  %19054 = vmatprep.subr.bf16.mxu1 %v19934_v7  ;;  %v12292_v61 = vshrl.u32 %v16074_v24, 16  ;;  %v11935_v15 = vsel %vm2306_vm4, %v11930_v37, %v11934_v43  ;;  %v11936_v17 = vshrl.u32 %v24953_v63, 16  ;;  %v12113_v47 = vsel %vm2789_vm5, %v12111_v6, %v12112_v50  ;;  %v19947_v6 = vld [vmem:[%s26336_s4 + $0x208] sm:$0xff]  }
 0x4a5   :  { %26697 = vst [vmem:[#allocation40_spill] sm:$0xff] %v24977_v21  ;;  %v24988_v33 = vadd.f32 %v9036_v38, %v24859_v35  ;;  %26700 = vst [vmem:[#allocation68_spill] sm:$0xff] %v24990_v0  ;;  %19080 = vmatprep.subr.bf16.mxu0 %v19935_v45  ;;  %v19939_v35 = vld [vmem:[%s26336_s4 + $0x220] sm:$0xff]   ;;  %v11682_v46 = vsel %vm2306_vm4, %v11677_v2, %v11681_v23  ;;  %v12301_v23 = vor.u32 %v12300_v36, %v12299_v1 }
 0x4a6   :  { %v24994_v28 = vpop.f32.mrf.mxu1  ;;  %v12294_v10 = vrot.slane %v12292_v61, 1 }
 0x4a7   :  { %26699 = vst [vmem:[#allocation67_spill] sm:$0xff] %v24988_v33  ;;  %26701 = vst [vmem:[#allocation25_spill] sm:$0xff] %v24994_v28  ;;  %v25006_v8 = vpop.f32.mrf.mxu0  ;;  %19041 = vmatmul.mubr.bf16.gmra.mxu0 %v11927_v14  ;;  %19055 = vmatpush3.bf16.msra.mxu1 %v19934_v7  ;;  %v19942_v7 = vld [vmem:[%s26336_s4 + $0x1d0] sm:$0xff]   ;;  %v11938_v14 = vor.u32 %v11936_v17, %v11934_v43  ;;  %v19944_v43 = vld [vmem:[%s26336_s4 + $0x1c8] sm:$0xff]  }
 0x4a8   :  { %26702 = vst [vmem:[#allocation39_spill] sm:$0xff] %v25006_v8  ;;  %v25009_v18 = vpop.f32.mrf.mxu1  ;;  %19044 = vmatprep.mubr.bf16.mxu0 %v11935_v15  ;;  %19081 = vmatpush3.bf16.msra.mxu0 %v19935_v45  ;;  %v12297_v45 = vrot.slane %v12295_v39, 2 }
 0x4a9   :  { %26703 = vst [vmem:[#allocation69_spill] sm:$0xff] %v25009_v18  ;;  %v25020_v38 = vpop.f32.mrf.mxu0  ;;  %19056 = vmatprep.subr.bf16.mxu1 %v19938_v26  ;;  %19082 = vmatprep.subr.bf16.mxu0 %v19939_v35 }
 0x4aa   :  { %26704 = vst [vmem:[#allocation70_spill] sm:$0xff] %v25020_v38  ;;  %v18682_v37 = vpop.f32.mrf.mxu1  ;;  %19017 = vmatmul.mubr.bf16.gmra.mxu1 %v11682_v46 }
 0x4ab   :  { %v25027_v24 = vadd.f32 %v18682_v37, %v24892_v19  ;;  %v25034_v2 = vpop.f32.mrf.mxu0  ;;  %19057 = vmatpush3.bf16.msra.mxu1 %v19938_v26  ;;  %19064 = vmatprep.mubr.bf16.mxu1 %v12113_v47  ;;  %v11942_v19 = vrot.slane %v11940_v31, 1  ;;  %v12298_v37 = vor.u32 %v12297_v45, %v12294_v10  ;;  %v19945_v26 = vld [vmem:[%s26336_s4 + $0x210] sm:$0xff]   ;;  %v12116_v10 = vrot.slane %v24890_v34, 1 }
 0x4ac   :  { %26706 = vst [vmem:[#allocation43_spill] sm:$0xff] %v25034_v2  ;;  %v9052_v15 = vpop.f32.mrf.mxu1  ;;  %19083 = vmatpush3.bf16.msra.mxu0 %v19939_v35  ;;  %19058 = vmatprep.subr.bf16.mxu1 %v19942_v7  ;;  %v19946_v35 = vld [vmem:[%s26336_s4 + $0x1c0] sm:$0xff]   ;;  %v12114_v45 = vrot.slane %v24884_v22, 1  ;;  %v12307_v47 = vrot.slane %v11920_v5, 1  ;;  %v19951_v22 = vld [vmem:[%s26336_s4 + $0x38] sm:$0xff]  }
 0x4ad   :  { %26705 = vst [vmem:[#allocation41_spill] sm:$0xff] %v25027_v24  ;;  %v25037_v61 = vadd.f32 %v9052_v15, %v24903_v41  ;;  %v25039_v39 = vpop.f32.mrf.mxu0  ;;  %19084 = vmatprep.subr.bf16.mxu0 %v19943_v56  ;;  %v11943_v1 = vsel %vm2306_vm4, %v11938_v14, %v11942_v19  ;;  %v12302_v41 = vsel %vm2971_vm6, %v12298_v37, %v12301_v23  ;;  %v12308_v14 = vrot.slane %v11916_v57, 2 }
 0x4ae   :  { %26708 = vst [vmem:[#allocation45_spill] sm:$0xff] %v25039_v39  ;;  %v25057_v31 = vpop.f32.mrf.mxu1  ;;  %v12303_v15 = vrot.slane %v11912_v52, 1  ;;  %v12304_v19 = vrot.slane %v11908_v27, 2  ;;  %v12115_v34 = vsel %vm2789_vm5, %v12112_v50, %v12114_v45  ;;  %v12117_v57 = vsel %vm2789_vm5, %v12114_v45, %v12116_v10  ;;  %v12548_v45 = vld [vmem:[#allocation2 + $0x68] sm:$0xf] }
 0x4af   :  { %26707 = vst [vmem:[#allocation42_spill] sm:$0xff] %v25037_v61  ;;  %19045 = vmatmul.mubr.bf16.gmra.mxu0 %v11943_v1  ;;  %19059 = vmatpush3.bf16.msra.mxu1 %v19942_v7  ;;  %v25052_v36 = vpop.f32.mrf.mxu0  ;;  %26710 = vst [vmem:[#allocation47_spill] sm:$0xff] %v25057_v31  ;;  %v19949_v7 = vld [vmem:[%s26336_s4 + $0x78] sm:$0xff]   ;;  %v12309_v52 = vor.u32 %v12308_v14, %v12307_v47 }
 0x4b0   :  { %19085 = vmatpush3.bf16.msra.mxu0 %v19943_v56  ;;  %19092 = vmatprep.mubr.bf16.mxu0 %v12302_v41  ;;  %26709 = vst [vmem:[#allocation44_spill] sm:$0xff] %v25052_v36  ;;  %v19948_v56 = vld [vmem:[%s26336_s4 + $0x200] sm:$0xff]   ;;  %v25077_v37 = vpop.f32.mrf.mxu1  ;;  %v12305_v5 = vor.u32 %v12304_v19, %v12303_v15  ;;  %v19952_v41 = vld [vmem:[%s26336_s4 + $0x68] sm:$0xff]   ;;  %v12311_v15 = vrot.slane %v11928_v9, 1  ;;  %v12312_v19 = vrot.slane %v11924_v30, 2  ;;  %v12315_v30 = vrot.slane %v11936_v17, 1 }
 0x4b1   :  { %19060 = vmatprep.subr.bf16.mxu1 %v19944_v43  ;;  %19086 = vmatprep.subr.bf16.mxu0 %v19945_v26  ;;  %v25062_v46 = vpop.f32.mrf.mxu0  ;;  %26712 = vst [vmem:[#allocation53_spill] sm:$0xff] %v25077_v37 }
 0x4b2   :  { %26711 = vst [vmem:[#allocation52_spill] sm:$0xff] %v25062_v46  ;;  %v12310_v14 = vsel %vm2971_vm6, %v12305_v5, %v12309_v52  ;;  %v12313_v61 = vor.u32 %v12312_v19, %v12311_v15 }
 0x4b3   :  { %19061 = vmatpush3.bf16.msra.mxu1 %v19944_v43  ;;  %v19950_v43 = vld [vmem:[%s26336_s4 + $0x70] sm:$0xff]  }
 0x4b4   :  { %19087 = vmatpush3.bf16.msra.mxu0 %v19945_v26  ;;  %19062 = vmatprep.subr.bf16.mxu1 %v19946_v35  ;;  %v25082_v26 = vpop.f32.mrf.mxu0  ;;  %v12314_v15 = vsel %vm2971_vm6, %v12309_v52, %v12313_v61 }
 0x4b5   :  { %19088 = vmatprep.subr.bf16.mxu0 %v19947_v6  ;;  %26713 = vst [vmem:[#allocation46_spill] sm:$0xff] %v25082_v26 }
 0x4b6   :  { %v25095_v50 = vpop.f32.mrf.mxu0 }
 0x4b7   :  { %19063 = vmatpush3.bf16.msra.mxu1 %v19946_v35  ;;  %26716 = vst [vmem:[#allocation60_spill] sm:$0xff] %v25095_v50  ;;  %v19953_v35 = vld [vmem:[%s26336_s4 + $0x30] sm:$0xff]  }
 0x4b8   :  { %19089 = vmatpush3.bf16.msra.mxu0 %v19947_v6  ;;  %19104 = vmatprep.subr.bf16.mxu1 %v19949_v7 }
 0x4b9   :  { %19090 = vmatprep.subr.bf16.mxu0 %v19948_v56 }
 0x4ba   :  { %v25090_v27 = vpop.f32.mrf.mxu1  ;;  %19065 = vmatmul.mubr.bf16.vlgmr.msra.gmra.mxu1 %v12115_v34  ;;  %v12576_v34 = vld [vmem:[#allocation2 + $0x64] sm:$0x8] }
 0x4bb   :  { %26714 = vst [vmem:[#allocation50_spill] sm:$0xff] %v25090_v27  ;;  %19068 = vmatprep.mubr.bf16.mxu1 %v12117_v57  ;;  %19105 = vmatpush3.bf16.msra.mxu1 %v19949_v7  ;;  %v12306_v7 = vsel %vm2971_vm6, %v12301_v23, %v12305_v5  ;;  %v16151_v57 = vcombine.low %v12547_v3, %v12548_v45  ;;  %v19960_v5 = vld [vmem:[#allocation2 + $0x78] ss:$0 sps:$4 sm:$0x33]  }
 0x4bc   :  { %19091 = vmatpush3.bf16.msra.mxu0 %v19948_v56  ;;  %v25093_v1 = vpop.f32.mrf.mxu1  ;;  %19106 = vmatprep.subr.bf16.mxu1 %v19950_v43  ;;  %v12118_v56 = vrot.slane %v24909_v55, 1  ;;  %v19955_v55 = vld [vmem:[%s26336_s4 + $0x28] sm:$0xff]  }
 0x4bd   :  { %26715 = vst [vmem:[#allocation49_spill] sm:$0xff] %v25093_v1  ;;  %19132 = vmatprep.subr.bf16.mxu0 %v19951_v22  ;;  %v12778_v37 = vshrl.u32 %v16151_v57, 16  ;;  %v12781_v36 = vshll.u32 %v16151_v57, 16 }
 0x4be   :  { %v25103_v6 = vpop.f32.mrf.mxu1  ;;  %v12119_v9 = vsel %vm2789_vm5, %v12116_v10, %v12118_v56  ;;  %v12121_v26 = vsel %vm2789_vm5, %v12118_v56, %v12120_v12  ;;  %v25135_v10 = vcombine.low %v12576_v34, %v12548_v45  ;;  %v19956_v56 = vld [vmem:[%s26336_s4 + $0x58] sm:$0xff]  }
 0x4bf   :  { %26717 = vst [vmem:[#allocation54_spill] sm:$0xff] %v25103_v6  ;;  %v25107_v47 = vpop.f32.mrf.mxu0  ;;  %19093 = vmatmul.mubr.bf16.vlgmr.msra.gmra.mxu0 %v12306_v7  ;;  %19107 = vmatpush3.bf16.msra.mxu1 %v19950_v43  ;;  %v19954_v7 = vld [vmem:[%s26336_s4 + $0x60] sm:$0xff]   ;;  %v25281_v6 = vld [vmem:[#allocation2 + $0x78] sm:$0xf] }
 0x4c0   :  { %26718 = vst [vmem:[#allocation58_spill] sm:$0xff] %v25107_v47  ;;  %19096 = vmatprep.mubr.bf16.mxu0 %v12310_v14  ;;  %19133 = vmatpush3.bf16.msra.mxu0 %v19951_v22  ;;  %v25114_v23 = vpop.f32.mrf.mxu1  ;;  %v26721_v22 = vshll.u32 %v24953_v63, 16  ;;  %v25130_v14 = vld [vmem:[#allocation2 + $0x6c] sm:$0xff]   ;;  %v12320_v63 = vshrl.u32 %v19960_v5, 16  ;;  %v12626_v19 = vrot.slane %v25135_v10, 3  ;;  %26751 = vst [vmem:[#allocation16_spill] sm:$0xff] %v25281_v6 }
 0x4c1   :  { %26719 = vst [vmem:[#allocation56_spill] sm:$0xff] %v25114_v23  ;;  %v25120_v43 = vpop.f32.mrf.mxu0  ;;  %19108 = vmatprep.subr.bf16.mxu1 %v19952_v41  ;;  %19134 = vmatprep.subr.bf16.mxu0 %v19953_v35  ;;  %v25279_v47 = vld [vmem:[#allocation2 + $0x70] sm:$0xf]  ;;  %v26754_v1 = vshll.u32 %v25130_v14, 16 }
 0x4c2   :  { %26720 = vst [vmem:[#allocation62_spill] sm:$0xff] %v25120_v43  ;;  %v12316_v3 = vrot.slane %v26721_v22, 2  ;;  %v25132_v50 = vpop.f32.mrf.mxu1  ;;  %19069 = vmatmul.mubr.bf16.gmra.mxu1 %v12119_v9  ;;  %v12323_v22 = vshll.u32 %v19960_v5, 16  ;;  %v12122_v5 = vrot.slane %v24992_v29, 1  ;;  %v19962_v29 = vld [vmem:[%s26336_s4 + $0x18] sm:$0xff]  }
 0x4c3   :  { %26722 = vst [vmem:[#allocation26_spill] sm:$0xff] %v25132_v50  ;;  %v25137_v46 = vpop.f32.mrf.mxu0  ;;  %19072 = vmatprep.mubr.bf16.mxu1 %v12121_v26  ;;  %19109 = vmatpush3.bf16.msra.mxu1 %v19952_v41  ;;  %v19957_v26 = vld [vmem:[%s26336_s4 + $0x20] sm:$0xff]   ;;  %v26744_v50 = vrot.slane %v25130_v14, 3  ;;  %v13003_v18 = vrot.slane %v26754_v1, 4  ;;  %v19976_v1 = vld [vmem:[%s26336_s4 + $0xf0] sm:$0xff]  }
 0x4c4   :  { %26723 = vst [vmem:[#allocation8_spill] sm:$0xff] %v25137_v46  ;;  %19135 = vmatpush3.bf16.msra.mxu0 %v19953_v35  ;;  %v25139_v17 = vpop.f32.mrf.mxu1  ;;  %19110 = vmatprep.subr.bf16.mxu1 %v19954_v7  ;;  %v12317_v9 = vor.u32 %v12316_v3, %v12315_v30  ;;  %v12780_v30 = vrot.slane %v12778_v37, 2  ;;  %v12783_v3 = vrot.slane %v12781_v36, 3  ;;  %v26383_v35 = vrot.slane %v25130_v14, 3 }
 0x4c5   :  { %26724 = vst [vmem:[#allocation11_spill] sm:$0xff] %v25139_v17  ;;  %v25141_v24 = vpop.f32.mrf.mxu0  ;;  %19136 = vmatprep.subr.bf16.mxu0 %v19955_v55  ;;  %v12325_v52 = vrot.slane %v12323_v22, 2  ;;  %v26730_v36 = vshrl.u32 %v25130_v14, 16 }
 0x4c6   :  { %26725 = vst [vmem:[#allocation9_spill] sm:$0xff] %v25141_v24  ;;  %v25151_v45 = vpop.f32.mrf.mxu1  ;;  %v12318_v57 = vsel %vm2971_vm6, %v12313_v61, %v12317_v9  ;;  %v12123_v61 = vsel %vm2789_vm5, %v12120_v12, %v12122_v5  ;;  %v12784_v12 = vor.u32 %v12783_v3, %v12780_v30  ;;  %v25197_v30 = vld [vmem:[#allocation2 + $0x7c] sm:$0xff]  }
 0x4c7   :  { %26726 = vst [vmem:[#allocation12_spill] sm:$0xff] %v25151_v45  ;;  %v25155_v34 = vpop.f32.mrf.mxu0  ;;  %19097 = vmatmul.mubr.bf16.gmra.mxu0 %v12314_v15  ;;  %19111 = vmatpush3.bf16.msra.mxu1 %v19954_v7  ;;  %v12322_v45 = vrot.slane %v12320_v63, 1  ;;  %v12788_v37 = vrot.slane %v26730_v36, 2  ;;  %v26731_v7 = vshll.u32 %v25130_v14, 16  ;;  %v12628_v63 = vsel %vm1245_vm1, %v12626_v19, %v26383_v35 }
 0x4c8   :  { %26727 = vst [vmem:[#allocation13_spill] sm:$0xff] %v25155_v34  ;;  %19100 = vmatprep.mubr.bf16.mxu0 %v12318_v57  ;;  %19137 = vmatpush3.bf16.msra.mxu0 %v19955_v55  ;;  %v25159_v41 = vpop.f32.mrf.mxu1  ;;  %v19961_v34 = vld [vmem:[%s26336_s4 + $0x50] sm:$0xff]  }
 0x4c9   :  { %26728 = vst [vmem:[#allocation10_spill] sm:$0xff] %v25159_v41  ;;  %v25165_v15 = vpop.f32.mrf.mxu0  ;;  %19112 = vmatprep.subr.bf16.mxu1 %v19956_v56  ;;  %19138 = vmatprep.subr.bf16.mxu0 %v19957_v26  ;;  %v12791_v55 = vrot.slane %v26731_v7, 3  ;;  %v12326_v5 = vor.u32 %v12325_v52, %v12322_v45  ;;  %v25195_v45 = vld [vmem:[#allocation2 + $0x74] sm:$0xff]   ;;  %v19966_v52 = vld [vmem:[%s26336_s4 + $0x40] sm:$0xff]   ;;  %v25211_v7 = vld [vmem:[#allocation2 + $0x8c] sm:$0xff]  }
 0x4ca   :  { %26729 = vst [vmem:[#allocation6_spill] sm:$0xff] %v25165_v15  ;;  %19073 = vmatmul.mubr.bf16.gmra.mxu1 %v12123_v61  ;;  %v25180_v57 = vpop.f32.mrf.mxu1  ;;  %v19964_v61 = vld [vmem:[%s26336_s4 + $0x48] sm:$0xff]   ;;  %v26748_v46 = vshrl.u32 %v25211_v7, 16  ;;  %v26749_v39 = vshll.u32 %v25211_v7, 16 }
 0x4cb   :  { %v25178_v22 = vpop.f32.mrf.mxu0  ;;  %19113 = vmatpush3.bf16.msra.mxu1 %v19956_v56  ;;  %19120 = vmatprep.mubr.bf16.mxu1 %v12628_v63  ;;  %26733 = vst [vmem:[#allocation27_spill] sm:$0xff] %v25180_v57  ;;  %v25184_v36 = vor.u32 %v12791_v55, %v12788_v37  ;;  %v19965_v56 = vld [vmem:[%s26336_s4 + $0x10] sm:$0xff]   ;;  %v12327_v19 = vsel %vm2971_vm6, %v12317_v9, %v12326_v5  ;;  %v19967_v9 = vld [vmem:[%s26336_s4 + $0x8] sm:$0xff]   ;;  %v26740_v63 = vshll.u32 %v25195_v45, 16  ;;  %v26742_v55 = vshll.u32 %v25197_v30, 16 }
 0x4cc   :  { %26732 = vst [vmem:[#allocation14_spill] sm:$0xff] %v25178_v22  ;;  %19139 = vmatpush3.bf16.msra.mxu0 %v19957_v26  ;;  %19114 = vmatprep.subr.bf16.mxu1 %v19961_v34  ;;  %v25199_v3 = vpop.f32.mrf.mxu1  ;;  %v13178_v41 = vld [vmem:[#allocation2 + $0x6c] sm:$0x8]  ;;  %v12824_v43 = vrot.slane %v26748_v46, 2  ;;  %v12827_v23 = vrot.slane %v26749_v39, 3 }
 0x4cd   :  { %v25182_v15 = vpop.f32.mrf.mxu0  ;;  %19140 = vmatprep.subr.bf16.mxu0 %v19962_v29  ;;  %v12793_v26 = vsel %vm1397_vm2, %v12784_v12, %v25184_v36  ;;  %26735 = vst [vmem:[#allocation7_spill] sm:$0xff] %v25199_v3  ;;  %v26739_v3 = vshrl.u32 %v25195_v45, 16  ;;  %v26741_v12 = vshrl.u32 %v25197_v30, 16  ;;  %v12809_v22 = vrot.slane %v26742_v55, 3  ;;  %v25256_v55 = vld [vmem:[#allocation2 + $0x74] sm:$0xf] }
 0x4ce   :  { %26734 = vst [vmem:[#allocation24_spill] sm:$0xff] %v25182_v15  ;;  %v25217_v5 = vpop.f32.mrf.mxu1  ;;  %v12800_v15 = vrot.slane %v26740_v63, 3  ;;  %v16201_v39 = vcombine.low %v13178_v41, %v25279_v47 }
 0x4cf   :  { %19101 = vmatmul.mubr.bf16.gmra.mxu0 %v12327_v19  ;;  %19115 = vmatpush3.bf16.msra.mxu1 %v19961_v34  ;;  %v25204_v37 = vpop.f32.mrf.mxu0  ;;  %v25209_v34 = vld [vmem:[#allocation2 + $0x84] sm:$0xff]   ;;  %26737 = vst [vmem:[#allocation15_spill] sm:$0xff] %v25217_v5  ;;  %v19970_v19 = vld [vmem:[%s26336_s4 + $0xb8] sm:$0xff]   ;;  %v12995_v5 = vshrl.u32 %v25135_v10, 16  ;;  %v12797_v57 = vrot.slane %v26739_v3, 2 }
 0x4d0   :  { %19141 = vmatpush3.bf16.msra.mxu0 %v19962_v29  ;;  %19148 = vmatprep.mubr.bf16.mxu0 %v12793_v26  ;;  %26736 = vst [vmem:[#allocation28_spill] sm:$0xff] %v25204_v37  ;;  %v12631_v26 = vrot.slane %v25197_v30, 3  ;;  %v12629_v29 = vrot.slane %v25195_v45, 3  ;;  %v25233_v37 = vld [vmem:[#allocation2 + $0x94] ss:$0 sps:$4 sm:$0x77]   ;;  %v25245_v17 = vpop.f32.mrf.mxu1 }
 0x4d1   :  { %19116 = vmatprep.subr.bf16.mxu1 %v19964_v61  ;;  %19142 = vmatprep.subr.bf16.mxu0 %v19965_v56  ;;  %v25223_v35 = vpop.f32.mrf.mxu0  ;;  %26743 = vst [vmem:[#allocation31_spill] sm:$0xff] %v25245_v17  ;;  %v12633_v63 = vrot.slane %v25209_v34, 3  ;;  %v26747_v17 = vshll.u32 %v25209_v34, 16  ;;  %v12831_v33 = vshrl.u32 %v25233_v37, 16  ;;  %v26778_v28 = vshrl.u32 %v25209_v34, 16 }
 0x4d2   :  { %26738 = vst [vmem:[#allocation18_spill] sm:$0xff] %v25223_v35  ;;  %v12998_v35 = vshll.u32 %v25135_v10, 16  ;;  %v12630_v10 = vsel %vm1245_vm1, %v26744_v50, %v12629_v29  ;;  %v12632_v3 = vsel %vm1245_vm1, %v12629_v29, %v12631_v26  ;;  %v19973_v50 = vld [vmem:[%s26336_s4 + $0xf8] sm:$0xff]  }
 0x4d3   :  { %19117 = vmatpush3.bf16.msra.mxu1 %v19964_v61  ;;  %v19969_v61 = vld [vmem:[%s26336_s4] sm:$0xff]   ;;  %v25258_v24 = vpop.f32.mrf.mxu0  ;;  %v12818_v31 = vrot.slane %v26747_v17, 3  ;;  %v12801_v17 = vor.u32 %v12800_v15, %v12797_v57  ;;  %v16202_v15 = vcombine.low %v25256_v55, %v25281_v6  ;;  %v12634_v57 = vsel %vm1245_vm1, %v12631_v26, %v12633_v63  ;;  %v25317_v6 = vld [vmem:[#allocation2 + $0x7c] sm:$0xf] }
 0x4d4   :  { %19143 = vmatpush3.bf16.msra.mxu0 %v19965_v56  ;;  %19118 = vmatprep.subr.bf16.mxu1 %v19966_v52  ;;  %v12806_v56 = vrot.slane %v26741_v12, 2  ;;  %v12635_v12 = vrot.slane %v25211_v7, 3  ;;  %26745 = vst [vmem:[#allocation48_spill] sm:$0xff] %v25258_v24  ;;  %v25273_v24 = vrot.slane %v12995_v5, 3  ;;  %v25275_v38 = vrot.slane %v12998_v35, 4  ;;  %26758 = vst [vmem:[#allocation55_spill] sm:$0xff] %v25317_v6 }
 0x4d5   :  { %19144 = vmatprep.subr.bf16.mxu0 %v19967_v9  ;;  %v12637_v35 = vrot.slane %v25233_v37, 3  ;;  %v26753_v5 = vshrl.u32 %v25130_v14, 16  ;;  %v12802_v41 = vsel %vm1397_vm2, %v25184_v36, %v12801_v17  ;;  %v13014_v0 = vrot.slane %v26778_v28, 3 }
 0x4d6   :  { %v12810_v46 = vor.u32 %v12809_v22, %v12806_v56  ;;  %v25295_v22 = vpop.f32.mrf.mxu0  ;;  %v12636_v56 = vsel %vm1245_vm1, %v12633_v63, %v12635_v12  ;;  %v13001_v36 = vor.u32 %v25275_v38, %v25273_v24  ;;  %v13244_v38 = vshll.u32 %v16201_v39, 16  ;;  %v25330_v24 = vld [vmem:[#allocation2 + $0x94] sm:$0xf] }
 0x4d7   :  { %19119 = vmatpush3.bf16.msra.mxu1 %v19966_v52  ;;  %v19972_v52 = vld [vmem:[%s26336_s4 + $0xb0] sm:$0xff]   ;;  %26756 = vst [vmem:[#allocation51_spill] sm:$0xff] %v25295_v22  ;;  %v25319_v22 = vld [vmem:[#allocation2 + $0x84] sm:$0xf]  ;;  %26762 = vst [vmem:[#allocation57_spill] sm:$0xff] %v25330_v24  ;;  %v26782_v28 = vshll.u32 %v25211_v7, 16 }
 0x4d8   :  { %19145 = vmatpush3.bf16.msra.mxu0 %v19967_v9  ;;  %19160 = vmatprep.subr.bf16.mxu1 %v19970_v19  ;;  %v26746_v9 = vshrl.u32 %v25209_v34, 16  ;;  %26759 = vst [vmem:[#allocation29_spill] sm:$0xff] %v25319_v22 }
 0x4d9   :  { %19146 = vmatprep.subr.bf16.mxu0 %v19969_v61 }
 0x4da   :  { %v12815_v29 = vrot.slane %v26746_v9, 2  ;;  %v25271_v2 = vpop.f32.mrf.mxu1  ;;  %19121 = vmatmul.mubr.bf16.vlgmr.msra.gmra.mxu1 %v12630_v10  ;;  %v12834_v9 = vshll.u32 %v25233_v37, 16  ;;  %v19975_v37 = vld [vmem:[%s26336_s4 + $0xa8] sm:$0xff]  }
 0x4db   :  { %26750 = vst [vmem:[#allocation20_spill] sm:$0xff] %v25271_v2  ;;  %19124 = vmatprep.mubr.bf16.mxu1 %v12632_v3  ;;  %19161 = vmatpush3.bf16.msra.mxu1 %v19970_v19  ;;  %v13002_v2 = vrot.slane %v26753_v5, 3  ;;  %v25291_v3 = vld [vmem:[#allocation2 + $0x80] sm:$0xf]  ;;  %v25306_v19 = vor.u32 %v12827_v23, %v12824_v43  ;;  %v25313_v5 = vrot.slane %v12831_v33, 2  ;;  %v13241_v43 = vshrl.u32 %v16201_v39, 16 }
 0x4dc   :  { %19147 = vmatpush3.bf16.msra.mxu0 %v19969_v61  ;;  %v25284_v10 = vpop.f32.mrf.mxu1  ;;  %19162 = vmatprep.subr.bf16.mxu1 %v19972_v52  ;;  %26755 = vst [vmem:[#allocation33_spill] sm:$0xff] %v25291_v3  ;;  %v12819_v14 = vor.u32 %v12818_v31, %v12815_v29  ;;  %v25315_v26 = vrot.slane %v12834_v9, 3  ;;  %v12811_v31 = vsel %vm1397_vm2, %v12801_v17, %v12810_v46  ;;  %v25328_v33 = vld [vmem:[#allocation2 + $0x90] sm:$0xf]  ;;  %v19978_v29 = vld [vmem:[%s26336_s4 + $0xa0] sm:$0xff]   ;;  %v13249_v17 = vshrl.u32 %v16202_v15, 16 }
 0x4dd   :  { %26752 = vst [vmem:[#allocation19_spill] sm:$0xff] %v25284_v10  ;;  %19188 = vmatprep.subr.bf16.mxu0 %v19973_v50  ;;  %v25326_v23 = vcombine.low %v25317_v6, %v25291_v3  ;;  %26761 = vst [vmem:[#allocation22_spill] sm:$0xff] %v25328_v33  ;;  %v25340_v9 = vor.u32 %v13003_v18, %v13002_v2  ;;  %v25342_v39 = vld [vmem:[#allocation2 + $0x88] sm:$0xf]  ;;  %v25354_v2 = vld [vmem:[#allocation2 + $0x8c] sm:$0xf] }
 0x4de   :  { %v25308_v61 = vpop.f32.mrf.mxu1  ;;  %26764 = vst [vmem:[#allocation64_spill] sm:$0xff] %v25342_v39  ;;  %v16204_v18 = vcombine.low %v25319_v22, %v25342_v39  ;;  %26766 = vst [vmem:[#allocation35_spill] sm:$0xff] %v25354_v2  ;;  %v25370_v22 = vrot.slane %v13241_v43, 3 }
 0x4df   :  { %26757 = vst [vmem:[#allocation17_spill] sm:$0xff] %v25308_v61  ;;  %v25321_v10 = vpop.f32.mrf.mxu0  ;;  %19149 = vmatmul.mubr.bf16.vlgmr.msra.gmra.mxu0 %v12802_v41  ;;  %19163 = vmatpush3.bf16.msra.mxu1 %v19972_v52  ;;  %v25338_v52 = vsel %vm1245_vm1, %v12635_v12, %v12637_v35  ;;  %v13252_v41 = vshll.u32 %v16202_v15, 16  ;;  %v12829_v12 = vsel %vm1397_vm2, %v12819_v14, %v25306_v19  ;;  %v25356_v35 = vld [vmem:[#allocation2 + $0x98] sm:$0xf]  ;;  %v13258_v6 = vshrl.u32 %v25326_v23, 16 }
 0x4e0   :  { %26760 = vst [vmem:[#allocation21_spill] sm:$0xff] %v25321_v10  ;;  %19152 = vmatprep.mubr.bf16.mxu0 %v12811_v31  ;;  %19189 = vmatpush3.bf16.msra.mxu0 %v19973_v50  ;;  %v25332_v63 = vpop.f32.mrf.mxu1  ;;  %v12820_v50 = vsel %vm1397_vm2, %v12810_v46, %v12819_v14  ;;  %v19979_v31 = vld [vmem:[%s26336_s4 + $0xe8] sm:$0xff]   ;;  %26767 = vst [vmem:[#allocation36_spill] sm:$0xff] %v25356_v35  ;;  %v13005_v46 = vsel %vm1616_vm3, %v13001_v36, %v25340_v9  ;;  %v13261_v43 = vshll.u32 %v25326_v23, 16 }
 0x4e1   :  { %26763 = vst [vmem:[#allocation61_spill] sm:$0xff] %v25332_v63  ;;  %v25344_v3 = vpop.f32.mrf.mxu0  ;;  %19164 = vmatprep.subr.bf16.mxu1 %v19975_v37  ;;  %19190 = vmatprep.subr.bf16.mxu0 %v19976_v1  ;;  %v16206_v14 = vcombine.low %v25330_v24, %v25356_v35  ;;  %v20004_v63 = vld [vmem:[#allocation2 + $0x94] ss:$0 sps:$4 sm:$0xff]   ;;  %v13251_v35 = vrot.slane %v13249_v17, 3  ;;  %v13254_v24 = vrot.slane %v13252_v41, 4  ;;  %v26775_v41 = vshll.u32 %v25197_v30, 16 }
 0x4e2   :  { %26765 = vst [vmem:[#allocation34_spill] sm:$0xff] %v25344_v3  ;;  %v25358_v15 = vpop.f32.mrf.mxu1  ;;  %19125 = vmatmul.mubr.bf16.gmra.mxu1 %v12634_v57  ;;  %v16205_v3 = vcombine.low %v25354_v2, %v25328_v33  ;;  %v26770_v57 = vshrl.u32 %v25195_v45, 16  ;;  %v26774_v2 = vshrl.u32 %v25197_v30, 16  ;;  %v13260_v21 = vrot.slane %v13258_v6, 3  ;;  %v25402_v30 = vld [vmem:[#allocation2 + $0x70] sm:$0xff]  }
 0x4e3   :  { %26768 = vst [vmem:[#allocation30_spill] sm:$0xff] %v25358_v15  ;;  %v25368_v39 = vpop.f32.mrf.mxu0  ;;  %19128 = vmatprep.mubr.bf16.mxu1 %v12636_v56  ;;  %19165 = vmatpush3.bf16.msra.mxu1 %v19975_v37  ;;  %v25372_v15 = vrot.slane %v13244_v38, 4  ;;  %v26772_v56 = vshll.u32 %v25195_v45, 16  ;;  %v13011_v45 = vrot.slane %v26775_v41, 4  ;;  %v13285_v10 = vshrl.u32 %v16206_v14, 16 }
 0x4e4   :  { %26769 = vst [vmem:[#allocation23_spill] sm:$0xff] %v25368_v39  ;;  %v25376_v36 = vrot.slane %v26770_v57, 3  ;;  %19191 = vmatpush3.bf16.msra.mxu0 %v19976_v1  ;;  %v25379_v33 = vpop.f32.mrf.mxu1  ;;  %19166 = vmatprep.subr.bf16.mxu1 %v19978_v29  ;;  %v19981_v57 = vld [vmem:[%s26336_s4 + $0x98] sm:$0xff]   ;;  %v19982_v1 = vld [vmem:[%s26336_s4 + $0xe0] sm:$0xff]   ;;  %v13010_v17 = vrot.slane %v26774_v2, 3  ;;  %v13279_v39 = vshll.u32 %v16205_v3, 16 }
 0x4e5   :  { %26771 = vst [vmem:[#allocation59_spill] sm:$0xff] %v25379_v33  ;;  %v13007_v37 = vrot.slane %v26772_v56, 4  ;;  %v25384_v38 = vpop.f32.mrf.mxu0  ;;  %19192 = vmatprep.subr.bf16.mxu0 %v19979_v31  ;;  %v13267_v56 = vshrl.u32 %v16204_v18, 16  ;;  %v13270_v33 = vshll.u32 %v16204_v18, 16  ;;  %v13288_v61 = vshll.u32 %v16206_v14, 16 }
 0x4e6   :  { %26773 = vst [vmem:[#allocation32_spill] sm:$0xff] %v25384_v38  ;;  %v25396_v23 = vpop.f32.mrf.mxu1  ;;  %v13276_v38 = vshrl.u32 %v16205_v3, 16  ;;  %v13023_v2 = vshrl.u32 %v20004_v63, 16  ;;  %v13026_v49 = vshll.u32 %v20004_v63, 16  ;;  %v19983_v3 = vld [vmem:[%s26336_s4 + $0x90] sm:$0xff]   ;;  %v13263_v14 = vrot.slane %v13261_v43, 4 }
 0x4e7   :  { %26776 = vst [vmem:[#allocation66_spill] sm:$0xff] %v25396_v23  ;;  %v25398_v8 = vpop.f32.mrf.mxu0  ;;  %19153 = vmatmul.mubr.bf16.gmra.mxu0 %v12820_v50  ;;  %19167 = vmatpush3.bf16.msra.mxu1 %v19978_v29  ;;  %v26780_v50 = vshll.u32 %v25209_v34, 16  ;;  %v26781_v6 = vshrl.u32 %v25211_v7, 16  ;;  %v13019_v63 = vrot.slane %v26782_v28, 4  ;;  %v13255_v43 = vor.u32 %v13254_v24, %v13251_v35 }
 0x4e8   :  { %26777 = vst [vmem:[#allocation71_spill] sm:$0xff] %v25398_v8  ;;  %19156 = vmatprep.mubr.bf16.mxu0 %v12829_v12  ;;  %19193 = vmatpush3.bf16.msra.mxu0 %v19979_v31  ;;  %v25404_v18 = vpop.f32.mrf.mxu1  ;;  %v19984_v31 = vld [vmem:[%s26336_s4 + $0xd8] sm:$0xff]   ;;  %v13247_v12 = vor.u32 %v25372_v15, %v25370_v22  ;;  %v13269_v34 = vrot.slane %v13267_v56, 3  ;;  %v13287_v7 = vrot.slane %v13285_v10, 3  ;;  %v13290_v28 = vrot.slane %v13288_v61, 4  ;;  %v19989_v10 = vld [vmem:[%s26336_s4 + $0x88] sm:$0xff]  }
 0x4e9   :  { %26779 = vst [vmem:[#allocation72_spill] sm:$0xff] %v25404_v18  ;;  %v13015_v29 = vrot.slane %v26780_v50, 4  ;;  %v13018_v41 = vrot.slane %v26781_v6, 3  ;;  %v25415_v8 = vpop.f32.mrf.mxu0  ;;  %19168 = vmatprep.subr.bf16.mxu1 %v19981_v57  ;;  %19194 = vmatprep.subr.bf16.mxu0 %v19982_v1  ;;  %v13272_v50 = vrot.slane %v13270_v33, 4  ;;  %v13278_v6 = vrot.slane %v13276_v38, 3 }
 0x4ea   :  { %26783 = vst [vmem:[#allocation73_spill] sm:$0xff] %v25415_v8  ;;  %19129 = vmatmul.mubr.bf16.gmra.mxu1 %v25338_v52  ;;  %v13281_v18 = vrot.slane %v13279_v39, 4  ;;  %v13012_v8 = vor.u32 %v13011_v45, %v13010_v17  ;;  %v13025_v44 = vrot.slane %v13023_v2, 3  ;;  %v13028_v27 = vrot.slane %v13026_v49, 4  ;;  %v25426_v4 = vpop.f32.mrf.mxu1  ;;  %v19990_v49 = vld [vmem:[%s26336_s4 + $0xd0] sm:$0xff]  }
 0x4eb   :  { %v25423_v23 = vpop.f32.mrf.mxu0  ;;  %19169 = vmatpush3.bf16.msra.mxu1 %v19981_v57  ;;  %19176 = vmatprep.mubr.bf16.mxu1 %v13005_v46  ;;  %v13683_v62 = vshll.u32 %v25402_v30, 16  ;;  %v13264_v22 = vor.u32 %v13263_v14, %v13260_v21  ;;  %v13016_v33 = vor.u32 %v13015_v29, %v13014_v0  ;;  %v13020_v24 = vor.u32 %v13019_v63, %v13018_v41  ;;  %v25452_v57 = vld [vmem:[#allocation2 + $0x9c] sm:$0xf] }
 0x4ec   :  { %19195 = vmatpush3.bf16.msra.mxu0 %v19982_v1  ;;  %19170 = vmatprep.subr.bf16.mxu1 %v19983_v3  ;;  %v13008_v61 = vor.u32 %v13007_v37, %v25376_v36  ;;  %v13273_v39 = vor.u32 %v13272_v50, %v13269_v34  ;;  %v26784_v35 = vor.u32 %v25315_v26, %v25313_v5  ;;  %v25454_v26 = vpop.f32.mrf.mxu1  ;;  %v13681_v56 = vshrl.u32 %v25402_v30, 16  ;;  %v26789_v34 = vld [vmem:[#allocation38_spill] sm:$0xff] }
 0x4ed   :  { %v25428_v52 = vpop.f32.mrf.mxu0  ;;  %19196 = vmatprep.subr.bf16.mxu0 %v19984_v31  ;;  %v13256_v0 = vsel %vm1616_vm3, %v13247_v12, %v13255_v43  ;;  %v13282_v15 = vor.u32 %v13281_v18, %v13278_v6  ;;  %v25443_v46 = vor.u32 %v13290_v28, %v13287_v7  ;;  %v13029_v37 = vor.u32 %v13028_v27, %v13025_v44  ;;  %v19992_v27 = vld [vmem:[%s26336_s4 + $0xc8] sm:$0xff]   ;;  %v26787_v12 = vld [vmem:[#allocation50_spill] sm:$0xff]  ;;  %v26790_v6 = vld [vmem:[#allocation68_spill] sm:$0xff] }
 0x4ee   :  { %v12838_v21 = vsel %vm1397_vm2, %v25306_v19, %v26784_v35  ;;  %v25447_v38 = vsel %vm1616_vm3, %v25340_v9, %v13008_v61  ;;  %v25450_v36 = vsel %vm1616_vm3, %v13008_v61, %v13012_v8  ;;  %v13685_v5 = vrot.slane %v13683_v62, 1  ;;  %v19991_v19 = vld [vmem:[%s26336_s4 + $0x80] sm:$0xff]   ;;  %v25507_v63 = vpop.f32.mrf.mxu1  ;;  %v26796_v61 = vld [vmem:[#allocation54_spill] sm:$0xff] }
 0x4ef   :  { %19157 = vmatmul.mubr.bf16.gmra.mxu0 %v12838_v21  ;;  %19171 = vmatpush3.bf16.msra.mxu1 %v19983_v3  ;;  %v25460_v1 = vsel %vm1616_vm3, %v13255_v43, %v13264_v22  ;;  %v25463_v9 = vsel %vm1616_vm3, %v13012_v8, %v13016_v33  ;;  %v25466_v17 = vsel %vm1616_vm3, %v13016_v33, %v13020_v24  ;;  %v25470_v62 = vpop.f32.mrf.mxu0  ;;  %v26788_v43 = vld [vmem:[#allocation37_spill] sm:$0xff]  ;;  %v26792_v28 = vld [vmem:[#allocation40_spill] sm:$0xff]  ;;  %v26797_v35 = vld [vmem:[#allocation58_spill] sm:$0xff] }
 0x4f0   :  { %19197 = vmatpush3.bf16.msra.mxu0 %v19984_v31  ;;  %19204 = vmatprep.mubr.bf16.mxu0 %v13256_v0  ;;  %v8840_v44 = vadd.f32 %v24816_v25, %v24783_v53  ;;  %v25476_v45 = vsel %vm1616_vm3, %v13264_v22, %v13273_v39  ;;  %v16232_v8 = vcombine.low %v25279_v47, %v25256_v55  ;;  %v26794_v33 = vld [vmem:[#allocation69_spill] sm:$0xff]  ;;  %v26798_v0 = vld [vmem:[#allocation67_spill] sm:$0xff]  ;;  %v20014_v55 = vld [vmem:[%s26336_s4 + $0x150] sm:$0xff]  }
 0x4f1   :  { %19172 = vmatprep.subr.bf16.mxu1 %v19989_v10  ;;  %19198 = vmatprep.subr.bf16.mxu0 %v19990_v49  ;;  %v8832_v2 = vadd.f32 %v24833_v16, %v24796_v51  ;;  %v25484_v53 = vsel %vm1616_vm3, %v13273_v39, %v13282_v15  ;;  %v25488_v25 = vsel %vm1616_vm3, %v13282_v15, %v25443_v46  ;;  %v26799_v15 = vld [vmem:[#allocation70_spill] sm:$0xff]  ;;  %v20013_v47 = vld [vmem:[%s26336_s4 + $0x108] sm:$0xff]  }
 0x4f2   :  { %v25492_v18 = vcombine.low %v25452_v57, %v25452_v57  ;;  %v9070_v3 = vadd.f32 %v24942_v20, %v8840_v44  ;;  %v9340_v14 = vadd.f32 %v24955_v11, %v24928_v42  ;;  %v25498_v30 = vsel %vm1616_vm3, %v13020_v24, %v13029_v37  ;;  %v19994_v42 = vld [vmem:[%s26336_s4 + $0x138] sm:$0xff]  }
 0x4f3   :  { %19173 = vmatpush3.bf16.msra.mxu1 %v19989_v10  ;;  %v25500_v51 = vor.u32 %v13685_v5, %v13681_v56  ;;  %v8856_v16 = vadd.f32 %v24863_v48, %v24829_v13  ;;  %v8848_v29 = vadd.f32 %v24873_v60, %v24846_v32  ;;  %v9068_v41 = vadd.f32 %v24959_v58, %v8832_v2  ;;  %v26785_v11 = vld [vmem:[#allocation63_spill] sm:$0xff]  ;;  %v26786_v13 = vld [vmem:[#allocation65_spill] sm:$0xff]  ;;  %v25518_v60 = vpop.f32.mrf.mxu0  ;;  %v19993_v58 = vld [vmem:[%s26336_s4 + $0xc0] sm:$0xff]  }
 0x4f4   :  { %19199 = vmatpush3.bf16.msra.mxu0 %v19990_v49  ;;  %19174 = vmatprep.subr.bf16.mxu1 %v19991_v19  ;;  %v8872_v20 = vadd.f32 %v24912_v40, %v24888_v59  ;;  %v9338_v31 = vadd.f32 %v26785_v11, %v24938_v54  ;;  %v9341_v48 = vadd.f32 %v26786_v13, %v9070_v3  ;;  %v26791_v59 = vld [vmem:[#allocation25_spill] sm:$0xff]  ;;  %v26793_v54 = vld [vmem:[#allocation39_spill] sm:$0xff]  ;;  %v26801_v56 = vld [vmem:[#allocation56_spill] sm:$0xff]  ;;  %v25537_v3 = vpop.f32.mrf.mxu1 }
 0x4f5   :  { %v9509_v32 = vadd.f32 %v26787_v12, %v9340_v14  ;;  %19200 = vmatprep.subr.bf16.mxu0 %v19992_v27  ;;  %v8864_v50 = vadd.f32 %v26789_v34, %v26788_v43  ;;  %v9339_v7 = vadd.f32 %v26790_v6, %v9068_v41  ;;  %v9074_v40 = vadd.f32 %v26791_v59, %v8856_v16  ;;  %v26795_v10 = vld [vmem:[#allocation49_spill] sm:$0xff]  ;;  %v26800_v5 = vld [vmem:[#allocation43_spill] sm:$0xff]  ;;  %v19995_v14 = vld [vmem:[%s26336_s4 + $0x130] sm:$0xff]   ;;  %v25546_v12 = vpop.f32.mrf.mxu0 }
 0x4f6   :  { %v9344_v22 = vadd.f32 %v26793_v54, %v26792_v28  ;;  %v9072_v24 = vadd.f32 %v26794_v33, %v8848_v29  ;;  %v9507_v49 = vadd.f32 %v26795_v10, %v9338_v31  ;;  %v9510_v39 = vadd.f32 %v26796_v61, %v9341_v48  ;;  %v26802_v16 = vld [vmem:[#allocation45_spill] sm:$0xff]  ;;  %v26803_v41 = vld [vmem:[#allocation62_spill] sm:$0xff]  ;;  %v26805_v13 = vld [vmem:[#allocation20_spill] sm:$0xff] }
 0x4f7   :  { %v9770_v21 = vadd.f32 %v26797_v35, %v9509_v32  ;;  %19175 = vmatpush3.bf16.msra.mxu1 %v19991_v19  ;;  %v9342_v37 = vadd.f32 %v26799_v15, %v26798_v0  ;;  %v9345_v44 = vadd.f32 %v26800_v5, %v9074_v40  ;;  %v9508_v2 = vadd.f32 %v26801_v56, %v9339_v7  ;;  %v26804_v19 = vld [vmem:[#allocation8_spill] sm:$0xff]  ;;  %v26806_v32 = vld [vmem:[#allocation47_spill] sm:$0xff]  ;;  %v26807_v34 = vld [vmem:[#allocation41_spill] sm:$0xff] }
 0x4f8   :  { %19201 = vmatpush3.bf16.msra.mxu0 %v19992_v27  ;;  %19216 = vmatprep.subr.bf16.mxu1 %v19994_v42  ;;  %v9343_v29 = vadd.f32 %v26802_v16, %v9072_v24  ;;  %v9768_v11 = vadd.f32 %v26803_v41, %v9507_v49  ;;  %v9771_v31 = vadd.f32 %v26804_v19, %v9510_v39  ;;  %v19996_v27 = vld [vmem:[%s26336_s4 + $0x178] sm:$0xff]   ;;  %v26808_v6 = vld [vmem:[#allocation44_spill] sm:$0xff]  ;;  %v26809_v59 = vld [vmem:[#allocation53_spill] sm:$0xff] }
 0x4f9   :  { %v10031_v48 = vadd.f32 %v26805_v13, %v9770_v21  ;;  %19202 = vmatprep.subr.bf16.mxu0 %v19993_v58  ;;  %v9078_v43 = vadd.f32 %v26806_v32, %v8872_v20  ;;  %v25554_v7 = vadd.f32 %v26808_v6, %v26807_v34  ;;  %v25557_v40 = vadd.f32 %v26809_v59, %v8864_v50  ;;  %v26810_v28 = vld [vmem:[#allocation9_spill] sm:$0xff]  ;;  %v26811_v24 = vld [vmem:[#allocation19_spill] sm:$0xff]  ;;  %v26814_v20 = vld [vmem:[#allocation42_spill] sm:$0xff] }
 0x4fa   :  { %v9769_v54 = vadd.f32 %v26810_v28, %v9508_v2  ;;  %v18842_v33 = vpop.f32.mrf.mxu1  ;;  %19177 = vmatmul.mubr.bf16.vlgmr.msra.gmra.mxu1 %v25447_v38  ;;  %v10029_v10 = vadd.f32 %v26811_v24, %v9768_v11  ;;  %v26812_v49 = vld [vmem:[#allocation17_spill] sm:$0xff]  ;;  %v26815_v21 = vld [vmem:[#allocation52_spill] sm:$0xff]  ;;  %v26816_v50 = vld [vmem:[#allocation46_spill] sm:$0xff] }
 0x4fb   :  { %v10032_v61 = vadd.f32 %v26812_v49, %v9771_v31  ;;  %v26813_v39 = vld [vmem:[#allocation21_spill] sm:$0xff]  ;;  %19180 = vmatprep.mubr.bf16.mxu1 %v25450_v36  ;;  %19217 = vmatpush3.bf16.msra.mxu1 %v19994_v42  ;;  %v25567_v0 = vadd.f32 %v26815_v21, %v26814_v20  ;;  %v25570_v15 = vadd.f32 %v26816_v50, %v9078_v43  ;;  %v26817_v5 = vld [vmem:[#allocation26_spill] sm:$0xff]  ;;  %v26820_v19 = vld [vmem:[#allocation23_spill] sm:$0xff]  ;;  %v25576_v36 = vpop.f32.mrf.mxu0 }
 0x4fc   :  { %v10211_v35 = vadd.f32 %v26813_v39, %v10031_v48  ;;  %v9513_v56 = vadd.f32 %v26817_v5, %v9344_v22  ;;  %19203 = vmatpush3.bf16.msra.mxu0 %v19993_v58  ;;  %v10366_v38 = vpop.f32.mrf.mxu1  ;;  %19218 = vmatprep.subr.bf16.mxu1 %v19995_v14  ;;  %v26818_v2 = vld [vmem:[#allocation61_spill] sm:$0xff]  ;;  %v26819_v41 = vld [vmem:[#allocation34_spill] sm:$0xff]  ;;  %v25584_v22 = vld [vmem:[#allocation2 + $0x78] sm:$0xff]  }
 0x4fd   :  { %v10030_v16 = vadd.f32 %v26818_v2, %v9769_v54  ;;  %v10209_v11 = vadd.f32 %v26819_v41, %v10029_v10  ;;  %v10212_v31 = vadd.f32 %v26820_v19, %v10032_v61  ;;  %19244 = vmatprep.subr.bf16.mxu0 %v19996_v27  ;;  %v19998_v13 = vld [vmem:[%s26336_s4 + $0x128] sm:$0xff]   ;;  %v19999_v58 = vld [vmem:[%s26336_s4 + $0x170] sm:$0xff]   ;;  %v26821_v48 = vld [vmem:[#allocation11_spill] sm:$0xff] }
 0x4fe   :  { %v10415_v42 = vadd.f32 %v18842_v33, %v10211_v35  ;;  %v9511_v32 = vadd.f32 %v26821_v48, %v9342_v37  ;;  %v26822_v43 = vld [vmem:[#allocation12_spill] sm:$0xff]  ;;  %v26823_v6 = vld [vmem:[#allocation13_spill] sm:$0xff]  ;;  %v26824_v28 = vld [vmem:[#allocation10_spill] sm:$0xff]  ;;  %v18843_v33 = vpop.f32.mrf.mxu1 }
 0x4ff   :  { %v9514_v34 = vadd.f32 %v26822_v43, %v9345_v44  ;;  %v9774_v59 = vadd.f32 %v26823_v6, %v9513_v56  ;;  %v9512_v54 = vadd.f32 %v26824_v28, %v9343_v29  ;;  %v26825_v24 = vld [vmem:[#allocation32_spill] sm:$0xff]  ;;  %v10413_v49 = vadd.f32 %v10366_v38, %v10209_v11  ;;  %v25591_v39 = vpop.f32.mrf.mxu0  ;;  %19205 = vmatmul.mubr.bf16.vlgmr.msra.gmra.mxu0 %v25460_v1  ;;  %v26826_v35 = vld [vmem:[#allocation6_spill] sm:$0xff]  ;;  %v26830_v11 = vld [vmem:[#allocation59_spill] sm:$0xff] }
 0x500   :  { %v10210_v10 = vadd.f32 %v26825_v24, %v10030_v16  ;;  %v10416_v61 = vadd.f32 %v18843_v33, %v10212_v31  ;;  %19219 = vmatpush3.bf16.msra.mxu1 %v19995_v14  ;;  %v9772_v20 = vadd.f32 %v26826_v35, %v9511_v32  ;;  %v26827_v21 = vld [vmem:[#allocation14_spill] sm:$0xff]  ;;  %19208 = vmatprep.mubr.bf16.mxu0 %v25476_v45  ;;  %v10369_v29 = vpop.f32.mrf.mxu1  ;;  %v20001_v5 = vld [vmem:[%s26336_s4 + $0x120] sm:$0xff]   ;;  %v20002_v45 = vld [vmem:[%s26336_s4 + $0x168] sm:$0xff]  }
 0x501   :  { %v9775_v37 = vadd.f32 %v26827_v21, %v9514_v34  ;;  %v26828_v50 = vld [vmem:[#allocation30_spill] sm:$0xff]  ;;  %19245 = vmatpush3.bf16.msra.mxu0 %v19996_v27  ;;  %v25604_v56 = vld [vmem:[%s26337_s5] ss:$0 sm:$0xff]  ;;  %v25608_v2 = vpop.f32.mrf.mxu0  ;;  %19220 = vmatprep.subr.bf16.mxu1 %v19998_v13  ;;  %v13688_v27 = vshll.u32 %v25584_v22, 16  ;;  %v26836_v21 = vld [vmem:[#allocation73_spill] sm:$0xff] }
 0x502   :  { %v10035_v44 = vadd.f32 %v26828_v50, %v9774_v59  ;;  %v10427_v1 = vadd.f32 %v25604_v56, %v10415_v42  ;;  %v10428_v14 = vadd.f32 %v25604_v56, %v10416_v61  ;;  %v10414_v38 = vadd.f32 %v10369_v29, %v10210_v10  ;;  %19246 = vmatprep.subr.bf16.mxu0 %v19999_v58  ;;  %v26829_v16 = vld [vmem:[#allocation24_spill] sm:$0xff]  ;;  %v26831_v31 = vld [vmem:[#allocation66_spill] sm:$0xff]  ;;  %v26832_v42 = vld [vmem:[#allocation71_spill] sm:$0xff]  ;;  %v18846_v43 = vpop.f32.mrf.mxu1 }
 0x503   :  { %v9773_v41 = vadd.f32 %v26829_v16, %v9512_v54  ;;  %v10033_v19 = vadd.f32 %v26830_v11, %v9772_v20  ;;  %v10036_v48 = vadd.f32 %v26831_v31, %v9775_v37  ;;  %19181 = vmatmul.mubr.bf16.gmra.mxu1 %v25463_v9  ;;  %v10425_v34 = vadd.f32 %v25604_v56, %v10413_v49  ;;  %v25621_v28 = vpop.f32.mrf.mxu0  ;;  %v26833_v33 = vld [vmem:[#allocation60_spill] sm:$0xff]  ;;  %v26834_v10 = vld [vmem:[#allocation27_spill] sm:$0xff] }
 0x504   :  { %v10215_v32 = vadd.f32 %v26832_v42, %v10035_v44  ;;  %v16792_v6 = vpack.c.bf16 %v10428_v14, %v10427_v1  ;;  %v10426_v59 = vadd.f32 %v25604_v56, %v10414_v38  ;;  %19184 = vmatprep.mubr.bf16.mxu1 %v25466_v17  ;;  %19221 = vmatpush3.bf16.msra.mxu1 %v19998_v13  ;;  %v13294_v54 = vshrl.u32 %v25492_v18, 16  ;;  %v26835_v35 = vld [vmem:[#allocation72_spill] sm:$0xff]  ;;  %v10382_v49 = vpop.f32.mrf.mxu1  ;;  %v26838_v29 = vld [vmem:[#allocation15_spill] sm:$0xff] }
 0x505   :  { %v9347_v24 = vadd.f32 %v26833_v33, %v25557_v40  ;;  %v9517_v61 = vadd.f32 %v26834_v10, %v25554_v7  ;;  %v10034_v9 = vadd.f32 %v26835_v35, %v9773_v41  ;;  %19247 = vmatpush3.bf16.msra.mxu0 %v19999_v58  ;;  %19222 = vmatprep.subr.bf16.mxu1 %v20001_v5  ;;  %v13297_v20 = vshll.u32 %v25492_v18, 16  ;;  %v25633_v44 = vpop.f32.mrf.mxu0  ;;  %v20005_v7 = vld [vmem:[%s26336_s4 + $0x118] sm:$0xff]   ;;  %v20006_v40 = vld [vmem:[%s26336_s4 + $0x160] sm:$0xff]  }
 0x506   :  { %v10213_v37 = vadd.f32 %v26836_v21, %v10033_v19  ;;  %v10216_v17 = vadd.f32 %v25423_v23, %v10036_v48  ;;  %16927 = vst [vmem:[#allocation3 + $0x98] sm:$0xff] %v16792_v6   ;;  %v16787_v13 = vpack.c.bf16 %v10426_v59, %v10425_v34  ;;  %v10419_v50 = vadd.f32 %v18846_v43, %v10215_v32  ;;  %v26837_v18 = vld [vmem:[#allocation7_spill] sm:$0xff]  ;;  %v26839_v1 = vld [vmem:[#allocation28_spill] sm:$0xff]  ;;  %v18847_v41 = vpop.f32.mrf.mxu1  ;;  %v20009_v59 = vld [vmem:[%s26336_s4 + $0x110] sm:$0xff]  }
 0x507   :  { %19248 = vmatprep.subr.bf16.mxu0 %v20002_v45  ;;  %v9515_v58 = vadd.f32 %v26837_v18, %v25567_v0  ;;  %v9518_v23 = vadd.f32 %v26838_v29, %v25570_v15  ;;  %v9778_v14 = vadd.f32 %v26839_v1, %v9517_v61  ;;  %v26840_v38 = vld [vmem:[#allocation31_spill] sm:$0xff]  ;;  %v10214_v11 = vadd.f32 %v25428_v52, %v10034_v9  ;;  %v25648_v48 = vpop.f32.mrf.mxu0  ;;  %v26841_v0 = vld [vmem:[#allocation18_spill] sm:$0xff]  ;;  %v26842_v43 = vld [vmem:[#allocation48_spill] sm:$0xff] }
 0x508   :  { %v9516_v16 = vadd.f32 %v26840_v38, %v9347_v24  ;;  %16788 = vst [vmem:[#allocation3 + $0x90] sm:$0xff] %v16787_v13   ;;  %v10417_v19 = vadd.f32 %v10382_v49, %v10213_v37  ;;  %v10420_v31 = vadd.f32 %v18847_v41, %v10216_v17  ;;  %19209 = vmatmul.mubr.bf16.gmra.mxu0 %v25484_v53  ;;  %v13296_v42 = vrot.slane %v13294_v54, 3  ;;  %v10385_v6 = vpop.f32.mrf.mxu1  ;;  %v20020_v18 = vld [vmem:[#allocation2 + $0x80] sm:$0xff]   ;;  %v20016_v1 = vld [vmem:[%s26336_s4 + $0x148] sm:$0xff]  }
 0x509   :  { %19223 = vmatpush3.bf16.msra.mxu1 %v20001_v5  ;;  %v9776_v32 = vadd.f32 %v26841_v0, %v9515_v58  ;;  %v9779_v15 = vadd.f32 %v26842_v43, %v9518_v23  ;;  %v10039_v34 = vadd.f32 %v25426_v4, %v9778_v14  ;;  %19212 = vmatprep.mubr.bf16.mxu0 %v25488_v25  ;;  %v13299_v52 = vrot.slane %v13297_v20, 4  ;;  %v25660_v54 = vpop.f32.mrf.mxu0  ;;  %v20010_v4 = vld [vmem:[%s26336_s4 + $0x158] sm:$0xff]   ;;  %v20015_v29 = vld [vmem:[%s26336_s4 + $0x100] sm:$0xff]   ;;  %v25718_v0 = vld [vmem:[#allocation2 + $0x88] sm:$0xff]  }
 0x50a   :  { %19249 = vmatpush3.bf16.msra.mxu0 %v20002_v45  ;;  %v10431_v33 = vadd.f32 %v25604_v56, %v10419_v50  ;;  %v10432_v53 = vadd.f32 %v25604_v56, %v10420_v31  ;;  %v10418_v5 = vadd.f32 %v10385_v6, %v10214_v11  ;;  %19224 = vmatprep.subr.bf16.mxu1 %v20005_v7  ;;  %v26843_v25 = vld [vmem:[#allocation51_spill] sm:$0xff]  ;;  %v18850_v35 = vpop.f32.mrf.mxu1  ;;  %v13696_v41 = vshll.u32 %v20020_v18, 16  ;;  %v25720_v43 = vld [vmem:[#allocation2 + $0x90] sm:$0xff]  }
 0x50b   :  { %19250 = vmatprep.subr.bf16.mxu0 %v20006_v40  ;;  %v9777_v45 = vadd.f32 %v26843_v25, %v9516_v16  ;;  %v10037_v24 = vadd.f32 %v25454_v26, %v9776_v32  ;;  %v10040_v10 = vadd.f32 %v25507_v63, %v9779_v15  ;;  %v10219_v61 = vadd.f32 %v25470_v62, %v10039_v34  ;;  %v25672_v21 = vpop.f32.mrf.mxu0  ;;  %v20018_v11 = vld [vmem:[%s26336_s4 + $0x1b8] sm:$0xff]   ;;  %v26845_v34 = vld [vmem:[#allocation16_spill] sm:$0xff] }
 0x50c   :  { %19185 = vmatmul.mubr.bf16.gmra.mxu1 %v25498_v30  ;;  %v10429_v9 = vadd.f32 %v25604_v56, %v10417_v19  ;;  %v16802_v49 = vpack.c.bf16 %v10432_v53, %v10431_v33  ;;  %v10430_v20 = vadd.f32 %v25604_v56, %v10418_v5  ;;  %v10398_v63 = vpop.f32.mrf.mxu1  ;;  %v13300_v62 = vor.u32 %v13299_v52, %v13296_v42  ;;  %v20017_v42 = vld [vmem:[%s26336_s4 + $0x140] sm:$0xff]   ;;  %v26844_v15 = vld [vmem:[#allocation55_spill] sm:$0xff]  ;;  %v20021_v52 = vld [vmem:[%s26336_s4 + $0x1b0] sm:$0xff]  }
 0x50d   :  { %19225 = vmatpush3.bf16.msra.mxu1 %v20005_v7  ;;  %19232 = vmatprep.mubr.bf16.mxu1 %v16232_v8  ;;  %v10038_v26 = vadd.f32 %v25537_v3, %v9777_v45  ;;  %v25680_v30 = vrot.slane %v13688_v27, 1  ;;  %v10217_v37 = vadd.f32 %v25518_v60, %v10037_v24  ;;  %v10220_v17 = vadd.f32 %v25546_v12, %v10040_v10  ;;  %v25684_v7 = vpop.f32.mrf.mxu0  ;;  %v26846_v53 = vld [vmem:[#allocation29_spill] sm:$0xff]  ;;  %v20022_v25 = vld [vmem:[%s26336_s4 + $0x1f8] sm:$0xff]  }
 0x50e   :  { %19251 = vmatpush3.bf16.msra.mxu0 %v20006_v40  ;;  %19226 = vmatprep.subr.bf16.mxu1 %v20009_v59  ;;  %16929 = vst [vmem:[#allocation3 + $0xa8] sm:$0xff] %v16802_v49   ;;  %v16797_v13 = vpack.c.bf16 %v10430_v20, %v10429_v9  ;;  %v10423_v50 = vadd.f32 %v18850_v35, %v10219_v61  ;;  %v18851_v8 = vpop.f32.mrf.mxu1  ;;  %v13698_v32 = vrot.slane %v13696_v41, 1  ;;  %v26847_v5 = vld [vmem:[#allocation33_spill] sm:$0xff]  ;;  %v13700_v45 = vshrl.u32 %v20020_v18, 16  ;;  %v25735_v10 = vld [vmem:[#allocation2 + $0x7c] sm:$0xf] }
 0x50f   :  { %19252 = vmatprep.subr.bf16.mxu0 %v20010_v4  ;;  %v13301_v60 = vsel %vm1616_vm3, %v25443_v46, %v13300_v62  ;;  %v13691_v3 = vsel %vm2306_vm4, %v25500_v51, %v25680_v30  ;;  %v10218_v12 = vadd.f32 %v25576_v36, %v10038_v26  ;;  %v10421_v27 = vadd.f32 %v10398_v63, %v10217_v37  ;;  %v25703_v51 = vpop.f32.mrf.mxu0 }
 0x510   :  { %16928 = vst [vmem:[#allocation3 + $0xa0] sm:$0xff] %v16797_v13   ;;  %v10424_v40 = vadd.f32 %v18851_v8, %v10220_v17  ;;  %19213 = vmatmul.mubr.bf16.gmra.mxu0 %v13301_v60  ;;  %v10401_v58 = vpop.f32.mrf.mxu1  ;;  %v10435_v46 = vadd.f32 %v25604_v56, %v10423_v50  ;;  %v16233_v6 = vcombine.low %v26845_v34, %v26844_v15  ;;  %v13704_v24 = vshll.u32 %v25718_v0, 16  ;;  %v25753_v13 = vld [vmem:[#allocation2 + $0x98] sm:$0xff]  }
 0x511   :  { %19227 = vmatpush3.bf16.msra.mxu1 %v20009_v59  ;;  %19260 = vmatprep.mubr.bf16.mxu0 %v13691_v3  ;;  %v10422_v36 = vadd.f32 %v10401_v58, %v10218_v12  ;;  %v10433_v14 = vadd.f32 %v25604_v56, %v10421_v27  ;;  %v25713_v31 = vpop.f32.mrf.mxu0  ;;  %v13879_v59 = vld [vmem:[#allocation2 + $0x78] sm:$0xf]  ;;  %v13692_v61 = vshrl.u32 %v25584_v22, 16  ;;  %v13702_v49 = vor.u32 %v13700_v45, %v13698_v32  ;;  %v20029_v58 = vld [vmem:[%s26336_s4 + $0x1a0] sm:$0xff]  }
 0x512   :  { %19253 = vmatpush3.bf16.msra.mxu0 %v20010_v4  ;;  %v10436_v23 = vadd.f32 %v25604_v56, %v10424_v40  ;;  %19228 = vmatprep.subr.bf16.mxu1 %v20013_v47  ;;  %v16234_v4 = vcombine.low %v26847_v5, %v26846_v53  ;;  %v13712_v20 = vshll.u32 %v25720_v43, 16  ;;  %v25742_v62 = vcombine.low %v13879_v59, %v25735_v10  ;;  %v26848_v27 = vld [vmem:[#allocation35_spill] sm:$0xff]  ;;  %v26849_v40 = vld [vmem:[#allocation64_spill] sm:$0xff] }
 0x513   :  { %19254 = vmatprep.subr.bf16.mxu0 %v20014_v55  ;;  %v10434_v16 = vadd.f32 %v25604_v56, %v10422_v36  ;;  %v25727_v33 = vpop.f32.mrf.mxu0  ;;  %v13694_v26 = vor.u32 %v13692_v61, %v25680_v30  ;;  %v13706_v17 = vrot.slane %v13704_v24, 1  ;;  %v20026_v30 = vld [vmem:[%s26336_s4 + $0x1f0] sm:$0xff]   ;;  %v16235_v18 = vcombine.low %v26849_v40, %v26848_v27 }
 0x514   :  { %v16812_v38 = vpack.c.bf16 %v10436_v23, %v10435_v46  ;;  %v13714_v60 = vrot.slane %v13712_v20, 1  ;;  %v26850_v23 = vld [vmem:[#allocation57_spill] sm:$0xff]  ;;  %v26851_v36 = vld [vmem:[#allocation22_spill] sm:$0xff]  ;;  %v13942_v24 = vshrl.u32 %v25742_v62, 16 }
 0x515   :  { %19229 = vmatpush3.bf16.msra.mxu1 %v20013_v47  ;;  %v16807_v19 = vpack.c.bf16 %v10434_v16, %v10433_v14  ;;  %v25744_v37 = vpop.f32.mrf.mxu0  ;;  %v13699_v47 = vsel %vm2306_vm4, %v13694_v26, %v13698_v32  ;;  %v20030_v14 = vld [vmem:[%s26336_s4 + $0x1e8] sm:$0xff]   ;;  %v13720_v16 = vshll.u32 %v25753_v13, 16  ;;  %v20037_v32 = vld [vmem:[#allocation2 + $0xa0] ss:$0 sps:$4 sm:$0x11]  }
 0x516   :  { %19255 = vmatpush3.bf16.msra.mxu0 %v20014_v55  ;;  %19230 = vmatprep.subr.bf16.mxu1 %v20015_v29  ;;  %16931 = vst [vmem:[#allocation3 + $0xb8] sm:$0xff] %v16812_v38   ;;  %v25758_v55 = vld [vmem:[#allocation2 + $0x80] sm:$0xff]   ;;  %v13716_v38 = vshrl.u32 %v25720_v43, 16  ;;  %v13728_v61 = vshll.u32 %v20037_v32, 16 }
 0x517   :  { %19256 = vmatprep.subr.bf16.mxu0 %v20016_v1  ;;  %16930 = vst [vmem:[#allocation3 + $0xb0] sm:$0xff] %v16807_v19   ;;  %v13708_v19 = vshrl.u32 %v25718_v0, 16  ;;  %v13722_v0 = vrot.slane %v13720_v16, 1 }
 0x518   :  { %v13730_v27 = vrot.slane %v13728_v61, 1 }
 0x519   :  { %19231 = vmatpush3.bf16.msra.mxu1 %v20015_v29  ;;  %v13944_v29 = vshll.u32 %v25742_v62, 16 }
 0x51a   :  { %19257 = vmatpush3.bf16.msra.mxu0 %v20016_v1  ;;  %19272 = vmatprep.subr.bf16.mxu1 %v20018_v11  ;;  %v18898_v35 = vpop.f32.mrf.mxu1  ;;  %v16236_v1 = vcombine.low %v26851_v36, %v26850_v23 }
 0x51b   :  { %19258 = vmatprep.subr.bf16.mxu0 %v20017_v42  ;;  %v10887_v9 = vadd.f32 %v18898_v35, %v25591_v39  ;;  %v20025_v39 = vld [vmem:[%s26336_s4 + $0x1a8] sm:$0xff]   ;;  %v13946_v59 = vrot.slane %v13944_v29, 1  ;;  %v14140_v35 = vld [vmem:[#allocation2 + $0x78] sm:$0xe] }
 0x51c   :  { %19233 = vmatmul.mubr.bf16.vlgmr.msra.gmra.mxu1 %v16233_v6  ;;  %v10878_v63 = vpop.f32.mrf.mxu1  ;;  %v13718_v6 = vor.u32 %v13716_v38, %v13714_v60  ;;  %v25827_v29 = vld [vmem:[#allocation2 + $0x88] sm:$0xff]   ;;  %v25840_v38 = vld [vmem:[#allocation2 + $0x90] sm:$0xff]  }
 0x51d   :  { %19236 = vmatprep.mubr.bf16.mxu1 %v16234_v4  ;;  %19273 = vmatpush3.bf16.msra.mxu1 %v20018_v11  ;;  %v10879_v22 = vadd.f32 %v10878_v63, %v25608_v2  ;;  %v13707_v2 = vsel %vm2306_vm4, %v13702_v49, %v13706_v17  ;;  %v20034_v4 = vld [vmem:[%s26336_s4 + $0x1e0] sm:$0xff]   ;;  %v13957_v32 = vshll.u32 %v25827_v29, 16  ;;  %v13961_v61 = vshrl.u32 %v25827_v29, 16 }
 0x51e   :  { %19259 = vmatpush3.bf16.msra.mxu0 %v20017_v42  ;;  %19274 = vmatprep.subr.bf16.mxu1 %v20021_v52  ;;  %v25755_v50 = vpop.f32.mrf.mxu1  ;;  %v13949_v42 = vshll.u32 %v25758_v55, 16  ;;  %v13723_v49 = vsel %vm2306_vm4, %v13718_v6, %v13722_v0  ;;  %v26852_v63 = vld [vmem:[#allocation36_spill] sm:$0xff]  ;;  %v20044_v6 = vld [vmem:[%s26336_s4 + $0x1c8] sm:$0xff]  }
 0x51f   :  { %19300 = vmatprep.subr.bf16.mxu0 %v20022_v25  ;;  %v18926_v8 = vpop.f32.mrf.mxu0  ;;  %v16237_v62 = vcombine.low %v26852_v63, %v25452_v57  ;;  %v20049_v63 = vld [vmem:[%s26336_s4 + $0x230] sm:$0xff]  }
 0x520   :  { %v25761_v3 = vadd.f32 %v18926_v8, %v10887_v9  ;;  %v25763_v12 = vpop.f32.mrf.mxu1  ;;  %v25817_v8 = vcombine.low %v14140_v35, %v25735_v10 }
 0x521   :  { %19261 = vmatmul.mubr.bf16.vlgmr.msra.gmra.mxu0 %v13699_v47  ;;  %19275 = vmatpush3.bf16.msra.mxu1 %v20021_v52  ;;  %v11070_v46 = vpop.f32.mrf.mxu0  ;;  %v13710_v52 = vor.u32 %v13708_v19, %v13706_v17  ;;  %v13724_v17 = vshrl.u32 %v25753_v13, 16  ;;  %v20039_v47 = vld [vmem:[%s26336_s4 + $0x1d8] sm:$0xff]   ;;  %v20043_v19 = vld [vmem:[%s26336_s4 + $0x180] sm:$0xff]  }
 0x522   :  { %19264 = vmatprep.mubr.bf16.mxu0 %v13707_v2  ;;  %19301 = vmatpush3.bf16.msra.mxu0 %v20022_v25  ;;  %v25778_v41 = vadd.f32 %v11070_v46, %v10879_v22  ;;  %v18902_v11 = vpop.f32.mrf.mxu1  ;;  %v13947_v22 = vor.u32 %v13946_v59, %v13942_v24  ;;  %v14160_v36 = vrot.slane %v25817_v8, 1  ;;  %v25857_v59 = vld [vmem:[#allocation2 + $0x98] sm:$0xff]   ;;  %v20046_v24 = vld [vmem:[%s26336_s4 + $0x1c0] sm:$0xff]  }
 0x523   :  { %19276 = vmatprep.subr.bf16.mxu1 %v20025_v39  ;;  %19302 = vmatprep.subr.bf16.mxu0 %v20026_v30  ;;  %v10903_v15 = vadd.f32 %v18902_v11, %v25648_v48  ;;  %v25783_v34 = vpop.f32.mrf.mxu0  ;;  %v20033_v48 = vld [vmem:[%s26336_s4 + $0x198] sm:$0xff]   ;;  %v13715_v45 = vsel %vm2306_vm4, %v13710_v52, %v13714_v60  ;;  %v13726_v60 = vor.u32 %v13724_v17, %v13722_v0  ;;  %v13965_v52 = vshll.u32 %v25840_v38, 16 }
 0x524   :  { %19237 = vmatmul.mubr.bf16.gmra.mxu1 %v16235_v18  ;;  %v10894_v43 = vpop.f32.mrf.mxu1 }
 0x525   :  { %19240 = vmatprep.mubr.bf16.mxu1 %v16236_v1  ;;  %19277 = vmatpush3.bf16.msra.mxu1 %v20025_v39  ;;  %v10895_v53 = vadd.f32 %v10894_v43, %v25660_v54  ;;  %v25786_v5 = vpop.f32.mrf.mxu0  ;;  %v25800_v54 = vrot.slane %v13949_v42, 1  ;;  %v20038_v39 = vld [vmem:[%s26336_s4 + $0x190] sm:$0xff]   ;;  %v13967_v35 = vrot.slane %v13965_v52, 1 }
 0x526   :  { %19303 = vmatpush3.bf16.msra.mxu0 %v20026_v30  ;;  %19278 = vmatprep.subr.bf16.mxu1 %v20029_v58  ;;  %v25794_v25 = vpop.f32.mrf.mxu1  ;;  %v20042_v1 = vld [vmem:[%s26336_s4 + $0x1d0] sm:$0xff]  }
 0x527   :  { %19304 = vmatprep.subr.bf16.mxu0 %v20030_v14  ;;  %v18930_v9 = vpop.f32.mrf.mxu0  ;;  %v13952_v13 = vsel %vm2306_vm4, %v13947_v22, %v25800_v54 }
 0x528   :  { %v25803_v20 = vadd.f32 %v18930_v9, %v10903_v15  ;;  %v25805_v26 = vpop.f32.mrf.mxu1  ;;  %v26394_v9 = vshll.u32 %v25857_v59, 16 }
 0x529   :  { %19265 = vmatmul.mubr.bf16.gmra.mxu0 %v13715_v45  ;;  %19279 = vmatpush3.bf16.msra.mxu1 %v20029_v58  ;;  %v11086_v30 = vpop.f32.mrf.mxu0  ;;  %v14161_v58 = vrot.slane %v25758_v55, 1 }
 0x52a   :  { %19268 = vmatprep.mubr.bf16.mxu0 %v13723_v49  ;;  %19305 = vmatpush3.bf16.msra.mxu0 %v20030_v14  ;;  %v25819_v2 = vadd.f32 %v11086_v30, %v10895_v53  ;;  %v18906_v57 = vpop.f32.mrf.mxu1  ;;  %v13731_v14 = vsel %vm2306_vm4, %v13726_v60, %v13730_v27  ;;  %v13953_v53 = vshrl.u32 %v25758_v55, 16  ;;  %v25896_v60 = vld [vmem:[#allocation2 + $0xa8] ss:$0 sps:$4 sm:$0x11]   ;;  %v20055_v55 = vld [vmem:[%s26336_s4 + $0x218] sm:$0xff]  }
 0x52b   :  { %19280 = vmatprep.subr.bf16.mxu1 %v20033_v48  ;;  %19306 = vmatprep.subr.bf16.mxu0 %v20034_v4  ;;  %v10919_v40 = vadd.f32 %v18906_v57, %v25703_v51  ;;  %v25824_v18 = vpop.f32.mrf.mxu0  ;;  %v20041_v51 = vld [vmem:[%s26336_s4 + $0x188] sm:$0xff]   ;;  %v14165_v57 = vrot.slane %v25840_v38, 1 }
 0x52c   :  { %19241 = vmatmul.mubr.bf16.gmra.mxu1 %v16237_v62  ;;  %v10910_v10 = vpop.f32.mrf.mxu1  ;;  %v13955_v45 = vor.u32 %v13953_v53, %v25800_v54  ;;  %v25884_v62 = vld [vmem:[#allocation2 + $0xa0] sm:$0xff]  }
 0x52d   :  { %19281 = vmatpush3.bf16.msra.mxu1 %v20033_v48  ;;  %19288 = vmatprep.mubr.bf16.mxu1 %v13952_v13  ;;  %v10911_v46 = vadd.f32 %v10910_v10, %v25713_v31  ;;  %v25830_v23 = vpop.f32.mrf.mxu0  ;;  %v14162_v31 = vsel %vm2789_vm5, %v14160_v36, %v14161_v58  ;;  %v13959_v48 = vrot.slane %v13957_v32, 1  ;;  %v13969_v13 = vshrl.u32 %v25840_v38, 16  ;;  %v20051_v10 = vld [vmem:[%s26336_s4 + $0x228] sm:$0xff]  }
 0x52e   :  { %19307 = vmatpush3.bf16.msra.mxu0 %v20034_v4  ;;  %19282 = vmatprep.subr.bf16.mxu1 %v20038_v39  ;;  %v25860_v0 = vpop.f32.mrf.mxu1  ;;  %v20047_v4 = vld [vmem:[%s26336_s4 + $0x238] sm:$0xff]   ;;  %v26393_v36 = vshll.u32 %v25884_v62, 16 }
 0x52f   :  { %19308 = vmatprep.subr.bf16.mxu0 %v20039_v47  ;;  %v18934_v16 = vpop.f32.mrf.mxu0  ;;  %v13963_v54 = vor.u32 %v13961_v61, %v13959_v48  ;;  %v13960_v17 = vsel %vm2306_vm4, %v13955_v45, %v13959_v48  ;;  %v13989_v48 = vshll.u32 %v25896_v60, 16  ;;  %v14341_v45 = vshrl.u32 %v25817_v8, 16 }
 0x530   :  { %v25845_v11 = vadd.f32 %v18934_v16, %v10919_v40  ;;  %v25877_v49 = vpop.f32.mrf.mxu1  ;;  %v14163_v40 = vrot.slane %v25827_v29, 1 }
 0x531   :  { %19269 = vmatmul.mubr.bf16.gmra.mxu0 %v13731_v14  ;;  %19283 = vmatpush3.bf16.msra.mxu1 %v20038_v39  ;;  %v11102_v15 = vpop.f32.mrf.mxu0  ;;  %v13968_v30 = vsel %vm2306_vm4, %v13963_v54, %v13967_v35 }
 0x532   :  { %19309 = vmatpush3.bf16.msra.mxu0 %v20039_v47  ;;  %19316 = vmatprep.mubr.bf16.mxu0 %v14162_v31  ;;  %v25854_v43 = vadd.f32 %v11102_v15, %v10911_v46  ;;  %v13975_v47 = vrot.slane %v26394_v9, 1  ;;  %v26395_v46 = vshrl.u32 %v25857_v59, 16  ;;  %v14164_v16 = vsel %vm2789_vm5, %v14161_v58, %v14163_v40  ;;  %v20053_v58 = vld [vmem:[%s26336_s4 + $0x220] sm:$0xff]  }
 0x533   :  { %19284 = vmatprep.subr.bf16.mxu1 %v20041_v51  ;;  %19310 = vmatprep.subr.bf16.mxu0 %v20042_v1  ;;  %v25886_v22 = vpop.f32.mrf.mxu0 }
 0x534   :  { %26853 = vst [vmem:[#allocation63_spill] sm:$0xff] %v25854_v43  ;;  %v13979_v31 = vor.u32 %v26395_v46, %v13975_v47 }
 0x535   :  { %19285 = vmatpush3.bf16.msra.mxu1 %v20041_v51  ;;  %v25906_v51 = vpop.f32.mrf.mxu0 }
 0x536   :  { %19311 = vmatpush3.bf16.msra.mxu0 %v20042_v1  ;;  %19286 = vmatprep.subr.bf16.mxu1 %v20043_v19  ;;  %v13971_v1 = vor.u32 %v13969_v13, %v13967_v35 }
 0x537   :  { %19312 = vmatprep.subr.bf16.mxu0 %v20044_v6 }
 0x538   :  { %v13976_v54 = vsel %vm2306_vm4, %v13971_v1, %v13975_v47  ;;  %v14169_v47 = vrot.slane %v25884_v62, 1 }
 0x539   :  { %19287 = vmatpush3.bf16.msra.mxu1 %v20043_v19  ;;  %v13983_v19 = vrot.slane %v26393_v36, 1 }
 0x53a   :  { %19313 = vmatpush3.bf16.msra.mxu0 %v20044_v6  ;;  %19328 = vmatprep.subr.bf16.mxu1 %v20047_v4  ;;  %v25889_v39 = vpop.f32.mrf.mxu1  ;;  %v14166_v6 = vsel %vm2789_vm5, %v14163_v40, %v14165_v57  ;;  %v14348_v40 = vrot.slane %v13953_v53, 1 }
 0x53b   :  { %19314 = vmatprep.subr.bf16.mxu0 %v20046_v24 }
 0x53c   :  { %19289 = vmatmul.mubr.bf16.vlgmr.msra.gmra.mxu1 %v13960_v17  ;;  %v25898_v27 = vpop.f32.mrf.mxu1 }
 0x53d   :  { %19292 = vmatprep.mubr.bf16.mxu1 %v13968_v30  ;;  %19329 = vmatpush3.bf16.msra.mxu1 %v20047_v4  ;;  %v13984_v30 = vsel %vm2306_vm4, %v13979_v31, %v13983_v19 }
 0x53e   :  { %19315 = vmatpush3.bf16.msra.mxu0 %v20046_v24  ;;  %19330 = vmatprep.subr.bf16.mxu1 %v20049_v63  ;;  %v25910_v14 = vpop.f32.mrf.mxu1  ;;  %v14344_v24 = vshll.u32 %v25817_v8, 16  ;;  %v14167_v8 = vrot.slane %v25857_v59, 1 }
 0x53f   :  { %v25919_v15 = vpop.f32.mrf.mxu0 }
 0x540   :  { %v25923_v4 = vpop.f32.mrf.mxu1  ;;  %v14346_v53 = vrot.slane %v14344_v24, 2  ;;  %v14171_v24 = vrot.slane %v25896_v60, 1  ;;  %v20057_v60 = vld [vmem:[%s26336_s4 + $0x208] sm:$0xff]  }
 0x541   :  { %19317 = vmatmul.mubr.bf16.vlgmr.msra.gmra.mxu0 %v14164_v16  ;;  %19331 = vmatpush3.bf16.msra.mxu1 %v20049_v63  ;;  %v25930_v35 = vpop.f32.mrf.mxu0  ;;  %v26396_v63 = vshrl.u32 %v25884_v62, 16  ;;  %v14349_v16 = vrot.slane %v13949_v42, 2  ;;  %v14343_v42 = vrot.slane %v14341_v45, 1 }
 0x542   :  { %19320 = vmatprep.mubr.bf16.mxu0 %v14166_v6  ;;  %19332 = vmatprep.subr.bf16.mxu1 %v20051_v10  ;;  %v25934_v17 = vpop.f32.mrf.mxu1 }
 0x543   :  { %v25941_v6 = vpop.f32.mrf.mxu0  ;;  %v13987_v1 = vor.u32 %v26396_v63, %v13983_v19  ;;  %v14350_v9 = vor.u32 %v14349_v16, %v14348_v40  ;;  %v14170_v19 = vsel %vm2789_vm5, %v14167_v8, %v14169_v47  ;;  %v14347_v45 = vor.u32 %v14346_v53, %v14343_v42 }
 0x544   :  { %19293 = vmatmul.mubr.bf16.gmra.mxu1 %v13976_v54  ;;  %v13991_v54 = vrot.slane %v13989_v48, 1  ;;  %v25947_v36 = vpop.f32.mrf.mxu1 }
 0x545   :  { %19296 = vmatprep.mubr.bf16.mxu1 %v13984_v30  ;;  %19333 = vmatpush3.bf16.msra.mxu1 %v20051_v10  ;;  %v25952_v31 = vpop.f32.mrf.mxu0  ;;  %v14168_v30 = vsel %vm2789_vm5, %v14165_v57, %v14167_v8  ;;  %v20056_v57 = vld [vmem:[%s26336_s4 + $0x210] sm:$0xff]   ;;  %v14351_v16 = vsel %vm2971_vm6, %v14347_v45, %v14350_v9 }
 0x546   :  { %19334 = vmatprep.subr.bf16.mxu1 %v20053_v58  ;;  %v25954_v10 = vpop.f32.mrf.mxu1  ;;  %v13992_v48 = vsel %vm2306_vm4, %v13987_v1, %v13991_v54  ;;  %v14172_v1 = vsel %vm2789_vm5, %v14169_v47, %v14171_v24  ;;  %v14356_v47 = vrot.slane %v13969_v13, 1 }
 0x547   :  { %v25957_v46 = vpop.f32.mrf.mxu0 }
 0x548   :  { %v25961_v63 = vpop.f32.mrf.mxu1 }
 0x549   :  { %19321 = vmatmul.mubr.bf16.gmra.mxu0 %v14168_v30  ;;  %19335 = vmatpush3.bf16.msra.mxu1 %v20053_v58  ;;  %v25967_v40 = vpop.f32.mrf.mxu0  ;;  %v14357_v30 = vrot.slane %v13965_v52, 2 }
 0x54a   :  { %19324 = vmatprep.mubr.bf16.mxu0 %v14170_v19  ;;  %19336 = vmatprep.subr.bf16.mxu1 %v20055_v55  ;;  %v25972_v58 = vpop.f32.mrf.mxu1  ;;  %v14352_v19 = vrot.slane %v13961_v61, 1  ;;  %v26861_v61 = vshrl.u32 %v25857_v59, 16 }
 0x54b   :  { %v25970_v8 = vpop.f32.mrf.mxu0  ;;  %26854 = vst [vmem:[#allocation65_spill] sm:$0xff] %v25972_v58 }
 0x54c   :  { %19297 = vmatmul.mubr.bf16.gmra.mxu1 %v13992_v48  ;;  %v25980_v42 = vpop.f32.mrf.mxu1  ;;  %v14353_v48 = vrot.slane %v13957_v32, 2  ;;  %v14360_v29 = vrot.slane %v26861_v61, 1 }
 0x54d   :  { %19337 = vmatpush3.bf16.msra.mxu1 %v20055_v55  ;;  %19344 = vmatprep.mubr.bf16.mxu1 %v14351_v16  ;;  %v25978_v54 = vpop.f32.mrf.mxu0  ;;  %26855 = vst [vmem:[#allocation50_spill] sm:$0xff] %v25980_v42  ;;  %v20058_v55 = vld [vmem:[%s26336_s4 + $0x200] sm:$0xff]  }
 0x54e   :  { %19338 = vmatprep.subr.bf16.mxu1 %v20056_v57  ;;  %v25995_v45 = vpop.f32.mrf.mxu1  ;;  %v14354_v16 = vor.u32 %v14353_v48, %v14352_v19 }
 0x54f   :  { %v25985_v53 = vpop.f32.mrf.mxu0  ;;  %26857 = vst [vmem:[#allocation38_spill] sm:$0xff] %v25995_v45 }
 0x550   :  { %26856 = vst [vmem:[#allocation37_spill] sm:$0xff] %v25985_v53  ;;  %v25999_v13 = vpop.f32.mrf.mxu1  ;;  %v14355_v52 = vsel %vm2971_vm6, %v14350_v9, %v14354_v16  ;;  %v26862_v53 = vshll.u32 %v25857_v59, 16 }
 0x551   :  { %19325 = vmatmul.mubr.bf16.gmra.mxu0 %v14172_v1  ;;  %19339 = vmatpush3.bf16.msra.mxu1 %v20056_v57  ;;  %v25997_v24 = vpop.f32.mrf.mxu0  ;;  %v14358_v57 = vor.u32 %v14357_v30, %v14356_v47  ;;  %v20059_v1 = vld [vmem:[#allocation2 + $0xa8] ss:$0 sps:$4 sm:$0x33]   ;;  %26859 = vst [vmem:[#allocation25_spill] sm:$0xff] %v25999_v13  ;;  %v26863_v47 = vshrl.u32 %v25884_v62, 16  ;;  %v26864_v30 = vshll.u32 %v25884_v62, 16 }
 0x552   :  { %19340 = vmatprep.subr.bf16.mxu1 %v20057_v60  ;;  %26858 = vst [vmem:[#allocation68_spill] sm:$0xff] %v25997_v24  ;;  %v14361_v24 = vrot.slane %v26862_v53, 2  ;;  %v14369_v48 = vshrl.u32 %v20059_v1, 16 }
 0x553   :  { %v26001_v38 = vpop.f32.mrf.mxu0  ;;  %v14365_v19 = vrot.slane %v26864_v30, 2 }
 0x554   :  { %26860 = vst [vmem:[#allocation40_spill] sm:$0xff] %v26001_v38  ;;  %v14372_v38 = vshll.u32 %v20059_v1, 16  ;;  %v14362_v45 = vor.u32 %v14361_v24, %v14360_v29 }
 0x555   :  { %19341 = vmatpush3.bf16.msra.mxu1 %v20057_v60  ;;  %v14359_v60 = vsel %vm2971_vm6, %v14354_v16, %v14358_v57  ;;  %v26013_v13 = vpop.f32.mrf.mxu0  ;;  %v14371_v16 = vrot.slane %v14369_v48, 1 }
 0x556   :  { %19342 = vmatprep.subr.bf16.mxu1 %v20058_v55  ;;  %26865 = vst [vmem:[#allocation39_spill] sm:$0xff] %v26013_v13  ;;  %v14374_v43 = vrot.slane %v14372_v38, 2  ;;  %v14363_v58 = vsel %vm2971_vm6, %v14358_v57, %v14362_v45 }
 0x558   :  { %v14375_v1 = vor.u32 %v14374_v43, %v14371_v16 }
 0x559   :  { %19343 = vmatpush3.bf16.msra.mxu1 %v20058_v55  ;;  %v14364_v55 = vrot.slane %v26863_v47, 1 }
 0x55a   :  { %v19010_v32 = vpop.f32.mrf.mxu1 }
 0x55c   :  { %19345 = vmatmul.mubr.bf16.vlgmr.msra.gmra.mxu1 %v14355_v52  ;;  %v11771_v9 = vpop.f32.mrf.mxu1  ;;  %v14366_v52 = vor.u32 %v14365_v19, %v14364_v55 }
 0x55d   :  { %19348 = vmatprep.mubr.bf16.mxu1 %v14359_v60 }
 0x55e   :  { %v19011_v61 = vpop.f32.mrf.mxu1  ;;  %v14367_v62 = vsel %vm2971_vm6, %v14362_v45, %v14366_v52  ;;  %v14376_v38 = vsel %vm2971_vm6, %v14366_v52, %v14375_v1  ;;  %v10890_v52 = vadd.f32 %v25755_v50, %v25621_v28  ;;  %v10882_v1 = vadd.f32 %v25763_v12, %v25633_v44 }
 0x55f   :  { %v19038_v42 = vpop.f32.mrf.mxu0 }
 0x560   :  { %v11774_v59 = vpop.f32.mrf.mxu1 }
 0x561   :  { %v12032_v53 = vpop.f32.mrf.mxu0 }
 0x562   :  { %v26016_v47 = vpop.f32.mrf.mxu1 }
 0x563   :  { %v19039_v60 = vpop.f32.mrf.mxu0 }
 0x564   :  { %19349 = vmatmul.mubr.bf16.gmra.mxu1 %v14363_v58  ;;  %v26019_v30 = vpop.f32.mrf.mxu1 }
 0x565   :  { %19352 = vmatprep.mubr.bf16.mxu1 %v14367_v62  ;;  %v12035_v13 = vpop.f32.mrf.mxu0 }
 0x566   :  { %v26021_v24 = vpop.f32.mrf.mxu1 }
 0x567   :  { %v26023_v29 = vpop.f32.mrf.mxu0 }
 0x568   :  { %v26026_v55 = vpop.f32.mrf.mxu1 }
 0x569   :  { %v26028_v57 = vpop.f32.mrf.mxu0 }
 0x56a   :  { %v26032_v45 = vpop.f32.mrf.mxu1 }
 0x56b   :  { %v26030_v58 = vpop.f32.mrf.mxu0  ;;  %26866 = vst [vmem:[#allocation69_spill] sm:$0xff] %v26032_v45  ;;  %v11390_v45 = vadd.f32 %v25889_v39, %v25761_v3 }
 0x56c   :  { %19353 = vmatmul.mubr.bf16.gmra.mxu1 %v14376_v38  ;;  %v26036_v43 = vpop.f32.mrf.mxu1  ;;  %v11120_v38 = vadd.f32 %v25783_v34, %v10890_v52  ;;  %v10906_v52 = vadd.f32 %v25794_v25, %v25672_v21  ;;  %v11394_v21 = vadd.f32 %v25934_v17, %v25803_v20 }
 0x56d   :  { %v26034_v19 = vpop.f32.mrf.mxu0  ;;  %26868 = vst [vmem:[#allocation54_spill] sm:$0xff] %v26036_v43  ;;  %v11559_v28 = vadd.f32 %v25919_v15, %v11390_v45 }
 0x56e   :  { %26867 = vst [vmem:[#allocation49_spill] sm:$0xff] %v26034_v19  ;;  %v26040_v16 = vpop.f32.mrf.mxu1 }
 0x56f   :  { %v26038_v48 = vpop.f32.mrf.mxu0  ;;  %26870 = vst [vmem:[#allocation67_spill] sm:$0xff] %v26040_v16  ;;  %v11391_v16 = vadd.f32 %v25910_v14, %v11120_v38  ;;  %v11820_v34 = vadd.f32 %v19010_v32, %v11559_v28  ;;  %v10922_v32 = vadd.f32 %v25860_v0, %v25727_v33 }
 0x570   :  { %26869 = vst [vmem:[#allocation58_spill] sm:$0xff] %v26038_v48  ;;  %v26051_v19 = vpop.f32.mrf.mxu1  ;;  %v11118_v48 = vadd.f32 %v25786_v5, %v10882_v1  ;;  %v10898_v5 = vadd.f32 %v25805_v26, %v25684_v7 }
 0x571   :  { %v26042_v62 = vpop.f32.mrf.mxu0  ;;  %v11560_v3 = vadd.f32 %v25941_v6, %v11391_v16  ;;  %v12081_v45 = vadd.f32 %v19038_v42, %v11820_v34  ;;  %v10914_v42 = vadd.f32 %v25877_v49, %v25744_v37 }
 0x572   :  { %26871 = vst [vmem:[#allocation70_spill] sm:$0xff] %v26042_v62  ;;  %v11388_v62 = vadd.f32 %v25898_v27, %v25778_v41  ;;  %v11389_v44 = vadd.f32 %v25923_v4, %v11118_v48  ;;  %v11122_v6 = vadd.f32 %v25830_v23, %v10898_v5 }
 0x573   :  { %v26053_v43 = vpop.f32.mrf.mxu0  ;;  %v11821_v15 = vadd.f32 %v19011_v61, %v11560_v3 }
 0x574   :  { %v11557_v12 = vadd.f32 %v25930_v35, %v11388_v62  ;;  %v11558_v27 = vadd.f32 %v25952_v31, %v11389_v44  ;;  %v11124_v35 = vadd.f32 %v25824_v18, %v10906_v52  ;;  %v11392_v18 = vadd.f32 %v25947_v36, %v25819_v2 }
 0x575   :  { %v26067_v41 = vpop.f32.mrf.mxu0  ;;  %v12082_v48 = vadd.f32 %v19039_v60, %v11821_v15  ;;  %v11393_v60 = vadd.f32 %v25961_v63, %v11122_v6 }
 0x576   :  { %v11818_v14 = vadd.f32 %v11771_v9, %v11557_v12  ;;  %v11819_v7 = vadd.f32 %v11774_v59, %v11558_v27  ;;  %v11395_v23 = vadd.f32 %v25954_v10, %v11124_v35  ;;  %v11563_v9 = vadd.f32 %v25957_v46, %v11394_v21  ;;  %v26872_v12 = vld [vmem:[#allocation65_spill] sm:$0xff]  ;;  %v26873_v27 = vld [vmem:[#allocation63_spill] sm:$0xff] }
 0x577   :  { %v11561_v62 = vadd.f32 %v25967_v40, %v11392_v18  ;;  %v11562_v38 = vadd.f32 %v25978_v54, %v11393_v60  ;;  %v11398_v3 = vadd.f32 %v26872_v12, %v25845_v11  ;;  %v26876_v11 = vld [vmem:[#allocation37_spill] sm:$0xff] }
 0x578   :  { %v12079_v26 = vadd.f32 %v12032_v53, %v11818_v14  ;;  %v12080_v0 = vadd.f32 %v12035_v13, %v11819_v7  ;;  %v11128_v53 = vadd.f32 %v25886_v22, %v10922_v32  ;;  %v11564_v37 = vadd.f32 %v25970_v8, %v11395_v23  ;;  %v26874_v14 = vld [vmem:[#allocation50_spill] sm:$0xff]  ;;  %v26881_v23 = vld [vmem:[#allocation69_spill] sm:$0xff] }
 0x579   :  { %v11824_v2 = vadd.f32 %v26016_v47, %v11563_v9  ;;  %v11126_v13 = vadd.f32 %v25906_v51, %v10914_v42  ;;  %v11822_v28 = vadd.f32 %v26019_v30, %v11561_v62  ;;  %v11823_v51 = vadd.f32 %v26026_v55, %v11562_v38  ;;  %v26877_v55 = vld [vmem:[#allocation49_spill] sm:$0xff]  ;;  %v26884_v62 = vld [vmem:[#allocation67_spill] sm:$0xff] }
 0x57a   :  { %v19066_v50 = vpop.f32.mrf.mxu1  ;;  %v11825_v22 = vadd.f32 %v26021_v24, %v11564_v37  ;;  %v11396_v15 = vadd.f32 %v26874_v14, %v26873_v27  ;;  %v11567_v35 = vadd.f32 %v26876_v11, %v11398_v3 }
 0x57b   :  { %v12261_v16 = vadd.f32 %v19066_v50, %v12081_v45  ;;  %v12085_v40 = vadd.f32 %v26023_v29, %v11824_v2  ;;  %v12083_v54 = vadd.f32 %v26028_v57, %v11822_v28  ;;  %v26875_v45 = vld [vmem:[#allocation38_spill] sm:$0xff]  ;;  %v12084_v6 = vadd.f32 %v26877_v55, %v11823_v51 }
 0x57c   :  { %v12212_v39 = vpop.f32.mrf.mxu1  ;;  %v12086_v30 = vadd.f32 %v26030_v58, %v11825_v22  ;;  %v11828_v9 = vadd.f32 %v26881_v23, %v11567_v35  ;;  %v26885_v2 = vld [vmem:[#allocation58_spill] sm:$0xff] }
 0x57d   :  { %v12259_v61 = vadd.f32 %v12212_v39, %v12079_v26  ;;  %v26878_v26 = vld [vmem:[#allocation25_spill] sm:$0xff]  ;;  %v26887_v22 = vld [vmem:[#allocation70_spill] sm:$0xff] }
 0x57e   :  { %v19067_v4 = vpop.f32.mrf.mxu1 }
 0x57f   :  { %v19094_v25 = vpop.f32.mrf.mxu0  ;;  %v12262_v20 = vadd.f32 %v19067_v4, %v12082_v48  ;;  %v11399_v4 = vadd.f32 %v26875_v45, %v11128_v53  ;;  %v11397_v48 = vadd.f32 %v26878_v26, %v11126_v13  ;;  %v26883_v53 = vld [vmem:[#allocation54_spill] sm:$0xff] }
 0x580   :  { %v12215_v31 = vpop.f32.mrf.mxu1  ;;  %v12465_v17 = vadd.f32 %v19094_v25, %v12261_v16 }
 0x581   :  { %v12416_v33 = vpop.f32.mrf.mxu0  ;;  %v12260_v36 = vadd.f32 %v12215_v31, %v12080_v0  ;;  %v26880_v31 = vld [vmem:[#allocation40_spill] sm:$0xff] }
 0x582   :  { %v19070_v59 = vpop.f32.mrf.mxu1  ;;  %v12463_v10 = vadd.f32 %v12416_v33, %v12259_v61  ;;  %v12477_v8 = vadd.f32 %v25604_v56, %v12465_v17  ;;  %v11568_v42 = vadd.f32 %v26880_v31, %v11399_v4  ;;  %v26882_v17 = vld [vmem:[#allocation39_spill] sm:$0xff] }
 0x583   :  { %v19095_v49 = vpop.f32.mrf.mxu0  ;;  %v12265_v39 = vadd.f32 %v19070_v59, %v12085_v40  ;;  %v11566_v59 = vadd.f32 %v26882_v17, %v11397_v48 }
 0x584   :  { %v12466_v46 = vadd.f32 %v19095_v49, %v12262_v20  ;;  %v12228_v1 = vpop.f32.mrf.mxu1  ;;  %v12475_v24 = vadd.f32 %v25604_v56, %v12463_v10  ;;  %v11829_v37 = vadd.f32 %v26884_v62, %v11568_v42  ;;  %v26117_v10 = vld [vmem:[%s26337_s5] ss:$0 sm:$0xff]  ;;  %s20379_s5 = smov [#allocation3]  }
 0x585   :  { %v12419_v63 = vpop.f32.mrf.mxu0  ;;  %v12263_v58 = vadd.f32 %v12228_v1, %v12083_v54  ;;  %26886 = vst [vmem:[#allocation43_spill] sm:$0xff] %v26117_v10  ;;  %v11827_v28 = vadd.f32 %v26051_v19, %v11566_v59  ;;  %s14601_s10 = sshll.u32 %s20379_s5, 4  ;;  %s14602_s10 = int_to_ptr.vmem [resolvable:$true] %s14601_s10 }
 0x586   :  { %v12478_v50 = vadd.f32 %v25604_v56, %v12466_v46  ;;  %v12464_v47 = vadd.f32 %v12419_v63, %v12260_v36  ;;  %v19071_v44 = vpop.f32.mrf.mxu1  ;;  %v12089_v36 = vadd.f32 %v26885_v2, %v11828_v9  ;;  %v12090_v40 = vadd.f32 %v26053_v43, %v11829_v37  ;;  %s20356_s11 = scalar_lea.vmem %s14602_s10, 4608  ;;  %p20361_p1 = scmp.lt.s32.totalorder %s14602_s10, %s14602_s10 }
 0x587   :  { %v19098_v34 = vpop.f32.mrf.mxu0  ;;  %v12266_v21 = vadd.f32 %v19071_v44, %v12086_v30  ;;  %v12088_v3 = vadd.f32 %v26067_v41, %v11827_v28  ;;  %p20357_p0 = scmp.ne.s32.totalorder %s14602_s10, %s20356_s11  ;;  %p20362_p2 = scmp.lt.s32.totalorder %s20356_s11, %s20356_s11 }
 0x588   :  { %v16822_v29 = vpack.c.bf16 %v12478_v50, %v12477_v8  ;;  %v12476_v52 = vadd.f32 %v25604_v56, %v12464_v47  ;;  %v12231_v5 = vpop.f32.mrf.mxu1  ;;  %v12469_v25 = vadd.f32 %v19098_v34, %v12265_v39  ;;  %v26879_v56 = vld [vmem:[#allocation68_spill] sm:$0xff] }
 0x589   :  { %v12432_v57 = vpop.f32.mrf.mxu0  ;;  %v11565_v16 = vadd.f32 %v26879_v56, %v11396_v15  ;;  %v12264_v33 = vadd.f32 %v12231_v5, %v12084_v6  ;;  %p20363_p3 = por %p20362_p2, %p20361_p1 }
 0x58a   :  { %16933 = vst [vmem:[#allocation3 + $0xc8] sm:$0xff] %v16822_v29   ;;  %v16817_v32 = vpack.c.bf16 %v12476_v52, %v12475_v24  ;;  %v19074_v7 = vpop.f32.mrf.mxu1  ;;  %v12467_v0 = vadd.f32 %v12432_v57, %v12263_v58  ;;  %v12481_v46 = vadd.f32 %v26117_v10, %v12469_v25 }
 0x58b   :  { %v19099_v18 = vpop.f32.mrf.mxu0  ;;  %v11826_v60 = vadd.f32 %v26883_v53, %v11565_v16  ;;  %v12269_v47 = vadd.f32 %v19074_v7, %v12089_v36  ;;  %p20364_p4 = pnand %p20363_p3, %p20357_p0 }
 0x58c   :  { %16932 = vst [vmem:[#allocation3 + $0xc0] sm:$0xff] %v16817_v32   ;;  %v12470_v61 = vadd.f32 %v19099_v18, %v12266_v21  ;;  %v12244_v20 = vpop.f32.mrf.mxu1  ;;  %v12479_v50 = vadd.f32 %v26117_v10, %v12467_v0 }
 0x58d   :  { %v12435_v49 = vpop.f32.mrf.mxu0  ;;  %v12087_v63 = vadd.f32 %v26887_v22, %v11826_v60 }
 0x58e   :  { %v12482_v1 = vadd.f32 %v26117_v10, %v12470_v61  ;;  %v12468_v13 = vadd.f32 %v12435_v49, %v12264_v33  ;;  %v19075_v38 = vpop.f32.mrf.mxu1 }
 0x58f   :  { %v19102_v8 = vpop.f32.mrf.mxu0  ;;  %v12267_v30 = vadd.f32 %v12244_v20, %v12087_v63  ;;  %v12270_v24 = vadd.f32 %v19075_v38, %v12090_v40 }
 0x590   :  { %v16832_v44 = vpack.c.bf16 %v12482_v1, %v12481_v46  ;;  %v12480_v12 = vadd.f32 %v26117_v10, %v12468_v13  ;;  %v12247_v51 = vpop.f32.mrf.mxu1  ;;  %v12473_v19 = vadd.f32 %v19102_v8, %v12269_v47 }
 0x591   :  { %v12448_v54 = vpop.f32.mrf.mxu0  ;;  %v12268_v29 = vadd.f32 %v12247_v51, %v12088_v3 }
 0x592   :  { %16935 = vst [vmem:[#allocation3 + $0xd8] sm:$0xff] %v16832_v44   ;;  %v16827_v34 = vpack.c.bf16 %v12480_v12, %v12479_v50  ;;  %v12471_v43 = vadd.f32 %v12448_v54, %v12267_v30  ;;  %v12485_v27 = vadd.f32 %v26117_v10, %v12473_v19 }
 0x593   :  { %v19103_v39 = vpop.f32.mrf.mxu0 }
 0x594   :  { %16934 = vst [vmem:[#allocation3 + $0xd0] sm:$0xff] %v16827_v34   ;;  %v12474_v52 = vadd.f32 %v19103_v39, %v12270_v24  ;;  %v12483_v41 = vadd.f32 %v26117_v10, %v12471_v43 }
 0x595   :  { %v12451_v5 = vpop.f32.mrf.mxu0 }
 0x596   :  { %v12486_v14 = vadd.f32 %v26117_v10, %v12474_v52  ;;  %v12472_v15 = vadd.f32 %v12451_v5, %v12268_v29 }
 0x598   :  { %v16842_v45 = vpack.c.bf16 %v12486_v14, %v12485_v27  ;;  %v12484_v4 = vadd.f32 %v26117_v10, %v12472_v15 }
 0x59a   :  { %16937 = vst [vmem:[#allocation3 + $0xe8] sm:$0xff] %v16842_v45   ;;  %v16837_v11 = vpack.c.bf16 %v12484_v4, %v12483_v41  ;;  %v19122_v35 = vpop.f32.mrf.mxu1 }
 0x59c   :  { %16936 = vst [vmem:[#allocation3 + $0xe0] sm:$0xff] %v16837_v11   ;;  %v12727_v55 = vpop.f32.mrf.mxu1 }
 0x59e   :  { %v26131_v6 = vpop.f32.mrf.mxu1 }
 0x59f   :  { %v19150_v57 = vpop.f32.mrf.mxu0 }
 0x5a0   :  { %v12936_v58 = vadd.f32 %v19150_v57, %v19122_v35  ;;  %v26133_v32 = vpop.f32.mrf.mxu1 }
 0x5a1   :  { %v12927_v21 = vpop.f32.mrf.mxu0 }
 0x5a2   :  { %v12928_v25 = vadd.f32 %v12927_v21, %v12727_v55  ;;  %v19126_v7 = vpop.f32.mrf.mxu1 }
 0x5a3   :  { %v26135_v26 = vpop.f32.mrf.mxu0 }
 0x5a4   :  { %v12743_v48 = vpop.f32.mrf.mxu1 }
 0x5a5   :  { %v26137_v56 = vpop.f32.mrf.mxu0 }
 0x5a6   :  { %v26139_v16 = vpop.f32.mrf.mxu1 }
 0x5a7   :  { %v19154_v31 = vpop.f32.mrf.mxu0 }
 0x5a8   :  { %v12952_v42 = vadd.f32 %v19154_v31, %v19126_v7  ;;  %v26141_v18 = vpop.f32.mrf.mxu1 }
 0x5a9   :  { %v12943_v23 = vpop.f32.mrf.mxu0 }
 0x5aa   :  { %v12944_v9 = vadd.f32 %v12943_v23, %v12743_v48  ;;  %v19130_v0 = vpop.f32.mrf.mxu1 }
 0x5ab   :  { %v26143_v33 = vpop.f32.mrf.mxu0 }
 0x5ac   :  { %v12759_v17 = vpop.f32.mrf.mxu1 }
 0x5ad   :  { %v26145_v61 = vpop.f32.mrf.mxu0 }
 0x5ae   :  { %v26147_v62 = vpop.f32.mrf.mxu1 }
 0x5af   :  { %v19158_v20 = vpop.f32.mrf.mxu0 }
 0x5b0   :  { %v12968_v59 = vadd.f32 %v19158_v20, %v19130_v0  ;;  %v26149_v37 = vpop.f32.mrf.mxu1 }
 0x5b1   :  { %v12959_v53 = vpop.f32.mrf.mxu0 }
 0x5b2   :  { %v12960_v60 = vadd.f32 %v12959_v53, %v12759_v17 }
 0x5b3   :  { %v26151_v49 = vpop.f32.mrf.mxu0 }
 0x5b5   :  { %v26155_v1 = vpop.f32.mrf.mxu0 }
 0x5ba   :  { %v19178_v2 = vpop.f32.mrf.mxu1 }
 0x5bb   :  { %v26153_v36 = vadd.f32 %v19178_v2, %v12936_v58 }
 0x5bc   :  { %v13119_v46 = vpop.f32.mrf.mxu1 }
 0x5bd   :  { %v26157_v13 = vadd.f32 %v13119_v46, %v12928_v25 }
 0x5be   :  { %v26159_v38 = vpop.f32.mrf.mxu1 }
 0x5bf   :  { %v26161_v28 = vpop.f32.mrf.mxu0 }
 0x5c0   :  { %v26163_v22 = vpop.f32.mrf.mxu1 }
 0x5c1   :  { %v26165_v63 = vpop.f32.mrf.mxu0 }
 0x5c3   :  { %v19182_v40 = vpop.f32.mrf.mxu1  ;;  %v26169_v50 = vpop.f32.mrf.mxu0 }
 0x5c4   :  { %v26167_v8 = vadd.f32 %v19182_v40, %v12952_v42 }
 0x5c5   :  { %v13135_v47 = vpop.f32.mrf.mxu1  ;;  %v26173_v12 = vpop.f32.mrf.mxu0 }
 0x5c6   :  { %v26171_v44 = vadd.f32 %v13135_v47, %v12944_v9 }
 0x5c7   :  { %v26175_v3 = vpop.f32.mrf.mxu1 }
 0x5c8   :  { %v26177_v51 = vpop.f32.mrf.mxu0 }
 0x5c9   :  { %v26179_v54 = vpop.f32.mrf.mxu1 }
 0x5ca   :  { %v26181_v30 = vpop.f32.mrf.mxu0 }
 0x5cc   :  { %v19186_v34 = vpop.f32.mrf.mxu1  ;;  %v26185_v19 = vpop.f32.mrf.mxu0 }
 0x5cd   :  { %v26183_v24 = vadd.f32 %v19186_v34, %v12968_v59 }
 0x5ce   :  { %v13151_v39 = vpop.f32.mrf.mxu1  ;;  %v26189_v43 = vpop.f32.mrf.mxu0 }
 0x5cf   :  { %v26187_v29 = vadd.f32 %v13151_v39, %v12960_v60 }
 0x5d0   :  { %v26191_v52 = vpop.f32.mrf.mxu0  ;;  %v26193_v5 = vpop.f32.mrf.mxu1 }
 0x5d1   :  { %26888 = vst [vmem:[#allocation56_spill] sm:$0xff] %v26187_v29 }
 0x5d2   :  { %v26195_v27 = vpop.f32.mrf.mxu0  ;;  %v26197_v14 = vpop.f32.mrf.mxu1 }
 0x5d3   :  { %26889 = vst [vmem:[#allocation45_spill] sm:$0xff] %v26195_v27  ;;  %26890 = vst [vmem:[#allocation62_spill] sm:$0xff] %v26197_v14  ;;  %v12931_v14 = vadd.f32 %v26137_v56, %v26133_v32 }
 0x5d4   :  { %v26199_v15 = vpop.f32.mrf.mxu0 }
 0x5d5   :  { %26891 = vst [vmem:[#allocation8_spill] sm:$0xff] %v26199_v15 }
 0x5d6   :  { %v26201_v4 = vpop.f32.mrf.mxu0 }
 0x5d7   :  { %26892 = vst [vmem:[#allocation20_spill] sm:$0xff] %v26201_v4 }
 0x5dc   :  { %v19234_v41 = vpop.f32.mrf.mxu1 }
 0x5de   :  { %v13559_v45 = vpop.f32.mrf.mxu1 }
 0x5e0   :  { %v19235_v11 = vpop.f32.mrf.mxu1 }
 0x5e1   :  { %v19262_v35 = vpop.f32.mrf.mxu0 }
 0x5e2   :  { %v13562_v55 = vpop.f32.mrf.mxu1 }
 0x5e3   :  { %v13820_v57 = vpop.f32.mrf.mxu0 }
 0x5e4   :  { %v26203_v58 = vpop.f32.mrf.mxu1 }
 0x5e5   :  { %v19263_v21 = vpop.f32.mrf.mxu0 }
 0x5e6   :  { %v26205_v25 = vpop.f32.mrf.mxu1 }
 0x5e7   :  { %v13823_v7 = vpop.f32.mrf.mxu0 }
 0x5e8   :  { %v26207_v48 = vpop.f32.mrf.mxu1 }
 0x5e9   :  { %v26209_v31 = vpop.f32.mrf.mxu0 }
 0x5ea   :  { %v26211_v42 = vpop.f32.mrf.mxu1 }
 0x5eb   :  { %v26213_v23 = vpop.f32.mrf.mxu0 }
 0x5ec   :  { %v26217_v0 = vpop.f32.mrf.mxu1 }
 0x5ed   :  { %v26215_v9 = vpop.f32.mrf.mxu0  ;;  %26893 = vst [vmem:[#allocation47_spill] sm:$0xff] %v26217_v0 }
 0x5ee   :  { %v26221_v17 = vpop.f32.mrf.mxu1 }
 0x5ef   :  { %v26219_v20 = vpop.f32.mrf.mxu0  ;;  %26895 = vst [vmem:[#allocation44_spill] sm:$0xff] %v26221_v17 }
 0x5f0   :  { %26894 = vst [vmem:[#allocation41_spill] sm:$0xff] %v26219_v20  ;;  %v26225_v53 = vpop.f32.mrf.mxu1 }
 0x5f1   :  { %v26223_v59 = vpop.f32.mrf.mxu0  ;;  %26897 = vst [vmem:[#allocation9_spill] sm:$0xff] %v26225_v53 }
 0x5f2   :  { %26896 = vst [vmem:[#allocation53_spill] sm:$0xff] %v26223_v59  ;;  %v26229_v2 = vpop.f32.mrf.mxu1 }
 0x5f3   :  { %v26227_v60 = vpop.f32.mrf.mxu0  ;;  %26899 = vst [vmem:[#allocation17_spill] sm:$0xff] %v26229_v2 }
 0x5f4   :  { %26898 = vst [vmem:[#allocation19_spill] sm:$0xff] %v26227_v60 }
 0x5f5   :  { %v26231_v46 = vpop.f32.mrf.mxu0 }
 0x5f6   :  { %26900 = vst [vmem:[#allocation21_spill] sm:$0xff] %v26231_v46 }
 0x5f7   :  { %v26233_v34 = vpop.f32.mrf.mxu0 }
 0x5f8   :  { %26901 = vst [vmem:[#allocation42_spill] sm:$0xff] %v26233_v34  ;;  %v12939_v34 = vadd.f32 %v26135_v26, %v26131_v6 }
 0x5fc   :  { %v19290_v40 = vpop.f32.mrf.mxu1 }
 0x5fe   :  { %v14081_v47 = vpop.f32.mrf.mxu1 }
 0x600   :  { %v19291_v39 = vpop.f32.mrf.mxu1 }
 0x601   :  { %v19318_v4 = vpop.f32.mrf.mxu0 }
 0x602   :  { %v14084_v0 = vpop.f32.mrf.mxu1 }
 0x603   :  { %v14261_v17 = vpop.f32.mrf.mxu0 }
 0x604   :  { %v26235_v15 = vpop.f32.mrf.mxu1 }
 0x605   :  { %v19319_v53 = vpop.f32.mrf.mxu0 }
 0x606   :  { %v26237_v27 = vpop.f32.mrf.mxu1 }
 0x607   :  { %26902 = vst [vmem:[#allocation52_spill] sm:$0xff] %v26237_v27  ;;  %v14264_v2 = vpop.f32.mrf.mxu0  ;;  %v13169_v27 = vadd.f32 %v26159_v38, %v12939_v34 }
 0x608   :  { %v26239_v59 = vpop.f32.mrf.mxu1 }
 0x609   :  { %26903 = vst [vmem:[#allocation46_spill] sm:$0xff] %v26239_v59  ;;  %v26245_v46 = vpop.f32.mrf.mxu0  ;;  %v13439_v59 = vadd.f32 %v26161_v28, %v26153_v36  ;;  %v12955_v36 = vadd.f32 %v26143_v33, %v26139_v16  ;;  %v12947_v28 = vadd.f32 %v26145_v61, %v26141_v18  ;;  %v13443_v16 = vadd.f32 %v26177_v51, %v26167_v8 }
 0x60a   :  { %v26241_v60 = vpop.f32.mrf.mxu1  ;;  %26906 = vst [vmem:[#allocation34_spill] sm:$0xff] %v26245_v46  ;;  %v13440_v46 = vadd.f32 %v26169_v50, %v13169_v27  ;;  %v12971_v50 = vadd.f32 %v26151_v49, %v26147_v62 }
 0x60b   :  { %26904 = vst [vmem:[#allocation26_spill] sm:$0xff] %v26241_v60  ;;  %v26256_v10 = vpop.f32.mrf.mxu0  ;;  %v13608_v6 = vadd.f32 %v19234_v41, %v13439_v59  ;;  %v13612_v49 = vadd.f32 %v26203_v58, %v13443_v16 }
 0x60c   :  { %v26243_v29 = vpop.f32.mrf.mxu1  ;;  %v13609_v56 = vadd.f32 %v19235_v11, %v13440_v46  ;;  %v13441_v11 = vadd.f32 %v26181_v30, %v26171_v44 }
 0x60d   :  { %26905 = vst [vmem:[#allocation61_spill] sm:$0xff] %v26243_v29  ;;  %v13167_v29 = vadd.f32 %v26163_v22, %v12931_v14  ;;  %v13869_v38 = vadd.f32 %v19262_v35, %v13608_v6  ;;  %v19323_v34 = vpop.f32.mrf.mxu0  ;;  %v13873_v44 = vadd.f32 %v26209_v31, %v13612_v49 }
 0x60e   :  { %v26247_v20 = vpop.f32.mrf.mxu1 }
 0x60f   :  { %26907 = vst [vmem:[#allocation23_spill] sm:$0xff] %v26247_v20  ;;  %v13437_v20 = vadd.f32 %v26165_v63, %v26157_v13  ;;  %v13438_v26 = vadd.f32 %v26173_v12, %v13167_v29  ;;  %v13870_v13 = vadd.f32 %v19263_v21, %v13609_v56  ;;  %v14130_v63 = vadd.f32 %v19290_v40, %v13869_v38  ;;  %v26911_v40 = vld [vmem:[#allocation41_spill] sm:$0xff]  ;;  %v26915_v56 = vld [vmem:[#allocation56_spill] sm:$0xff] }
 0x610   :  { %v26258_v60 = vpop.f32.mrf.mxu1  ;;  %v12963_v12 = vadd.f32 %v26155_v1, %v26149_v37  ;;  %v13173_v29 = vadd.f32 %v26175_v3, %v12955_v36  ;;  %v14280_v37 = vpop.f32.mrf.mxu0  ;;  %v26916_v38 = vld [vmem:[#allocation45_spill] sm:$0xff] }
 0x611   :  { %26908 = vst [vmem:[#allocation11_spill] sm:$0xff] %v26258_v60  ;;  %v13606_v32 = vadd.f32 %v13559_v45, %v13437_v20  ;;  %v13607_v22 = vadd.f32 %v13562_v55, %v13438_v26  ;;  %v14131_v27 = vadd.f32 %v19291_v39, %v13870_v13  ;;  %v14310_v41 = vadd.f32 %v19318_v4, %v14130_v63  ;;  %v26914_v6 = vld [vmem:[#allocation34_spill] sm:$0xff] }
 0x612   :  { %v26269_v60 = vpop.f32.mrf.mxu1  ;;  %v13171_v45 = vadd.f32 %v26179_v54, %v12947_v28  ;;  %v13444_v62 = vadd.f32 %v26185_v19, %v13173_v29  ;;  %v13610_v4 = vadd.f32 %v26205_v25, %v13441_v11  ;;  %v14134_v25 = vadd.f32 %v26235_v15, %v13873_v44  ;;  %v26917_v28 = vld [vmem:[#allocation8_spill] sm:$0xff]  ;;  %v26919_v63 = vld [vmem:[#allocation26_spill] sm:$0xff] }
 0x613   :  { %v13867_v14 = vadd.f32 %v13820_v57, %v13606_v32  ;;  %v13868_v18 = vadd.f32 %v13823_v7, %v13607_v22  ;;  %v14311_v55 = vadd.f32 %v19319_v53, %v14131_v27  ;;  %v13177_v57 = vadd.f32 %v26193_v5, %v12971_v50  ;;  %v19326_v5 = vpop.f32.mrf.mxu0  ;;  %v26920_v27 = vld [vmem:[#allocation20_spill] sm:$0xff] }
 0x614   :  { %v13442_v51 = vadd.f32 %v26189_v43, %v13171_v45  ;;  %v13613_v54 = vadd.f32 %v26207_v48, %v13444_v62  ;;  %v13447_v7 = vadd.f32 %v26191_v52, %v26183_v24  ;;  %v13871_v20 = vadd.f32 %v26213_v23, %v13610_v4  ;;  %v26909_v48 = vld [vmem:[#allocation43_spill] sm:$0xff]  ;;  %v26912_v24 = vld [vmem:[#allocation52_spill] sm:$0xff]  ;;  %v26922_v62 = vld [vmem:[#allocation9_spill] sm:$0xff] }
 0x615   :  { %v14128_v61 = vadd.f32 %v14081_v47, %v13867_v14  ;;  %v14129_v3 = vadd.f32 %v14084_v0, %v13868_v18  ;;  %v13445_v36 = vadd.f32 %v26916_v38, %v26915_v56  ;;  %v13448_v22 = vadd.f32 %v26917_v28, %v13177_v57  ;;  %v26918_v14 = vld [vmem:[#allocation47_spill] sm:$0xff]  ;;  %v26921_v45 = vld [vmem:[#allocation44_spill] sm:$0xff]  ;;  %v26924_v57 = vld [vmem:[#allocation17_spill] sm:$0xff] }
 0x616   :  { %v13611_v0 = vadd.f32 %v26211_v42, %v13442_v51  ;;  %v13874_v43 = vadd.f32 %v26215_v9, %v13613_v54  ;;  %v14132_v52 = vadd.f32 %v26912_v24, %v13871_v20  ;;  %v26913_v42 = vld [vmem:[#allocation46_spill] sm:$0xff]  ;;  %v14314_v9 = vadd.f32 %v26914_v6, %v14134_v25  ;;  %v26926_v54 = vld [vmem:[#allocation21_spill] sm:$0xff] }
 0x617   :  { %v14308_v35 = vadd.f32 %v14261_v17, %v14128_v61  ;;  %v14309_v30 = vadd.f32 %v14264_v2, %v14129_v3  ;;  %v26910_v2 = vld [vmem:[#allocation62_spill] sm:$0xff]  ;;  %v13616_v13 = vadd.f32 %v26918_v14, %v13447_v7  ;;  %v13614_v11 = vadd.f32 %v26921_v45, %v13445_v36  ;;  %v26923_v3 = vld [vmem:[#allocation53_spill] sm:$0xff] }
 0x618   :  { %v13175_v46 = vadd.f32 %v26910_v2, %v12963_v12  ;;  %v13872_v47 = vadd.f32 %v26911_v40, %v13611_v0  ;;  %v14135_v39 = vadd.f32 %v26913_v42, %v13874_v43  ;;  %v14293_v12 = vpop.f32.mrf.mxu0  ;;  %v14312_v16 = vadd.f32 %v26256_v10, %v14132_v52  ;;  %v26925_v10 = vld [vmem:[#allocation19_spill] sm:$0xff]  ;;  %v26928_v43 = vld [vmem:[#allocation42_spill] sm:$0xff] }
 0x619   :  { %v13617_v49 = vadd.f32 %v26922_v62, %v13448_v22 }
 0x61a   :  { %v14133_v50 = vadd.f32 %v26919_v63, %v13872_v47  ;;  %v19327_v44 = vpop.f32.mrf.mxu0 }
 0x61c   :  { %v19346_v33 = vpop.f32.mrf.mxu1  ;;  %v14296_v52 = vpop.f32.mrf.mxu0 }
 0x61d   :  { %v14514_v8 = vadd.f32 %v19346_v33, %v14310_v41  ;;  %v14315_v33 = vadd.f32 %v19323_v34, %v14135_v39  ;;  %v13446_v41 = vadd.f32 %v26920_v27, %v13175_v46  ;;  %v13875_v34 = vadd.f32 %v26925_v10, %v13614_v11 }
 0x61e   :  { %v14465_v1 = vpop.f32.mrf.mxu1 }
 0x61f   :  { %v14512_v19 = vadd.f32 %v14465_v1, %v14308_v35  ;;  %v14526_v59 = vadd.f32 %v26909_v48, %v14514_v8  ;;  %v13877_v35 = vadd.f32 %v26923_v3, %v13616_v13  ;;  %v13615_v4 = vadd.f32 %v26924_v57, %v13446_v41 }
 0x620   :  { %v19347_v21 = vpop.f32.mrf.mxu1 }
 0x621   :  { %v14515_v58 = vadd.f32 %v19347_v21, %v14311_v55  ;;  %v14524_v26 = vadd.f32 %v26909_v48, %v14512_v19  ;;  %v14313_v55 = vadd.f32 %v14280_v37, %v14133_v50  ;;  %v13878_v21 = vadd.f32 %v26926_v54, %v13617_v49  ;;  %v26927_v19 = vld [vmem:[#allocation61_spill] sm:$0xff] }
 0x622   :  { %v14468_v17 = vpop.f32.mrf.mxu1  ;;  %v13876_v37 = vadd.f32 %v26928_v43, %v13615_v4 }
 0x623   :  { %v14527_v31 = vadd.f32 %v26909_v48, %v14515_v58  ;;  %v14513_v53 = vadd.f32 %v14468_v17, %v14309_v30  ;;  %v14138_v58 = vadd.f32 %v26927_v19, %v13877_v35  ;;  %v26929_v17 = vld [vmem:[#allocation23_spill] sm:$0xff] }
 0x624   :  { %v19350_v23 = vpop.f32.mrf.mxu1  ;;  %v14136_v25 = vadd.f32 %v26929_v17, %v13875_v34  ;;  %v14137_v24 = vadd.f32 %v26269_v60, %v13876_v37 }
 0x625   :  { %v16852_v32 = vpack.c.bf16 %v14527_v31, %v14526_v59  ;;  %v14525_v15 = vadd.f32 %v26909_v48, %v14513_v53  ;;  %v14518_v61 = vadd.f32 %v19350_v23, %v14314_v9  ;;  %v26930_v59 = vld [vmem:[#allocation11_spill] sm:$0xff]  ;;  %v14318_v2 = vadd.f32 %v19326_v5, %v14138_v58 }
 0x626   :  { %v14481_v29 = vpop.f32.mrf.mxu1  ;;  %v14139_v31 = vadd.f32 %v26930_v59, %v13878_v21  ;;  %v14316_v39 = vadd.f32 %v14293_v12, %v14136_v25 }
 0x627   :  { %16939 = vst [vmem:[#allocation3 + $0xf8] sm:$0xff] %v16852_v32   ;;  %v16847_v18 = vpack.c.bf16 %v14525_v15, %v14524_v26  ;;  %v14516_v8 = vadd.f32 %v14481_v29, %v14312_v16  ;;  %v14530_v7 = vadd.f32 %v26909_v48, %v14518_v61  ;;  %v14317_v32 = vadd.f32 %v14296_v52, %v14137_v24 }
 0x628   :  { %v19351_v1 = vpop.f32.mrf.mxu1  ;;  %v14319_v23 = vadd.f32 %v19327_v44, %v14139_v31 }
 0x629   :  { %16938 = vst [vmem:[#allocation3 + $0xf0] sm:$0xff] %v16847_v18   ;;  %v14519_v51 = vadd.f32 %v19351_v1, %v14315_v33  ;;  %v14528_v46 = vadd.f32 %v26909_v48, %v14516_v8 }
 0x62a   :  { %v14484_v30 = vpop.f32.mrf.mxu1 }
 0x62b   :  { %v14531_v0 = vadd.f32 %v26909_v48, %v14519_v51  ;;  %v14517_v20 = vadd.f32 %v14484_v30, %v14313_v55 }
 0x62c   :  { %v19354_v53 = vpop.f32.mrf.mxu1 }
 0x62d   :  { %v16862_v40 = vpack.c.bf16 %v14531_v0, %v14530_v7  ;;  %v14529_v47 = vadd.f32 %v26909_v48, %v14517_v20  ;;  %v14522_v9 = vadd.f32 %v19354_v53, %v14318_v2 }
 0x62e   :  { %v14497_v42 = vpop.f32.mrf.mxu1 }
 0x62f   :  { %16941 = vst [vmem:[#allocation3 + $0x108] sm:$0xff] %v16862_v40   ;;  %v16857_v6 = vpack.c.bf16 %v14529_v47, %v14528_v46  ;;  %v14520_v15 = vadd.f32 %v14497_v42, %v14316_v39  ;;  %v14534_v38 = vadd.f32 %v26909_v48, %v14522_v9 }
 0x630   :  { %v19355_v26 = vpop.f32.mrf.mxu1 }
 0x631   :  { %16940 = vst [vmem:[#allocation3 + $0x100] sm:$0xff] %v16857_v6   ;;  %v14523_v56 = vadd.f32 %v19355_v26, %v14319_v23  ;;  %v14532_v60 = vadd.f32 %v26909_v48, %v14520_v15 }
 0x632   :  { %v14500_v5 = vpop.f32.mrf.mxu1 }
 0x633   :  { %v14535_v36 = vadd.f32 %v26909_v48, %v14523_v56  ;;  %v14521_v28 = vadd.f32 %v14500_v5, %v14317_v32 }
 0x635   :  { %v16872_v22 = vpack.c.bf16 %v14535_v36, %v14534_v38  ;;  %v14533_v14 = vadd.f32 %v26909_v48, %v14521_v28 }
 0x637   :  { %16943 = vst [vmem:[#allocation3 + $0x118] sm:$0xff] %v16872_v22   ;;  %v16867_v13 = vpack.c.bf16 %v14533_v14, %v14532_v60 }
 0x639   :  { %16942 = vst [vmem:[#allocation3 + $0x110] sm:$0xff] %v16867_v13  }
 0x63a   :  { %20367 = shalt.err (!%p20364_p4)
}
 0x63b   :  { %s20380_s12 = smov 64   ;;  %s20381_s2 = smov 4  }
 0x63c   :  { %14607 = dma.vmem_to_hbm [thread:$0]  %s14602_s10, 4608, %s26338_s6, [#allocation4], %s20380_s12, %s20380_s12, %s20381_s2  }
 0x63d   :  { %20376 = dma.done.wait [#allocation4], 4608  }
 0x63e   :  { %20377 = vsyncadd [#allocation4], 4294962688 }
 0x63f   :  { %14611 = vsyncpa [#allocation4], 1 }

</bundles_post_ra>
